<compile_context>
chip_gen: v6e
topology: v6e:2x2x1
jax: 0.10.0
libtpu: 0.0.40
codegen_flags: <defaults>
</compile_context>

<pallas_src>
import functools

import jax
import jax.numpy as jnp
from jax.experimental import pallas as pl
from jax.experimental.pallas import tpu as pltpu

BN_EPS = 1e-5
N_BLOCKS = 4


# ---------------------------------------------------------------------------
# Static shape helpers
# ---------------------------------------------------------------------------
def _level_dims(in_channels, num_features, h0, w0):
    """Per-block (H, W, Cin, Cout) at the resolution the block runs at."""
    dims = []
    cin, cout, h, w = in_channels, num_features, h0, w0
    for _ in range(N_BLOCKS):
        dims.append((h, w, cin, cout))
        cin, cout, h, w = cout, cout * 2, h // 2, w // 2
    return tuple(dims)


# ---------------------------------------------------------------------------
# Host-side parameter preparation (done ONCE, outside the forward jit)
# ---------------------------------------------------------------------------
def _flat_conv_weight(w, w_pix):
    """(3, 3, cin, cout) conv weight -> (3*W*cin, W*cout) block-banded matrix.

    Row block dy (size W*cin) maps the dy-row-shifted input slab to the
    output; within it, input lane group xi feeds output lane group x iff
    xi == x + dx - 1 (the eye(k=1-dx) shift), which also encodes the
    width-direction zero padding (out-of-range taps simply have no rows)."""
    blocks = []
    for dy in range(3):
        acc = jnp.zeros((w_pix * w.shape[2], w_pix * w.shape[3]), jnp.float32)
        for dx in range(3):
            shift = jnp.eye(w_pix, k=1 - dx, dtype=jnp.float32)
            acc = acc + jnp.kron(shift, w[dy, dx].astype(jnp.float32))
        blocks.append(acc)
    return jnp.concatenate(blocks, axis=0)


def prepare_params(params, dims):
    """Flatten conv weights / BN params into the lane-dense kernel layout."""
    layers = []
    tmats = []
    for lvl, (_, w_pix, _, cout) in enumerate(dims):
        for (w, b, gamma, beta) in params[lvl]:
            layers.append((
                _flat_conv_weight(w, w_pix),                                  # (3*W*cin, W*cout)
                jnp.tile(b, w_pix).reshape(1, w_pix * cout).astype(jnp.float32),
                jnp.tile(gamma, w_pix).reshape(1, w_pix * cout).astype(jnp.float32),
                jnp.tile(beta, w_pix).reshape(1, w_pix * cout).astype(jnp.float32),
            ))
        # (W*cout, W*cout) 0/1 matrix: sums the W spatial copies of each
        # channel and re-broadcasts the per-channel total to every copy.
        tmats.append(jnp.kron(jnp.ones((w_pix, w_pix), jnp.float32),
                              jnp.eye(cout, dtype=jnp.float32)))
    return tuple(layers), tuple(tmats)


# ---------------------------------------------------------------------------
# In-kernel building blocks (values + VMEM refs only; all indices static)
# ---------------------------------------------------------------------------
def _build_taps(s_ref, xv, n, h, wc):
    """Fill s_ref (N*H, 3*Wc) with the three dy row-shifted copies of the flat
    activation xv (N*H, Wc); only the per-image halo rows are zeroed."""
    zero_row = jnp.zeros((1, wc), jnp.float32)
    for ni in range(n):
        b = ni * h
        # dy = 0 : reads input row y-1 (top row is zero padding)
        s_ref[b:b + 1, 0:wc] = zero_row
        s_ref[b + 1:b + h, 0:wc] = xv[b:b + h - 1, :]
        # dy = 1 : reads input row y
        s_ref[b:b + h, wc:2 * wc] = xv[b:b + h, :]
        # dy = 2 : reads input row y+1 (bottom row is zero padding)
        s_ref[b:b + h - 1, 2 * wc:3 * wc] = xv[b + 1:b + h, :]
        s_ref[b + h - 1:b + h, 2 * wc:3 * wc] = zero_row


def _conv_bn_relu(s_ref, xv, w_ref, b_ref, g_ref, be_ref, t_ref, n, h, w, cin):
    """conv3x3(+bias) -> training-mode BN -> ReLU, as ONE MXU matmul.

    xv: (N*H, W*cin) flat input value.  Returns (N*H, W*cout) flat value."""
    wc = w * cin
    _build_taps(s_ref, xv, n, h, wc)
    y = jnp.dot(s_ref[...], w_ref[...],
                preferred_element_type=jnp.float32) + b_ref[...]
    # BatchNorm (batch statistics, biased variance, eps=1e-5).
    inv_m = 1.0 / float(n * h * w)
    s = jnp.sum(y, axis=0, keepdims=True)                      # (1, W*cout)
    ss = jnp.sum(y * y, axis=0, keepdims=True)                 # (1, W*cout)
    mean_t = jnp.dot(s, t_ref[...], preferred_element_type=jnp.float32) * inv_m
    msq_t = jnp.dot(ss, t_ref[...], preferred_element_type=jnp.float32) * inv_m
    var_t = jnp.maximum(msq_t - mean_t * mean_t, 0.0)          # clamp >= 0
    scale_t = jax.lax.rsqrt(var_t + BN_EPS) * g_ref[...]
    shift_t = be_ref[...] - mean_t * scale_t
    return jnp.maximum(y * scale_t + shift_t, 0.0)


def _pool2x2(dst_ref, src_val, n, h, w, c):
    """MaxPool2d(2): (N*H, W*C) flat value -> (N*H/2, (W/2)*C) flat ref."""
    wo = w // 2
    for r in range(n * h // 2):
        hmax = jnp.maximum(src_val[2 * r:2 * r + 1, :],
                           src_val[2 * r + 1:2 * r + 2, :])    # (1, W*C)
        parts = [jnp.maximum(hmax[:, (2 * j) * c:(2 * j + 1) * c],
                             hmax[:, (2 * j + 1) * c:(2 * j + 2) * c])
                 for j in range(wo)]
        dst_ref[r:r + 1, :] = parts[0] if wo == 1 else jnp.concatenate(parts, axis=1)


def _encoder_kernel(*refs, n, dims):
    n_levels = len(dims)
    n_layers = 2 * n_levels
    pos = 0
    x_ref = refs[pos]; pos += 1
    layer_refs = []
    for _ in range(n_layers):
        layer_refs.append(refs[pos:pos + 4])
        pos += 4
    t_refs = refs[pos:pos + n_levels]; pos += n_levels
    o_pool = refs[pos]; pos += 1
    act_refs = refs[pos:pos + n_levels]; pos += n_levels
    s_refs = refs[pos:pos + n_layers]; pos += n_layers
    pool_refs = refs[pos:pos + n_levels - 1]

    src = x_ref[...]                                           # (N*H1, W1*C0)
    for lvl, (h, w, cin, cout) in enumerate(dims):
        wa, ba, ga, bea = layer_refs[2 * lvl]
        wb, bb, gb, beb = layer_refs[2 * lvl + 1]
        a1 = _conv_bn_relu(s_refs[2 * lvl], src, wa, ba, ga, bea,
                           t_refs[lvl], n, h, w, cin)
        a2 = _conv_bn_relu(s_refs[2 * lvl + 1], a1, wb, bb, gb, beb,
                           t_refs[lvl], n, h, w, cout)
        act_refs[lvl][...] = a2                                # lane-dense store
        if lvl + 1 < n_levels:
            _pool2x2(pool_refs[lvl], a2, n, h, w, cout)
            src = pool_refs[lvl][...]
        else:
            _pool2x2(o_pool, a2, n, h, w, cout)                # final pool(x4)


# ---------------------------------------------------------------------------
# Encoder forward (single fused pallas_call)
# ---------------------------------------------------------------------------
@jax.jit
def encoder_forward(x_nchw, layer_params, tmats):
    n, c0, h0, w0 = x_nchw.shape
    num_features = tmats[0].shape[0] // w0
    dims = _level_dims(c0, num_features, h0, w0)

    # NCHW -> NHWC -> flat (N*H, W*C); both are contiguous/free reshapes.
    x_flat = jnp.transpose(x_nchw, (0, 2, 3, 1)).astype(jnp.float32)
    x_flat = x_flat.reshape(n * h0, w0 * c0)

    operands = [x_flat]
    for lp in layer_params:
        operands.extend(lp)
    operands.extend(tmats)

    h4, w4, _, c4 = dims[-1]
    out_shapes = [jax.ShapeDtypeStruct((n * (h4 // 2), (w4 // 2) * c4), jnp.float32)]
    for (h, w, _, cout) in dims:
        out_shapes.append(jax.ShapeDtypeStruct((n * h, w * cout), jnp.float32))

    scratch = []
    for (h, w, cin, cout) in dims:
        scratch.append(pltpu.VMEM((n * h, 3 * w * cin), jnp.float32))   # layer a taps
        scratch.append(pltpu.VMEM((n * h, 3 * w * cout), jnp.float32))  # layer b taps
    for (h, w, _, cout) in dims[:-1]:
        scratch.append(pltpu.VMEM((n * h // 2, (w // 2) * cout), jnp.float32))  # pooled

    kernel = functools.partial(_encoder_kernel, n=n, dims=dims)
    outs = pl.pallas_call(
        kernel,
        out_shape=out_shapes,
        scratch_shapes=scratch,
    )(*operands)

    def unflat(a, h, w, c):
        return jnp.transpose(a.reshape(n, h, w, c), (0, 3, 1, 2))       # -> NCHW

    p = unflat(outs[0], h4 // 2, w4 // 2, c4)
    xs = tuple(unflat(a, h, w, cout)
               for a, (h, w, _, cout) in zip(outs[1:], dims))
    return (p,) + xs


# ---------------------------------------------------------------------------
# Deterministic in-script parameters
# ---------------------------------------------------------------------------
def init_params(key, in_channels, num_features, bias):
    params = []
    c_in, c_out = in_channels, num_features
    for _ in range(N_BLOCKS):                 # 4 ConvBlocks
        blk = []
        cin = c_in
        for _ in range(2):                    # 2 conv layers per block
            key, kw, kb = jax.random.split(key, 3)
            fan_in = 9 * cin
            w = jax.random.normal(kw, (3, 3, cin, c_out), jnp.float32) / jnp.sqrt(
                jnp.float32(fan_in))
            b = (jax.random.normal(kb, (c_out,), jnp.float32) * 0.05
                 if bias else jnp.zeros((c_out,), jnp.float32))
            gamma = jnp.ones((c_out,), jnp.float32)   # BN weight
            beta = jnp.zeros((c_out,), jnp.float32)   # BN bias
            blk.append((w, b, gamma, beta))
            cin = c_out
        params.append(tuple(blk))
        c_in, c_out = c_out, c_out * 2
    return params


if __name__ == "__main__":
    key = jax.random.PRNGKey(0)
    k_x, k_p = jax.random.split(key)
    in_channels, num_features, bias = 4, 8, True
    n, h0, w0 = 2, 16, 16

    x = jax.random.normal(k_x, (n, in_channels, h0, w0), jnp.float32)   # NCHW
    params = init_params(k_p, in_channels, num_features, bias)
    dims = _level_dims(in_channels, num_features, h0, w0)
    layer_params, tmats = prepare_params(params, dims)

    outs = encoder_forward(x, layer_params, tmats)
    outs = jax.block_until_ready(outs)

    expected = [(2, 64, 1, 1), (2, 8, 16, 16), (2, 16, 8, 8),
                (2, 32, 4, 4), (2, 64, 2, 2)]
    assert [tuple(o.shape) for o in outs] == expected, \
        [tuple(o.shape) for o in outs]
    assert all(bool(jnp.all(jnp.isfinite(o))) for o in outs)
    print("KERNEL_OK")
</pallas_src>

<mosaic_0001>
module attributes {stable_mosaic.version = 11 : i64} {
  func.func @_encoder_kernel(%arg0: memref<32x64xf32, #tpu.memory_space<vmem>>, %arg1: memref<192x128xf32, #tpu.memory_space<vmem>>, %arg2: memref<1x128xf32, #tpu.memory_space<vmem>>, %arg3: memref<1x128xf32, #tpu.memory_space<vmem>>, %arg4: memref<1x128xf32, #tpu.memory_space<vmem>>, %arg5: memref<384x128xf32, #tpu.memory_space<vmem>>, %arg6: memref<1x128xf32, #tpu.memory_space<vmem>>, %arg7: memref<1x128xf32, #tpu.memory_space<vmem>>, %arg8: memref<1x128xf32, #tpu.memory_space<vmem>>, %arg9: memref<192x128xf32, #tpu.memory_space<vmem>>, %arg10: memref<1x128xf32, #tpu.memory_space<vmem>>, %arg11: memref<1x128xf32, #tpu.memory_space<vmem>>, %arg12: memref<1x128xf32, #tpu.memory_space<vmem>>, %arg13: memref<384x128xf32, #tpu.memory_space<vmem>>, %arg14: memref<1x128xf32, #tpu.memory_space<vmem>>, %arg15: memref<1x128xf32, #tpu.memory_space<vmem>>, %arg16: memref<1x128xf32, #tpu.memory_space<vmem>>, %arg17: memref<192x128xf32, #tpu.memory_space<vmem>>, %arg18: memref<1x128xf32, #tpu.memory_space<vmem>>, %arg19: memref<1x128xf32, #tpu.memory_space<vmem>>, %arg20: memref<1x128xf32, #tpu.memory_space<vmem>>, %arg21: memref<384x128xf32, #tpu.memory_space<vmem>>, %arg22: memref<1x128xf32, #tpu.memory_space<vmem>>, %arg23: memref<1x128xf32, #tpu.memory_space<vmem>>, %arg24: memref<1x128xf32, #tpu.memory_space<vmem>>, %arg25: memref<192x128xf32, #tpu.memory_space<vmem>>, %arg26: memref<1x128xf32, #tpu.memory_space<vmem>>, %arg27: memref<1x128xf32, #tpu.memory_space<vmem>>, %arg28: memref<1x128xf32, #tpu.memory_space<vmem>>, %arg29: memref<384x128xf32, #tpu.memory_space<vmem>>, %arg30: memref<1x128xf32, #tpu.memory_space<vmem>>, %arg31: memref<1x128xf32, #tpu.memory_space<vmem>>, %arg32: memref<1x128xf32, #tpu.memory_space<vmem>>, %arg33: memref<128x128xf32, #tpu.memory_space<vmem>>, %arg34: memref<128x128xf32, #tpu.memory_space<vmem>>, %arg35: memref<128x128xf32, #tpu.memory_space<vmem>>, %arg36: memref<128x128xf32, #tpu.memory_space<vmem>>, %arg37: memref<2x64xf32, #tpu.memory_space<vmem>>, %arg38: memref<32x128xf32, #tpu.memory_space<vmem>>, %arg39: memref<16x128xf32, #tpu.memory_space<vmem>>, %arg40: memref<8x128xf32, #tpu.memory_space<vmem>>, %arg41: memref<4x128xf32, #tpu.memory_space<vmem>>, %arg42: memref<32x192xf32, #tpu.memory_space<vmem>>, %arg43: memref<32x384xf32, #tpu.memory_space<vmem>>, %arg44: memref<16x192xf32, #tpu.memory_space<vmem>>, %arg45: memref<16x384xf32, #tpu.memory_space<vmem>>, %arg46: memref<8x192xf32, #tpu.memory_space<vmem>>, %arg47: memref<8x384xf32, #tpu.memory_space<vmem>>, %arg48: memref<4x192xf32, #tpu.memory_space<vmem>>, %arg49: memref<4x384xf32, #tpu.memory_space<vmem>>, %arg50: memref<16x64xf32, #tpu.memory_space<vmem>>, %arg51: memref<8x64xf32, #tpu.memory_space<vmem>>, %arg52: memref<4x64xf32, #tpu.memory_space<vmem>>) attributes {dimension_semantics = [], scalar_prefetch = 0 : i64, scratch_operands = 11 : i64, tpu.core_type = #tpu.core_type<tc>} {
    %c0 = arith.constant 0 : index
    %c0_0 = arith.constant 0 : index
    %0 = vector.load %arg0[%c0, %c0_0] : memref<32x64xf32, #tpu.memory_space<vmem>>, vector<32x64xf32>
    %cst = arith.constant 0.000000e+00 : f32
    %1 = vector.broadcast %cst : f32 to vector<1x64xf32>
    %c0_1 = arith.constant 0 : index
    %c0_2 = arith.constant 0 : index
    %2 = vector.load %arg42[%c0_1, %c0_2] : memref<32x192xf32, #tpu.memory_space<vmem>>, vector<1x64xf32>
    tpu.vector_store %arg42[%c0_1, %c0_2], %1 {strides = array<i32>} : memref<32x192xf32, #tpu.memory_space<vmem>>, vector<1x64xf32>,
    %3 = vector.extract_strided_slice %0 {offsets = [0, 0], sizes = [15, 64], strides = [1, 1]} : vector<32x64xf32> to vector<15x64xf32>
    %c1 = arith.constant 1 : index
    %c0_3 = arith.constant 0 : index
    %4 = vector.load %arg42[%c1, %c0_3] : memref<32x192xf32, #tpu.memory_space<vmem>>, vector<15x64xf32>
    tpu.vector_store %arg42[%c1, %c0_3], %3 {strides = array<i32>} : memref<32x192xf32, #tpu.memory_space<vmem>>, vector<15x64xf32>,
    %5 = vector.extract_strided_slice %0 {offsets = [0, 0], sizes = [16, 64], strides = [1, 1]} : vector<32x64xf32> to vector<16x64xf32>
    %c0_4 = arith.constant 0 : index
    %c64 = arith.constant 64 : index
    %6 = vector.load %arg42[%c0_4, %c64] : memref<32x192xf32, #tpu.memory_space<vmem>>, vector<16x64xf32>
    tpu.vector_store %arg42[%c0_4, %c64], %5 {strides = array<i32>} : memref<32x192xf32, #tpu.memory_space<vmem>>, vector<16x64xf32>,
    %7 = vector.extract_strided_slice %0 {offsets = [1, 0], sizes = [15, 64], strides = [1, 1]} : vector<32x64xf32> to vector<15x64xf32>
    %c0_5 = arith.constant 0 : index
    %c128 = arith.constant 128 : index
    %8 = vector.load %arg42[%c0_5, %c128] : memref<32x192xf32, #tpu.memory_space<vmem>>, vector<15x64xf32>
    tpu.vector_store %arg42[%c0_5, %c128], %7 {strides = array<i32>} : memref<32x192xf32, #tpu.memory_space<vmem>>, vector<15x64xf32>,
    %c15 = arith.constant 15 : index
    %c128_6 = arith.constant 128 : index
    %9 = vector.load %arg42[%c15, %c128_6] : memref<32x192xf32, #tpu.memory_space<vmem>>, vector<1x64xf32>
    tpu.vector_store %arg42[%c15, %c128_6], %1 {strides = array<i32>} : memref<32x192xf32, #tpu.memory_space<vmem>>, vector<1x64xf32>,
    %c16 = arith.constant 16 : index
    %c0_7 = arith.constant 0 : index
    %10 = vector.load %arg42[%c16, %c0_7] : memref<32x192xf32, #tpu.memory_space<vmem>>, vector<1x64xf32>
    tpu.vector_store %arg42[%c16, %c0_7], %1 {strides = array<i32>} : memref<32x192xf32, #tpu.memory_space<vmem>>, vector<1x64xf32>,
    %11 = vector.extract_strided_slice %0 {offsets = [16, 0], sizes = [15, 64], strides = [1, 1]} : vector<32x64xf32> to vector<15x64xf32>
    %c17 = arith.constant 17 : index
    %c0_8 = arith.constant 0 : index
    %12 = vector.load %arg42[%c17, %c0_8] : memref<32x192xf32, #tpu.memory_space<vmem>>, vector<15x64xf32>
    tpu.vector_store %arg42[%c17, %c0_8], %11 {strides = array<i32>} : memref<32x192xf32, #tpu.memory_space<vmem>>, vector<15x64xf32>,
    %13 = vector.extract_strided_slice %0 {offsets = [16, 0], sizes = [16, 64], strides = [1, 1]} : vector<32x64xf32> to vector<16x64xf32>
    %c16_9 = arith.constant 16 : index
    %c64_10 = arith.constant 64 : index
    %14 = vector.load %arg42[%c16_9, %c64_10] : memref<32x192xf32, #tpu.memory_space<vmem>>, vector<16x64xf32>
    tpu.vector_store %arg42[%c16_9, %c64_10], %13 {strides = array<i32>} : memref<32x192xf32, #tpu.memory_space<vmem>>, vector<16x64xf32>,
    %15 = vector.extract_strided_slice %0 {offsets = [17, 0], sizes = [15, 64], strides = [1, 1]} : vector<32x64xf32> to vector<15x64xf32>
    %c16_11 = arith.constant 16 : index
    %c128_12 = arith.constant 128 : index
    %16 = vector.load %arg42[%c16_11, %c128_12] : memref<32x192xf32, #tpu.memory_space<vmem>>, vector<15x64xf32>
    tpu.vector_store %arg42[%c16_11, %c128_12], %15 {strides = array<i32>} : memref<32x192xf32, #tpu.memory_space<vmem>>, vector<15x64xf32>,
    %c31 = arith.constant 31 : index
    %c128_13 = arith.constant 128 : index
    %17 = vector.load %arg42[%c31, %c128_13] : memref<32x192xf32, #tpu.memory_space<vmem>>, vector<1x64xf32>
    tpu.vector_store %arg42[%c31, %c128_13], %1 {strides = array<i32>} : memref<32x192xf32, #tpu.memory_space<vmem>>, vector<1x64xf32>,
    %c0_14 = arith.constant 0 : index
    %c0_15 = arith.constant 0 : index
    %18 = vector.load %arg42[%c0_14, %c0_15] : memref<32x192xf32, #tpu.memory_space<vmem>>, vector<32x192xf32>
    %c0_16 = arith.constant 0 : index
    %c0_17 = arith.constant 0 : index
    %19 = vector.load %arg1[%c0_16, %c0_17] : memref<192x128xf32, #tpu.memory_space<vmem>>, vector<192x128xf32>
    %cst_18 = arith.constant dense<0.000000e+00> : vector<32x128xf32>
    %20 = tpu.matmul %18, %19, %cst_18 {dimension_numbers = #tpu.dot_dimension_numbers<[1], [0], [0], [1], [0, 0, 1, 1], [], []>} : vector<32x192xf32>, vector<192x128xf32>, vector<32x128xf32> -> vector<32x128xf32>
    %c0_19 = arith.constant 0 : index
    %c0_20 = arith.constant 0 : index
    %21 = vector.load %arg2[%c0_19, %c0_20] : memref<1x128xf32, #tpu.memory_space<vmem>>, vector<1x128xf32>
    %22 = vector.broadcast %21 : vector<1x128xf32> to vector<32x128xf32>
    %23 = arith.addf %20, %22 : vector<32x128xf32>
    %cst_21 = arith.constant dense<0.000000e+00> : vector<128xf32>
    %24 = vector.multi_reduction <add>, %23, %cst_21 [0] : vector<32x128xf32> to vector<128xf32>
    %25 = vector.shape_cast %24 : vector<128xf32> to vector<1x128xf32>
    %26 = arith.mulf %23, %23 : vector<32x128xf32>
    %cst_22 = arith.constant dense<0.000000e+00> : vector<128xf32>
    %27 = vector.multi_reduction <add>, %26, %cst_22 [0] : vector<32x128xf32> to vector<128xf32>
    %28 = vector.shape_cast %27 : vector<128xf32> to vector<1x128xf32>
    %c0_23 = arith.constant 0 : index
    %c0_24 = arith.constant 0 : index
    %29 = vector.load %arg33[%c0_23, %c0_24] : memref<128x128xf32, #tpu.memory_space<vmem>>, vector<128x128xf32>
    %cst_25 = arith.constant dense<0.000000e+00> : vector<1x128xf32>
    %30 = tpu.matmul %25, %29, %cst_25 {dimension_numbers = #tpu.dot_dimension_numbers<[1], [0], [0], [1], [0, 0, 1, 1], [], []>} : vector<1x128xf32>, vector<128x128xf32>, vector<1x128xf32> -> vector<1x128xf32>
    %cst_26 = arith.constant 0.001953125 : f32
    %31 = vector.broadcast %cst_26 : f32 to vector<1x128xf32>
    %32 = arith.mulf %30, %31 : vector<1x128xf32>
    %c0_27 = arith.constant 0 : index
    %c0_28 = arith.constant 0 : index
    %33 = vector.load %arg33[%c0_27, %c0_28] : memref<128x128xf32, #tpu.memory_space<vmem>>, vector<128x128xf32>
    %cst_29 = arith.constant dense<0.000000e+00> : vector<1x128xf32>
    %34 = tpu.matmul %28, %33, %cst_29 {dimension_numbers = #tpu.dot_dimension_numbers<[1], [0], [0], [1], [0, 0, 1, 1], [], []>} : vector<1x128xf32>, vector<128x128xf32>, vector<1x128xf32> -> vector<1x128xf32>
    %cst_30 = arith.constant 0.001953125 : f32
    %35 = vector.broadcast %cst_30 : f32 to vector<1x128xf32>
    %36 = arith.mulf %34, %35 : vector<1x128xf32>
    %37 = arith.mulf %32, %32 : vector<1x128xf32>
    %38 = arith.subf %36, %37 : vector<1x128xf32>
    %cst_31 = arith.constant 0.000000e+00 : f32
    %39 = vector.broadcast %cst_31 : f32 to vector<1x128xf32>
    %40 = arith.maximumf %38, %39 : vector<1x128xf32>
    %cst_32 = arith.constant 9.99999974E-6 : f32
    %41 = vector.broadcast %cst_32 : f32 to vector<1x128xf32>
    %42 = arith.addf %40, %41 : vector<1x128xf32>
    %43 = math.rsqrt %42 : vector<1x128xf32>
    %c0_33 = arith.constant 0 : index
    %c0_34 = arith.constant 0 : index
    %44 = vector.load %arg3[%c0_33, %c0_34] : memref<1x128xf32, #tpu.memory_space<vmem>>, vector<1x128xf32>
    %45 = arith.mulf %43, %44 : vector<1x128xf32>
    %c0_35 = arith.constant 0 : index
    %c0_36 = arith.constant 0 : index
    %46 = vector.load %arg4[%c0_35, %c0_36] : memref<1x128xf32, #tpu.memory_space<vmem>>, vector<1x128xf32>
    %47 = arith.mulf %32, %45 : vector<1x128xf32>
    %48 = arith.subf %46, %47 : vector<1x128xf32>
    %49 = vector.broadcast %45 : vector<1x128xf32> to vector<32x128xf32>
    %50 = arith.mulf %23, %49 : vector<32x128xf32>
    %51 = vector.broadcast %48 : vector<1x128xf32> to vector<32x128xf32>
    %52 = arith.addf %50, %51 : vector<32x128xf32>
    %cst_37 = arith.constant 0.000000e+00 : f32
    %53 = vector.broadcast %cst_37 : f32 to vector<32x128xf32>
    %54 = arith.maximumf %52, %53 : vector<32x128xf32>
    %cst_38 = arith.constant 0.000000e+00 : f32
    %55 = vector.broadcast %cst_38 : f32 to vector<1x128xf32>
    %c0_39 = arith.constant 0 : index
    %c0_40 = arith.constant 0 : index
    %56 = vector.load %arg43[%c0_39, %c0_40] : memref<32x384xf32, #tpu.memory_space<vmem>>, vector<1x128xf32>
    tpu.vector_store %arg43[%c0_39, %c0_40], %55 {strides = array<i32>} : memref<32x384xf32, #tpu.memory_space<vmem>>, vector<1x128xf32>,
    %57 = vector.extract_strided_slice %54 {offsets = [0, 0], sizes = [15, 128], strides = [1, 1]} : vector<32x128xf32> to vector<15x128xf32>
    %c1_41 = arith.constant 1 : index
    %c0_42 = arith.constant 0 : index
    %58 = vector.load %arg43[%c1_41, %c0_42] : memref<32x384xf32, #tpu.memory_space<vmem>>, vector<15x128xf32>
    tpu.vector_store %arg43[%c1_41, %c0_42], %57 {strides = array<i32>} : memref<32x384xf32, #tpu.memory_space<vmem>>, vector<15x128xf32>,
    %59 = vector.extract_strided_slice %54 {offsets = [0, 0], sizes = [16, 128], strides = [1, 1]} : vector<32x128xf32> to vector<16x128xf32>
    %c0_43 = arith.constant 0 : index
    %c128_44 = arith.constant 128 : index
    %60 = vector.load %arg43[%c0_43, %c128_44] : memref<32x384xf32, #tpu.memory_space<vmem>>, vector<16x128xf32>
    tpu.vector_store %arg43[%c0_43, %c128_44], %59 {strides = array<i32>} : memref<32x384xf32, #tpu.memory_space<vmem>>, vector<16x128xf32>,
    %61 = vector.extract_strided_slice %54 {offsets = [1, 0], sizes = [15, 128], strides = [1, 1]} : vector<32x128xf32> to vector<15x128xf32>
    %c0_45 = arith.constant 0 : index
    %c256 = arith.constant 256 : index
    %62 = vector.load %arg43[%c0_45, %c256] : memref<32x384xf32, #tpu.memory_space<vmem>>, vector<15x128xf32>
    tpu.vector_store %arg43[%c0_45, %c256], %61 {strides = array<i32>} : memref<32x384xf32, #tpu.memory_space<vmem>>, vector<15x128xf32>,
    %c15_46 = arith.constant 15 : index
    %c256_47 = arith.constant 256 : index
    %63 = vector.load %arg43[%c15_46, %c256_47] : memref<32x384xf32, #tpu.memory_space<vmem>>, vector<1x128xf32>
    tpu.vector_store %arg43[%c15_46, %c256_47], %55 {strides = array<i32>} : memref<32x384xf32, #tpu.memory_space<vmem>>, vector<1x128xf32>,
    %c16_48 = arith.constant 16 : index
    %c0_49 = arith.constant 0 : index
    %64 = vector.load %arg43[%c16_48, %c0_49] : memref<32x384xf32, #tpu.memory_space<vmem>>, vector<1x128xf32>
    tpu.vector_store %arg43[%c16_48, %c0_49], %55 {strides = array<i32>} : memref<32x384xf32, #tpu.memory_space<vmem>>, vector<1x128xf32>,
    %65 = vector.extract_strided_slice %54 {offsets = [16, 0], sizes = [15, 128], strides = [1, 1]} : vector<32x128xf32> to vector<15x128xf32>
    %c17_50 = arith.constant 17 : index
    %c0_51 = arith.constant 0 : index
    %66 = vector.load %arg43[%c17_50, %c0_51] : memref<32x384xf32, #tpu.memory_space<vmem>>, vector<15x128xf32>
    tpu.vector_store %arg43[%c17_50, %c0_51], %65 {strides = array<i32>} : memref<32x384xf32, #tpu.memory_space<vmem>>, vector<15x128xf32>,
    %67 = vector.extract_strided_slice %54 {offsets = [16, 0], sizes = [16, 128], strides = [1, 1]} : vector<32x128xf32> to vector<16x128xf32>
    %c16_52 = arith.constant 16 : index
    %c128_53 = arith.constant 128 : index
    %68 = vector.load %arg43[%c16_52, %c128_53] : memref<32x384xf32, #tpu.memory_space<vmem>>, vector<16x128xf32>
    tpu.vector_store %arg43[%c16_52, %c128_53], %67 {strides = array<i32>} : memref<32x384xf32, #tpu.memory_space<vmem>>, vector<16x128xf32>,
    %69 = vector.extract_strided_slice %54 {offsets = [17, 0], sizes = [15, 128], strides = [1, 1]} : vector<32x128xf32> to vector<15x128xf32>
    %c16_54 = arith.constant 16 : index
    %c256_55 = arith.constant 256 : index
    %70 = vector.load %arg43[%c16_54, %c256_55] : memref<32x384xf32, #tpu.memory_space<vmem>>, vector<15x128xf32>
    tpu.vector_store %arg43[%c16_54, %c256_55], %69 {strides = array<i32>} : memref<32x384xf32, #tpu.memory_space<vmem>>, vector<15x128xf32>,
    %c31_56 = arith.constant 31 : index
    %c256_57 = arith.constant 256 : index
    %71 = vector.load %arg43[%c31_56, %c256_57] : memref<32x384xf32, #tpu.memory_space<vmem>>, vector<1x128xf32>
    tpu.vector_store %arg43[%c31_56, %c256_57], %55 {strides = array<i32>} : memref<32x384xf32, #tpu.memory_space<vmem>>, vector<1x128xf32>,
    %c0_58 = arith.constant 0 : index
    %c0_59 = arith.constant 0 : index
    %72 = vector.load %arg43[%c0_58, %c0_59] : memref<32x384xf32, #tpu.memory_space<vmem>>, vector<32x384xf32>
    %c0_60 = arith.constant 0 : index
    %c0_61 = arith.constant 0 : index
    %73 = vector.load %arg5[%c0_60, %c0_61] : memref<384x128xf32, #tpu.memory_space<vmem>>, vector<384x128xf32>
    %cst_62 = arith.constant dense<0.000000e+00> : vector<32x128xf32>
    %74 = tpu.matmul %72, %73, %cst_62 {dimension_numbers = #tpu.dot_dimension_numbers<[1], [0], [0], [1], [0, 0, 1, 1], [], []>} : vector<32x384xf32>, vector<384x128xf32>, vector<32x128xf32> -> vector<32x128xf32>
    %c0_63 = arith.constant 0 : index
    %c0_64 = arith.constant 0 : index
    %75 = vector.load %arg6[%c0_63, %c0_64] : memref<1x128xf32, #tpu.memory_space<vmem>>, vector<1x128xf32>
    %76 = vector.broadcast %75 : vector<1x128xf32> to vector<32x128xf32>
    %77 = arith.addf %74, %76 : vector<32x128xf32>
    %cst_65 = arith.constant dense<0.000000e+00> : vector<128xf32>
    %78 = vector.multi_reduction <add>, %77, %cst_65 [0] : vector<32x128xf32> to vector<128xf32>
    %79 = vector.shape_cast %78 : vector<128xf32> to vector<1x128xf32>
    %80 = arith.mulf %77, %77 : vector<32x128xf32>
    %cst_66 = arith.constant dense<0.000000e+00> : vector<128xf32>
    %81 = vector.multi_reduction <add>, %80, %cst_66 [0] : vector<32x128xf32> to vector<128xf32>
    %82 = vector.shape_cast %81 : vector<128xf32> to vector<1x128xf32>
    %c0_67 = arith.constant 0 : index
    %c0_68 = arith.constant 0 : index
    %83 = vector.load %arg33[%c0_67, %c0_68] : memref<128x128xf32, #tpu.memory_space<vmem>>, vector<128x128xf32>
    %cst_69 = arith.constant dense<0.000000e+00> : vector<1x128xf32>
    %84 = tpu.matmul %79, %83, %cst_69 {dimension_numbers = #tpu.dot_dimension_numbers<[1], [0], [0], [1], [0, 0, 1, 1], [], []>} : vector<1x128xf32>, vector<128x128xf32>, vector<1x128xf32> -> vector<1x128xf32>
    %cst_70 = arith.constant 0.001953125 : f32
    %85 = vector.broadcast %cst_70 : f32 to vector<1x128xf32>
    %86 = arith.mulf %84, %85 : vector<1x128xf32>
    %c0_71 = arith.constant 0 : index
    %c0_72 = arith.constant 0 : index
    %87 = vector.load %arg33[%c0_71, %c0_72] : memref<128x128xf32, #tpu.memory_space<vmem>>, vector<128x128xf32>
    %cst_73 = arith.constant dense<0.000000e+00> : vector<1x128xf32>
    %88 = tpu.matmul %82, %87, %cst_73 {dimension_numbers = #tpu.dot_dimension_numbers<[1], [0], [0], [1], [0, 0, 1, 1], [], []>} : vector<1x128xf32>, vector<128x128xf32>, vector<1x128xf32> -> vector<1x128xf32>
    %cst_74 = arith.constant 0.001953125 : f32
    %89 = vector.broadcast %cst_74 : f32 to vector<1x128xf32>
    %90 = arith.mulf %88, %89 : vector<1x128xf32>
    %91 = arith.mulf %86, %86 : vector<1x128xf32>
    %92 = arith.subf %90, %91 : vector<1x128xf32>
    %cst_75 = arith.constant 0.000000e+00 : f32
    %93 = vector.broadcast %cst_75 : f32 to vector<1x128xf32>
    %94 = arith.maximumf %92, %93 : vector<1x128xf32>
    %cst_76 = arith.constant 9.99999974E-6 : f32
    %95 = vector.broadcast %cst_76 : f32 to vector<1x128xf32>
    %96 = arith.addf %94, %95 : vector<1x128xf32>
    %97 = math.rsqrt %96 : vector<1x128xf32>
    %c0_77 = arith.constant 0 : index
    %c0_78 = arith.constant 0 : index
    %98 = vector.load %arg7[%c0_77, %c0_78] : memref<1x128xf32, #tpu.memory_space<vmem>>, vector<1x128xf32>
    %99 = arith.mulf %97, %98 : vector<1x128xf32>
    %c0_79 = arith.constant 0 : index
    %c0_80 = arith.constant 0 : index
    %100 = vector.load %arg8[%c0_79, %c0_80] : memref<1x128xf32, #tpu.memory_space<vmem>>, vector<1x128xf32>
    %101 = arith.mulf %86, %99 : vector<1x128xf32>
    %102 = arith.subf %100, %101 : vector<1x128xf32>
    %103 = vector.broadcast %99 : vector<1x128xf32> to vector<32x128xf32>
    %104 = arith.mulf %77, %103 : vector<32x128xf32>
    %105 = vector.broadcast %102 : vector<1x128xf32> to vector<32x128xf32>
    %106 = arith.addf %104, %105 : vector<32x128xf32>
    %cst_81 = arith.constant 0.000000e+00 : f32
    %107 = vector.broadcast %cst_81 : f32 to vector<32x128xf32>
    %108 = arith.maximumf %106, %107 : vector<32x128xf32>
    %c0_82 = arith.constant 0 : index
    %c0_83 = arith.constant 0 : index
    %109 = vector.load %arg38[%c0_82, %c0_83] : memref<32x128xf32, #tpu.memory_space<vmem>>, vector<32x128xf32>
    tpu.vector_store %arg38[%c0_82, %c0_83], %108 {strides = array<i32>} : memref<32x128xf32, #tpu.memory_space<vmem>>, vector<32x128xf32>,
    %110 = vector.extract_strided_slice %108 {offsets = [0, 0], sizes = [1, 128], strides = [1, 1]} : vector<32x128xf32> to vector<1x128xf32>
    %111 = vector.extract_strided_slice %108 {offsets = [1, 0], sizes = [1, 128], strides = [1, 1]} : vector<32x128xf32> to vector<1x128xf32>
    %112 = arith.maximumf %110, %111 : vector<1x128xf32>
    %113 = vector.extract_strided_slice %112 {offsets = [0, 0], sizes = [1, 8], strides = [1, 1]} : vector<1x128xf32> to vector<1x8xf32>
    %114 = vector.extract_strided_slice %112 {offsets = [0, 8], sizes = [1, 8], strides = [1, 1]} : vector<1x128xf32> to vector<1x8xf32>
    %115 = arith.maximumf %113, %114 : vector<1x8xf32>
    %116 = vector.extract_strided_slice %112 {offsets = [0, 16], sizes = [1, 8], strides = [1, 1]} : vector<1x128xf32> to vector<1x8xf32>
    %117 = vector.extract_strided_slice %112 {offsets = [0, 24], sizes = [1, 8], strides = [1, 1]} : vector<1x128xf32> to vector<1x8xf32>
    %118 = arith.maximumf %116, %117 : vector<1x8xf32>
    %119 = vector.extract_strided_slice %112 {offsets = [0, 32], sizes = [1, 8], strides = [1, 1]} : vector<1x128xf32> to vector<1x8xf32>
    %120 = vector.extract_strided_slice %112 {offsets = [0, 40], sizes = [1, 8], strides = [1, 1]} : vector<1x128xf32> to vector<1x8xf32>
    %121 = arith.maximumf %119, %120 : vector<1x8xf32>
    %122 = vector.extract_strided_slice %112 {offsets = [0, 48], sizes = [1, 8], strides = [1, 1]} : vector<1x128xf32> to vector<1x8xf32>
    %123 = vector.extract_strided_slice %112 {offsets = [0, 56], sizes = [1, 8], strides = [1, 1]} : vector<1x128xf32> to vector<1x8xf32>
    %124 = arith.maximumf %122, %123 : vector<1x8xf32>
    %125 = vector.extract_strided_slice %112 {offsets = [0, 64], sizes = [1, 8], strides = [1, 1]} : vector<1x128xf32> to vector<1x8xf32>
    %126 = vector.extract_strided_slice %112 {offsets = [0, 72], sizes = [1, 8], strides = [1, 1]} : vector<1x128xf32> to vector<1x8xf32>
    %127 = arith.maximumf %125, %126 : vector<1x8xf32>
    %128 = vector.extract_strided_slice %112 {offsets = [0, 80], sizes = [1, 8], strides = [1, 1]} : vector<1x128xf32> to vector<1x8xf32>
    %129 = vector.extract_strided_slice %112 {offsets = [0, 88], sizes = [1, 8], strides = [1, 1]} : vector<1x128xf32> to vector<1x8xf32>
    %130 = arith.maximumf %128, %129 : vector<1x8xf32>
    %131 = vector.extract_strided_slice %112 {offsets = [0, 96], sizes = [1, 8], strides = [1, 1]} : vector<1x128xf32> to vector<1x8xf32>
    %132 = vector.extract_strided_slice %112 {offsets = [0, 104], sizes = [1, 8], strides = [1, 1]} : vector<1x128xf32> to vector<1x8xf32>
    %133 = arith.maximumf %131, %132 : vector<1x8xf32>
    %134 = vector.extract_strided_slice %112 {offsets = [0, 112], sizes = [1, 8], strides = [1, 1]} : vector<1x128xf32> to vector<1x8xf32>
    %135 = vector.extract_strided_slice %112 {offsets = [0, 120], sizes = [1, 8], strides = [1, 1]} : vector<1x128xf32> to vector<1x8xf32>
    %136 = arith.maximumf %134, %135 : vector<1x8xf32>
    %137 = tpu.concatenate %115, %118, %121, %124, %127, %130, %133, %136 in 1 : vector<1x8xf32>, vector<1x8xf32>, vector<1x8xf32>, vector<1x8xf32>, vector<1x8xf32>, vector<1x8xf32>, vector<1x8xf32>, vector<1x8xf32> -> vector<1x64xf32>
    %c0_84 = arith.constant 0 : index
    %c0_85 = arith.constant 0 : index
    %138 = vector.load %arg50[%c0_84, %c0_85] : memref<16x64xf32, #tpu.memory_space<vmem>>, vector<1x64xf32>
    tpu.vector_store %arg50[%c0_84, %c0_85], %137 {strides = array<i32>} : memref<16x64xf32, #tpu.memory_space<vmem>>, vector<1x64xf32>,
    %139 = vector.extract_strided_slice %108 {offsets = [2, 0], sizes = [1, 128], strides = [1, 1]} : vector<32x128xf32> to vector<1x128xf32>
    %140 = vector.extract_strided_slice %108 {offsets = [3, 0], sizes = [1, 128], strides = [1, 1]} : vector<32x128xf32> to vector<1x128xf32>
    %141 = arith.maximumf %139, %140 : vector<1x128xf32>
    %142 = vector.extract_strided_slice %141 {offsets = [0, 0], sizes = [1, 8], strides = [1, 1]} : vector<1x128xf32> to vector<1x8xf32>
    %143 = vector.extract_strided_slice %141 {offsets = [0, 8], sizes = [1, 8], strides = [1, 1]} : vector<1x128xf32> to vector<1x8xf32>
    %144 = arith.maximumf %142, %143 : vector<1x8xf32>
    %145 = vector.extract_strided_slice %141 {offsets = [0, 16], sizes = [1, 8], strides = [1, 1]} : vector<1x128xf32> to vector<1x8xf32>
    %146 = vector.extract_strided_slice %141 {offsets = [0, 24], sizes = [1, 8], strides = [1, 1]} : vector<1x128xf32> to vector<1x8xf32>
    %147 = arith.maximumf %145, %146 : vector<1x8xf32>
    %148 = vector.extract_strided_slice %141 {offsets = [0, 32], sizes = [1, 8], strides = [1, 1]} : vector<1x128xf32> to vector<1x8xf32>
    %149 = vector.extract_strided_slice %141 {offsets = [0, 40], sizes = [1, 8], strides = [1, 1]} : vector<1x128xf32> to vector<1x8xf32>
    %150 = arith.maximumf %148, %149 : vector<1x8xf32>
    %151 = vector.extract_strided_slice %141 {offsets = [0, 48], sizes = [1, 8], strides = [1, 1]} : vector<1x128xf32> to vector<1x8xf32>
    %152 = vector.extract_strided_slice %141 {offsets = [0, 56], sizes = [1, 8], strides = [1, 1]} : vector<1x128xf32> to vector<1x8xf32>
    %153 = arith.maximumf %151, %152 : vector<1x8xf32>
    %154 = vector.extract_strided_slice %141 {offsets = [0, 64], sizes = [1, 8], strides = [1, 1]} : vector<1x128xf32> to vector<1x8xf32>
    %155 = vector.extract_strided_slice %141 {offsets = [0, 72], sizes = [1, 8], strides = [1, 1]} : vector<1x128xf32> to vector<1x8xf32>
    %156 = arith.maximumf %154, %155 : vector<1x8xf32>
    %157 = vector.extract_strided_slice %141 {offsets = [0, 80], sizes = [1, 8], strides = [1, 1]} : vector<1x128xf32> to vector<1x8xf32>
    %158 = vector.extract_strided_slice %141 {offsets = [0, 88], sizes = [1, 8], strides = [1, 1]} : vector<1x128xf32> to vector<1x8xf32>
    %159 = arith.maximumf %157, %158 : vector<1x8xf32>
    %160 = vector.extract_strided_slice %141 {offsets = [0, 96], sizes = [1, 8], strides = [1, 1]} : vector<1x128xf32> to vector<1x8xf32>
    %161 = vector.extract_strided_slice %141 {offsets = [0, 104], sizes = [1, 8], strides = [1, 1]} : vector<1x128xf32> to vector<1x8xf32>
    %162 = arith.maximumf %160, %161 : vector<1x8xf32>
    %163 = vector.extract_strided_slice %141 {offsets = [0, 112], sizes = [1, 8], strides = [1, 1]} : vector<1x128xf32> to vector<1x8xf32>
    %164 = vector.extract_strided_slice %141 {offsets = [0, 120], sizes = [1, 8], strides = [1, 1]} : vector<1x128xf32> to vector<1x8xf32>
    %165 = arith.maximumf %163, %164 : vector<1x8xf32>
    %166 = tpu.concatenate %144, %147, %150, %153, %156, %159, %162, %165 in 1 : vector<1x8xf32>, vector<1x8xf32>, vector<1x8xf32>, vector<1x8xf32>, vector<1x8xf32>, vector<1x8xf32>, vector<1x8xf32>, vector<1x8xf32> -> vector<1x64xf32>
    %c1_86 = arith.constant 1 : index
    %c0_87 = arith.constant 0 : index
    %167 = vector.load %arg50[%c1_86, %c0_87] : memref<16x64xf32, #tpu.memory_space<vmem>>, vector<1x64xf32>
    tpu.vector_store %arg50[%c1_86, %c0_87], %166 {strides = array<i32>} : memref<16x64xf32, #tpu.memory_space<vmem>>, vector<1x64xf32>,
    %168 = vector.extract_strided_slice %108 {offsets = [4, 0], sizes = [1, 128], strides = [1, 1]} : vector<32x128xf32> to vector<1x128xf32>
    %169 = vector.extract_strided_slice %108 {offsets = [5, 0], sizes = [1, 128], strides = [1, 1]} : vector<32x128xf32> to vector<1x128xf32>
    %170 = arith.maximumf %168, %169 : vector<1x128xf32>
    %171 = vector.extract_strided_slice %170 {offsets = [0, 0], sizes = [1, 8], strides = [1, 1]} : vector<1x128xf32> to vector<1x8xf32>
    %172 = vector.extract_strided_slice %170 {offsets = [0, 8], sizes = [1, 8], strides = [1, 1]} : vector<1x128xf32> to vector<1x8xf32>
    %173 = arith.maximumf %171, %172 : vector<1x8xf32>
    %174 = vector.extract_strided_slice %170 {offsets = [0, 16], sizes = [1, 8], strides = [1, 1]} : vector<1x128xf32> to vector<1x8xf32>
    %175 = vector.extract_strided_slice %170 {offsets = [0, 24], sizes = [1, 8], strides = [1, 1]} : vector<1x128xf32> to vector<1x8xf32>
    %176 = arith.maximumf %174, %175 : vector<1x8xf32>
    %177 = vector.extract_strided_slice %170 {offsets = [0, 32], sizes = [1, 8], strides = [1, 1]} : vector<1x128xf32> to vector<1x8xf32>
    %178 = vector.extract_strided_slice %170 {offsets = [0, 40], sizes = [1, 8], strides = [1, 1]} : vector<1x128xf32> to vector<1x8xf32>
    %179 = arith.maximumf %177, %178 : vector<1x8xf32>
    %180 = vector.extract_strided_slice %170 {offsets = [0, 48], sizes = [1, 8], strides = [1, 1]} : vector<1x128xf32> to vector<1x8xf32>
    %181 = vector.extract_strided_slice %170 {offsets = [0, 56], sizes = [1, 8], strides = [1, 1]} : vector<1x128xf32> to vector<1x8xf32>
    %182 = arith.maximumf %180, %181 : vector<1x8xf32>
    %183 = vector.extract_strided_slice %170 {offsets = [0, 64], sizes = [1, 8], strides = [1, 1]} : vector<1x128xf32> to vector<1x8xf32>
    %184 = vector.extract_strided_slice %170 {offsets = [0, 72], sizes = [1, 8], strides = [1, 1]} : vector<1x128xf32> to vector<1x8xf32>
    %185 = arith.maximumf %183, %184 : vector<1x8xf32>
    %186 = vector.extract_strided_slice %170 {offsets = [0, 80], sizes = [1, 8], strides = [1, 1]} : vector<1x128xf32> to vector<1x8xf32>
    %187 = vector.extract_strided_slice %170 {offsets = [0, 88], sizes = [1, 8], strides = [1, 1]} : vector<1x128xf32> to vector<1x8xf32>
    %188 = arith.maximumf %186, %187 : vector<1x8xf32>
    %189 = vector.extract_strided_slice %170 {offsets = [0, 96], sizes = [1, 8], strides = [1, 1]} : vector<1x128xf32> to vector<1x8xf32>
    %190 = vector.extract_strided_slice %170 {offsets = [0, 104], sizes = [1, 8], strides = [1, 1]} : vector<1x128xf32> to vector<1x8xf32>
    %191 = arith.maximumf %189, %190 : vector<1x8xf32>
    %192 = vector.extract_strided_slice %170 {offsets = [0, 112], sizes = [1, 8], strides = [1, 1]} : vector<1x128xf32> to vector<1x8xf32>
    %193 = vector.extract_strided_slice %170 {offsets = [0, 120], sizes = [1, 8], strides = [1, 1]} : vector<1x128xf32> to vector<1x8xf32>
    %194 = arith.maximumf %192, %193 : vector<1x8xf32>
    %195 = tpu.concatenate %173, %176, %179, %182, %185, %188, %191, %194 in 1 : vector<1x8xf32>, vector<1x8xf32>, vector<1x8xf32>, vector<1x8xf32>, vector<1x8xf32>, vector<1x8xf32>, vector<1x8xf32>, vector<1x8xf32> -> vector<1x64xf32>
    %c2 = arith.constant 2 : index
    %c0_88 = arith.constant 0 : index
    %196 = vector.load %arg50[%c2, %c0_88] : memref<16x64xf32, #tpu.memory_space<vmem>>, vector<1x64xf32>
    tpu.vector_store %arg50[%c2, %c0_88], %195 {strides = array<i32>} : memref<16x64xf32, #tpu.memory_space<vmem>>, vector<1x64xf32>,
    %197 = vector.extract_strided_slice %108 {offsets = [6, 0], sizes = [1, 128], strides = [1, 1]} : vector<32x128xf32> to vector<1x128xf32>
    %198 = vector.extract_strided_slice %108 {offsets = [7, 0], sizes = [1, 128], strides = [1, 1]} : vector<32x128xf32> to vector<1x128xf32>
    %199 = arith.maximumf %197, %198 : vector<1x128xf32>
    %200 = vector.extract_strided_slice %199 {offsets = [0, 0], sizes = [1, 8], strides = [1, 1]} : vector<1x128xf32> to vector<1x8xf32>
    %201 = vector.extract_strided_slice %199 {offsets = [0, 8], sizes = [1, 8], strides = [1, 1]} : vector<1x128xf32> to vector<1x8xf32>
    %202 = arith.maximumf %200, %201 : vector<1x8xf32>
    %203 = vector.extract_strided_slice %199 {offsets = [0, 16], sizes = [1, 8], strides = [1, 1]} : vector<1x128xf32> to vector<1x8xf32>
    %204 = vector.extract_strided_slice %199 {offsets = [0, 24], sizes = [1, 8], strides = [1, 1]} : vector<1x128xf32> to vector<1x8xf32>
    %205 = arith.maximumf %203, %204 : vector<1x8xf32>
    %206 = vector.extract_strided_slice %199 {offsets = [0, 32], sizes = [1, 8], strides = [1, 1]} : vector<1x128xf32> to vector<1x8xf32>
    %207 = vector.extract_strided_slice %199 {offsets = [0, 40], sizes = [1, 8], strides = [1, 1]} : vector<1x128xf32> to vector<1x8xf32>
    %208 = arith.maximumf %206, %207 : vector<1x8xf32>
    %209 = vector.extract_strided_slice %199 {offsets = [0, 48], sizes = [1, 8], strides = [1, 1]} : vector<1x128xf32> to vector<1x8xf32>
    %210 = vector.extract_strided_slice %199 {offsets = [0, 56], sizes = [1, 8], strides = [1, 1]} : vector<1x128xf32> to vector<1x8xf32>
    %211 = arith.maximumf %209, %210 : vector<1x8xf32>
    %212 = vector.extract_strided_slice %199 {offsets = [0, 64], sizes = [1, 8], strides = [1, 1]} : vector<1x128xf32> to vector<1x8xf32>
    %213 = vector.extract_strided_slice %199 {offsets = [0, 72], sizes = [1, 8], strides = [1, 1]} : vector<1x128xf32> to vector<1x8xf32>
    %214 = arith.maximumf %212, %213 : vector<1x8xf32>
    %215 = vector.extract_strided_slice %199 {offsets = [0, 80], sizes = [1, 8], strides = [1, 1]} : vector<1x128xf32> to vector<1x8xf32>
    %216 = vector.extract_strided_slice %199 {offsets = [0, 88], sizes = [1, 8], strides = [1, 1]} : vector<1x128xf32> to vector<1x8xf32>
    %217 = arith.maximumf %215, %216 : vector<1x8xf32>
    %218 = vector.extract_strided_slice %199 {offsets = [0, 96], sizes = [1, 8], strides = [1, 1]} : vector<1x128xf32> to vector<1x8xf32>
    %219 = vector.extract_strided_slice %199 {offsets = [0, 104], sizes = [1, 8], strides = [1, 1]} : vector<1x128xf32> to vector<1x8xf32>
    %220 = arith.maximumf %218, %219 : vector<1x8xf32>
    %221 = vector.extract_strided_slice %199 {offsets = [0, 112], sizes = [1, 8], strides = [1, 1]} : vector<1x128xf32> to vector<1x8xf32>
    %222 = vector.extract_strided_slice %199 {offsets = [0, 120], sizes = [1, 8], strides = [1, 1]} : vector<1x128xf32> to vector<1x8xf32>
    %223 = arith.maximumf %221, %222 : vector<1x8xf32>
    %224 = tpu.concatenate %202, %205, %208, %211, %214, %217, %220, %223 in 1 : vector<1x8xf32>, vector<1x8xf32>, vector<1x8xf32>, vector<1x8xf32>, vector<1x8xf32>, vector<1x8xf32>, vector<1x8xf32>, vector<1x8xf32> -> vector<1x64xf32>
    %c3 = arith.constant 3 : index
    %c0_89 = arith.constant 0 : index
    %225 = vector.load %arg50[%c3, %c0_89] : memref<16x64xf32, #tpu.memory_space<vmem>>, vector<1x64xf32>
    tpu.vector_store %arg50[%c3, %c0_89], %224 {strides = array<i32>} : memref<16x64xf32, #tpu.memory_space<vmem>>, vector<1x64xf32>,
    %226 = vector.extract_strided_slice %108 {offsets = [8, 0], sizes = [1, 128], strides = [1, 1]} : vector<32x128xf32> to vector<1x128xf32>
    %227 = vector.extract_strided_slice %108 {offsets = [9, 0], sizes = [1, 128], strides = [1, 1]} : vector<32x128xf32> to vector<1x128xf32>
    %228 = arith.maximumf %226, %227 : vector<1x128xf32>
    %229 = vector.extract_strided_slice %228 {offsets = [0, 0], sizes = [1, 8], strides = [1, 1]} : vector<1x128xf32> to vector<1x8xf32>
    %230 = vector.extract_strided_slice %228 {offsets = [0, 8], sizes = [1, 8], strides = [1, 1]} : vector<1x128xf32> to vector<1x8xf32>
    %231 = arith.maximumf %229, %230 : vector<1x8xf32>
    %232 = vector.extract_strided_slice %228 {offsets = [0, 16], sizes = [1, 8], strides = [1, 1]} : vector<1x128xf32> to vector<1x8xf32>
    %233 = vector.extract_strided_slice %228 {offsets = [0, 24], sizes = [1, 8], strides = [1, 1]} : vector<1x128xf32> to vector<1x8xf32>
    %234 = arith.maximumf %232, %233 : vector<1x8xf32>
    %235 = vector.extract_strided_slice %228 {offsets = [0, 32], sizes = [1, 8], strides = [1, 1]} : vector<1x128xf32> to vector<1x8xf32>
    %236 = vector.extract_strided_slice %228 {offsets = [0, 40], sizes = [1, 8], strides = [1, 1]} : vector<1x128xf32> to vector<1x8xf32>
    %237 = arith.maximumf %235, %236 : vector<1x8xf32>
    %238 = vector.extract_strided_slice %228 {offsets = [0, 48], sizes = [1, 8], strides = [1, 1]} : vector<1x128xf32> to vector<1x8xf32>
    %239 = vector.extract_strided_slice %228 {offsets = [0, 56], sizes = [1, 8], strides = [1, 1]} : vector<1x128xf32> to vector<1x8xf32>
    %240 = arith.maximumf %238, %239 : vector<1x8xf32>
    %241 = vector.extract_strided_slice %228 {offsets = [0, 64], sizes = [1, 8], strides = [1, 1]} : vector<1x128xf32> to vector<1x8xf32>
    %242 = vector.extract_strided_slice %228 {offsets = [0, 72], sizes = [1, 8], strides = [1, 1]} : vector<1x128xf32> to vector<1x8xf32>
    %243 = arith.maximumf %241, %242 : vector<1x8xf32>
    %244 = vector.extract_strided_slice %228 {offsets = [0, 80], sizes = [1, 8], strides = [1, 1]} : vector<1x128xf32> to vector<1x8xf32>
    %245 = vector.extract_strided_slice %228 {offsets = [0, 88], sizes = [1, 8], strides = [1, 1]} : vector<1x128xf32> to vector<1x8xf32>
    %246 = arith.maximumf %244, %245 : vector<1x8xf32>
    %247 = vector.extract_strided_slice %228 {offsets = [0, 96], sizes = [1, 8], strides = [1, 1]} : vector<1x128xf32> to vector<1x8xf32>
    %248 = vector.extract_strided_slice %228 {offsets = [0, 104], sizes = [1, 8], strides = [1, 1]} : vector<1x128xf32> to vector<1x8xf32>
    %249 = arith.maximumf %247, %248 : vector<1x8xf32>
    %250 = vector.extract_strided_slice %228 {offsets = [0, 112], sizes = [1, 8], strides = [1, 1]} : vector<1x128xf32> to vector<1x8xf32>
    %251 = vector.extract_strided_slice %228 {offsets = [0, 120], sizes = [1, 8], strides = [1, 1]} : vector<1x128xf32> to vector<1x8xf32>
    %252 = arith.maximumf %250, %251 : vector<1x8xf32>
    %253 = tpu.concatenate %231, %234, %237, %240, %243, %246, %249, %252 in 1 : vector<1x8xf32>, vector<1x8xf32>, vector<1x8xf32>, vector<1x8xf32>, vector<1x8xf32>, vector<1x8xf32>, vector<1x8xf32>, vector<1x8xf32> -> vector<1x64xf32>
    %c4 = arith.constant 4 : index
    %c0_90 = arith.constant 0 : index
    %254 = vector.load %arg50[%c4, %c0_90] : memref<16x64xf32, #tpu.memory_space<vmem>>, vector<1x64xf32>
    tpu.vector_store %arg50[%c4, %c0_90], %253 {strides = array<i32>} : memref<16x64xf32, #tpu.memory_space<vmem>>, vector<1x64xf32>,
    %255 = vector.extract_strided_slice %108 {offsets = [10, 0], sizes = [1, 128], strides = [1, 1]} : vector<32x128xf32> to vector<1x128xf32>
    %256 = vector.extract_strided_slice %108 {offsets = [11, 0], sizes = [1, 128], strides = [1, 1]} : vector<32x128xf32> to vector<1x128xf32>
    %257 = arith.maximumf %255, %256 : vector<1x128xf32>
    %258 = vector.extract_strided_slice %257 {offsets = [0, 0], sizes = [1, 8], strides = [1, 1]} : vector<1x128xf32> to vector<1x8xf32>
    %259 = vector.extract_strided_slice %257 {offsets = [0, 8], sizes = [1, 8], strides = [1, 1]} : vector<1x128xf32> to vector<1x8xf32>
    %260 = arith.maximumf %258, %259 : vector<1x8xf32>
    %261 = vector.extract_strided_slice %257 {offsets = [0, 16], sizes = [1, 8], strides = [1, 1]} : vector<1x128xf32> to vector<1x8xf32>
    %262 = vector.extract_strided_slice %257 {offsets = [0, 24], sizes = [1, 8], strides = [1, 1]} : vector<1x128xf32> to vector<1x8xf32>
    %263 = arith.maximumf %261, %262 : vector<1x8xf32>
    %264 = vector.extract_strided_slice %257 {offsets = [0, 32], sizes = [1, 8], strides = [1, 1]} : vector<1x128xf32> to vector<1x8xf32>
    %265 = vector.extract_strided_slice %257 {offsets = [0, 40], sizes = [1, 8], strides = [1, 1]} : vector<1x128xf32> to vector<1x8xf32>
    %266 = arith.maximumf %264, %265 : vector<1x8xf32>
    %267 = vector.extract_strided_slice %257 {offsets = [0, 48], sizes = [1, 8], strides = [1, 1]} : vector<1x128xf32> to vector<1x8xf32>
    %268 = vector.extract_strided_slice %257 {offsets = [0, 56], sizes = [1, 8], strides = [1, 1]} : vector<1x128xf32> to vector<1x8xf32>
    %269 = arith.maximumf %267, %268 : vector<1x8xf32>
    %270 = vector.extract_strided_slice %257 {offsets = [0, 64], sizes = [1, 8], strides = [1, 1]} : vector<1x128xf32> to vector<1x8xf32>
    %271 = vector.extract_strided_slice %257 {offsets = [0, 72], sizes = [1, 8], strides = [1, 1]} : vector<1x128xf32> to vector<1x8xf32>
    %272 = arith.maximumf %270, %271 : vector<1x8xf32>
    %273 = vector.extract_strided_slice %257 {offsets = [0, 80], sizes = [1, 8], strides = [1, 1]} : vector<1x128xf32> to vector<1x8xf32>
    %274 = vector.extract_strided_slice %257 {offsets = [0, 88], sizes = [1, 8], strides = [1, 1]} : vector<1x128xf32> to vector<1x8xf32>
    %275 = arith.maximumf %273, %274 : vector<1x8xf32>
    %276 = vector.extract_strided_slice %257 {offsets = [0, 96], sizes = [1, 8], strides = [1, 1]} : vector<1x128xf32> to vector<1x8xf32>
    %277 = vector.extract_strided_slice %257 {offsets = [0, 104], sizes = [1, 8], strides = [1, 1]} : vector<1x128xf32> to vector<1x8xf32>
    %278 = arith.maximumf %276, %277 : vector<1x8xf32>
    %279 = vector.extract_strided_slice %257 {offsets = [0, 112], sizes = [1, 8], strides = [1, 1]} : vector<1x128xf32> to vector<1x8xf32>
    %280 = vector.extract_strided_slice %257 {offsets = [0, 120], sizes = [1, 8], strides = [1, 1]} : vector<1x128xf32> to vector<1x8xf32>
    %281 = arith.maximumf %279, %280 : vector<1x8xf32>
    %282 = tpu.concatenate %260, %263, %266, %269, %272, %275, %278, %281 in 1 : vector<1x8xf32>, vector<1x8xf32>, vector<1x8xf32>, vector<1x8xf32>, vector<1x8xf32>, vector<1x8xf32>, vector<1x8xf32>, vector<1x8xf32> -> vector<1x64xf32>
    %c5 = arith.constant 5 : index
    %c0_91 = arith.constant 0 : index
    %283 = vector.load %arg50[%c5, %c0_91] : memref<16x64xf32, #tpu.memory_space<vmem>>, vector<1x64xf32>
    tpu.vector_store %arg50[%c5, %c0_91], %282 {strides = array<i32>} : memref<16x64xf32, #tpu.memory_space<vmem>>, vector<1x64xf32>,
    %284 = vector.extract_strided_slice %108 {offsets = [12, 0], sizes = [1, 128], strides = [1, 1]} : vector<32x128xf32> to vector<1x128xf32>
    %285 = vector.extract_strided_slice %108 {offsets = [13, 0], sizes = [1, 128], strides = [1, 1]} : vector<32x128xf32> to vector<1x128xf32>
    %286 = arith.maximumf %284, %285 : vector<1x128xf32>
    %287 = vector.extract_strided_slice %286 {offsets = [0, 0], sizes = [1, 8], strides = [1, 1]} : vector<1x128xf32> to vector<1x8xf32>
    %288 = vector.extract_strided_slice %286 {offsets = [0, 8], sizes = [1, 8], strides = [1, 1]} : vector<1x128xf32> to vector<1x8xf32>
    %289 = arith.maximumf %287, %288 : vector<1x8xf32>
    %290 = vector.extract_strided_slice %286 {offsets = [0, 16], sizes = [1, 8], strides = [1, 1]} : vector<1x128xf32> to vector<1x8xf32>
    %291 = vector.extract_strided_slice %286 {offsets = [0, 24], sizes = [1, 8], strides = [1, 1]} : vector<1x128xf32> to vector<1x8xf32>
    %292 = arith.maximumf %290, %291 : vector<1x8xf32>
    %293 = vector.extract_strided_slice %286 {offsets = [0, 32], sizes = [1, 8], strides = [1, 1]} : vector<1x128xf32> to vector<1x8xf32>
    %294 = vector.extract_strided_slice %286 {offsets = [0, 40], sizes = [1, 8], strides = [1, 1]} : vector<1x128xf32> to vector<1x8xf32>
    %295 = arith.maximumf %293, %294 : vector<1x8xf32>
    %296 = vector.extract_strided_slice %286 {offsets = [0, 48], sizes = [1, 8], strides = [1, 1]} : vector<1x128xf32> to vector<1x8xf32>
    %297 = vector.extract_strided_slice %286 {offsets = [0, 56], sizes = [1, 8], strides = [1, 1]} : vector<1x128xf32> to vector<1x8xf32>
    %298 = arith.maximumf %296, %297 : vector<1x8xf32>
    %299 = vector.extract_strided_slice %286 {offsets = [0, 64], sizes = [1, 8], strides = [1, 1]} : vector<1x128xf32> to vector<1x8xf32>
    %300 = vector.extract_strided_slice %286 {offsets = [0, 72], sizes = [1, 8], strides = [1, 1]} : vector<1x128xf32> to vector<1x8xf32>
    %301 = arith.maximumf %299, %300 : vector<1x8xf32>
    %302 = vector.extract_strided_slice %286 {offsets = [0, 80], sizes = [1, 8], strides = [1, 1]} : vector<1x128xf32> to vector<1x8xf32>
    %303 = vector.extract_strided_slice %286 {offsets = [0, 88], sizes = [1, 8], strides = [1, 1]} : vector<1x128xf32> to vector<1x8xf32>
    %304 = arith.maximumf %302, %303 : vector<1x8xf32>
    %305 = vector.extract_strided_slice %286 {offsets = [0, 96], sizes = [1, 8], strides = [1, 1]} : vector<1x128xf32> to vector<1x8xf32>
    %306 = vector.extract_strided_slice %286 {offsets = [0, 104], sizes = [1, 8], strides = [1, 1]} : vector<1x128xf32> to vector<1x8xf32>
    %307 = arith.maximumf %305, %306 : vector<1x8xf32>
    %308 = vector.extract_strided_slice %286 {offsets = [0, 112], sizes = [1, 8], strides = [1, 1]} : vector<1x128xf32> to vector<1x8xf32>
    %309 = vector.extract_strided_slice %286 {offsets = [0, 120], sizes = [1, 8], strides = [1, 1]} : vector<1x128xf32> to vector<1x8xf32>
    %310 = arith.maximumf %308, %309 : vector<1x8xf32>
    %311 = tpu.concatenate %289, %292, %295, %298, %301, %304, %307, %310 in 1 : vector<1x8xf32>, vector<1x8xf32>, vector<1x8xf32>, vector<1x8xf32>, vector<1x8xf32>, vector<1x8xf32>, vector<1x8xf32>, vector<1x8xf32> -> vector<1x64xf32>
    %c6 = arith.constant 6 : index
    %c0_92 = arith.constant 0 : index
    %312 = vector.load %arg50[%c6, %c0_92] : memref<16x64xf32, #tpu.memory_space<vmem>>, vector<1x64xf32>
    tpu.vector_store %arg50[%c6, %c0_92], %311 {strides = array<i32>} : memref<16x64xf32, #tpu.memory_space<vmem>>, vector<1x64xf32>,
    %313 = vector.extract_strided_slice %108 {offsets = [14, 0], sizes = [1, 128], strides = [1, 1]} : vector<32x128xf32> to vector<1x128xf32>
    %314 = vector.extract_strided_slice %108 {offsets = [15, 0], sizes = [1, 128], strides = [1, 1]} : vector<32x128xf32> to vector<1x128xf32>
    %315 = arith.maximumf %313, %314 : vector<1x128xf32>
    %316 = vector.extract_strided_slice %315 {offsets = [0, 0], sizes = [1, 8], strides = [1, 1]} : vector<1x128xf32> to vector<1x8xf32>
    %317 = vector.extract_strided_slice %315 {offsets = [0, 8], sizes = [1, 8], strides = [1, 1]} : vector<1x128xf32> to vector<1x8xf32>
    %318 = arith.maximumf %316, %317 : vector<1x8xf32>
    %319 = vector.extract_strided_slice %315 {offsets = [0, 16], sizes = [1, 8], strides = [1, 1]} : vector<1x128xf32> to vector<1x8xf32>
    %320 = vector.extract_strided_slice %315 {offsets = [0, 24], sizes = [1, 8], strides = [1, 1]} : vector<1x128xf32> to vector<1x8xf32>
    %321 = arith.maximumf %319, %320 : vector<1x8xf32>
    %322 = vector.extract_strided_slice %315 {offsets = [0, 32], sizes = [1, 8], strides = [1, 1]} : vector<1x128xf32> to vector<1x8xf32>
    %323 = vector.extract_strided_slice %315 {offsets = [0, 40], sizes = [1, 8], strides = [1, 1]} : vector<1x128xf32> to vector<1x8xf32>
    %324 = arith.maximumf %322, %323 : vector<1x8xf32>
    %325 = vector.extract_strided_slice %315 {offsets = [0, 48], sizes = [1, 8], strides = [1, 1]} : vector<1x128xf32> to vector<1x8xf32>
    %326 = vector.extract_strided_slice %315 {offsets = [0, 56], sizes = [1, 8], strides = [1, 1]} : vector<1x128xf32> to vector<1x8xf32>
    %327 = arith.maximumf %325, %326 : vector<1x8xf32>
    %328 = vector.extract_strided_slice %315 {offsets = [0, 64], sizes = [1, 8], strides = [1, 1]} : vector<1x128xf32> to vector<1x8xf32>
    %329 = vector.extract_strided_slice %315 {offsets = [0, 72], sizes = [1, 8], strides = [1, 1]} : vector<1x128xf32> to vector<1x8xf32>
    %330 = arith.maximumf %328, %329 : vector<1x8xf32>
    %331 = vector.extract_strided_slice %315 {offsets = [0, 80], sizes = [1, 8], strides = [1, 1]} : vector<1x128xf32> to vector<1x8xf32>
    %332 = vector.extract_strided_slice %315 {offsets = [0, 88], sizes = [1, 8], strides = [1, 1]} : vector<1x128xf32> to vector<1x8xf32>
    %333 = arith.maximumf %331, %332 : vector<1x8xf32>
    %334 = vector.extract_strided_slice %315 {offsets = [0, 96], sizes = [1, 8], strides = [1, 1]} : vector<1x128xf32> to vector<1x8xf32>
    %335 = vector.extract_strided_slice %315 {offsets = [0, 104], sizes = [1, 8], strides = [1, 1]} : vector<1x128xf32> to vector<1x8xf32>
    %336 = arith.maximumf %334, %335 : vector<1x8xf32>
    %337 = vector.extract_strided_slice %315 {offsets = [0, 112], sizes = [1, 8], strides = [1, 1]} : vector<1x128xf32> to vector<1x8xf32>
    %338 = vector.extract_strided_slice %315 {offsets = [0, 120], sizes = [1, 8], strides = [1, 1]} : vector<1x128xf32> to vector<1x8xf32>
    %339 = arith.maximumf %337, %338 : vector<1x8xf32>
    %340 = tpu.concatenate %318, %321, %324, %327, %330, %333, %336, %339 in 1 : vector<1x8xf32>, vector<1x8xf32>, vector<1x8xf32>, vector<1x8xf32>, vector<1x8xf32>, vector<1x8xf32>, vector<1x8xf32>, vector<1x8xf32> -> vector<1x64xf32>
    %c7 = arith.constant 7 : index
    %c0_93 = arith.constant 0 : index
    %341 = vector.load %arg50[%c7, %c0_93] : memref<16x64xf32, #tpu.memory_space<vmem>>, vector<1x64xf32>
    tpu.vector_store %arg50[%c7, %c0_93], %340 {strides = array<i32>} : memref<16x64xf32, #tpu.memory_space<vmem>>, vector<1x64xf32>,
    %342 = vector.extract_strided_slice %108 {offsets = [16, 0], sizes = [1, 128], strides = [1, 1]} : vector<32x128xf32> to vector<1x128xf32>
    %343 = vector.extract_strided_slice %108 {offsets = [17, 0], sizes = [1, 128], strides = [1, 1]} : vector<32x128xf32> to vector<1x128xf32>
    %344 = arith.maximumf %342, %343 : vector<1x128xf32>
    %345 = vector.extract_strided_slice %344 {offsets = [0, 0], sizes = [1, 8], strides = [1, 1]} : vector<1x128xf32> to vector<1x8xf32>
    %346 = vector.extract_strided_slice %344 {offsets = [0, 8], sizes = [1, 8], strides = [1, 1]} : vector<1x128xf32> to vector<1x8xf32>
    %347 = arith.maximumf %345, %346 : vector<1x8xf32>
    %348 = vector.extract_strided_slice %344 {offsets = [0, 16], sizes = [1, 8], strides = [1, 1]} : vector<1x128xf32> to vector<1x8xf32>
    %349 = vector.extract_strided_slice %344 {offsets = [0, 24], sizes = [1, 8], strides = [1, 1]} : vector<1x128xf32> to vector<1x8xf32>
    %350 = arith.maximumf %348, %349 : vector<1x8xf32>
    %351 = vector.extract_strided_slice %344 {offsets = [0, 32], sizes = [1, 8], strides = [1, 1]} : vector<1x128xf32> to vector<1x8xf32>
    %352 = vector.extract_strided_slice %344 {offsets = [0, 40], sizes = [1, 8], strides = [1, 1]} : vector<1x128xf32> to vector<1x8xf32>
    %353 = arith.maximumf %351, %352 : vector<1x8xf32>
    %354 = vector.extract_strided_slice %344 {offsets = [0, 48], sizes = [1, 8], strides = [1, 1]} : vector<1x128xf32> to vector<1x8xf32>
    %355 = vector.extract_strided_slice %344 {offsets = [0, 56], sizes = [1, 8], strides = [1, 1]} : vector<1x128xf32> to vector<1x8xf32>
    %356 = arith.maximumf %354, %355 : vector<1x8xf32>
    %357 = vector.extract_strided_slice %344 {offsets = [0, 64], sizes = [1, 8], strides = [1, 1]} : vector<1x128xf32> to vector<1x8xf32>
    %358 = vector.extract_strided_slice %344 {offsets = [0, 72], sizes = [1, 8], strides = [1, 1]} : vector<1x128xf32> to vector<1x8xf32>
    %359 = arith.maximumf %357, %358 : vector<1x8xf32>
    %360 = vector.extract_strided_slice %344 {offsets = [0, 80], sizes = [1, 8], strides = [1, 1]} : vector<1x128xf32> to vector<1x8xf32>
    %361 = vector.extract_strided_slice %344 {offsets = [0, 88], sizes = [1, 8], strides = [1, 1]} : vector<1x128xf32> to vector<1x8xf32>
    %362 = arith.maximumf %360, %361 : vector<1x8xf32>
    %363 = vector.extract_strided_slice %344 {offsets = [0, 96], sizes = [1, 8], strides = [1, 1]} : vector<1x128xf32> to vector<1x8xf32>
    %364 = vector.extract_strided_slice %344 {offsets = [0, 104], sizes = [1, 8], strides = [1, 1]} : vector<1x128xf32> to vector<1x8xf32>
    %365 = arith.maximumf %363, %364 : vector<1x8xf32>
    %366 = vector.extract_strided_slice %344 {offsets = [0, 112], sizes = [1, 8], strides = [1, 1]} : vector<1x128xf32> to vector<1x8xf32>
    %367 = vector.extract_strided_slice %344 {offsets = [0, 120], sizes = [1, 8], strides = [1, 1]} : vector<1x128xf32> to vector<1x8xf32>
    %368 = arith.maximumf %366, %367 : vector<1x8xf32>
    %369 = tpu.concatenate %347, %350, %353, %356, %359, %362, %365, %368 in 1 : vector<1x8xf32>, vector<1x8xf32>, vector<1x8xf32>, vector<1x8xf32>, vector<1x8xf32>, vector<1x8xf32>, vector<1x8xf32>, vector<1x8xf32> -> vector<1x64xf32>
    %c8 = arith.constant 8 : index
    %c0_94 = arith.constant 0 : index
    %370 = vector.load %arg50[%c8, %c0_94] : memref<16x64xf32, #tpu.memory_space<vmem>>, vector<1x64xf32>
    tpu.vector_store %arg50[%c8, %c0_94], %369 {strides = array<i32>} : memref<16x64xf32, #tpu.memory_space<vmem>>, vector<1x64xf32>,
    %371 = vector.extract_strided_slice %108 {offsets = [18, 0], sizes = [1, 128], strides = [1, 1]} : vector<32x128xf32> to vector<1x128xf32>
    %372 = vector.extract_strided_slice %108 {offsets = [19, 0], sizes = [1, 128], strides = [1, 1]} : vector<32x128xf32> to vector<1x128xf32>
    %373 = arith.maximumf %371, %372 : vector<1x128xf32>
    %374 = vector.extract_strided_slice %373 {offsets = [0, 0], sizes = [1, 8], strides = [1, 1]} : vector<1x128xf32> to vector<1x8xf32>
    %375 = vector.extract_strided_slice %373 {offsets = [0, 8], sizes = [1, 8], strides = [1, 1]} : vector<1x128xf32> to vector<1x8xf32>
    %376 = arith.maximumf %374, %375 : vector<1x8xf32>
    %377 = vector.extract_strided_slice %373 {offsets = [0, 16], sizes = [1, 8], strides = [1, 1]} : vector<1x128xf32> to vector<1x8xf32>
    %378 = vector.extract_strided_slice %373 {offsets = [0, 24], sizes = [1, 8], strides = [1, 1]} : vector<1x128xf32> to vector<1x8xf32>
    %379 = arith.maximumf %377, %378 : vector<1x8xf32>
    %380 = vector.extract_strided_slice %373 {offsets = [0, 32], sizes = [1, 8], strides = [1, 1]} : vector<1x128xf32> to vector<1x8xf32>
    %381 = vector.extract_strided_slice %373 {offsets = [0, 40], sizes = [1, 8], strides = [1, 1]} : vector<1x128xf32> to vector<1x8xf32>
    %382 = arith.maximumf %380, %381 : vector<1x8xf32>
    %383 = vector.extract_strided_slice %373 {offsets = [0, 48], sizes = [1, 8], strides = [1, 1]} : vector<1x128xf32> to vector<1x8xf32>
    %384 = vector.extract_strided_slice %373 {offsets = [0, 56], sizes = [1, 8], strides = [1, 1]} : vector<1x128xf32> to vector<1x8xf32>
    %385 = arith.maximumf %383, %384 : vector<1x8xf32>
    %386 = vector.extract_strided_slice %373 {offsets = [0, 64], sizes = [1, 8], strides = [1, 1]} : vector<1x128xf32> to vector<1x8xf32>
    %387 = vector.extract_strided_slice %373 {offsets = [0, 72], sizes = [1, 8], strides = [1, 1]} : vector<1x128xf32> to vector<1x8xf32>
    %388 = arith.maximumf %386, %387 : vector<1x8xf32>
    %389 = vector.extract_strided_slice %373 {offsets = [0, 80], sizes = [1, 8], strides = [1, 1]} : vector<1x128xf32> to vector<1x8xf32>
    %390 = vector.extract_strided_slice %373 {offsets = [0, 88], sizes = [1, 8], strides = [1, 1]} : vector<1x128xf32> to vector<1x8xf32>
    %391 = arith.maximumf %389, %390 : vector<1x8xf32>
    %392 = vector.extract_strided_slice %373 {offsets = [0, 96], sizes = [1, 8], strides = [1, 1]} : vector<1x128xf32> to vector<1x8xf32>
    %393 = vector.extract_strided_slice %373 {offsets = [0, 104], sizes = [1, 8], strides = [1, 1]} : vector<1x128xf32> to vector<1x8xf32>
    %394 = arith.maximumf %392, %393 : vector<1x8xf32>
    %395 = vector.extract_strided_slice %373 {offsets = [0, 112], sizes = [1, 8], strides = [1, 1]} : vector<1x128xf32> to vector<1x8xf32>
    %396 = vector.extract_strided_slice %373 {offsets = [0, 120], sizes = [1, 8], strides = [1, 1]} : vector<1x128xf32> to vector<1x8xf32>
    %397 = arith.maximumf %395, %396 : vector<1x8xf32>
    %398 = tpu.concatenate %376, %379, %382, %385, %388, %391, %394, %397 in 1 : vector<1x8xf32>, vector<1x8xf32>, vector<1x8xf32>, vector<1x8xf32>, vector<1x8xf32>, vector<1x8xf32>, vector<1x8xf32>, vector<1x8xf32> -> vector<1x64xf32>
    %c9 = arith.constant 9 : index
    %c0_95 = arith.constant 0 : index
    %399 = vector.load %arg50[%c9, %c0_95] : memref<16x64xf32, #tpu.memory_space<vmem>>, vector<1x64xf32>
    tpu.vector_store %arg50[%c9, %c0_95], %398 {strides = array<i32>} : memref<16x64xf32, #tpu.memory_space<vmem>>, vector<1x64xf32>,
    %400 = vector.extract_strided_slice %108 {offsets = [20, 0], sizes = [1, 128], strides = [1, 1]} : vector<32x128xf32> to vector<1x128xf32>
    %401 = vector.extract_strided_slice %108 {offsets = [21, 0], sizes = [1, 128], strides = [1, 1]} : vector<32x128xf32> to vector<1x128xf32>
    %402 = arith.maximumf %400, %401 : vector<1x128xf32>
    %403 = vector.extract_strided_slice %402 {offsets = [0, 0], sizes = [1, 8], strides = [1, 1]} : vector<1x128xf32> to vector<1x8xf32>
    %404 = vector.extract_strided_slice %402 {offsets = [0, 8], sizes = [1, 8], strides = [1, 1]} : vector<1x128xf32> to vector<1x8xf32>
    %405 = arith.maximumf %403, %404 : vector<1x8xf32>
    %406 = vector.extract_strided_slice %402 {offsets = [0, 16], sizes = [1, 8], strides = [1, 1]} : vector<1x128xf32> to vector<1x8xf32>
    %407 = vector.extract_strided_slice %402 {offsets = [0, 24], sizes = [1, 8], strides = [1, 1]} : vector<1x128xf32> to vector<1x8xf32>
    %408 = arith.maximumf %406, %407 : vector<1x8xf32>
    %409 = vector.extract_strided_slice %402 {offsets = [0, 32], sizes = [1, 8], strides = [1, 1]} : vector<1x128xf32> to vector<1x8xf32>
    %410 = vector.extract_strided_slice %402 {offsets = [0, 40], sizes = [1, 8], strides = [1, 1]} : vector<1x128xf32> to vector<1x8xf32>
    %411 = arith.maximumf %409, %410 : vector<1x8xf32>
    %412 = vector.extract_strided_slice %402 {offsets = [0, 48], sizes = [1, 8], strides = [1, 1]} : vector<1x128xf32> to vector<1x8xf32>
    %413 = vector.extract_strided_slice %402 {offsets = [0, 56], sizes = [1, 8], strides = [1, 1]} : vector<1x128xf32> to vector<1x8xf32>
    %414 = arith.maximumf %412, %413 : vector<1x8xf32>
    %415 = vector.extract_strided_slice %402 {offsets = [0, 64], sizes = [1, 8], strides = [1, 1]} : vector<1x128xf32> to vector<1x8xf32>
    %416 = vector.extract_strided_slice %402 {offsets = [0, 72], sizes = [1, 8], strides = [1, 1]} : vector<1x128xf32> to vector<1x8xf32>
    %417 = arith.maximumf %415, %416 : vector<1x8xf32>
    %418 = vector.extract_strided_slice %402 {offsets = [0, 80], sizes = [1, 8], strides = [1, 1]} : vector<1x128xf32> to vector<1x8xf32>
    %419 = vector.extract_strided_slice %402 {offsets = [0, 88], sizes = [1, 8], strides = [1, 1]} : vector<1x128xf32> to vector<1x8xf32>
    %420 = arith.maximumf %418, %419 : vector<1x8xf32>
    %421 = vector.extract_strided_slice %402 {offsets = [0, 96], sizes = [1, 8], strides = [1, 1]} : vector<1x128xf32> to vector<1x8xf32>
    %422 = vector.extract_strided_slice %402 {offsets = [0, 104], sizes = [1, 8], strides = [1, 1]} : vector<1x128xf32> to vector<1x8xf32>
    %423 = arith.maximumf %421, %422 : vector<1x8xf32>
    %424 = vector.extract_strided_slice %402 {offsets = [0, 112], sizes = [1, 8], strides = [1, 1]} : vector<1x128xf32> to vector<1x8xf32>
    %425 = vector.extract_strided_slice %402 {offsets = [0, 120], sizes = [1, 8], strides = [1, 1]} : vector<1x128xf32> to vector<1x8xf32>
    %426 = arith.maximumf %424, %425 : vector<1x8xf32>
    %427 = tpu.concatenate %405, %408, %411, %414, %417, %420, %423, %426 in 1 : vector<1x8xf32>, vector<1x8xf32>, vector<1x8xf32>, vector<1x8xf32>, vector<1x8xf32>, vector<1x8xf32>, vector<1x8xf32>, vector<1x8xf32> -> vector<1x64xf32>
    %c10 = arith.constant 10 : index
    %c0_96 = arith.constant 0 : index
    %428 = vector.load %arg50[%c10, %c0_96] : memref<16x64xf32, #tpu.memory_space<vmem>>, vector<1x64xf32>
    tpu.vector_store %arg50[%c10, %c0_96], %427 {strides = array<i32>} : memref<16x64xf32, #tpu.memory_space<vmem>>, vector<1x64xf32>,
    %429 = vector.extract_strided_slice %108 {offsets = [22, 0], sizes = [1, 128], strides = [1, 1]} : vector<32x128xf32> to vector<1x128xf32>
    %430 = vector.extract_strided_slice %108 {offsets = [23, 0], sizes = [1, 128], strides = [1, 1]} : vector<32x128xf32> to vector<1x128xf32>
    %431 = arith.maximumf %429, %430 : vector<1x128xf32>
    %432 = vector.extract_strided_slice %431 {offsets = [0, 0], sizes = [1, 8], strides = [1, 1]} : vector<1x128xf32> to vector<1x8xf32>
    %433 = vector.extract_strided_slice %431 {offsets = [0, 8], sizes = [1, 8], strides = [1, 1]} : vector<1x128xf32> to vector<1x8xf32>
    %434 = arith.maximumf %432, %433 : vector<1x8xf32>
    %435 = vector.extract_strided_slice %431 {offsets = [0, 16], sizes = [1, 8], strides = [1, 1]} : vector<1x128xf32> to vector<1x8xf32>
    %436 = vector.extract_strided_slice %431 {offsets = [0, 24], sizes = [1, 8], strides = [1, 1]} : vector<1x128xf32> to vector<1x8xf32>
    %437 = arith.maximumf %435, %436 : vector<1x8xf32>
    %438 = vector.extract_strided_slice %431 {offsets = [0, 32], sizes = [1, 8], strides = [1, 1]} : vector<1x128xf32> to vector<1x8xf32>
    %439 = vector.extract_strided_slice %431 {offsets = [0, 40], sizes = [1, 8], strides = [1, 1]} : vector<1x128xf32> to vector<1x8xf32>
    %440 = arith.maximumf %438, %439 : vector<1x8xf32>
    %441 = vector.extract_strided_slice %431 {offsets = [0, 48], sizes = [1, 8], strides = [1, 1]} : vector<1x128xf32> to vector<1x8xf32>
    %442 = vector.extract_strided_slice %431 {offsets = [0, 56], sizes = [1, 8], strides = [1, 1]} : vector<1x128xf32> to vector<1x8xf32>
    %443 = arith.maximumf %441, %442 : vector<1x8xf32>
    %444 = vector.extract_strided_slice %431 {offsets = [0, 64], sizes = [1, 8], strides = [1, 1]} : vector<1x128xf32> to vector<1x8xf32>
    %445 = vector.extract_strided_slice %431 {offsets = [0, 72], sizes = [1, 8], strides = [1, 1]} : vector<1x128xf32> to vector<1x8xf32>
    %446 = arith.maximumf %444, %445 : vector<1x8xf32>
    %447 = vector.extract_strided_slice %431 {offsets = [0, 80], sizes = [1, 8], strides = [1, 1]} : vector<1x128xf32> to vector<1x8xf32>
    %448 = vector.extract_strided_slice %431 {offsets = [0, 88], sizes = [1, 8], strides = [1, 1]} : vector<1x128xf32> to vector<1x8xf32>
    %449 = arith.maximumf %447, %448 : vector<1x8xf32>
    %450 = vector.extract_strided_slice %431 {offsets = [0, 96], sizes = [1, 8], strides = [1, 1]} : vector<1x128xf32> to vector<1x8xf32>
    %451 = vector.extract_strided_slice %431 {offsets = [0, 104], sizes = [1, 8], strides = [1, 1]} : vector<1x128xf32> to vector<1x8xf32>
    %452 = arith.maximumf %450, %451 : vector<1x8xf32>
    %453 = vector.extract_strided_slice %431 {offsets = [0, 112], sizes = [1, 8], strides = [1, 1]} : vector<1x128xf32> to vector<1x8xf32>
    %454 = vector.extract_strided_slice %431 {offsets = [0, 120], sizes = [1, 8], strides = [1, 1]} : vector<1x128xf32> to vector<1x8xf32>
    %455 = arith.maximumf %453, %454 : vector<1x8xf32>
    %456 = tpu.concatenate %434, %437, %440, %443, %446, %449, %452, %455 in 1 : vector<1x8xf32>, vector<1x8xf32>, vector<1x8xf32>, vector<1x8xf32>, vector<1x8xf32>, vector<1x8xf32>, vector<1x8xf32>, vector<1x8xf32> -> vector<1x64xf32>
    %c11 = arith.constant 11 : index
    %c0_97 = arith.constant 0 : index
    %457 = vector.load %arg50[%c11, %c0_97] : memref<16x64xf32, #tpu.memory_space<vmem>>, vector<1x64xf32>
    tpu.vector_store %arg50[%c11, %c0_97], %456 {strides = array<i32>} : memref<16x64xf32, #tpu.memory_space<vmem>>, vector<1x64xf32>,
    %458 = vector.extract_strided_slice %108 {offsets = [24, 0], sizes = [1, 128], strides = [1, 1]} : vector<32x128xf32> to vector<1x128xf32>
    %459 = vector.extract_strided_slice %108 {offsets = [25, 0], sizes = [1, 128], strides = [1, 1]} : vector<32x128xf32> to vector<1x128xf32>
    %460 = arith.maximumf %458, %459 : vector<1x128xf32>
    %461 = vector.extract_strided_slice %460 {offsets = [0, 0], sizes = [1, 8], strides = [1, 1]} : vector<1x128xf32> to vector<1x8xf32>
    %462 = vector.extract_strided_slice %460 {offsets = [0, 8], sizes = [1, 8], strides = [1, 1]} : vector<1x128xf32> to vector<1x8xf32>
    %463 = arith.maximumf %461, %462 : vector<1x8xf32>
    %464 = vector.extract_strided_slice %460 {offsets = [0, 16], sizes = [1, 8], strides = [1, 1]} : vector<1x128xf32> to vector<1x8xf32>
    %465 = vector.extract_strided_slice %460 {offsets = [0, 24], sizes = [1, 8], strides = [1, 1]} : vector<1x128xf32> to vector<1x8xf32>
    %466 = arith.maximumf %464, %465 : vector<1x8xf32>
    %467 = vector.extract_strided_slice %460 {offsets = [0, 32], sizes = [1, 8], strides = [1, 1]} : vector<1x128xf32> to vector<1x8xf32>
    %468 = vector.extract_strided_slice %460 {offsets = [0, 40], sizes = [1, 8], strides = [1, 1]} : vector<1x128xf32> to vector<1x8xf32>
    %469 = arith.maximumf %467, %468 : vector<1x8xf32>
    %470 = vector.extract_strided_slice %460 {offsets = [0, 48], sizes = [1, 8], strides = [1, 1]} : vector<1x128xf32> to vector<1x8xf32>
    %471 = vector.extract_strided_slice %460 {offsets = [0, 56], sizes = [1, 8], strides = [1, 1]} : vector<1x128xf32> to vector<1x8xf32>
    %472 = arith.maximumf %470, %471 : vector<1x8xf32>
    %473 = vector.extract_strided_slice %460 {offsets = [0, 64], sizes = [1, 8], strides = [1, 1]} : vector<1x128xf32> to vector<1x8xf32>
    %474 = vector.extract_strided_slice %460 {offsets = [0, 72], sizes = [1, 8], strides = [1, 1]} : vector<1x128xf32> to vector<1x8xf32>
    %475 = arith.maximumf %473, %474 : vector<1x8xf32>
    %476 = vector.extract_strided_slice %460 {offsets = [0, 80], sizes = [1, 8], strides = [1, 1]} : vector<1x128xf32> to vector<1x8xf32>
    %477 = vector.extract_strided_slice %460 {offsets = [0, 88], sizes = [1, 8], strides = [1, 1]} : vector<1x128xf32> to vector<1x8xf32>
    %478 = arith.maximumf %476, %477 : vector<1x8xf32>
    %479 = vector.extract_strided_slice %460 {offsets = [0, 96], sizes = [1, 8], strides = [1, 1]} : vector<1x128xf32> to vector<1x8xf32>
    %480 = vector.extract_strided_slice %460 {offsets = [0, 104], sizes = [1, 8], strides = [1, 1]} : vector<1x128xf32> to vector<1x8xf32>
    %481 = arith.maximumf %479, %480 : vector<1x8xf32>
    %482 = vector.extract_strided_slice %460 {offsets = [0, 112], sizes = [1, 8], strides = [1, 1]} : vector<1x128xf32> to vector<1x8xf32>
    %483 = vector.extract_strided_slice %460 {offsets = [0, 120], sizes = [1, 8], strides = [1, 1]} : vector<1x128xf32> to vector<1x8xf32>
    %484 = arith.maximumf %482, %483 : vector<1x8xf32>
    %485 = tpu.concatenate %463, %466, %469, %472, %475, %478, %481, %484 in 1 : vector<1x8xf32>, vector<1x8xf32>, vector<1x8xf32>, vector<1x8xf32>, vector<1x8xf32>, vector<1x8xf32>, vector<1x8xf32>, vector<1x8xf32> -> vector<1x64xf32>
    %c12 = arith.constant 12 : index
    %c0_98 = arith.constant 0 : index
    %486 = vector.load %arg50[%c12, %c0_98] : memref<16x64xf32, #tpu.memory_space<vmem>>, vector<1x64xf32>
    tpu.vector_store %arg50[%c12, %c0_98], %485 {strides = array<i32>} : memref<16x64xf32, #tpu.memory_space<vmem>>, vector<1x64xf32>,
    %487 = vector.extract_strided_slice %108 {offsets = [26, 0], sizes = [1, 128], strides = [1, 1]} : vector<32x128xf32> to vector<1x128xf32>
    %488 = vector.extract_strided_slice %108 {offsets = [27, 0], sizes = [1, 128], strides = [1, 1]} : vector<32x128xf32> to vector<1x128xf32>
    %489 = arith.maximumf %487, %488 : vector<1x128xf32>
    %490 = vector.extract_strided_slice %489 {offsets = [0, 0], sizes = [1, 8], strides = [1, 1]} : vector<1x128xf32> to vector<1x8xf32>
    %491 = vector.extract_strided_slice %489 {offsets = [0, 8], sizes = [1, 8], strides = [1, 1]} : vector<1x128xf32> to vector<1x8xf32>
    %492 = arith.maximumf %490, %491 : vector<1x8xf32>
    %493 = vector.extract_strided_slice %489 {offsets = [0, 16], sizes = [1, 8], strides = [1, 1]} : vector<1x128xf32> to vector<1x8xf32>
    %494 = vector.extract_strided_slice %489 {offsets = [0, 24], sizes = [1, 8], strides = [1, 1]} : vector<1x128xf32> to vector<1x8xf32>
    %495 = arith.maximumf %493, %494 : vector<1x8xf32>
    %496 = vector.extract_strided_slice %489 {offsets = [0, 32], sizes = [1, 8], strides = [1, 1]} : vector<1x128xf32> to vector<1x8xf32>
    %497 = vector.extract_strided_slice %489 {offsets = [0, 40], sizes = [1, 8], strides = [1, 1]} : vector<1x128xf32> to vector<1x8xf32>
    %498 = arith.maximumf %496, %497 : vector<1x8xf32>
    %499 = vector.extract_strided_slice %489 {offsets = [0, 48], sizes = [1, 8], strides = [1, 1]} : vector<1x128xf32> to vector<1x8xf32>
    %500 = vector.extract_strided_slice %489 {offsets = [0, 56], sizes = [1, 8], strides = [1, 1]} : vector<1x128xf32> to vector<1x8xf32>
    %501 = arith.maximumf %499, %500 : vector<1x8xf32>
    %502 = vector.extract_strided_slice %489 {offsets = [0, 64], sizes = [1, 8], strides = [1, 1]} : vector<1x128xf32> to vector<1x8xf32>
    %503 = vector.extract_strided_slice %489 {offsets = [0, 72], sizes = [1, 8], strides = [1, 1]} : vector<1x128xf32> to vector<1x8xf32>
    %504 = arith.maximumf %502, %503 : vector<1x8xf32>
    %505 = vector.extract_strided_slice %489 {offsets = [0, 80], sizes = [1, 8], strides = [1, 1]} : vector<1x128xf32> to vector<1x8xf32>
    %506 = vector.extract_strided_slice %489 {offsets = [0, 88], sizes = [1, 8], strides = [1, 1]} : vector<1x128xf32> to vector<1x8xf32>
    %507 = arith.maximumf %505, %506 : vector<1x8xf32>
    %508 = vector.extract_strided_slice %489 {offsets = [0, 96], sizes = [1, 8], strides = [1, 1]} : vector<1x128xf32> to vector<1x8xf32>
    %509 = vector.extract_strided_slice %489 {offsets = [0, 104], sizes = [1, 8], strides = [1, 1]} : vector<1x128xf32> to vector<1x8xf32>
    %510 = arith.maximumf %508, %509 : vector<1x8xf32>
    %511 = vector.extract_strided_slice %489 {offsets = [0, 112], sizes = [1, 8], strides = [1, 1]} : vector<1x128xf32> to vector<1x8xf32>
    %512 = vector.extract_strided_slice %489 {offsets = [0, 120], sizes = [1, 8], strides = [1, 1]} : vector<1x128xf32> to vector<1x8xf32>
    %513 = arith.maximumf %511, %512 : vector<1x8xf32>
    %514 = tpu.concatenate %492, %495, %498, %501, %504, %507, %510, %513 in 1 : vector<1x8xf32>, vector<1x8xf32>, vector<1x8xf32>, vector<1x8xf32>, vector<1x8xf32>, vector<1x8xf32>, vector<1x8xf32>, vector<1x8xf32> -> vector<1x64xf32>
    %c13 = arith.constant 13 : index
    %c0_99 = arith.constant 0 : index
    %515 = vector.load %arg50[%c13, %c0_99] : memref<16x64xf32, #tpu.memory_space<vmem>>, vector<1x64xf32>
    tpu.vector_store %arg50[%c13, %c0_99], %514 {strides = array<i32>} : memref<16x64xf32, #tpu.memory_space<vmem>>, vector<1x64xf32>,
    %516 = vector.extract_strided_slice %108 {offsets = [28, 0], sizes = [1, 128], strides = [1, 1]} : vector<32x128xf32> to vector<1x128xf32>
    %517 = vector.extract_strided_slice %108 {offsets = [29, 0], sizes = [1, 128], strides = [1, 1]} : vector<32x128xf32> to vector<1x128xf32>
    %518 = arith.maximumf %516, %517 : vector<1x128xf32>
    %519 = vector.extract_strided_slice %518 {offsets = [0, 0], sizes = [1, 8], strides = [1, 1]} : vector<1x128xf32> to vector<1x8xf32>
    %520 = vector.extract_strided_slice %518 {offsets = [0, 8], sizes = [1, 8], strides = [1, 1]} : vector<1x128xf32> to vector<1x8xf32>
    %521 = arith.maximumf %519, %520 : vector<1x8xf32>
    %522 = vector.extract_strided_slice %518 {offsets = [0, 16], sizes = [1, 8], strides = [1, 1]} : vector<1x128xf32> to vector<1x8xf32>
    %523 = vector.extract_strided_slice %518 {offsets = [0, 24], sizes = [1, 8], strides = [1, 1]} : vector<1x128xf32> to vector<1x8xf32>
    %524 = arith.maximumf %522, %523 : vector<1x8xf32>
    %525 = vector.extract_strided_slice %518 {offsets = [0, 32], sizes = [1, 8], strides = [1, 1]} : vector<1x128xf32> to vector<1x8xf32>
    %526 = vector.extract_strided_slice %518 {offsets = [0, 40], sizes = [1, 8], strides = [1, 1]} : vector<1x128xf32> to vector<1x8xf32>
    %527 = arith.maximumf %525, %526 : vector<1x8xf32>
    %528 = vector.extract_strided_slice %518 {offsets = [0, 48], sizes = [1, 8], strides = [1, 1]} : vector<1x128xf32> to vector<1x8xf32>
    %529 = vector.extract_strided_slice %518 {offsets = [0, 56], sizes = [1, 8], strides = [1, 1]} : vector<1x128xf32> to vector<1x8xf32>
    %530 = arith.maximumf %528, %529 : vector<1x8xf32>
    %531 = vector.extract_strided_slice %518 {offsets = [0, 64], sizes = [1, 8], strides = [1, 1]} : vector<1x128xf32> to vector<1x8xf32>
    %532 = vector.extract_strided_slice %518 {offsets = [0, 72], sizes = [1, 8], strides = [1, 1]} : vector<1x128xf32> to vector<1x8xf32>
    %533 = arith.maximumf %531, %532 : vector<1x8xf32>
    %534 = vector.extract_strided_slice %518 {offsets = [0, 80], sizes = [1, 8], strides = [1, 1]} : vector<1x128xf32> to vector<1x8xf32>
    %535 = vector.extract_strided_slice %518 {offsets = [0, 88], sizes = [1, 8], strides = [1, 1]} : vector<1x128xf32> to vector<1x8xf32>
    %536 = arith.maximumf %534, %535 : vector<1x8xf32>
    %537 = vector.extract_strided_slice %518 {offsets = [0, 96], sizes = [1, 8], strides = [1, 1]} : vector<1x128xf32> to vector<1x8xf32>
    %538 = vector.extract_strided_slice %518 {offsets = [0, 104], sizes = [1, 8], strides = [1, 1]} : vector<1x128xf32> to vector<1x8xf32>
    %539 = arith.maximumf %537, %538 : vector<1x8xf32>
    %540 = vector.extract_strided_slice %518 {offsets = [0, 112], sizes = [1, 8], strides = [1, 1]} : vector<1x128xf32> to vector<1x8xf32>
    %541 = vector.extract_strided_slice %518 {offsets = [0, 120], sizes = [1, 8], strides = [1, 1]} : vector<1x128xf32> to vector<1x8xf32>
    %542 = arith.maximumf %540, %541 : vector<1x8xf32>
    %543 = tpu.concatenate %521, %524, %527, %530, %533, %536, %539, %542 in 1 : vector<1x8xf32>, vector<1x8xf32>, vector<1x8xf32>, vector<1x8xf32>, vector<1x8xf32>, vector<1x8xf32>, vector<1x8xf32>, vector<1x8xf32> -> vector<1x64xf32>
    %c14 = arith.constant 14 : index
    %c0_100 = arith.constant 0 : index
    %544 = vector.load %arg50[%c14, %c0_100] : memref<16x64xf32, #tpu.memory_space<vmem>>, vector<1x64xf32>
    tpu.vector_store %arg50[%c14, %c0_100], %543 {strides = array<i32>} : memref<16x64xf32, #tpu.memory_space<vmem>>, vector<1x64xf32>,
    %545 = vector.extract_strided_slice %108 {offsets = [30, 0], sizes = [1, 128], strides = [1, 1]} : vector<32x128xf32> to vector<1x128xf32>
    %546 = vector.extract_strided_slice %108 {offsets = [31, 0], sizes = [1, 128], strides = [1, 1]} : vector<32x128xf32> to vector<1x128xf32>
    %547 = arith.maximumf %545, %546 : vector<1x128xf32>
    %548 = vector.extract_strided_slice %547 {offsets = [0, 0], sizes = [1, 8], strides = [1, 1]} : vector<1x128xf32> to vector<1x8xf32>
    %549 = vector.extract_strided_slice %547 {offsets = [0, 8], sizes = [1, 8], strides = [1, 1]} : vector<1x128xf32> to vector<1x8xf32>
    %550 = arith.maximumf %548, %549 : vector<1x8xf32>
    %551 = vector.extract_strided_slice %547 {offsets = [0, 16], sizes = [1, 8], strides = [1, 1]} : vector<1x128xf32> to vector<1x8xf32>
    %552 = vector.extract_strided_slice %547 {offsets = [0, 24], sizes = [1, 8], strides = [1, 1]} : vector<1x128xf32> to vector<1x8xf32>
    %553 = arith.maximumf %551, %552 : vector<1x8xf32>
    %554 = vector.extract_strided_slice %547 {offsets = [0, 32], sizes = [1, 8], strides = [1, 1]} : vector<1x128xf32> to vector<1x8xf32>
    %555 = vector.extract_strided_slice %547 {offsets = [0, 40], sizes = [1, 8], strides = [1, 1]} : vector<1x128xf32> to vector<1x8xf32>
    %556 = arith.maximumf %554, %555 : vector<1x8xf32>
    %557 = vector.extract_strided_slice %547 {offsets = [0, 48], sizes = [1, 8], strides = [1, 1]} : vector<1x128xf32> to vector<1x8xf32>
    %558 = vector.extract_strided_slice %547 {offsets = [0, 56], sizes = [1, 8], strides = [1, 1]} : vector<1x128xf32> to vector<1x8xf32>
    %559 = arith.maximumf %557, %558 : vector<1x8xf32>
    %560 = vector.extract_strided_slice %547 {offsets = [0, 64], sizes = [1, 8], strides = [1, 1]} : vector<1x128xf32> to vector<1x8xf32>
    %561 = vector.extract_strided_slice %547 {offsets = [0, 72], sizes = [1, 8], strides = [1, 1]} : vector<1x128xf32> to vector<1x8xf32>
    %562 = arith.maximumf %560, %561 : vector<1x8xf32>
    %563 = vector.extract_strided_slice %547 {offsets = [0, 80], sizes = [1, 8], strides = [1, 1]} : vector<1x128xf32> to vector<1x8xf32>
    %564 = vector.extract_strided_slice %547 {offsets = [0, 88], sizes = [1, 8], strides = [1, 1]} : vector<1x128xf32> to vector<1x8xf32>
    %565 = arith.maximumf %563, %564 : vector<1x8xf32>
    %566 = vector.extract_strided_slice %547 {offsets = [0, 96], sizes = [1, 8], strides = [1, 1]} : vector<1x128xf32> to vector<1x8xf32>
    %567 = vector.extract_strided_slice %547 {offsets = [0, 104], sizes = [1, 8], strides = [1, 1]} : vector<1x128xf32> to vector<1x8xf32>
    %568 = arith.maximumf %566, %567 : vector<1x8xf32>
    %569 = vector.extract_strided_slice %547 {offsets = [0, 112], sizes = [1, 8], strides = [1, 1]} : vector<1x128xf32> to vector<1x8xf32>
    %570 = vector.extract_strided_slice %547 {offsets = [0, 120], sizes = [1, 8], strides = [1, 1]} : vector<1x128xf32> to vector<1x8xf32>
    %571 = arith.maximumf %569, %570 : vector<1x8xf32>
    %572 = tpu.concatenate %550, %553, %556, %559, %562, %565, %568, %571 in 1 : vector<1x8xf32>, vector<1x8xf32>, vector<1x8xf32>, vector<1x8xf32>, vector<1x8xf32>, vector<1x8xf32>, vector<1x8xf32>, vector<1x8xf32> -> vector<1x64xf32>
    %c15_101 = arith.constant 15 : index
    %c0_102 = arith.constant 0 : index
    %573 = vector.load %arg50[%c15_101, %c0_102] : memref<16x64xf32, #tpu.memory_space<vmem>>, vector<1x64xf32>
    tpu.vector_store %arg50[%c15_101, %c0_102], %572 {strides = array<i32>} : memref<16x64xf32, #tpu.memory_space<vmem>>, vector<1x64xf32>,
    %c0_103 = arith.constant 0 : index
    %c0_104 = arith.constant 0 : index
    %574 = vector.load %arg50[%c0_103, %c0_104] : memref<16x64xf32, #tpu.memory_space<vmem>>, vector<16x64xf32>
    %cst_105 = arith.constant 0.000000e+00 : f32
    %575 = vector.broadcast %cst_105 : f32 to vector<1x64xf32>
    %c0_106 = arith.constant 0 : index
    %c0_107 = arith.constant 0 : index
    %576 = vector.load %arg44[%c0_106, %c0_107] : memref<16x192xf32, #tpu.memory_space<vmem>>, vector<1x64xf32>
    tpu.vector_store %arg44[%c0_106, %c0_107], %575 {strides = array<i32>} : memref<16x192xf32, #tpu.memory_space<vmem>>, vector<1x64xf32>,
    %577 = vector.extract_strided_slice %574 {offsets = [0, 0], sizes = [7, 64], strides = [1, 1]} : vector<16x64xf32> to vector<7x64xf32>
    %c1_108 = arith.constant 1 : index
    %c0_109 = arith.constant 0 : index
    %578 = vector.load %arg44[%c1_108, %c0_109] : memref<16x192xf32, #tpu.memory_space<vmem>>, vector<7x64xf32>
    tpu.vector_store %arg44[%c1_108, %c0_109], %577 {strides = array<i32>} : memref<16x192xf32, #tpu.memory_space<vmem>>, vector<7x64xf32>,
    %579 = vector.extract_strided_slice %574 {offsets = [0, 0], sizes = [8, 64], strides = [1, 1]} : vector<16x64xf32> to vector<8x64xf32>
    %c0_110 = arith.constant 0 : index
    %c64_111 = arith.constant 64 : index
    %580 = vector.load %arg44[%c0_110, %c64_111] : memref<16x192xf32, #tpu.memory_space<vmem>>, vector<8x64xf32>
    tpu.vector_store %arg44[%c0_110, %c64_111], %579 {strides = array<i32>} : memref<16x192xf32, #tpu.memory_space<vmem>>, vector<8x64xf32>,
    %581 = vector.extract_strided_slice %574 {offsets = [1, 0], sizes = [7, 64], strides = [1, 1]} : vector<16x64xf32> to vector<7x64xf32>
    %c0_112 = arith.constant 0 : index
    %c128_113 = arith.constant 128 : index
    %582 = vector.load %arg44[%c0_112, %c128_113] : memref<16x192xf32, #tpu.memory_space<vmem>>, vector<7x64xf32>
    tpu.vector_store %arg44[%c0_112, %c128_113], %581 {strides = array<i32>} : memref<16x192xf32, #tpu.memory_space<vmem>>, vector<7x64xf32>,
    %c7_114 = arith.constant 7 : index
    %c128_115 = arith.constant 128 : index
    %583 = vector.load %arg44[%c7_114, %c128_115] : memref<16x192xf32, #tpu.memory_space<vmem>>, vector<1x64xf32>
    tpu.vector_store %arg44[%c7_114, %c128_115], %575 {strides = array<i32>} : memref<16x192xf32, #tpu.memory_space<vmem>>, vector<1x64xf32>,
    %c8_116 = arith.constant 8 : index
    %c0_117 = arith.constant 0 : index
    %584 = vector.load %arg44[%c8_116, %c0_117] : memref<16x192xf32, #tpu.memory_space<vmem>>, vector<1x64xf32>
    tpu.vector_store %arg44[%c8_116, %c0_117], %575 {strides = array<i32>} : memref<16x192xf32, #tpu.memory_space<vmem>>, vector<1x64xf32>,
    %585 = vector.extract_strided_slice %574 {offsets = [8, 0], sizes = [7, 64], strides = [1, 1]} : vector<16x64xf32> to vector<7x64xf32>
    %c9_118 = arith.constant 9 : index
    %c0_119 = arith.constant 0 : index
    %586 = vector.load %arg44[%c9_118, %c0_119] : memref<16x192xf32, #tpu.memory_space<vmem>>, vector<7x64xf32>
    tpu.vector_store %arg44[%c9_118, %c0_119], %585 {strides = array<i32>} : memref<16x192xf32, #tpu.memory_space<vmem>>, vector<7x64xf32>,
    %587 = vector.extract_strided_slice %574 {offsets = [8, 0], sizes = [8, 64], strides = [1, 1]} : vector<16x64xf32> to vector<8x64xf32>
    %c8_120 = arith.constant 8 : index
    %c64_121 = arith.constant 64 : index
    %588 = vector.load %arg44[%c8_120, %c64_121] : memref<16x192xf32, #tpu.memory_space<vmem>>, vector<8x64xf32>
    tpu.vector_store %arg44[%c8_120, %c64_121], %587 {strides = array<i32>} : memref<16x192xf32, #tpu.memory_space<vmem>>, vector<8x64xf32>,
    %589 = vector.extract_strided_slice %574 {offsets = [9, 0], sizes = [7, 64], strides = [1, 1]} : vector<16x64xf32> to vector<7x64xf32>
    %c8_122 = arith.constant 8 : index
    %c128_123 = arith.constant 128 : index
    %590 = vector.load %arg44[%c8_122, %c128_123] : memref<16x192xf32, #tpu.memory_space<vmem>>, vector<7x64xf32>
    tpu.vector_store %arg44[%c8_122, %c128_123], %589 {strides = array<i32>} : memref<16x192xf32, #tpu.memory_space<vmem>>, vector<7x64xf32>,
    %c15_124 = arith.constant 15 : index
    %c128_125 = arith.constant 128 : index
    %591 = vector.load %arg44[%c15_124, %c128_125] : memref<16x192xf32, #tpu.memory_space<vmem>>, vector<1x64xf32>
    tpu.vector_store %arg44[%c15_124, %c128_125], %575 {strides = array<i32>} : memref<16x192xf32, #tpu.memory_space<vmem>>, vector<1x64xf32>,
    %c0_126 = arith.constant 0 : index
    %c0_127 = arith.constant 0 : index
    %592 = vector.load %arg44[%c0_126, %c0_127] : memref<16x192xf32, #tpu.memory_space<vmem>>, vector<16x192xf32>
    %c0_128 = arith.constant 0 : index
    %c0_129 = arith.constant 0 : index
    %593 = vector.load %arg9[%c0_128, %c0_129] : memref<192x128xf32, #tpu.memory_space<vmem>>, vector<192x128xf32>
    %cst_130 = arith.constant dense<0.000000e+00> : vector<16x128xf32>
    %594 = tpu.matmul %592, %593, %cst_130 {dimension_numbers = #tpu.dot_dimension_numbers<[1], [0], [0], [1], [0, 0, 1, 1], [], []>} : vector<16x192xf32>, vector<192x128xf32>, vector<16x128xf32> -> vector<16x128xf32>
    %c0_131 = arith.constant 0 : index
    %c0_132 = arith.constant 0 : index
    %595 = vector.load %arg10[%c0_131, %c0_132] : memref<1x128xf32, #tpu.memory_space<vmem>>, vector<1x128xf32>
    %596 = vector.broadcast %595 : vector<1x128xf32> to vector<16x128xf32>
    %597 = arith.addf %594, %596 : vector<16x128xf32>
    %cst_133 = arith.constant dense<0.000000e+00> : vector<128xf32>
    %598 = vector.multi_reduction <add>, %597, %cst_133 [0] : vector<16x128xf32> to vector<128xf32>
    %599 = vector.shape_cast %598 : vector<128xf32> to vector<1x128xf32>
    %600 = arith.mulf %597, %597 : vector<16x128xf32>
    %cst_134 = arith.constant dense<0.000000e+00> : vector<128xf32>
    %601 = vector.multi_reduction <add>, %600, %cst_134 [0] : vector<16x128xf32> to vector<128xf32>
    %602 = vector.shape_cast %601 : vector<128xf32> to vector<1x128xf32>
    %c0_135 = arith.constant 0 : index
    %c0_136 = arith.constant 0 : index
    %603 = vector.load %arg34[%c0_135, %c0_136] : memref<128x128xf32, #tpu.memory_space<vmem>>, vector<128x128xf32>
    %cst_137 = arith.constant dense<0.000000e+00> : vector<1x128xf32>
    %604 = tpu.matmul %599, %603, %cst_137 {dimension_numbers = #tpu.dot_dimension_numbers<[1], [0], [0], [1], [0, 0, 1, 1], [], []>} : vector<1x128xf32>, vector<128x128xf32>, vector<1x128xf32> -> vector<1x128xf32>
    %cst_138 = arith.constant 7.812500e-03 : f32
    %605 = vector.broadcast %cst_138 : f32 to vector<1x128xf32>
    %606 = arith.mulf %604, %605 : vector<1x128xf32>
    %c0_139 = arith.constant 0 : index
    %c0_140 = arith.constant 0 : index
    %607 = vector.load %arg34[%c0_139, %c0_140] : memref<128x128xf32, #tpu.memory_space<vmem>>, vector<128x128xf32>
    %cst_141 = arith.constant dense<0.000000e+00> : vector<1x128xf32>
    %608 = tpu.matmul %602, %607, %cst_141 {dimension_numbers = #tpu.dot_dimension_numbers<[1], [0], [0], [1], [0, 0, 1, 1], [], []>} : vector<1x128xf32>, vector<128x128xf32>, vector<1x128xf32> -> vector<1x128xf32>
    %cst_142 = arith.constant 7.812500e-03 : f32
    %609 = vector.broadcast %cst_142 : f32 to vector<1x128xf32>
    %610 = arith.mulf %608, %609 : vector<1x128xf32>
    %611 = arith.mulf %606, %606 : vector<1x128xf32>
    %612 = arith.subf %610, %611 : vector<1x128xf32>
    %cst_143 = arith.constant 0.000000e+00 : f32
    %613 = vector.broadcast %cst_143 : f32 to vector<1x128xf32>
    %614 = arith.maximumf %612, %613 : vector<1x128xf32>
    %cst_144 = arith.constant 9.99999974E-6 : f32
    %615 = vector.broadcast %cst_144 : f32 to vector<1x128xf32>
    %616 = arith.addf %614, %615 : vector<1x128xf32>
    %617 = math.rsqrt %616 : vector<1x128xf32>
    %c0_145 = arith.constant 0 : index
    %c0_146 = arith.constant 0 : index
    %618 = vector.load %arg11[%c0_145, %c0_146] : memref<1x128xf32, #tpu.memory_space<vmem>>, vector<1x128xf32>
    %619 = arith.mulf %617, %618 : vector<1x128xf32>
    %c0_147 = arith.constant 0 : index
    %c0_148 = arith.constant 0 : index
    %620 = vector.load %arg12[%c0_147, %c0_148] : memref<1x128xf32, #tpu.memory_space<vmem>>, vector<1x128xf32>
    %621 = arith.mulf %606, %619 : vector<1x128xf32>
    %622 = arith.subf %620, %621 : vector<1x128xf32>
    %623 = vector.broadcast %619 : vector<1x128xf32> to vector<16x128xf32>
    %624 = arith.mulf %597, %623 : vector<16x128xf32>
    %625 = vector.broadcast %622 : vector<1x128xf32> to vector<16x128xf32>
    %626 = arith.addf %624, %625 : vector<16x128xf32>
    %cst_149 = arith.constant 0.000000e+00 : f32
    %627 = vector.broadcast %cst_149 : f32 to vector<16x128xf32>
    %628 = arith.maximumf %626, %627 : vector<16x128xf32>
    %cst_150 = arith.constant 0.000000e+00 : f32
    %629 = vector.broadcast %cst_150 : f32 to vector<1x128xf32>
    %c0_151 = arith.constant 0 : index
    %c0_152 = arith.constant 0 : index
    %630 = vector.load %arg45[%c0_151, %c0_152] : memref<16x384xf32, #tpu.memory_space<vmem>>, vector<1x128xf32>
    tpu.vector_store %arg45[%c0_151, %c0_152], %629 {strides = array<i32>} : memref<16x384xf32, #tpu.memory_space<vmem>>, vector<1x128xf32>,
    %631 = vector.extract_strided_slice %628 {offsets = [0, 0], sizes = [7, 128], strides = [1, 1]} : vector<16x128xf32> to vector<7x128xf32>
    %c1_153 = arith.constant 1 : index
    %c0_154 = arith.constant 0 : index
    %632 = vector.load %arg45[%c1_153, %c0_154] : memref<16x384xf32, #tpu.memory_space<vmem>>, vector<7x128xf32>
    tpu.vector_store %arg45[%c1_153, %c0_154], %631 {strides = array<i32>} : memref<16x384xf32, #tpu.memory_space<vmem>>, vector<7x128xf32>,
    %633 = vector.extract_strided_slice %628 {offsets = [0, 0], sizes = [8, 128], strides = [1, 1]} : vector<16x128xf32> to vector<8x128xf32>
    %c0_155 = arith.constant 0 : index
    %c128_156 = arith.constant 128 : index
    %634 = vector.load %arg45[%c0_155, %c128_156] : memref<16x384xf32, #tpu.memory_space<vmem>>, vector<8x128xf32>
    tpu.vector_store %arg45[%c0_155, %c128_156], %633 {strides = array<i32>} : memref<16x384xf32, #tpu.memory_space<vmem>>, vector<8x128xf32>,
    %635 = vector.extract_strided_slice %628 {offsets = [1, 0], sizes = [7, 128], strides = [1, 1]} : vector<16x128xf32> to vector<7x128xf32>
    %c0_157 = arith.constant 0 : index
    %c256_158 = arith.constant 256 : index
    %636 = vector.load %arg45[%c0_157, %c256_158] : memref<16x384xf32, #tpu.memory_space<vmem>>, vector<7x128xf32>
    tpu.vector_store %arg45[%c0_157, %c256_158], %635 {strides = array<i32>} : memref<16x384xf32, #tpu.memory_space<vmem>>, vector<7x128xf32>,
    %c7_159 = arith.constant 7 : index
    %c256_160 = arith.constant 256 : index
    %637 = vector.load %arg45[%c7_159, %c256_160] : memref<16x384xf32, #tpu.memory_space<vmem>>, vector<1x128xf32>
    tpu.vector_store %arg45[%c7_159, %c256_160], %629 {strides = array<i32>} : memref<16x384xf32, #tpu.memory_space<vmem>>, vector<1x128xf32>,
    %c8_161 = arith.constant 8 : index
    %c0_162 = arith.constant 0 : index
    %638 = vector.load %arg45[%c8_161, %c0_162] : memref<16x384xf32, #tpu.memory_space<vmem>>, vector<1x128xf32>
    tpu.vector_store %arg45[%c8_161, %c0_162], %629 {strides = array<i32>} : memref<16x384xf32, #tpu.memory_space<vmem>>, vector<1x128xf32>,
    %639 = vector.extract_strided_slice %628 {offsets = [8, 0], sizes = [7, 128], strides = [1, 1]} : vector<16x128xf32> to vector<7x128xf32>
    %c9_163 = arith.constant 9 : index
    %c0_164 = arith.constant 0 : index
    %640 = vector.load %arg45[%c9_163, %c0_164] : memref<16x384xf32, #tpu.memory_space<vmem>>, vector<7x128xf32>
    tpu.vector_store %arg45[%c9_163, %c0_164], %639 {strides = array<i32>} : memref<16x384xf32, #tpu.memory_space<vmem>>, vector<7x128xf32>,
    %641 = vector.extract_strided_slice %628 {offsets = [8, 0], sizes = [8, 128], strides = [1, 1]} : vector<16x128xf32> to vector<8x128xf32>
    %c8_165 = arith.constant 8 : index
    %c128_166 = arith.constant 128 : index
    %642 = vector.load %arg45[%c8_165, %c128_166] : memref<16x384xf32, #tpu.memory_space<vmem>>, vector<8x128xf32>
    tpu.vector_store %arg45[%c8_165, %c128_166], %641 {strides = array<i32>} : memref<16x384xf32, #tpu.memory_space<vmem>>, vector<8x128xf32>,
    %643 = vector.extract_strided_slice %628 {offsets = [9, 0], sizes = [7, 128], strides = [1, 1]} : vector<16x128xf32> to vector<7x128xf32>
    %c8_167 = arith.constant 8 : index
    %c256_168 = arith.constant 256 : index
    %644 = vector.load %arg45[%c8_167, %c256_168] : memref<16x384xf32, #tpu.memory_space<vmem>>, vector<7x128xf32>
    tpu.vector_store %arg45[%c8_167, %c256_168], %643 {strides = array<i32>} : memref<16x384xf32, #tpu.memory_space<vmem>>, vector<7x128xf32>,
    %c15_169 = arith.constant 15 : index
    %c256_170 = arith.constant 256 : index
    %645 = vector.load %arg45[%c15_169, %c256_170] : memref<16x384xf32, #tpu.memory_space<vmem>>, vector<1x128xf32>
    tpu.vector_store %arg45[%c15_169, %c256_170], %629 {strides = array<i32>} : memref<16x384xf32, #tpu.memory_space<vmem>>, vector<1x128xf32>,
    %c0_171 = arith.constant 0 : index
    %c0_172 = arith.constant 0 : index
    %646 = vector.load %arg45[%c0_171, %c0_172] : memref<16x384xf32, #tpu.memory_space<vmem>>, vector<16x384xf32>
    %c0_173 = arith.constant 0 : index
    %c0_174 = arith.constant 0 : index
    %647 = vector.load %arg13[%c0_173, %c0_174] : memref<384x128xf32, #tpu.memory_space<vmem>>, vector<384x128xf32>
    %cst_175 = arith.constant dense<0.000000e+00> : vector<16x128xf32>
    %648 = tpu.matmul %646, %647, %cst_175 {dimension_numbers = #tpu.dot_dimension_numbers<[1], [0], [0], [1], [0, 0, 1, 1], [], []>} : vector<16x384xf32>, vector<384x128xf32>, vector<16x128xf32> -> vector<16x128xf32>
    %c0_176 = arith.constant 0 : index
    %c0_177 = arith.constant 0 : index
    %649 = vector.load %arg14[%c0_176, %c0_177] : memref<1x128xf32, #tpu.memory_space<vmem>>, vector<1x128xf32>
    %650 = vector.broadcast %649 : vector<1x128xf32> to vector<16x128xf32>
    %651 = arith.addf %648, %650 : vector<16x128xf32>
    %cst_178 = arith.constant dense<0.000000e+00> : vector<128xf32>
    %652 = vector.multi_reduction <add>, %651, %cst_178 [0] : vector<16x128xf32> to vector<128xf32>
    %653 = vector.shape_cast %652 : vector<128xf32> to vector<1x128xf32>
    %654 = arith.mulf %651, %651 : vector<16x128xf32>
    %cst_179 = arith.constant dense<0.000000e+00> : vector<128xf32>
    %655 = vector.multi_reduction <add>, %654, %cst_179 [0] : vector<16x128xf32> to vector<128xf32>
    %656 = vector.shape_cast %655 : vector<128xf32> to vector<1x128xf32>
    %c0_180 = arith.constant 0 : index
    %c0_181 = arith.constant 0 : index
    %657 = vector.load %arg34[%c0_180, %c0_181] : memref<128x128xf32, #tpu.memory_space<vmem>>, vector<128x128xf32>
    %cst_182 = arith.constant dense<0.000000e+00> : vector<1x128xf32>
    %658 = tpu.matmul %653, %657, %cst_182 {dimension_numbers = #tpu.dot_dimension_numbers<[1], [0], [0], [1], [0, 0, 1, 1], [], []>} : vector<1x128xf32>, vector<128x128xf32>, vector<1x128xf32> -> vector<1x128xf32>
    %cst_183 = arith.constant 7.812500e-03 : f32
    %659 = vector.broadcast %cst_183 : f32 to vector<1x128xf32>
    %660 = arith.mulf %658, %659 : vector<1x128xf32>
    %c0_184 = arith.constant 0 : index
    %c0_185 = arith.constant 0 : index
    %661 = vector.load %arg34[%c0_184, %c0_185] : memref<128x128xf32, #tpu.memory_space<vmem>>, vector<128x128xf32>
    %cst_186 = arith.constant dense<0.000000e+00> : vector<1x128xf32>
    %662 = tpu.matmul %656, %661, %cst_186 {dimension_numbers = #tpu.dot_dimension_numbers<[1], [0], [0], [1], [0, 0, 1, 1], [], []>} : vector<1x128xf32>, vector<128x128xf32>, vector<1x128xf32> -> vector<1x128xf32>
    %cst_187 = arith.constant 7.812500e-03 : f32
    %663 = vector.broadcast %cst_187 : f32 to vector<1x128xf32>
    %664 = arith.mulf %662, %663 : vector<1x128xf32>
    %665 = arith.mulf %660, %660 : vector<1x128xf32>
    %666 = arith.subf %664, %665 : vector<1x128xf32>
    %cst_188 = arith.constant 0.000000e+00 : f32
    %667 = vector.broadcast %cst_188 : f32 to vector<1x128xf32>
    %668 = arith.maximumf %666, %667 : vector<1x128xf32>
    %cst_189 = arith.constant 9.99999974E-6 : f32
    %669 = vector.broadcast %cst_189 : f32 to vector<1x128xf32>
    %670 = arith.addf %668, %669 : vector<1x128xf32>
    %671 = math.rsqrt %670 : vector<1x128xf32>
    %c0_190 = arith.constant 0 : index
    %c0_191 = arith.constant 0 : index
    %672 = vector.load %arg15[%c0_190, %c0_191] : memref<1x128xf32, #tpu.memory_space<vmem>>, vector<1x128xf32>
    %673 = arith.mulf %671, %672 : vector<1x128xf32>
    %c0_192 = arith.constant 0 : index
    %c0_193 = arith.constant 0 : index
    %674 = vector.load %arg16[%c0_192, %c0_193] : memref<1x128xf32, #tpu.memory_space<vmem>>, vector<1x128xf32>
    %675 = arith.mulf %660, %673 : vector<1x128xf32>
    %676 = arith.subf %674, %675 : vector<1x128xf32>
    %677 = vector.broadcast %673 : vector<1x128xf32> to vector<16x128xf32>
    %678 = arith.mulf %651, %677 : vector<16x128xf32>
    %679 = vector.broadcast %676 : vector<1x128xf32> to vector<16x128xf32>
    %680 = arith.addf %678, %679 : vector<16x128xf32>
    %cst_194 = arith.constant 0.000000e+00 : f32
    %681 = vector.broadcast %cst_194 : f32 to vector<16x128xf32>
    %682 = arith.maximumf %680, %681 : vector<16x128xf32>
    %c0_195 = arith.constant 0 : index
    %c0_196 = arith.constant 0 : index
    %683 = vector.load %arg39[%c0_195, %c0_196] : memref<16x128xf32, #tpu.memory_space<vmem>>, vector<16x128xf32>
    tpu.vector_store %arg39[%c0_195, %c0_196], %682 {strides = array<i32>} : memref<16x128xf32, #tpu.memory_space<vmem>>, vector<16x128xf32>,
    %684 = vector.extract_strided_slice %682 {offsets = [0, 0], sizes = [1, 128], strides = [1, 1]} : vector<16x128xf32> to vector<1x128xf32>
    %685 = vector.extract_strided_slice %682 {offsets = [1, 0], sizes = [1, 128], strides = [1, 1]} : vector<16x128xf32> to vector<1x128xf32>
    %686 = arith.maximumf %684, %685 : vector<1x128xf32>
    %687 = vector.extract_strided_slice %686 {offsets = [0, 0], sizes = [1, 16], strides = [1, 1]} : vector<1x128xf32> to vector<1x16xf32>
    %688 = vector.extract_strided_slice %686 {offsets = [0, 16], sizes = [1, 16], strides = [1, 1]} : vector<1x128xf32> to vector<1x16xf32>
    %689 = arith.maximumf %687, %688 : vector<1x16xf32>
    %690 = vector.extract_strided_slice %686 {offsets = [0, 32], sizes = [1, 16], strides = [1, 1]} : vector<1x128xf32> to vector<1x16xf32>
    %691 = vector.extract_strided_slice %686 {offsets = [0, 48], sizes = [1, 16], strides = [1, 1]} : vector<1x128xf32> to vector<1x16xf32>
    %692 = arith.maximumf %690, %691 : vector<1x16xf32>
    %693 = vector.extract_strided_slice %686 {offsets = [0, 64], sizes = [1, 16], strides = [1, 1]} : vector<1x128xf32> to vector<1x16xf32>
    %694 = vector.extract_strided_slice %686 {offsets = [0, 80], sizes = [1, 16], strides = [1, 1]} : vector<1x128xf32> to vector<1x16xf32>
    %695 = arith.maximumf %693, %694 : vector<1x16xf32>
    %696 = vector.extract_strided_slice %686 {offsets = [0, 96], sizes = [1, 16], strides = [1, 1]} : vector<1x128xf32> to vector<1x16xf32>
    %697 = vector.extract_strided_slice %686 {offsets = [0, 112], sizes = [1, 16], strides = [1, 1]} : vector<1x128xf32> to vector<1x16xf32>
    %698 = arith.maximumf %696, %697 : vector<1x16xf32>
    %699 = tpu.concatenate %689, %692, %695, %698 in 1 : vector<1x16xf32>, vector<1x16xf32>, vector<1x16xf32>, vector<1x16xf32> -> vector<1x64xf32>
    %c0_197 = arith.constant 0 : index
    %c0_198 = arith.constant 0 : index
    %700 = vector.load %arg51[%c0_197, %c0_198] : memref<8x64xf32, #tpu.memory_space<vmem>>, vector<1x64xf32>
    tpu.vector_store %arg51[%c0_197, %c0_198], %699 {strides = array<i32>} : memref<8x64xf32, #tpu.memory_space<vmem>>, vector<1x64xf32>,
    %701 = vector.extract_strided_slice %682 {offsets = [2, 0], sizes = [1, 128], strides = [1, 1]} : vector<16x128xf32> to vector<1x128xf32>
    %702 = vector.extract_strided_slice %682 {offsets = [3, 0], sizes = [1, 128], strides = [1, 1]} : vector<16x128xf32> to vector<1x128xf32>
    %703 = arith.maximumf %701, %702 : vector<1x128xf32>
    %704 = vector.extract_strided_slice %703 {offsets = [0, 0], sizes = [1, 16], strides = [1, 1]} : vector<1x128xf32> to vector<1x16xf32>
    %705 = vector.extract_strided_slice %703 {offsets = [0, 16], sizes = [1, 16], strides = [1, 1]} : vector<1x128xf32> to vector<1x16xf32>
    %706 = arith.maximumf %704, %705 : vector<1x16xf32>
    %707 = vector.extract_strided_slice %703 {offsets = [0, 32], sizes = [1, 16], strides = [1, 1]} : vector<1x128xf32> to vector<1x16xf32>
    %708 = vector.extract_strided_slice %703 {offsets = [0, 48], sizes = [1, 16], strides = [1, 1]} : vector<1x128xf32> to vector<1x16xf32>
    %709 = arith.maximumf %707, %708 : vector<1x16xf32>
    %710 = vector.extract_strided_slice %703 {offsets = [0, 64], sizes = [1, 16], strides = [1, 1]} : vector<1x128xf32> to vector<1x16xf32>
    %711 = vector.extract_strided_slice %703 {offsets = [0, 80], sizes = [1, 16], strides = [1, 1]} : vector<1x128xf32> to vector<1x16xf32>
    %712 = arith.maximumf %710, %711 : vector<1x16xf32>
    %713 = vector.extract_strided_slice %703 {offsets = [0, 96], sizes = [1, 16], strides = [1, 1]} : vector<1x128xf32> to vector<1x16xf32>
    %714 = vector.extract_strided_slice %703 {offsets = [0, 112], sizes = [1, 16], strides = [1, 1]} : vector<1x128xf32> to vector<1x16xf32>
    %715 = arith.maximumf %713, %714 : vector<1x16xf32>
    %716 = tpu.concatenate %706, %709, %712, %715 in 1 : vector<1x16xf32>, vector<1x16xf32>, vector<1x16xf32>, vector<1x16xf32> -> vector<1x64xf32>
    %c1_199 = arith.constant 1 : index
    %c0_200 = arith.constant 0 : index
    %717 = vector.load %arg51[%c1_199, %c0_200] : memref<8x64xf32, #tpu.memory_space<vmem>>, vector<1x64xf32>
    tpu.vector_store %arg51[%c1_199, %c0_200], %716 {strides = array<i32>} : memref<8x64xf32, #tpu.memory_space<vmem>>, vector<1x64xf32>,
    %718 = vector.extract_strided_slice %682 {offsets = [4, 0], sizes = [1, 128], strides = [1, 1]} : vector<16x128xf32> to vector<1x128xf32>
    %719 = vector.extract_strided_slice %682 {offsets = [5, 0], sizes = [1, 128], strides = [1, 1]} : vector<16x128xf32> to vector<1x128xf32>
    %720 = arith.maximumf %718, %719 : vector<1x128xf32>
    %721 = vector.extract_strided_slice %720 {offsets = [0, 0], sizes = [1, 16], strides = [1, 1]} : vector<1x128xf32> to vector<1x16xf32>
    %722 = vector.extract_strided_slice %720 {offsets = [0, 16], sizes = [1, 16], strides = [1, 1]} : vector<1x128xf32> to vector<1x16xf32>
    %723 = arith.maximumf %721, %722 : vector<1x16xf32>
    %724 = vector.extract_strided_slice %720 {offsets = [0, 32], sizes = [1, 16], strides = [1, 1]} : vector<1x128xf32> to vector<1x16xf32>
    %725 = vector.extract_strided_slice %720 {offsets = [0, 48], sizes = [1, 16], strides = [1, 1]} : vector<1x128xf32> to vector<1x16xf32>
    %726 = arith.maximumf %724, %725 : vector<1x16xf32>
    %727 = vector.extract_strided_slice %720 {offsets = [0, 64], sizes = [1, 16], strides = [1, 1]} : vector<1x128xf32> to vector<1x16xf32>
    %728 = vector.extract_strided_slice %720 {offsets = [0, 80], sizes = [1, 16], strides = [1, 1]} : vector<1x128xf32> to vector<1x16xf32>
    %729 = arith.maximumf %727, %728 : vector<1x16xf32>
    %730 = vector.extract_strided_slice %720 {offsets = [0, 96], sizes = [1, 16], strides = [1, 1]} : vector<1x128xf32> to vector<1x16xf32>
    %731 = vector.extract_strided_slice %720 {offsets = [0, 112], sizes = [1, 16], strides = [1, 1]} : vector<1x128xf32> to vector<1x16xf32>
    %732 = arith.maximumf %730, %731 : vector<1x16xf32>
    %733 = tpu.concatenate %723, %726, %729, %732 in 1 : vector<1x16xf32>, vector<1x16xf32>, vector<1x16xf32>, vector<1x16xf32> -> vector<1x64xf32>
    %c2_201 = arith.constant 2 : index
    %c0_202 = arith.constant 0 : index
    %734 = vector.load %arg51[%c2_201, %c0_202] : memref<8x64xf32, #tpu.memory_space<vmem>>, vector<1x64xf32>
    tpu.vector_store %arg51[%c2_201, %c0_202], %733 {strides = array<i32>} : memref<8x64xf32, #tpu.memory_space<vmem>>, vector<1x64xf32>,
    %735 = vector.extract_strided_slice %682 {offsets = [6, 0], sizes = [1, 128], strides = [1, 1]} : vector<16x128xf32> to vector<1x128xf32>
    %736 = vector.extract_strided_slice %682 {offsets = [7, 0], sizes = [1, 128], strides = [1, 1]} : vector<16x128xf32> to vector<1x128xf32>
    %737 = arith.maximumf %735, %736 : vector<1x128xf32>
    %738 = vector.extract_strided_slice %737 {offsets = [0, 0], sizes = [1, 16], strides = [1, 1]} : vector<1x128xf32> to vector<1x16xf32>
    %739 = vector.extract_strided_slice %737 {offsets = [0, 16], sizes = [1, 16], strides = [1, 1]} : vector<1x128xf32> to vector<1x16xf32>
    %740 = arith.maximumf %738, %739 : vector<1x16xf32>
    %741 = vector.extract_strided_slice %737 {offsets = [0, 32], sizes = [1, 16], strides = [1, 1]} : vector<1x128xf32> to vector<1x16xf32>
    %742 = vector.extract_strided_slice %737 {offsets = [0, 48], sizes = [1, 16], strides = [1, 1]} : vector<1x128xf32> to vector<1x16xf32>
    %743 = arith.maximumf %741, %742 : vector<1x16xf32>
    %744 = vector.extract_strided_slice %737 {offsets = [0, 64], sizes = [1, 16], strides = [1, 1]} : vector<1x128xf32> to vector<1x16xf32>
    %745 = vector.extract_strided_slice %737 {offsets = [0, 80], sizes = [1, 16], strides = [1, 1]} : vector<1x128xf32> to vector<1x16xf32>
    %746 = arith.maximumf %744, %745 : vector<1x16xf32>
    %747 = vector.extract_strided_slice %737 {offsets = [0, 96], sizes = [1, 16], strides = [1, 1]} : vector<1x128xf32> to vector<1x16xf32>
    %748 = vector.extract_strided_slice %737 {offsets = [0, 112], sizes = [1, 16], strides = [1, 1]} : vector<1x128xf32> to vector<1x16xf32>
    %749 = arith.maximumf %747, %748 : vector<1x16xf32>
    %750 = tpu.concatenate %740, %743, %746, %749 in 1 : vector<1x16xf32>, vector<1x16xf32>, vector<1x16xf32>, vector<1x16xf32> -> vector<1x64xf32>
    %c3_203 = arith.constant 3 : index
    %c0_204 = arith.constant 0 : index
    %751 = vector.load %arg51[%c3_203, %c0_204] : memref<8x64xf32, #tpu.memory_space<vmem>>, vector<1x64xf32>
    tpu.vector_store %arg51[%c3_203, %c0_204], %750 {strides = array<i32>} : memref<8x64xf32, #tpu.memory_space<vmem>>, vector<1x64xf32>,
    %752 = vector.extract_strided_slice %682 {offsets = [8, 0], sizes = [1, 128], strides = [1, 1]} : vector<16x128xf32> to vector<1x128xf32>
    %753 = vector.extract_strided_slice %682 {offsets = [9, 0], sizes = [1, 128], strides = [1, 1]} : vector<16x128xf32> to vector<1x128xf32>
    %754 = arith.maximumf %752, %753 : vector<1x128xf32>
    %755 = vector.extract_strided_slice %754 {offsets = [0, 0], sizes = [1, 16], strides = [1, 1]} : vector<1x128xf32> to vector<1x16xf32>
    %756 = vector.extract_strided_slice %754 {offsets = [0, 16], sizes = [1, 16], strides = [1, 1]} : vector<1x128xf32> to vector<1x16xf32>
    %757 = arith.maximumf %755, %756 : vector<1x16xf32>
    %758 = vector.extract_strided_slice %754 {offsets = [0, 32], sizes = [1, 16], strides = [1, 1]} : vector<1x128xf32> to vector<1x16xf32>
    %759 = vector.extract_strided_slice %754 {offsets = [0, 48], sizes = [1, 16], strides = [1, 1]} : vector<1x128xf32> to vector<1x16xf32>
    %760 = arith.maximumf %758, %759 : vector<1x16xf32>
    %761 = vector.extract_strided_slice %754 {offsets = [0, 64], sizes = [1, 16], strides = [1, 1]} : vector<1x128xf32> to vector<1x16xf32>
    %762 = vector.extract_strided_slice %754 {offsets = [0, 80], sizes = [1, 16], strides = [1, 1]} : vector<1x128xf32> to vector<1x16xf32>
    %763 = arith.maximumf %761, %762 : vector<1x16xf32>
    %764 = vector.extract_strided_slice %754 {offsets = [0, 96], sizes = [1, 16], strides = [1, 1]} : vector<1x128xf32> to vector<1x16xf32>
    %765 = vector.extract_strided_slice %754 {offsets = [0, 112], sizes = [1, 16], strides = [1, 1]} : vector<1x128xf32> to vector<1x16xf32>
    %766 = arith.maximumf %764, %765 : vector<1x16xf32>
    %767 = tpu.concatenate %757, %760, %763, %766 in 1 : vector<1x16xf32>, vector<1x16xf32>, vector<1x16xf32>, vector<1x16xf32> -> vector<1x64xf32>
    %c4_205 = arith.constant 4 : index
    %c0_206 = arith.constant 0 : index
    %768 = vector.load %arg51[%c4_205, %c0_206] : memref<8x64xf32, #tpu.memory_space<vmem>>, vector<1x64xf32>
    tpu.vector_store %arg51[%c4_205, %c0_206], %767 {strides = array<i32>} : memref<8x64xf32, #tpu.memory_space<vmem>>, vector<1x64xf32>,
    %769 = vector.extract_strided_slice %682 {offsets = [10, 0], sizes = [1, 128], strides = [1, 1]} : vector<16x128xf32> to vector<1x128xf32>
    %770 = vector.extract_strided_slice %682 {offsets = [11, 0], sizes = [1, 128], strides = [1, 1]} : vector<16x128xf32> to vector<1x128xf32>
    %771 = arith.maximumf %769, %770 : vector<1x128xf32>
    %772 = vector.extract_strided_slice %771 {offsets = [0, 0], sizes = [1, 16], strides = [1, 1]} : vector<1x128xf32> to vector<1x16xf32>
    %773 = vector.extract_strided_slice %771 {offsets = [0, 16], sizes = [1, 16], strides = [1, 1]} : vector<1x128xf32> to vector<1x16xf32>
    %774 = arith.maximumf %772, %773 : vector<1x16xf32>
    %775 = vector.extract_strided_slice %771 {offsets = [0, 32], sizes = [1, 16], strides = [1, 1]} : vector<1x128xf32> to vector<1x16xf32>
    %776 = vector.extract_strided_slice %771 {offsets = [0, 48], sizes = [1, 16], strides = [1, 1]} : vector<1x128xf32> to vector<1x16xf32>
    %777 = arith.maximumf %775, %776 : vector<1x16xf32>
    %778 = vector.extract_strided_slice %771 {offsets = [0, 64], sizes = [1, 16], strides = [1, 1]} : vector<1x128xf32> to vector<1x16xf32>
    %779 = vector.extract_strided_slice %771 {offsets = [0, 80], sizes = [1, 16], strides = [1, 1]} : vector<1x128xf32> to vector<1x16xf32>
    %780 = arith.maximumf %778, %779 : vector<1x16xf32>
    %781 = vector.extract_strided_slice %771 {offsets = [0, 96], sizes = [1, 16], strides = [1, 1]} : vector<1x128xf32> to vector<1x16xf32>
    %782 = vector.extract_strided_slice %771 {offsets = [0, 112], sizes = [1, 16], strides = [1, 1]} : vector<1x128xf32> to vector<1x16xf32>
    %783 = arith.maximumf %781, %782 : vector<1x16xf32>
    %784 = tpu.concatenate %774, %777, %780, %783 in 1 : vector<1x16xf32>, vector<1x16xf32>, vector<1x16xf32>, vector<1x16xf32> -> vector<1x64xf32>
    %c5_207 = arith.constant 5 : index
    %c0_208 = arith.constant 0 : index
    %785 = vector.load %arg51[%c5_207, %c0_208] : memref<8x64xf32, #tpu.memory_space<vmem>>, vector<1x64xf32>
    tpu.vector_store %arg51[%c5_207, %c0_208], %784 {strides = array<i32>} : memref<8x64xf32, #tpu.memory_space<vmem>>, vector<1x64xf32>,
    %786 = vector.extract_strided_slice %682 {offsets = [12, 0], sizes = [1, 128], strides = [1, 1]} : vector<16x128xf32> to vector<1x128xf32>
    %787 = vector.extract_strided_slice %682 {offsets = [13, 0], sizes = [1, 128], strides = [1, 1]} : vector<16x128xf32> to vector<1x128xf32>
    %788 = arith.maximumf %786, %787 : vector<1x128xf32>
    %789 = vector.extract_strided_slice %788 {offsets = [0, 0], sizes = [1, 16], strides = [1, 1]} : vector<1x128xf32> to vector<1x16xf32>
    %790 = vector.extract_strided_slice %788 {offsets = [0, 16], sizes = [1, 16], strides = [1, 1]} : vector<1x128xf32> to vector<1x16xf32>
    %791 = arith.maximumf %789, %790 : vector<1x16xf32>
    %792 = vector.extract_strided_slice %788 {offsets = [0, 32], sizes = [1, 16], strides = [1, 1]} : vector<1x128xf32> to vector<1x16xf32>
    %793 = vector.extract_strided_slice %788 {offsets = [0, 48], sizes = [1, 16], strides = [1, 1]} : vector<1x128xf32> to vector<1x16xf32>
    %794 = arith.maximumf %792, %793 : vector<1x16xf32>
    %795 = vector.extract_strided_slice %788 {offsets = [0, 64], sizes = [1, 16], strides = [1, 1]} : vector<1x128xf32> to vector<1x16xf32>
    %796 = vector.extract_strided_slice %788 {offsets = [0, 80], sizes = [1, 16], strides = [1, 1]} : vector<1x128xf32> to vector<1x16xf32>
    %797 = arith.maximumf %795, %796 : vector<1x16xf32>
    %798 = vector.extract_strided_slice %788 {offsets = [0, 96], sizes = [1, 16], strides = [1, 1]} : vector<1x128xf32> to vector<1x16xf32>
    %799 = vector.extract_strided_slice %788 {offsets = [0, 112], sizes = [1, 16], strides = [1, 1]} : vector<1x128xf32> to vector<1x16xf32>
    %800 = arith.maximumf %798, %799 : vector<1x16xf32>
    %801 = tpu.concatenate %791, %794, %797, %800 in 1 : vector<1x16xf32>, vector<1x16xf32>, vector<1x16xf32>, vector<1x16xf32> -> vector<1x64xf32>
    %c6_209 = arith.constant 6 : index
    %c0_210 = arith.constant 0 : index
    %802 = vector.load %arg51[%c6_209, %c0_210] : memref<8x64xf32, #tpu.memory_space<vmem>>, vector<1x64xf32>
    tpu.vector_store %arg51[%c6_209, %c0_210], %801 {strides = array<i32>} : memref<8x64xf32, #tpu.memory_space<vmem>>, vector<1x64xf32>,
    %803 = vector.extract_strided_slice %682 {offsets = [14, 0], sizes = [1, 128], strides = [1, 1]} : vector<16x128xf32> to vector<1x128xf32>
    %804 = vector.extract_strided_slice %682 {offsets = [15, 0], sizes = [1, 128], strides = [1, 1]} : vector<16x128xf32> to vector<1x128xf32>
    %805 = arith.maximumf %803, %804 : vector<1x128xf32>
    %806 = vector.extract_strided_slice %805 {offsets = [0, 0], sizes = [1, 16], strides = [1, 1]} : vector<1x128xf32> to vector<1x16xf32>
    %807 = vector.extract_strided_slice %805 {offsets = [0, 16], sizes = [1, 16], strides = [1, 1]} : vector<1x128xf32> to vector<1x16xf32>
    %808 = arith.maximumf %806, %807 : vector<1x16xf32>
    %809 = vector.extract_strided_slice %805 {offsets = [0, 32], sizes = [1, 16], strides = [1, 1]} : vector<1x128xf32> to vector<1x16xf32>
    %810 = vector.extract_strided_slice %805 {offsets = [0, 48], sizes = [1, 16], strides = [1, 1]} : vector<1x128xf32> to vector<1x16xf32>
    %811 = arith.maximumf %809, %810 : vector<1x16xf32>
    %812 = vector.extract_strided_slice %805 {offsets = [0, 64], sizes = [1, 16], strides = [1, 1]} : vector<1x128xf32> to vector<1x16xf32>
    %813 = vector.extract_strided_slice %805 {offsets = [0, 80], sizes = [1, 16], strides = [1, 1]} : vector<1x128xf32> to vector<1x16xf32>
    %814 = arith.maximumf %812, %813 : vector<1x16xf32>
    %815 = vector.extract_strided_slice %805 {offsets = [0, 96], sizes = [1, 16], strides = [1, 1]} : vector<1x128xf32> to vector<1x16xf32>
    %816 = vector.extract_strided_slice %805 {offsets = [0, 112], sizes = [1, 16], strides = [1, 1]} : vector<1x128xf32> to vector<1x16xf32>
    %817 = arith.maximumf %815, %816 : vector<1x16xf32>
    %818 = tpu.concatenate %808, %811, %814, %817 in 1 : vector<1x16xf32>, vector<1x16xf32>, vector<1x16xf32>, vector<1x16xf32> -> vector<1x64xf32>
    %c7_211 = arith.constant 7 : index
    %c0_212 = arith.constant 0 : index
    %819 = vector.load %arg51[%c7_211, %c0_212] : memref<8x64xf32, #tpu.memory_space<vmem>>, vector<1x64xf32>
    tpu.vector_store %arg51[%c7_211, %c0_212], %818 {strides = array<i32>} : memref<8x64xf32, #tpu.memory_space<vmem>>, vector<1x64xf32>,
    %c0_213 = arith.constant 0 : index
    %c0_214 = arith.constant 0 : index
    %820 = vector.load %arg51[%c0_213, %c0_214] : memref<8x64xf32, #tpu.memory_space<vmem>>, vector<8x64xf32>
    %cst_215 = arith.constant 0.000000e+00 : f32
    %821 = vector.broadcast %cst_215 : f32 to vector<1x64xf32>
    %c0_216 = arith.constant 0 : index
    %c0_217 = arith.constant 0 : index
    %822 = vector.load %arg46[%c0_216, %c0_217] : memref<8x192xf32, #tpu.memory_space<vmem>>, vector<1x64xf32>
    tpu.vector_store %arg46[%c0_216, %c0_217], %821 {strides = array<i32>} : memref<8x192xf32, #tpu.memory_space<vmem>>, vector<1x64xf32>,
    %823 = vector.extract_strided_slice %820 {offsets = [0, 0], sizes = [3, 64], strides = [1, 1]} : vector<8x64xf32> to vector<3x64xf32>
    %c1_218 = arith.constant 1 : index
    %c0_219 = arith.constant 0 : index
    %824 = vector.load %arg46[%c1_218, %c0_219] : memref<8x192xf32, #tpu.memory_space<vmem>>, vector<3x64xf32>
    tpu.vector_store %arg46[%c1_218, %c0_219], %823 {strides = array<i32>} : memref<8x192xf32, #tpu.memory_space<vmem>>, vector<3x64xf32>,
    %825 = vector.extract_strided_slice %820 {offsets = [0, 0], sizes = [4, 64], strides = [1, 1]} : vector<8x64xf32> to vector<4x64xf32>
    %c0_220 = arith.constant 0 : index
    %c64_221 = arith.constant 64 : index
    %826 = vector.load %arg46[%c0_220, %c64_221] : memref<8x192xf32, #tpu.memory_space<vmem>>, vector<4x64xf32>
    tpu.vector_store %arg46[%c0_220, %c64_221], %825 {strides = array<i32>} : memref<8x192xf32, #tpu.memory_space<vmem>>, vector<4x64xf32>,
    %827 = vector.extract_strided_slice %820 {offsets = [1, 0], sizes = [3, 64], strides = [1, 1]} : vector<8x64xf32> to vector<3x64xf32>
    %c0_222 = arith.constant 0 : index
    %c128_223 = arith.constant 128 : index
    %828 = vector.load %arg46[%c0_222, %c128_223] : memref<8x192xf32, #tpu.memory_space<vmem>>, vector<3x64xf32>
    tpu.vector_store %arg46[%c0_222, %c128_223], %827 {strides = array<i32>} : memref<8x192xf32, #tpu.memory_space<vmem>>, vector<3x64xf32>,
    %c3_224 = arith.constant 3 : index
    %c128_225 = arith.constant 128 : index
    %829 = vector.load %arg46[%c3_224, %c128_225] : memref<8x192xf32, #tpu.memory_space<vmem>>, vector<1x64xf32>
    tpu.vector_store %arg46[%c3_224, %c128_225], %821 {strides = array<i32>} : memref<8x192xf32, #tpu.memory_space<vmem>>, vector<1x64xf32>,
    %c4_226 = arith.constant 4 : index
    %c0_227 = arith.constant 0 : index
    %830 = vector.load %arg46[%c4_226, %c0_227] : memref<8x192xf32, #tpu.memory_space<vmem>>, vector<1x64xf32>
    tpu.vector_store %arg46[%c4_226, %c0_227], %821 {strides = array<i32>} : memref<8x192xf32, #tpu.memory_space<vmem>>, vector<1x64xf32>,
    %831 = vector.extract_strided_slice %820 {offsets = [4, 0], sizes = [3, 64], strides = [1, 1]} : vector<8x64xf32> to vector<3x64xf32>
    %c5_228 = arith.constant 5 : index
    %c0_229 = arith.constant 0 : index
    %832 = vector.load %arg46[%c5_228, %c0_229] : memref<8x192xf32, #tpu.memory_space<vmem>>, vector<3x64xf32>
    tpu.vector_store %arg46[%c5_228, %c0_229], %831 {strides = array<i32>} : memref<8x192xf32, #tpu.memory_space<vmem>>, vector<3x64xf32>,
    %833 = vector.extract_strided_slice %820 {offsets = [4, 0], sizes = [4, 64], strides = [1, 1]} : vector<8x64xf32> to vector<4x64xf32>
    %c4_230 = arith.constant 4 : index
    %c64_231 = arith.constant 64 : index
    %834 = vector.load %arg46[%c4_230, %c64_231] : memref<8x192xf32, #tpu.memory_space<vmem>>, vector<4x64xf32>
    tpu.vector_store %arg46[%c4_230, %c64_231], %833 {strides = array<i32>} : memref<8x192xf32, #tpu.memory_space<vmem>>, vector<4x64xf32>,
    %835 = vector.extract_strided_slice %820 {offsets = [5, 0], sizes = [3, 64], strides = [1, 1]} : vector<8x64xf32> to vector<3x64xf32>
    %c4_232 = arith.constant 4 : index
    %c128_233 = arith.constant 128 : index
    %836 = vector.load %arg46[%c4_232, %c128_233] : memref<8x192xf32, #tpu.memory_space<vmem>>, vector<3x64xf32>
    tpu.vector_store %arg46[%c4_232, %c128_233], %835 {strides = array<i32>} : memref<8x192xf32, #tpu.memory_space<vmem>>, vector<3x64xf32>,
    %c7_234 = arith.constant 7 : index
    %c128_235 = arith.constant 128 : index
    %837 = vector.load %arg46[%c7_234, %c128_235] : memref<8x192xf32, #tpu.memory_space<vmem>>, vector<1x64xf32>
    tpu.vector_store %arg46[%c7_234, %c128_235], %821 {strides = array<i32>} : memref<8x192xf32, #tpu.memory_space<vmem>>, vector<1x64xf32>,
    %c0_236 = arith.constant 0 : index
    %c0_237 = arith.constant 0 : index
    %838 = vector.load %arg46[%c0_236, %c0_237] : memref<8x192xf32, #tpu.memory_space<vmem>>, vector<8x192xf32>
    %c0_238 = arith.constant 0 : index
    %c0_239 = arith.constant 0 : index
    %839 = vector.load %arg17[%c0_238, %c0_239] : memref<192x128xf32, #tpu.memory_space<vmem>>, vector<192x128xf32>
    %cst_240 = arith.constant dense<0.000000e+00> : vector<8x128xf32>
    %840 = tpu.matmul %838, %839, %cst_240 {dimension_numbers = #tpu.dot_dimension_numbers<[1], [0], [0], [1], [0, 0, 1, 1], [], []>} : vector<8x192xf32>, vector<192x128xf32>, vector<8x128xf32> -> vector<8x128xf32>
    %c0_241 = arith.constant 0 : index
    %c0_242 = arith.constant 0 : index
    %841 = vector.load %arg18[%c0_241, %c0_242] : memref<1x128xf32, #tpu.memory_space<vmem>>, vector<1x128xf32>
    %842 = vector.broadcast %841 : vector<1x128xf32> to vector<8x128xf32>
    %843 = arith.addf %840, %842 : vector<8x128xf32>
    %cst_243 = arith.constant dense<0.000000e+00> : vector<128xf32>
    %844 = vector.multi_reduction <add>, %843, %cst_243 [0] : vector<8x128xf32> to vector<128xf32>
    %845 = vector.shape_cast %844 : vector<128xf32> to vector<1x128xf32>
    %846 = arith.mulf %843, %843 : vector<8x128xf32>
    %cst_244 = arith.constant dense<0.000000e+00> : vector<128xf32>
    %847 = vector.multi_reduction <add>, %846, %cst_244 [0] : vector<8x128xf32> to vector<128xf32>
    %848 = vector.shape_cast %847 : vector<128xf32> to vector<1x128xf32>
    %c0_245 = arith.constant 0 : index
    %c0_246 = arith.constant 0 : index
    %849 = vector.load %arg35[%c0_245, %c0_246] : memref<128x128xf32, #tpu.memory_space<vmem>>, vector<128x128xf32>
    %cst_247 = arith.constant dense<0.000000e+00> : vector<1x128xf32>
    %850 = tpu.matmul %845, %849, %cst_247 {dimension_numbers = #tpu.dot_dimension_numbers<[1], [0], [0], [1], [0, 0, 1, 1], [], []>} : vector<1x128xf32>, vector<128x128xf32>, vector<1x128xf32> -> vector<1x128xf32>
    %cst_248 = arith.constant 3.125000e-02 : f32
    %851 = vector.broadcast %cst_248 : f32 to vector<1x128xf32>
    %852 = arith.mulf %850, %851 : vector<1x128xf32>
    %c0_249 = arith.constant 0 : index
    %c0_250 = arith.constant 0 : index
    %853 = vector.load %arg35[%c0_249, %c0_250] : memref<128x128xf32, #tpu.memory_space<vmem>>, vector<128x128xf32>
    %cst_251 = arith.constant dense<0.000000e+00> : vector<1x128xf32>
    %854 = tpu.matmul %848, %853, %cst_251 {dimension_numbers = #tpu.dot_dimension_numbers<[1], [0], [0], [1], [0, 0, 1, 1], [], []>} : vector<1x128xf32>, vector<128x128xf32>, vector<1x128xf32> -> vector<1x128xf32>
    %cst_252 = arith.constant 3.125000e-02 : f32
    %855 = vector.broadcast %cst_252 : f32 to vector<1x128xf32>
    %856 = arith.mulf %854, %855 : vector<1x128xf32>
    %857 = arith.mulf %852, %852 : vector<1x128xf32>
    %858 = arith.subf %856, %857 : vector<1x128xf32>
    %cst_253 = arith.constant 0.000000e+00 : f32
    %859 = vector.broadcast %cst_253 : f32 to vector<1x128xf32>
    %860 = arith.maximumf %858, %859 : vector<1x128xf32>
    %cst_254 = arith.constant 9.99999974E-6 : f32
    %861 = vector.broadcast %cst_254 : f32 to vector<1x128xf32>
    %862 = arith.addf %860, %861 : vector<1x128xf32>
    %863 = math.rsqrt %862 : vector<1x128xf32>
    %c0_255 = arith.constant 0 : index
    %c0_256 = arith.constant 0 : index
    %864 = vector.load %arg19[%c0_255, %c0_256] : memref<1x128xf32, #tpu.memory_space<vmem>>, vector<1x128xf32>
    %865 = arith.mulf %863, %864 : vector<1x128xf32>
    %c0_257 = arith.constant 0 : index
    %c0_258 = arith.constant 0 : index
    %866 = vector.load %arg20[%c0_257, %c0_258] : memref<1x128xf32, #tpu.memory_space<vmem>>, vector<1x128xf32>
    %867 = arith.mulf %852, %865 : vector<1x128xf32>
    %868 = arith.subf %866, %867 : vector<1x128xf32>
    %869 = vector.broadcast %865 : vector<1x128xf32> to vector<8x128xf32>
    %870 = arith.mulf %843, %869 : vector<8x128xf32>
    %871 = vector.broadcast %868 : vector<1x128xf32> to vector<8x128xf32>
    %872 = arith.addf %870, %871 : vector<8x128xf32>
    %cst_259 = arith.constant 0.000000e+00 : f32
    %873 = vector.broadcast %cst_259 : f32 to vector<8x128xf32>
    %874 = arith.maximumf %872, %873 : vector<8x128xf32>
    %cst_260 = arith.constant 0.000000e+00 : f32
    %875 = vector.broadcast %cst_260 : f32 to vector<1x128xf32>
    %c0_261 = arith.constant 0 : index
    %c0_262 = arith.constant 0 : index
    %876 = vector.load %arg47[%c0_261, %c0_262] : memref<8x384xf32, #tpu.memory_space<vmem>>, vector<1x128xf32>
    tpu.vector_store %arg47[%c0_261, %c0_262], %875 {strides = array<i32>} : memref<8x384xf32, #tpu.memory_space<vmem>>, vector<1x128xf32>,
    %877 = vector.extract_strided_slice %874 {offsets = [0, 0], sizes = [3, 128], strides = [1, 1]} : vector<8x128xf32> to vector<3x128xf32>
    %c1_263 = arith.constant 1 : index
    %c0_264 = arith.constant 0 : index
    %878 = vector.load %arg47[%c1_263, %c0_264] : memref<8x384xf32, #tpu.memory_space<vmem>>, vector<3x128xf32>
    tpu.vector_store %arg47[%c1_263, %c0_264], %877 {strides = array<i32>} : memref<8x384xf32, #tpu.memory_space<vmem>>, vector<3x128xf32>,
    %879 = vector.extract_strided_slice %874 {offsets = [0, 0], sizes = [4, 128], strides = [1, 1]} : vector<8x128xf32> to vector<4x128xf32>
    %c0_265 = arith.constant 0 : index
    %c128_266 = arith.constant 128 : index
    %880 = vector.load %arg47[%c0_265, %c128_266] : memref<8x384xf32, #tpu.memory_space<vmem>>, vector<4x128xf32>
    tpu.vector_store %arg47[%c0_265, %c128_266], %879 {strides = array<i32>} : memref<8x384xf32, #tpu.memory_space<vmem>>, vector<4x128xf32>,
    %881 = vector.extract_strided_slice %874 {offsets = [1, 0], sizes = [3, 128], strides = [1, 1]} : vector<8x128xf32> to vector<3x128xf32>
    %c0_267 = arith.constant 0 : index
    %c256_268 = arith.constant 256 : index
    %882 = vector.load %arg47[%c0_267, %c256_268] : memref<8x384xf32, #tpu.memory_space<vmem>>, vector<3x128xf32>
    tpu.vector_store %arg47[%c0_267, %c256_268], %881 {strides = array<i32>} : memref<8x384xf32, #tpu.memory_space<vmem>>, vector<3x128xf32>,
    %c3_269 = arith.constant 3 : index
    %c256_270 = arith.constant 256 : index
    %883 = vector.load %arg47[%c3_269, %c256_270] : memref<8x384xf32, #tpu.memory_space<vmem>>, vector<1x128xf32>
    tpu.vector_store %arg47[%c3_269, %c256_270], %875 {strides = array<i32>} : memref<8x384xf32, #tpu.memory_space<vmem>>, vector<1x128xf32>,
    %c4_271 = arith.constant 4 : index
    %c0_272 = arith.constant 0 : index
    %884 = vector.load %arg47[%c4_271, %c0_272] : memref<8x384xf32, #tpu.memory_space<vmem>>, vector<1x128xf32>
    tpu.vector_store %arg47[%c4_271, %c0_272], %875 {strides = array<i32>} : memref<8x384xf32, #tpu.memory_space<vmem>>, vector<1x128xf32>,
    %885 = vector.extract_strided_slice %874 {offsets = [4, 0], sizes = [3, 128], strides = [1, 1]} : vector<8x128xf32> to vector<3x128xf32>
    %c5_273 = arith.constant 5 : index
    %c0_274 = arith.constant 0 : index
    %886 = vector.load %arg47[%c5_273, %c0_274] : memref<8x384xf32, #tpu.memory_space<vmem>>, vector<3x128xf32>
    tpu.vector_store %arg47[%c5_273, %c0_274], %885 {strides = array<i32>} : memref<8x384xf32, #tpu.memory_space<vmem>>, vector<3x128xf32>,
    %887 = vector.extract_strided_slice %874 {offsets = [4, 0], sizes = [4, 128], strides = [1, 1]} : vector<8x128xf32> to vector<4x128xf32>
    %c4_275 = arith.constant 4 : index
    %c128_276 = arith.constant 128 : index
    %888 = vector.load %arg47[%c4_275, %c128_276] : memref<8x384xf32, #tpu.memory_space<vmem>>, vector<4x128xf32>
    tpu.vector_store %arg47[%c4_275, %c128_276], %887 {strides = array<i32>} : memref<8x384xf32, #tpu.memory_space<vmem>>, vector<4x128xf32>,
    %889 = vector.extract_strided_slice %874 {offsets = [5, 0], sizes = [3, 128], strides = [1, 1]} : vector<8x128xf32> to vector<3x128xf32>
    %c4_277 = arith.constant 4 : index
    %c256_278 = arith.constant 256 : index
    %890 = vector.load %arg47[%c4_277, %c256_278] : memref<8x384xf32, #tpu.memory_space<vmem>>, vector<3x128xf32>
    tpu.vector_store %arg47[%c4_277, %c256_278], %889 {strides = array<i32>} : memref<8x384xf32, #tpu.memory_space<vmem>>, vector<3x128xf32>,
    %c7_279 = arith.constant 7 : index
    %c256_280 = arith.constant 256 : index
    %891 = vector.load %arg47[%c7_279, %c256_280] : memref<8x384xf32, #tpu.memory_space<vmem>>, vector<1x128xf32>
    tpu.vector_store %arg47[%c7_279, %c256_280], %875 {strides = array<i32>} : memref<8x384xf32, #tpu.memory_space<vmem>>, vector<1x128xf32>,
    %c0_281 = arith.constant 0 : index
    %c0_282 = arith.constant 0 : index
    %892 = vector.load %arg47[%c0_281, %c0_282] : memref<8x384xf32, #tpu.memory_space<vmem>>, vector<8x384xf32>
    %c0_283 = arith.constant 0 : index
    %c0_284 = arith.constant 0 : index
    %893 = vector.load %arg21[%c0_283, %c0_284] : memref<384x128xf32, #tpu.memory_space<vmem>>, vector<384x128xf32>
    %cst_285 = arith.constant dense<0.000000e+00> : vector<8x128xf32>
    %894 = tpu.matmul %892, %893, %cst_285 {dimension_numbers = #tpu.dot_dimension_numbers<[1], [0], [0], [1], [0, 0, 1, 1], [], []>} : vector<8x384xf32>, vector<384x128xf32>, vector<8x128xf32> -> vector<8x128xf32>
    %c0_286 = arith.constant 0 : index
    %c0_287 = arith.constant 0 : index
    %895 = vector.load %arg22[%c0_286, %c0_287] : memref<1x128xf32, #tpu.memory_space<vmem>>, vector<1x128xf32>
    %896 = vector.broadcast %895 : vector<1x128xf32> to vector<8x128xf32>
    %897 = arith.addf %894, %896 : vector<8x128xf32>
    %cst_288 = arith.constant dense<0.000000e+00> : vector<128xf32>
    %898 = vector.multi_reduction <add>, %897, %cst_288 [0] : vector<8x128xf32> to vector<128xf32>
    %899 = vector.shape_cast %898 : vector<128xf32> to vector<1x128xf32>
    %900 = arith.mulf %897, %897 : vector<8x128xf32>
    %cst_289 = arith.constant dense<0.000000e+00> : vector<128xf32>
    %901 = vector.multi_reduction <add>, %900, %cst_289 [0] : vector<8x128xf32> to vector<128xf32>
    %902 = vector.shape_cast %901 : vector<128xf32> to vector<1x128xf32>
    %c0_290 = arith.constant 0 : index
    %c0_291 = arith.constant 0 : index
    %903 = vector.load %arg35[%c0_290, %c0_291] : memref<128x128xf32, #tpu.memory_space<vmem>>, vector<128x128xf32>
    %cst_292 = arith.constant dense<0.000000e+00> : vector<1x128xf32>
    %904 = tpu.matmul %899, %903, %cst_292 {dimension_numbers = #tpu.dot_dimension_numbers<[1], [0], [0], [1], [0, 0, 1, 1], [], []>} : vector<1x128xf32>, vector<128x128xf32>, vector<1x128xf32> -> vector<1x128xf32>
    %cst_293 = arith.constant 3.125000e-02 : f32
    %905 = vector.broadcast %cst_293 : f32 to vector<1x128xf32>
    %906 = arith.mulf %904, %905 : vector<1x128xf32>
    %c0_294 = arith.constant 0 : index
    %c0_295 = arith.constant 0 : index
    %907 = vector.load %arg35[%c0_294, %c0_295] : memref<128x128xf32, #tpu.memory_space<vmem>>, vector<128x128xf32>
    %cst_296 = arith.constant dense<0.000000e+00> : vector<1x128xf32>
    %908 = tpu.matmul %902, %907, %cst_296 {dimension_numbers = #tpu.dot_dimension_numbers<[1], [0], [0], [1], [0, 0, 1, 1], [], []>} : vector<1x128xf32>, vector<128x128xf32>, vector<1x128xf32> -> vector<1x128xf32>
    %cst_297 = arith.constant 3.125000e-02 : f32
    %909 = vector.broadcast %cst_297 : f32 to vector<1x128xf32>
    %910 = arith.mulf %908, %909 : vector<1x128xf32>
    %911 = arith.mulf %906, %906 : vector<1x128xf32>
    %912 = arith.subf %910, %911 : vector<1x128xf32>
    %cst_298 = arith.constant 0.000000e+00 : f32
    %913 = vector.broadcast %cst_298 : f32 to vector<1x128xf32>
    %914 = arith.maximumf %912, %913 : vector<1x128xf32>
    %cst_299 = arith.constant 9.99999974E-6 : f32
    %915 = vector.broadcast %cst_299 : f32 to vector<1x128xf32>
    %916 = arith.addf %914, %915 : vector<1x128xf32>
    %917 = math.rsqrt %916 : vector<1x128xf32>
    %c0_300 = arith.constant 0 : index
    %c0_301 = arith.constant 0 : index
    %918 = vector.load %arg23[%c0_300, %c0_301] : memref<1x128xf32, #tpu.memory_space<vmem>>, vector<1x128xf32>
    %919 = arith.mulf %917, %918 : vector<1x128xf32>
    %c0_302 = arith.constant 0 : index
    %c0_303 = arith.constant 0 : index
    %920 = vector.load %arg24[%c0_302, %c0_303] : memref<1x128xf32, #tpu.memory_space<vmem>>, vector<1x128xf32>
    %921 = arith.mulf %906, %919 : vector<1x128xf32>
    %922 = arith.subf %920, %921 : vector<1x128xf32>
    %923 = vector.broadcast %919 : vector<1x128xf32> to vector<8x128xf32>
    %924 = arith.mulf %897, %923 : vector<8x128xf32>
    %925 = vector.broadcast %922 : vector<1x128xf32> to vector<8x128xf32>
    %926 = arith.addf %924, %925 : vector<8x128xf32>
    %cst_304 = arith.constant 0.000000e+00 : f32
    %927 = vector.broadcast %cst_304 : f32 to vector<8x128xf32>
    %928 = arith.maximumf %926, %927 : vector<8x128xf32>
    %c0_305 = arith.constant 0 : index
    %c0_306 = arith.constant 0 : index
    %929 = vector.load %arg40[%c0_305, %c0_306] : memref<8x128xf32, #tpu.memory_space<vmem>>, vector<8x128xf32>
    tpu.vector_store %arg40[%c0_305, %c0_306], %928 {strides = array<i32>} : memref<8x128xf32, #tpu.memory_space<vmem>>, vector<8x128xf32>,
    %930 = vector.extract_strided_slice %928 {offsets = [0, 0], sizes = [1, 128], strides = [1, 1]} : vector<8x128xf32> to vector<1x128xf32>
    %931 = vector.extract_strided_slice %928 {offsets = [1, 0], sizes = [1, 128], strides = [1, 1]} : vector<8x128xf32> to vector<1x128xf32>
    %932 = arith.maximumf %930, %931 : vector<1x128xf32>
    %933 = vector.extract_strided_slice %932 {offsets = [0, 0], sizes = [1, 32], strides = [1, 1]} : vector<1x128xf32> to vector<1x32xf32>
    %934 = vector.extract_strided_slice %932 {offsets = [0, 32], sizes = [1, 32], strides = [1, 1]} : vector<1x128xf32> to vector<1x32xf32>
    %935 = arith.maximumf %933, %934 : vector<1x32xf32>
    %936 = vector.extract_strided_slice %932 {offsets = [0, 64], sizes = [1, 32], strides = [1, 1]} : vector<1x128xf32> to vector<1x32xf32>
    %937 = vector.extract_strided_slice %932 {offsets = [0, 96], sizes = [1, 32], strides = [1, 1]} : vector<1x128xf32> to vector<1x32xf32>
    %938 = arith.maximumf %936, %937 : vector<1x32xf32>
    %939 = tpu.concatenate %935, %938 in 1 : vector<1x32xf32>, vector<1x32xf32> -> vector<1x64xf32>
    %c0_307 = arith.constant 0 : index
    %c0_308 = arith.constant 0 : index
    %940 = vector.load %arg52[%c0_307, %c0_308] : memref<4x64xf32, #tpu.memory_space<vmem>>, vector<1x64xf32>
    tpu.vector_store %arg52[%c0_307, %c0_308], %939 {strides = array<i32>} : memref<4x64xf32, #tpu.memory_space<vmem>>, vector<1x64xf32>,
    %941 = vector.extract_strided_slice %928 {offsets = [2, 0], sizes = [1, 128], strides = [1, 1]} : vector<8x128xf32> to vector<1x128xf32>
    %942 = vector.extract_strided_slice %928 {offsets = [3, 0], sizes = [1, 128], strides = [1, 1]} : vector<8x128xf32> to vector<1x128xf32>
    %943 = arith.maximumf %941, %942 : vector<1x128xf32>
    %944 = vector.extract_strided_slice %943 {offsets = [0, 0], sizes = [1, 32], strides = [1, 1]} : vector<1x128xf32> to vector<1x32xf32>
    %945 = vector.extract_strided_slice %943 {offsets = [0, 32], sizes = [1, 32], strides = [1, 1]} : vector<1x128xf32> to vector<1x32xf32>
    %946 = arith.maximumf %944, %945 : vector<1x32xf32>
    %947 = vector.extract_strided_slice %943 {offsets = [0, 64], sizes = [1, 32], strides = [1, 1]} : vector<1x128xf32> to vector<1x32xf32>
    %948 = vector.extract_strided_slice %943 {offsets = [0, 96], sizes = [1, 32], strides = [1, 1]} : vector<1x128xf32> to vector<1x32xf32>
    %949 = arith.maximumf %947, %948 : vector<1x32xf32>
    %950 = tpu.concatenate %946, %949 in 1 : vector<1x32xf32>, vector<1x32xf32> -> vector<1x64xf32>
    %c1_309 = arith.constant 1 : index
    %c0_310 = arith.constant 0 : index
    %951 = vector.load %arg52[%c1_309, %c0_310] : memref<4x64xf32, #tpu.memory_space<vmem>>, vector<1x64xf32>
    tpu.vector_store %arg52[%c1_309, %c0_310], %950 {strides = array<i32>} : memref<4x64xf32, #tpu.memory_space<vmem>>, vector<1x64xf32>,
    %952 = vector.extract_strided_slice %928 {offsets = [4, 0], sizes = [1, 128], strides = [1, 1]} : vector<8x128xf32> to vector<1x128xf32>
    %953 = vector.extract_strided_slice %928 {offsets = [5, 0], sizes = [1, 128], strides = [1, 1]} : vector<8x128xf32> to vector<1x128xf32>
    %954 = arith.maximumf %952, %953 : vector<1x128xf32>
    %955 = vector.extract_strided_slice %954 {offsets = [0, 0], sizes = [1, 32], strides = [1, 1]} : vector<1x128xf32> to vector<1x32xf32>
    %956 = vector.extract_strided_slice %954 {offsets = [0, 32], sizes = [1, 32], strides = [1, 1]} : vector<1x128xf32> to vector<1x32xf32>
    %957 = arith.maximumf %955, %956 : vector<1x32xf32>
    %958 = vector.extract_strided_slice %954 {offsets = [0, 64], sizes = [1, 32], strides = [1, 1]} : vector<1x128xf32> to vector<1x32xf32>
    %959 = vector.extract_strided_slice %954 {offsets = [0, 96], sizes = [1, 32], strides = [1, 1]} : vector<1x128xf32> to vector<1x32xf32>
    %960 = arith.maximumf %958, %959 : vector<1x32xf32>
    %961 = tpu.concatenate %957, %960 in 1 : vector<1x32xf32>, vector<1x32xf32> -> vector<1x64xf32>
    %c2_311 = arith.constant 2 : index
    %c0_312 = arith.constant 0 : index
    %962 = vector.load %arg52[%c2_311, %c0_312] : memref<4x64xf32, #tpu.memory_space<vmem>>, vector<1x64xf32>
    tpu.vector_store %arg52[%c2_311, %c0_312], %961 {strides = array<i32>} : memref<4x64xf32, #tpu.memory_space<vmem>>, vector<1x64xf32>,
    %963 = vector.extract_strided_slice %928 {offsets = [6, 0], sizes = [1, 128], strides = [1, 1]} : vector<8x128xf32> to vector<1x128xf32>
    %964 = vector.extract_strided_slice %928 {offsets = [7, 0], sizes = [1, 128], strides = [1, 1]} : vector<8x128xf32> to vector<1x128xf32>
    %965 = arith.maximumf %963, %964 : vector<1x128xf32>
    %966 = vector.extract_strided_slice %965 {offsets = [0, 0], sizes = [1, 32], strides = [1, 1]} : vector<1x128xf32> to vector<1x32xf32>
    %967 = vector.extract_strided_slice %965 {offsets = [0, 32], sizes = [1, 32], strides = [1, 1]} : vector<1x128xf32> to vector<1x32xf32>
    %968 = arith.maximumf %966, %967 : vector<1x32xf32>
    %969 = vector.extract_strided_slice %965 {offsets = [0, 64], sizes = [1, 32], strides = [1, 1]} : vector<1x128xf32> to vector<1x32xf32>
    %970 = vector.extract_strided_slice %965 {offsets = [0, 96], sizes = [1, 32], strides = [1, 1]} : vector<1x128xf32> to vector<1x32xf32>
    %971 = arith.maximumf %969, %970 : vector<1x32xf32>
    %972 = tpu.concatenate %968, %971 in 1 : vector<1x32xf32>, vector<1x32xf32> -> vector<1x64xf32>
    %c3_313 = arith.constant 3 : index
    %c0_314 = arith.constant 0 : index
    %973 = vector.load %arg52[%c3_313, %c0_314] : memref<4x64xf32, #tpu.memory_space<vmem>>, vector<1x64xf32>
    tpu.vector_store %arg52[%c3_313, %c0_314], %972 {strides = array<i32>} : memref<4x64xf32, #tpu.memory_space<vmem>>, vector<1x64xf32>,
    %c0_315 = arith.constant 0 : index
    %c0_316 = arith.constant 0 : index
    %974 = vector.load %arg52[%c0_315, %c0_316] : memref<4x64xf32, #tpu.memory_space<vmem>>, vector<4x64xf32>
    %cst_317 = arith.constant 0.000000e+00 : f32
    %975 = vector.broadcast %cst_317 : f32 to vector<1x64xf32>
    %c0_318 = arith.constant 0 : index
    %c0_319 = arith.constant 0 : index
    %976 = vector.load %arg48[%c0_318, %c0_319] : memref<4x192xf32, #tpu.memory_space<vmem>>, vector<1x64xf32>
    tpu.vector_store %arg48[%c0_318, %c0_319], %975 {strides = array<i32>} : memref<4x192xf32, #tpu.memory_space<vmem>>, vector<1x64xf32>,
    %977 = vector.extract_strided_slice %974 {offsets = [0, 0], sizes = [1, 64], strides = [1, 1]} : vector<4x64xf32> to vector<1x64xf32>
    %c1_320 = arith.constant 1 : index
    %c0_321 = arith.constant 0 : index
    %978 = vector.load %arg48[%c1_320, %c0_321] : memref<4x192xf32, #tpu.memory_space<vmem>>, vector<1x64xf32>
    tpu.vector_store %arg48[%c1_320, %c0_321], %977 {strides = array<i32>} : memref<4x192xf32, #tpu.memory_space<vmem>>, vector<1x64xf32>,
    %979 = vector.extract_strided_slice %974 {offsets = [0, 0], sizes = [2, 64], strides = [1, 1]} : vector<4x64xf32> to vector<2x64xf32>
    %c0_322 = arith.constant 0 : index
    %c64_323 = arith.constant 64 : index
    %980 = vector.load %arg48[%c0_322, %c64_323] : memref<4x192xf32, #tpu.memory_space<vmem>>, vector<2x64xf32>
    tpu.vector_store %arg48[%c0_322, %c64_323], %979 {strides = array<i32>} : memref<4x192xf32, #tpu.memory_space<vmem>>, vector<2x64xf32>,
    %981 = vector.extract_strided_slice %974 {offsets = [1, 0], sizes = [1, 64], strides = [1, 1]} : vector<4x64xf32> to vector<1x64xf32>
    %c0_324 = arith.constant 0 : index
    %c128_325 = arith.constant 128 : index
    %982 = vector.load %arg48[%c0_324, %c128_325] : memref<4x192xf32, #tpu.memory_space<vmem>>, vector<1x64xf32>
    tpu.vector_store %arg48[%c0_324, %c128_325], %981 {strides = array<i32>} : memref<4x192xf32, #tpu.memory_space<vmem>>, vector<1x64xf32>,
    %c1_326 = arith.constant 1 : index
    %c128_327 = arith.constant 128 : index
    %983 = vector.load %arg48[%c1_326, %c128_327] : memref<4x192xf32, #tpu.memory_space<vmem>>, vector<1x64xf32>
    tpu.vector_store %arg48[%c1_326, %c128_327], %975 {strides = array<i32>} : memref<4x192xf32, #tpu.memory_space<vmem>>, vector<1x64xf32>,
    %c2_328 = arith.constant 2 : index
    %c0_329 = arith.constant 0 : index
    %984 = vector.load %arg48[%c2_328, %c0_329] : memref<4x192xf32, #tpu.memory_space<vmem>>, vector<1x64xf32>
    tpu.vector_store %arg48[%c2_328, %c0_329], %975 {strides = array<i32>} : memref<4x192xf32, #tpu.memory_space<vmem>>, vector<1x64xf32>,
    %985 = vector.extract_strided_slice %974 {offsets = [2, 0], sizes = [1, 64], strides = [1, 1]} : vector<4x64xf32> to vector<1x64xf32>
    %c3_330 = arith.constant 3 : index
    %c0_331 = arith.constant 0 : index
    %986 = vector.load %arg48[%c3_330, %c0_331] : memref<4x192xf32, #tpu.memory_space<vmem>>, vector<1x64xf32>
    tpu.vector_store %arg48[%c3_330, %c0_331], %985 {strides = array<i32>} : memref<4x192xf32, #tpu.memory_space<vmem>>, vector<1x64xf32>,
    %987 = vector.extract_strided_slice %974 {offsets = [2, 0], sizes = [2, 64], strides = [1, 1]} : vector<4x64xf32> to vector<2x64xf32>
    %c2_332 = arith.constant 2 : index
    %c64_333 = arith.constant 64 : index
    %988 = vector.load %arg48[%c2_332, %c64_333] : memref<4x192xf32, #tpu.memory_space<vmem>>, vector<2x64xf32>
    tpu.vector_store %arg48[%c2_332, %c64_333], %987 {strides = array<i32>} : memref<4x192xf32, #tpu.memory_space<vmem>>, vector<2x64xf32>,
    %989 = vector.extract_strided_slice %974 {offsets = [3, 0], sizes = [1, 64], strides = [1, 1]} : vector<4x64xf32> to vector<1x64xf32>
    %c2_334 = arith.constant 2 : index
    %c128_335 = arith.constant 128 : index
    %990 = vector.load %arg48[%c2_334, %c128_335] : memref<4x192xf32, #tpu.memory_space<vmem>>, vector<1x64xf32>
    tpu.vector_store %arg48[%c2_334, %c128_335], %989 {strides = array<i32>} : memref<4x192xf32, #tpu.memory_space<vmem>>, vector<1x64xf32>,
    %c3_336 = arith.constant 3 : index
    %c128_337 = arith.constant 128 : index
    %991 = vector.load %arg48[%c3_336, %c128_337] : memref<4x192xf32, #tpu.memory_space<vmem>>, vector<1x64xf32>
    tpu.vector_store %arg48[%c3_336, %c128_337], %975 {strides = array<i32>} : memref<4x192xf32, #tpu.memory_space<vmem>>, vector<1x64xf32>,
    %c0_338 = arith.constant 0 : index
    %c0_339 = arith.constant 0 : index
    %992 = vector.load %arg48[%c0_338, %c0_339] : memref<4x192xf32, #tpu.memory_space<vmem>>, vector<4x192xf32>
    %c0_340 = arith.constant 0 : index
    %c0_341 = arith.constant 0 : index
    %993 = vector.load %arg25[%c0_340, %c0_341] : memref<192x128xf32, #tpu.memory_space<vmem>>, vector<192x128xf32>
    %cst_342 = arith.constant dense<0.000000e+00> : vector<4x128xf32>
    %994 = tpu.matmul %992, %993, %cst_342 {dimension_numbers = #tpu.dot_dimension_numbers<[1], [0], [0], [1], [0, 0, 1, 1], [], []>} : vector<4x192xf32>, vector<192x128xf32>, vector<4x128xf32> -> vector<4x128xf32>
    %c0_343 = arith.constant 0 : index
    %c0_344 = arith.constant 0 : index
    %995 = vector.load %arg26[%c0_343, %c0_344] : memref<1x128xf32, #tpu.memory_space<vmem>>, vector<1x128xf32>
    %996 = vector.broadcast %995 : vector<1x128xf32> to vector<4x128xf32>
    %997 = arith.addf %994, %996 : vector<4x128xf32>
    %cst_345 = arith.constant dense<0.000000e+00> : vector<128xf32>
    %998 = vector.multi_reduction <add>, %997, %cst_345 [0] : vector<4x128xf32> to vector<128xf32>
    %999 = vector.shape_cast %998 : vector<128xf32> to vector<1x128xf32>
    %1000 = arith.mulf %997, %997 : vector<4x128xf32>
    %cst_346 = arith.constant dense<0.000000e+00> : vector<128xf32>
    %1001 = vector.multi_reduction <add>, %1000, %cst_346 [0] : vector<4x128xf32> to vector<128xf32>
    %1002 = vector.shape_cast %1001 : vector<128xf32> to vector<1x128xf32>
    %c0_347 = arith.constant 0 : index
    %c0_348 = arith.constant 0 : index
    %1003 = vector.load %arg36[%c0_347, %c0_348] : memref<128x128xf32, #tpu.memory_space<vmem>>, vector<128x128xf32>
    %cst_349 = arith.constant dense<0.000000e+00> : vector<1x128xf32>
    %1004 = tpu.matmul %999, %1003, %cst_349 {dimension_numbers = #tpu.dot_dimension_numbers<[1], [0], [0], [1], [0, 0, 1, 1], [], []>} : vector<1x128xf32>, vector<128x128xf32>, vector<1x128xf32> -> vector<1x128xf32>
    %cst_350 = arith.constant 1.250000e-01 : f32
    %1005 = vector.broadcast %cst_350 : f32 to vector<1x128xf32>
    %1006 = arith.mulf %1004, %1005 : vector<1x128xf32>
    %c0_351 = arith.constant 0 : index
    %c0_352 = arith.constant 0 : index
    %1007 = vector.load %arg36[%c0_351, %c0_352] : memref<128x128xf32, #tpu.memory_space<vmem>>, vector<128x128xf32>
    %cst_353 = arith.constant dense<0.000000e+00> : vector<1x128xf32>
    %1008 = tpu.matmul %1002, %1007, %cst_353 {dimension_numbers = #tpu.dot_dimension_numbers<[1], [0], [0], [1], [0, 0, 1, 1], [], []>} : vector<1x128xf32>, vector<128x128xf32>, vector<1x128xf32> -> vector<1x128xf32>
    %cst_354 = arith.constant 1.250000e-01 : f32
    %1009 = vector.broadcast %cst_354 : f32 to vector<1x128xf32>
    %1010 = arith.mulf %1008, %1009 : vector<1x128xf32>
    %1011 = arith.mulf %1006, %1006 : vector<1x128xf32>
    %1012 = arith.subf %1010, %1011 : vector<1x128xf32>
    %cst_355 = arith.constant 0.000000e+00 : f32
    %1013 = vector.broadcast %cst_355 : f32 to vector<1x128xf32>
    %1014 = arith.maximumf %1012, %1013 : vector<1x128xf32>
    %cst_356 = arith.constant 9.99999974E-6 : f32
    %1015 = vector.broadcast %cst_356 : f32 to vector<1x128xf32>
    %1016 = arith.addf %1014, %1015 : vector<1x128xf32>
    %1017 = math.rsqrt %1016 : vector<1x128xf32>
    %c0_357 = arith.constant 0 : index
    %c0_358 = arith.constant 0 : index
    %1018 = vector.load %arg27[%c0_357, %c0_358] : memref<1x128xf32, #tpu.memory_space<vmem>>, vector<1x128xf32>
    %1019 = arith.mulf %1017, %1018 : vector<1x128xf32>
    %c0_359 = arith.constant 0 : index
    %c0_360 = arith.constant 0 : index
    %1020 = vector.load %arg28[%c0_359, %c0_360] : memref<1x128xf32, #tpu.memory_space<vmem>>, vector<1x128xf32>
    %1021 = arith.mulf %1006, %1019 : vector<1x128xf32>
    %1022 = arith.subf %1020, %1021 : vector<1x128xf32>
    %1023 = vector.broadcast %1019 : vector<1x128xf32> to vector<4x128xf32>
    %1024 = arith.mulf %997, %1023 : vector<4x128xf32>
    %1025 = vector.broadcast %1022 : vector<1x128xf32> to vector<4x128xf32>
    %1026 = arith.addf %1024, %1025 : vector<4x128xf32>
    %cst_361 = arith.constant 0.000000e+00 : f32
    %1027 = vector.broadcast %cst_361 : f32 to vector<4x128xf32>
    %1028 = arith.maximumf %1026, %1027 : vector<4x128xf32>
    %cst_362 = arith.constant 0.000000e+00 : f32
    %1029 = vector.broadcast %cst_362 : f32 to vector<1x128xf32>
    %c0_363 = arith.constant 0 : index
    %c0_364 = arith.constant 0 : index
    %1030 = vector.load %arg49[%c0_363, %c0_364] : memref<4x384xf32, #tpu.memory_space<vmem>>, vector<1x128xf32>
    tpu.vector_store %arg49[%c0_363, %c0_364], %1029 {strides = array<i32>} : memref<4x384xf32, #tpu.memory_space<vmem>>, vector<1x128xf32>,
    %1031 = vector.extract_strided_slice %1028 {offsets = [0, 0], sizes = [1, 128], strides = [1, 1]} : vector<4x128xf32> to vector<1x128xf32>
    %c1_365 = arith.constant 1 : index
    %c0_366 = arith.constant 0 : index
    %1032 = vector.load %arg49[%c1_365, %c0_366] : memref<4x384xf32, #tpu.memory_space<vmem>>, vector<1x128xf32>
    tpu.vector_store %arg49[%c1_365, %c0_366], %1031 {strides = array<i32>} : memref<4x384xf32, #tpu.memory_space<vmem>>, vector<1x128xf32>,
    %1033 = vector.extract_strided_slice %1028 {offsets = [0, 0], sizes = [2, 128], strides = [1, 1]} : vector<4x128xf32> to vector<2x128xf32>
    %c0_367 = arith.constant 0 : index
    %c128_368 = arith.constant 128 : index
    %1034 = vector.load %arg49[%c0_367, %c128_368] : memref<4x384xf32, #tpu.memory_space<vmem>>, vector<2x128xf32>
    tpu.vector_store %arg49[%c0_367, %c128_368], %1033 {strides = array<i32>} : memref<4x384xf32, #tpu.memory_space<vmem>>, vector<2x128xf32>,
    %1035 = vector.extract_strided_slice %1028 {offsets = [1, 0], sizes = [1, 128], strides = [1, 1]} : vector<4x128xf32> to vector<1x128xf32>
    %c0_369 = arith.constant 0 : index
    %c256_370 = arith.constant 256 : index
    %1036 = vector.load %arg49[%c0_369, %c256_370] : memref<4x384xf32, #tpu.memory_space<vmem>>, vector<1x128xf32>
    tpu.vector_store %arg49[%c0_369, %c256_370], %1035 {strides = array<i32>} : memref<4x384xf32, #tpu.memory_space<vmem>>, vector<1x128xf32>,
    %c1_371 = arith.constant 1 : index
    %c256_372 = arith.constant 256 : index
    %1037 = vector.load %arg49[%c1_371, %c256_372] : memref<4x384xf32, #tpu.memory_space<vmem>>, vector<1x128xf32>
    tpu.vector_store %arg49[%c1_371, %c256_372], %1029 {strides = array<i32>} : memref<4x384xf32, #tpu.memory_space<vmem>>, vector<1x128xf32>,
    %c2_373 = arith.constant 2 : index
    %c0_374 = arith.constant 0 : index
    %1038 = vector.load %arg49[%c2_373, %c0_374] : memref<4x384xf32, #tpu.memory_space<vmem>>, vector<1x128xf32>
    tpu.vector_store %arg49[%c2_373, %c0_374], %1029 {strides = array<i32>} : memref<4x384xf32, #tpu.memory_space<vmem>>, vector<1x128xf32>,
    %1039 = vector.extract_strided_slice %1028 {offsets = [2, 0], sizes = [1, 128], strides = [1, 1]} : vector<4x128xf32> to vector<1x128xf32>
    %c3_375 = arith.constant 3 : index
    %c0_376 = arith.constant 0 : index
    %1040 = vector.load %arg49[%c3_375, %c0_376] : memref<4x384xf32, #tpu.memory_space<vmem>>, vector<1x128xf32>
    tpu.vector_store %arg49[%c3_375, %c0_376], %1039 {strides = array<i32>} : memref<4x384xf32, #tpu.memory_space<vmem>>, vector<1x128xf32>,
    %1041 = vector.extract_strided_slice %1028 {offsets = [2, 0], sizes = [2, 128], strides = [1, 1]} : vector<4x128xf32> to vector<2x128xf32>
    %c2_377 = arith.constant 2 : index
    %c128_378 = arith.constant 128 : index
    %1042 = vector.load %arg49[%c2_377, %c128_378] : memref<4x384xf32, #tpu.memory_space<vmem>>, vector<2x128xf32>
    tpu.vector_store %arg49[%c2_377, %c128_378], %1041 {strides = array<i32>} : memref<4x384xf32, #tpu.memory_space<vmem>>, vector<2x128xf32>,
    %1043 = vector.extract_strided_slice %1028 {offsets = [3, 0], sizes = [1, 128], strides = [1, 1]} : vector<4x128xf32> to vector<1x128xf32>
    %c2_379 = arith.constant 2 : index
    %c256_380 = arith.constant 256 : index
    %1044 = vector.load %arg49[%c2_379, %c256_380] : memref<4x384xf32, #tpu.memory_space<vmem>>, vector<1x128xf32>
    tpu.vector_store %arg49[%c2_379, %c256_380], %1043 {strides = array<i32>} : memref<4x384xf32, #tpu.memory_space<vmem>>, vector<1x128xf32>,
    %c3_381 = arith.constant 3 : index
    %c256_382 = arith.constant 256 : index
    %1045 = vector.load %arg49[%c3_381, %c256_382] : memref<4x384xf32, #tpu.memory_space<vmem>>, vector<1x128xf32>
    tpu.vector_store %arg49[%c3_381, %c256_382], %1029 {strides = array<i32>} : memref<4x384xf32, #tpu.memory_space<vmem>>, vector<1x128xf32>,
    %c0_383 = arith.constant 0 : index
    %c0_384 = arith.constant 0 : index
    %1046 = vector.load %arg49[%c0_383, %c0_384] : memref<4x384xf32, #tpu.memory_space<vmem>>, vector<4x384xf32>
    %c0_385 = arith.constant 0 : index
    %c0_386 = arith.constant 0 : index
    %1047 = vector.load %arg29[%c0_385, %c0_386] : memref<384x128xf32, #tpu.memory_space<vmem>>, vector<384x128xf32>
    %cst_387 = arith.constant dense<0.000000e+00> : vector<4x128xf32>
    %1048 = tpu.matmul %1046, %1047, %cst_387 {dimension_numbers = #tpu.dot_dimension_numbers<[1], [0], [0], [1], [0, 0, 1, 1], [], []>} : vector<4x384xf32>, vector<384x128xf32>, vector<4x128xf32> -> vector<4x128xf32>
    %c0_388 = arith.constant 0 : index
    %c0_389 = arith.constant 0 : index
    %1049 = vector.load %arg30[%c0_388, %c0_389] : memref<1x128xf32, #tpu.memory_space<vmem>>, vector<1x128xf32>
    %1050 = vector.broadcast %1049 : vector<1x128xf32> to vector<4x128xf32>
    %1051 = arith.addf %1048, %1050 : vector<4x128xf32>
    %cst_390 = arith.constant dense<0.000000e+00> : vector<128xf32>
    %1052 = vector.multi_reduction <add>, %1051, %cst_390 [0] : vector<4x128xf32> to vector<128xf32>
    %1053 = vector.shape_cast %1052 : vector<128xf32> to vector<1x128xf32>
    %1054 = arith.mulf %1051, %1051 : vector<4x128xf32>
    %cst_391 = arith.constant dense<0.000000e+00> : vector<128xf32>
    %1055 = vector.multi_reduction <add>, %1054, %cst_391 [0] : vector<4x128xf32> to vector<128xf32>
    %1056 = vector.shape_cast %1055 : vector<128xf32> to vector<1x128xf32>
    %c0_392 = arith.constant 0 : index
    %c0_393 = arith.constant 0 : index
    %1057 = vector.load %arg36[%c0_392, %c0_393] : memref<128x128xf32, #tpu.memory_space<vmem>>, vector<128x128xf32>
    %cst_394 = arith.constant dense<0.000000e+00> : vector<1x128xf32>
    %1058 = tpu.matmul %1053, %1057, %cst_394 {dimension_numbers = #tpu.dot_dimension_numbers<[1], [0], [0], [1], [0, 0, 1, 1], [], []>} : vector<1x128xf32>, vector<128x128xf32>, vector<1x128xf32> -> vector<1x128xf32>
    %cst_395 = arith.constant 1.250000e-01 : f32
    %1059 = vector.broadcast %cst_395 : f32 to vector<1x128xf32>
    %1060 = arith.mulf %1058, %1059 : vector<1x128xf32>
    %c0_396 = arith.constant 0 : index
    %c0_397 = arith.constant 0 : index
    %1061 = vector.load %arg36[%c0_396, %c0_397] : memref<128x128xf32, #tpu.memory_space<vmem>>, vector<128x128xf32>
    %cst_398 = arith.constant dense<0.000000e+00> : vector<1x128xf32>
    %1062 = tpu.matmul %1056, %1061, %cst_398 {dimension_numbers = #tpu.dot_dimension_numbers<[1], [0], [0], [1], [0, 0, 1, 1], [], []>} : vector<1x128xf32>, vector<128x128xf32>, vector<1x128xf32> -> vector<1x128xf32>
    %cst_399 = arith.constant 1.250000e-01 : f32
    %1063 = vector.broadcast %cst_399 : f32 to vector<1x128xf32>
    %1064 = arith.mulf %1062, %1063 : vector<1x128xf32>
    %1065 = arith.mulf %1060, %1060 : vector<1x128xf32>
    %1066 = arith.subf %1064, %1065 : vector<1x128xf32>
    %cst_400 = arith.constant 0.000000e+00 : f32
    %1067 = vector.broadcast %cst_400 : f32 to vector<1x128xf32>
    %1068 = arith.maximumf %1066, %1067 : vector<1x128xf32>
    %cst_401 = arith.constant 9.99999974E-6 : f32
    %1069 = vector.broadcast %cst_401 : f32 to vector<1x128xf32>
    %1070 = arith.addf %1068, %1069 : vector<1x128xf32>
    %1071 = math.rsqrt %1070 : vector<1x128xf32>
    %c0_402 = arith.constant 0 : index
    %c0_403 = arith.constant 0 : index
    %1072 = vector.load %arg31[%c0_402, %c0_403] : memref<1x128xf32, #tpu.memory_space<vmem>>, vector<1x128xf32>
    %1073 = arith.mulf %1071, %1072 : vector<1x128xf32>
    %c0_404 = arith.constant 0 : index
    %c0_405 = arith.constant 0 : index
    %1074 = vector.load %arg32[%c0_404, %c0_405] : memref<1x128xf32, #tpu.memory_space<vmem>>, vector<1x128xf32>
    %1075 = arith.mulf %1060, %1073 : vector<1x128xf32>
    %1076 = arith.subf %1074, %1075 : vector<1x128xf32>
    %1077 = vector.broadcast %1073 : vector<1x128xf32> to vector<4x128xf32>
    %1078 = arith.mulf %1051, %1077 : vector<4x128xf32>
    %1079 = vector.broadcast %1076 : vector<1x128xf32> to vector<4x128xf32>
    %1080 = arith.addf %1078, %1079 : vector<4x128xf32>
    %cst_406 = arith.constant 0.000000e+00 : f32
    %1081 = vector.broadcast %cst_406 : f32 to vector<4x128xf32>
    %1082 = arith.maximumf %1080, %1081 : vector<4x128xf32>
    %c0_407 = arith.constant 0 : index
    %c0_408 = arith.constant 0 : index
    %1083 = vector.load %arg41[%c0_407, %c0_408] : memref<4x128xf32, #tpu.memory_space<vmem>>, vector<4x128xf32>
    tpu.vector_store %arg41[%c0_407, %c0_408], %1082 {strides = array<i32>} : memref<4x128xf32, #tpu.memory_space<vmem>>, vector<4x128xf32>,
    %1084 = vector.extract_strided_slice %1082 {offsets = [0, 0], sizes = [1, 128], strides = [1, 1]} : vector<4x128xf32> to vector<1x128xf32>
    %1085 = vector.extract_strided_slice %1082 {offsets = [1, 0], sizes = [1, 128], strides = [1, 1]} : vector<4x128xf32> to vector<1x128xf32>
    %1086 = arith.maximumf %1084, %1085 : vector<1x128xf32>
    %1087 = vector.extract_strided_slice %1086 {offsets = [0, 0], sizes = [1, 64], strides = [1, 1]} : vector<1x128xf32> to vector<1x64xf32>
    %1088 = vector.extract_strided_slice %1086 {offsets = [0, 64], sizes = [1, 64], strides = [1, 1]} : vector<1x128xf32> to vector<1x64xf32>
    %1089 = arith.maximumf %1087, %1088 : vector<1x64xf32>
    %c0_409 = arith.constant 0 : index
    %c0_410 = arith.constant 0 : index
    %1090 = vector.load %arg37[%c0_409, %c0_410] : memref<2x64xf32, #tpu.memory_space<vmem>>, vector<1x64xf32>
    tpu.vector_store %arg37[%c0_409, %c0_410], %1089 {strides = array<i32>} : memref<2x64xf32, #tpu.memory_space<vmem>>, vector<1x64xf32>,
    %1091 = vector.extract_strided_slice %1082 {offsets = [2, 0], sizes = [1, 128], strides = [1, 1]} : vector<4x128xf32> to vector<1x128xf32>
    %1092 = vector.extract_strided_slice %1082 {offsets = [3, 0], sizes = [1, 128], strides = [1, 1]} : vector<4x128xf32> to vector<1x128xf32>
    %1093 = arith.maximumf %1091, %1092 : vector<1x128xf32>
    %1094 = vector.extract_strided_slice %1093 {offsets = [0, 0], sizes = [1, 64], strides = [1, 1]} : vector<1x128xf32> to vector<1x64xf32>
    %1095 = vector.extract_strided_slice %1093 {offsets = [0, 64], sizes = [1, 64], strides = [1, 1]} : vector<1x128xf32> to vector<1x64xf32>
    %1096 = arith.maximumf %1094, %1095 : vector<1x64xf32>
    %c1_411 = arith.constant 1 : index
    %c0_412 = arith.constant 0 : index
    %1097 = vector.load %arg37[%c1_411, %c0_412] : memref<2x64xf32, #tpu.memory_space<vmem>>, vector<1x64xf32>
    tpu.vector_store %arg37[%c1_411, %c0_412], %1096 {strides = array<i32>} : memref<2x64xf32, #tpu.memory_space<vmem>>, vector<1x64xf32>,
    return
  }
}

</mosaic_0001>

<bundles_post_ra>
// kernel: encoder_forward.1
= control target key start
LH: loop header
LB: loop body
LE: loop exit
PB: predicated region body
PF: predicated region fallthrough
CT: control target
= control target key end

     0   :  { %s5333_s6 = smov 1   ;;  %s5334_s10 = smov 2   ;;  %s6880_s0 = inlined_call_operand.smem [shape: u32[42], index: -1, kind: input, shape index: {}] }
   0x1   :  { %s5405_s5 = sld [smem:[%s6880_s0]]   ;;  %s5335_s14 = smov 3  }
   0x2   :  { %s5410_s9 = sld [smem:[%s6880_s0 + %s5333_s6]]   ;;  %s5336_s18 = smov 4  }
   0x3   :  { %s5415_s13 = sld [smem:[%s6880_s0 + %s5334_s10]]   ;;  %s5337_s22 = smov 5  }
   0x4   :  { %s5420_s17 = sld [smem:[%s6880_s0 + %s5335_s14]]   ;;  %s5338_s26 = smov 6  }
   0x5   :  { %s5425_s21 = sld [smem:[%s6880_s0 + %s5336_s18]]   ;;  %s5339_s30 = smov 7  }
   0x6   :  { %s5430_s25 = sld [smem:[%s6880_s0 + %s5337_s22]]   ;;  %s5340_s4 = smov 8  }
   0x7   :  { %s5435_s29 = sld [smem:[%s6880_s0 + %s5338_s26]]   ;;  %s5341_s10 = smov 9  }
   0x8   :  { %s5440_s3 = sld [smem:[%s6880_s0 + %s5339_s30]]   ;;  %s5342_s15 = smov 10  }
   0x9   :  { %s5445_s8 = sld [smem:[%s6880_s0 + %s5340_s4]]   ;;  %s5343_s20 = smov 11  }
   0xa   :  { %6881 = sst [smem:[#allocation38_spill]] %s5420_s17  ;;  %s5344_s26 = smov 12  }
   0xb   :  { %6882 = sst [smem:[#allocation39_spill]] %s5425_s21  ;;  %s5345_s1 = smov 13  }
   0xc   :  { %s5450_s14 = sld [smem:[%s6880_s0 + %s5341_s10]]   ;;  %s5346_s7 = smov 14  }
   0xd   :  { %6883 = sst [smem:[#allocation40_spill]] %s5435_s29  ;;  %s5348_s22 = smov 16  }
   0xe   :  { %6884 = sst [smem:[#allocation41_spill]] %s5440_s3  ;;  %s5349_s28 = smov 17  }
   0xf   :  { %6885 = sst [smem:[#allocation42_spill]] %s5445_s8 }
  0x10   :  { %s5455_s19 = sld [smem:[%s6880_s0 + %s5342_s15]]   ;;  %s5347_s15 = smov 15  }
  0x11   :  { %s5460_s24 = sld [smem:[%s6880_s0 + %s5343_s20]]  }
  0x12   :  { %s5465_s30 = sld [smem:[%s6880_s0 + %s5344_s26]]  }
  0x13   :  { %s5470_s6 = sld [smem:[%s6880_s0 + %s5345_s1]]  }
  0x14   :  { %s5475_s12 = sld [smem:[%s6880_s0 + %s5346_s7]]   ;;  %s5350_s7 = smov 18  }
  0x15   :  { %s5480_s20 = sld [smem:[%s6880_s0 + %s5347_s15]]   ;;  %s5351_s15 = smov 19  }
  0x16   :  { %6886 = sst [smem:[#allocation43_spill]] %s5455_s19 }
  0x17   :  { %6887 = sst [smem:[#allocation44_spill]] %s5460_s24 }
  0x18   :  { %6888 = sst [smem:[#allocation45_spill]] %s5465_s30 }
  0x19   :  { %s5485_s27 = sld [smem:[%s6880_s0 + %s5348_s22]]   ;;  %s5352_s22 = smov 20  }
  0x1a   :  { %6889 = sst [smem:[#allocation46_spill]] %s5475_s12 }
  0x1b   :  { %6890 = sst [smem:[#allocation47_spill]] %s5480_s20 }
  0x1c   :  { %s5490_s4 = sld [smem:[%s6880_s0 + %s5349_s28]]   ;;  %s5353_s28 = smov 21  }
  0x1d   :  { %s5495_s12 = sld [smem:[%s6880_s0 + %s5350_s7]]   ;;  %s5354_s7 = smov 22  }
  0x1e   :  { %s5500_s20 = sld [smem:[%s6880_s0 + %s5351_s15]]   ;;  %s5355_s15 = smov 23  }
  0x1f   :  { %6891 = sst [smem:[#allocation48_spill]] %s5485_s27 }
  0x20   :  { %s5505_s27 = sld [smem:[%s6880_s0 + %s5352_s22]]   ;;  %s5356_s22 = smov 24  }
  0x21   :  { %s5510_s30 = sld [smem:[%s6880_s0 + %s5353_s28]]   ;;  %s5357_s28 = smov 25  }
  0x22   :  { %s5530_s24 = sld [smem:[%s6880_s0 + %s5357_s28]]   ;;  %s5361_s28 = smov 29  }
  0x23   :  { %6892 = sst [smem:[#allocation49_spill]] %s5495_s12 }
  0x24   :  { %6893 = sst [smem:[#allocation50_spill]] %s5500_s20 }
  0x25   :  { %s5515_s12 = sld [smem:[%s6880_s0 + %s5354_s7]]   ;;  %s5358_s7 = smov 26  }
  0x26   :  { %6894 = sst [smem:[#allocation51_spill]] %s5505_s27 }
  0x27   :  { %s5520_s20 = sld [smem:[%s6880_s0 + %s5355_s15]]   ;;  %s5359_s15 = smov 27  }
  0x28   :  { %s5525_s27 = sld [smem:[%s6880_s0 + %s5356_s22]]   ;;  %s5360_s22 = smov 28  }
  0x29   :  { %s5550_s19 = sld [smem:[%s6880_s0 + %s5361_s28]]   ;;  %s5365_s28 = smov 33  }
  0x2a   :  { %s5570_s8 = sld [smem:[%s6880_s0 + %s5365_s28]]   ;;  %s5369_s28 = smov 37  }
  0x2b   :  { %6895 = sst [smem:[#allocation52_spill]] %s5515_s12 }
  0x2c   :  { %s5535_s12 = sld [smem:[%s6880_s0 + %s5358_s7]]   ;;  %s5362_s7 = smov 30  }
  0x2d   :  { %6896 = sst [smem:[#allocation53_spill]] %s5520_s20 }
  0x2e   :  { %6897 = sst [smem:[#allocation54_spill]] %s5525_s27 }
  0x2f   :  { %s5540_s20 = sld [smem:[%s6880_s0 + %s5359_s15]]   ;;  %s5363_s15 = smov 31  }
  0x30   :  { %s5545_s27 = sld [smem:[%s6880_s0 + %s5360_s22]]   ;;  %s5364_s22 = smov 32  }
  0x31   :  { %s5590_s3 = sld [smem:[%s6880_s0 + %s5369_s28]]   ;;  %s5373_s28 = smov 41  }
  0x32   :  { %6898 = sst [smem:[#allocation55_spill]] %s5535_s12 }
  0x33   :  { %s5555_s12 = sld [smem:[%s6880_s0 + %s5362_s7]]   ;;  %s5366_s7 = smov 34  }
  0x35   :  { %6899 = sst [smem:[#allocation56_spill]] %s5540_s20 }
  0x36   :  { %6900 = sst [smem:[#allocation57_spill]] %s5545_s27 }
  0x37   :  { %s5560_s20 = sld [smem:[%s6880_s0 + %s5363_s15]]   ;;  %s5367_s15 = smov 35  }
  0x38   :  { %s5565_s27 = sld [smem:[%s6880_s0 + %s5364_s22]]   ;;  %s5368_s22 = smov 36  }
  0x39   :  { %6901 = sst [smem:[#allocation58_spill]] %s5555_s12 }
  0x3a   :  { %s5575_s12 = sld [smem:[%s6880_s0 + %s5366_s7]]   ;;  %s5370_s7 = smov 38  }
  0x3b   :  { %6904 = sst [smem:[#allocation61_spill]] %s5590_s3 }
  0x3c   :  { %s5595_s29 = sld [smem:[%s6880_s0 + %s5370_s7]]  }
  0x3d   :  { %6902 = sst [smem:[#allocation59_spill]] %s5560_s20 }
  0x3e   :  { %6903 = sst [smem:[#allocation60_spill]] %s5565_s27 }
  0x3f   :  { %s5580_s20 = sld [smem:[%s6880_s0 + %s5367_s15]]   ;;  %s5371_s15 = smov 39  }
  0x40   :  { %s5585_s27 = sld [smem:[%s6880_s0 + %s5368_s22]]   ;;  %s5372_s22 = smov 40  }
  0x41   :  { %s5600_s21 = sld [smem:[%s6880_s0 + %s5371_s15]]  }
  0x42   :  { %s5605_s17 = sld [smem:[%s6880_s0 + %s5372_s22]]  }
  0x43   :  { %s5610_s3 = sld [smem:[%s6880_s0 + %s5373_s28]]  }
  0x44   :  { %89 = vsyncpa [#allocation14], 0 }
  0x45   :  { %90 = vsyncpa [#allocation17], 0 }
  0x46   :  { %91 = vsyncpa [#allocation20], 0 }
  0x47   :  { %92 = vsyncpa [#allocation23], 0 }
  0x48   :  { %93 = vsyncpa [#allocation26], 0 }
  0x49   :  { %94 = vsyncpa [#allocation29], 0 }
  0x4a   :  { %95 = vsyncpa [#allocation15], 0  ;;  %s5374_s7 = smov [#allocation16]   ;;  %s5375_s11 = smov [#allocation19]  }
  0x4b   :  { %s137_s10 = sshll.u32 %s5374_s7, 4  ;;  %s173_s15 = sshll.u32 %s5375_s11, 4  ;;  %s138_s10 = int_to_ptr.vmem [resolvable:$true] %s137_s10  ;;  %s174_s15 = int_to_ptr.vmem [resolvable:$true] %s173_s15 }
  0x4c   :  { %s5107_s16 = scalar_lea.vmem %s138_s10, 6144  ;;  %p5112_p1 = scmp.lt.s32.totalorder %s138_s10, %s138_s10 }
  0x4d   :  { %p5108_p0 = scmp.ne.s32.totalorder %s138_s10, %s5107_s16  ;;  %p5113_p2 = scmp.lt.s32.totalorder %s5107_s16, %s5107_s16 }
  0x4f   :  { %p5114_p3 = por %p5113_p2, %p5112_p1 }
  0x51   :  { %p5115_p4 = pnand %p5114_p3, %p5108_p0 }
  0x53   :  { %5118 = shalt.err (!%p5115_p4)
}
  0x54   :  { %s5376_s0 = smov 128   ;;  %s5377_s18 = smov 8  }
  0x55   :  { %143 = dma.hbm_to_vmem [thread:$0]  %s5470_s6, 6144, %s138_s10, [#allocation17], %s5376_s0, %s5376_s0, %s5377_s18  }
  0x56   :  { %s5127_s22 = scalar_lea.vmem %s174_s15, 6144  ;;  %p5132_p6 = scmp.lt.s32.totalorder %s174_s15, %s174_s15 }
  0x57   :  { %p5128_p5 = scmp.ne.s32.totalorder %s174_s15, %s5127_s22  ;;  %p5133_p7 = scmp.lt.s32.totalorder %s5127_s22, %s5127_s22 }
  0x59   :  { %p5134_p8 = por %p5133_p7, %p5132_p6 }
  0x5b   :  { %p5135_p9 = pnand %p5134_p8, %p5128_p5 }
  0x5d   :  { %5138 = shalt.err (!%p5135_p9)
}
  0x5e   :  { %179 = dma.hbm_to_vmem [thread:$0]  %s5510_s30, 6144, %s174_s15, [#allocation20], %s5376_s0, %s5376_s0, %s5377_s18  }
  0x5f   :  { %s5378_s23 = smov [#allocation22]   ;;  %s5379_s28 = smov [#allocation25]  }
  0x60   :  { %s209_s26 = sshll.u32 %s5378_s23, 4  ;;  %s239_s1 = sshll.u32 %s5379_s28, 4  ;;  %s210_s26 = int_to_ptr.vmem [resolvable:$true] %s209_s26  ;;  %s240_s1 = int_to_ptr.vmem [resolvable:$true] %s239_s1 }
  0x61   :  { %s5147_s2 = scalar_lea.vmem %s210_s26, 6144  ;;  %p5152_p11 = scmp.lt.s32.totalorder %s210_s26, %s210_s26 }
  0x62   :  { %p5148_p10 = scmp.ne.s32.totalorder %s210_s26, %s5147_s2  ;;  %p5153_p12 = scmp.lt.s32.totalorder %s5147_s2, %s5147_s2 }
  0x64   :  { %p5154_p13 = por %p5153_p12, %p5152_p11 }
  0x66   :  { %p5155_p0 = pnand %p5154_p13, %p5148_p10 }
  0x68   :  { %5158 = shalt.err (!%p5155_p0)
}
  0x69   :  { %215 = dma.hbm_to_vmem [thread:$0]  %s5550_s19, 6144, %s210_s26, [#allocation23], %s5376_s0, %s5376_s0, %s5377_s18  }
  0x6a   :  { %s5167_s6 = scalar_lea.vmem %s240_s1, 2048  ;;  %p5172_p2 = scmp.lt.s32.totalorder %s240_s1, %s240_s1 }
  0x6b   :  { %p5168_p1 = scmp.ne.s32.totalorder %s240_s1, %s5167_s6  ;;  %p5173_p3 = scmp.lt.s32.totalorder %s5167_s6, %s5167_s6 }
  0x6d   :  { %p5174_p4 = por %p5173_p3, %p5172_p2 }
  0x6f   :  { %p5175_p5 = pnand %p5174_p4, %p5168_p1 }
  0x71   :  { %5178 = shalt.err (!%p5175_p5)
}
  0x72   :  { %245 = dma.hbm_to_vmem [thread:$0]  %s5575_s12, 2048, %s240_s1, [#allocation26], %s5376_s0, %s5376_s0, %s5377_s18  }
  0x73   :  { %s5380_s30 = smov [#allocation13]   ;;  %s5381_s10 = smov [#allocation18]  }
  0x74   :  { %s119_s7 = sshll.u32 %s5380_s30, 4  ;;  %s155_s11 = sshll.u32 %s5381_s10, 4  ;;  %s120_s7 = int_to_ptr.vmem [resolvable:$true] %s119_s7  ;;  %s156_s11 = int_to_ptr.vmem [resolvable:$true] %s155_s11 }
  0x75   :  { %s5187_s15 = scalar_lea.vmem %s120_s7, 3072  ;;  %p5192_p7 = scmp.lt.s32.totalorder %s120_s7, %s120_s7 }
  0x76   :  { %p5188_p6 = scmp.ne.s32.totalorder %s120_s7, %s5187_s15  ;;  %p5193_p8 = scmp.lt.s32.totalorder %s5187_s15, %s5187_s15 }
  0x78   :  { %p5194_p9 = por %p5193_p8, %p5192_p7 }
  0x7a   :  { %p5195_p10 = pnand %p5194_p9, %p5188_p6 }
  0x7c   :  { %5198 = shalt.err (!%p5195_p10)
}
  0x7d   :  { %125 = dma.hbm_to_vmem [thread:$0]  %s5450_s14, 3072, %s120_s7, [#allocation14], %s5376_s0, %s5376_s0, %s5377_s18  }
  0x7e   :  { %s5207_s19 = scalar_lea.vmem %s156_s11, 3072  ;;  %p5212_p12 = scmp.lt.s32.totalorder %s156_s11, %s156_s11 }
  0x7f   :  { %p5208_p11 = scmp.ne.s32.totalorder %s156_s11, %s5207_s19  ;;  %p5213_p13 = scmp.lt.s32.totalorder %s5207_s19, %s5207_s19 }
  0x81   :  { %p5214_p0 = por %p5213_p13, %p5212_p12 }
  0x83   :  { %p5215_p1 = pnand %p5214_p0, %p5208_p11 }
  0x85   :  { %5218 = shalt.err (!%p5215_p1)
}
  0x86   :  { %161 = dma.hbm_to_vmem [thread:$0]  %s5490_s4, 3072, %s156_s11, [#allocation17], %s5376_s0, %s5376_s0, %s5377_s18  }
  0x87   :  { %s5382_s12 = smov [#allocation21]   ;;  %s5383_s22 = smov [#allocation24]  }
  0x88   :  { %s191_s16 = sshll.u32 %s5382_s12, 4  ;;  %s227_s23 = sshll.u32 %s5383_s22, 4  ;;  %s192_s16 = int_to_ptr.vmem [resolvable:$true] %s191_s16  ;;  %s228_s23 = int_to_ptr.vmem [resolvable:$true] %s227_s23 }
  0x89   :  { %s5227_s26 = scalar_lea.vmem %s192_s16, 3072  ;;  %p5232_p3 = scmp.lt.s32.totalorder %s192_s16, %s192_s16 }
  0x8a   :  { %p5228_p2 = scmp.ne.s32.totalorder %s192_s16, %s5227_s26  ;;  %p5233_p4 = scmp.lt.s32.totalorder %s5227_s26, %s5227_s26 }
  0x8c   :  { %p5234_p5 = por %p5233_p4, %p5232_p3 }
  0x8e   :  { %p5235_p6 = pnand %p5234_p5, %p5228_p2 }
  0x90   :  { %5238 = shalt.err (!%p5235_p6)
}
  0x91   :  { %197 = dma.hbm_to_vmem [thread:$0]  %s5530_s24, 3072, %s192_s16, [#allocation20], %s5376_s0, %s5376_s0, %s5377_s18  }
  0x92   :  { %s5247_s14 = scalar_lea.vmem %s228_s23, 2048  ;;  %p5252_p8 = scmp.lt.s32.totalorder %s228_s23, %s228_s23 }
  0x93   :  { %p5248_p7 = scmp.ne.s32.totalorder %s228_s23, %s5247_s14  ;;  %p5253_p9 = scmp.lt.s32.totalorder %s5247_s14, %s5247_s14 }
  0x95   :  { %p5254_p10 = por %p5253_p9, %p5252_p8 }
  0x97   :  { %p5255_p11 = pnand %p5254_p10, %p5248_p7 }
  0x99   :  { %5258 = shalt.err (!%p5255_p11)
}
  0x9a   :  { %233 = dma.hbm_to_vmem [thread:$0]  %s5570_s8, 2048, %s228_s23, [#allocation23], %s5376_s0, %s5376_s0, %s5377_s18  }
  0x9b   :  { %s5384_s4 = smov [#allocation27]   ;;  %s5385_s1 = smov [#allocation28]  }
  0x9c   :  { %s251_s28 = sshll.u32 %s5384_s4, 4  ;;  %s263_s2 = sshll.u32 %s5385_s1, 4  ;;  %s252_s28 = int_to_ptr.vmem [resolvable:$true] %s251_s28  ;;  %s264_s2 = int_to_ptr.vmem [resolvable:$true] %s263_s2 }
  0x9d   :  { %s5267_s6 = scalar_lea.vmem %s252_s28, 2048  ;;  %p5272_p13 = scmp.lt.s32.totalorder %s252_s28, %s252_s28 }
  0x9e   :  { %p5268_p12 = scmp.ne.s32.totalorder %s252_s28, %s5267_s6  ;;  %p5273_p0 = scmp.lt.s32.totalorder %s5267_s6, %s5267_s6 }
  0xa0   :  { %p5274_p1 = por %p5273_p0, %p5272_p13 }
  0xa2   :  { %p5275_p2 = pnand %p5274_p1, %p5268_p12 }
  0xa4   :  { %5278 = shalt.err (!%p5275_p2)
}
  0xa5   :  { %257 = dma.hbm_to_vmem [thread:$0]  %s5580_s20, 2048, %s252_s28, [#allocation26], %s5376_s0, %s5376_s0, %s5377_s18  }
  0xa6   :  { %s5287_s24 = scalar_lea.vmem %s264_s2, 2048  ;;  %p5292_p4 = scmp.lt.s32.totalorder %s264_s2, %s264_s2 }
  0xa7   :  { %p5288_p3 = scmp.ne.s32.totalorder %s264_s2, %s5287_s24  ;;  %p5293_p5 = scmp.lt.s32.totalorder %s5287_s24, %s5287_s24 }
  0xa9   :  { %p5294_p6 = por %p5293_p5, %p5292_p4 }
  0xab   :  { %p5295_p7 = pnand %p5294_p6, %p5288_p3 }
  0xad   :  { %5298 = shalt.err (!%p5295_p7)
}
  0xae   :  { %269 = dma.hbm_to_vmem [thread:$0]  %s5585_s27, 2048, %s264_s2, [#allocation29], %s5376_s0, %s5376_s0, %s5377_s18  }
  0xaf   :  { %5319 = dma.done.wait [#allocation14], 3072  }
  0xb0   :  { %5320 = vsyncadd [#allocation14], 4294964224 }
  0xb1   :  { %5321 = dma.done.wait [#allocation17], 9216  }
  0xb2   :  { %5322 = vsyncadd [#allocation17], 4294958080 }
  0xb3   :  { %5323 = dma.done.wait [#allocation20], 9216  }
  0xb4   :  { %5324 = vsyncadd [#allocation20], 4294958080 }
  0xb5   :  { %5325 = dma.done.wait [#allocation23], 8192  }
  0xb6   :  { %5326 = vsyncadd [#allocation23], 4294959104 }
  0xb7   :  { %5327 = dma.done.wait [#allocation26], 4096  }
  0xb8   :  { %5328 = vsyncadd [#allocation26], 4294963200 }
  0xb9   :  { %5329 = dma.done.wait [#allocation29], 2048  }
  0xba   :  { %5330 = vsyncadd [#allocation29], 4294965248  ;;  %vm304_vm0 = vcmask 516096   ;;  %v5386_v0 = vmov 0.0   ;;  %vm314_vm1 = vcmask 523265   ;;  %vm308_vm2 = vcmask 1040384  }
  0xbb   :  { %414 = vmatprep.subr.mxu0 %v5386_v0  ;;  %711 = vst [vmem:[#allocation3] sm:$0x1] %v5386_v0  ;;  %730 = vst [vmem:[#allocation3 + $0x2f] sm:$0x1] %v5386_v0  ;;  %4314 = vmatprep.subr.mxu1 %v5386_v0  ;;  %v300_v1 = vld [vmem:[%s5405_s5] sm:$0xff]  ;;  %v301_v2 = vld [vmem:[%s5405_s5 + $0x8] sm:$0xff] }
  0xbc   :  { %731 = vst [vmem:[#allocation3 + $0x30] sm:$0x1] %v5386_v0  ;;  %750 = vst [vmem:[#allocation3 + $0x5f] sm:$0x1] %v5386_v0  ;;  %vm316_vm3 = vcmask 523264   ;;  %vm327_vm4 = vcmask 1046528  }
  0xbd   :  { %1726 = vst [vmem:[#allocation5] sm:$0x1] %v5386_v0  ;;  %1735 = vst [vmem:[#allocation5 + $0x17] sm:$0x1] %v5386_v0  ;;  %vm334_vm5 = vcmask 522240   ;;  %v302_v3 = vld [vmem:[%s5405_s5 + $0x10] sm:$0xff] }
  0xbe   :  { %1736 = vst [vmem:[#allocation5 + $0x18] sm:$0x1] %v5386_v0  ;;  %1745 = vst [vmem:[#allocation5 + $0x2f] sm:$0x1] %v5386_v0  ;;  %s5387_s8 = smov 64   ;;  %v309_v4 = vrot.slane %v300_v1, 7 }
  0xbf   :  { %2536 = vst [vmem:[#allocation7] sm:$0x1] %v5386_v0  ;;  %2545 = vst [vmem:[#allocation7 + $0x13] sm:$0x1] %v5386_v0  ;;  %318 = vrot.lane.b32.xlu0 %v300_v1, %s5387_s8  ;;  %v328_v5 = vrot.slane %v300_v1, 1  ;;  %v310_v6 = vrot.slane %v301_v2, 7  ;;  %347 = vrot.lane.b32.xlu1 %v302_v3, %s5387_s8 }
  0xc0   :  { %2546 = vst [vmem:[#allocation7 + $0x4] sm:$0x1] %v5386_v0  ;;  %2550 = vst [vmem:[#allocation7 + $0x17] sm:$0x1] %v5386_v0  ;;  %v329_v7 = vrot.slane %v301_v2, 1  ;;  %v303_v8 = vld [vmem:[%s5405_s5 + $0x18] sm:$0xff] }
  0xc1   :  { %3291 = vst [vmem:[#allocation9] sm:$0x1] %v5386_v0  ;;  %3299 = vst [vmem:[#allocation9 + $0x9] sm:$0x1] %v5386_v0  ;;  %v386_v9 = vld [vmem:[%s5410_s9 + $0x78] sm:$0xff]  ;;  %v340_v10 = vrot.slane %v302_v3, 7  ;;  %v311_v15 = vsel %vm308_vm2, %v309_v4, %v310_v6 }
  0xc2   :  { %3300 = vst [vmem:[#allocation9 + $0x2] sm:$0x1] %v5386_v0  ;;  %3310 = vst [vmem:[#allocation9 + $0xb] sm:$0x1] %v5386_v0  ;;  %v355_v11 = vrot.slane %v302_v3, 1  ;;  %v341_v12 = vrot.slane %v303_v8, 7  ;;  %415 = vmatpush1.msra.mxu0 %v386_v9  ;;  %v330_v16 = vsel %vm327_vm4, %v328_v5, %v329_v7 }
  0xc3   :  { %305 = vst.msk [vmem:[#allocation2] sm:$0x1] %vm304_vm0, %v5386_v0  ;;  %336 = vst.msk [vmem:[#allocation2 + $0x1f] sm:$0x1] %vm304_vm0, %v5386_v0  ;;  %v356_v13 = vrot.slane %v303_v8, 1  ;;  %v385_v14 = vld [vmem:[%s5410_s9 + $0x70] sm:$0xff]  ;;  %416 = vmatprep.subr.mxu0 %v5386_v0  ;;  %320 = vrot.lane.b32.xlu0 %v301_v2, %s5387_s8 }
  0xc4   :  { %337 = vst.msk [vmem:[#allocation2 + $0x20] sm:$0x1] %vm304_vm0, %v5386_v0  ;;  %362 = vst.msk [vmem:[#allocation2 + $0x3f] sm:$0x1] %vm304_vm0, %v5386_v0  ;;  %v342_v17 = vsel %vm308_vm2, %v340_v10, %v341_v12  ;;  %417 = vmatpush1.msra.mxu0 %v385_v14  ;;  %v384_v19 = vld [vmem:[%s5410_s9 + $0x68] sm:$0xff]  ;;  %349 = vrot.lane.b32.xlu1 %v303_v8, %s5387_s8  ;;  %v383_v20 = vld [vmem:[%s5410_s9 + $0x60] sm:$0xff] }
  0xc5   :  { %1384 = vst.msk [vmem:[#allocation4] sm:$0x1] %vm304_vm0, %v5386_v0  ;;  %1396 = vst.msk [vmem:[#allocation4 + $0xf] sm:$0x1] %vm304_vm0, %v5386_v0  ;;  %v357_v18 = vsel %vm327_vm4, %v355_v11, %v356_v13  ;;  %418 = vmatprep.subr.mxu0 %v5386_v0  ;;  %v382_v21 = vld [vmem:[%s5410_s9 + $0x58] sm:$0xff]  ;;  %v381_v22 = vld [vmem:[%s5410_s9 + $0x50] sm:$0xff] }
  0xc6   :  { %1397 = vst.msk [vmem:[#allocation4 + $0x10] sm:$0x1] %vm304_vm0, %v5386_v0  ;;  %1409 = vst.msk [vmem:[#allocation4 + $0x1f] sm:$0x1] %vm304_vm0, %v5386_v0  ;;  %419 = vmatpush1.msra.mxu0 %v384_v19  ;;  %v5732_v23 = vld [vmem:[#allocation24 + $0x78] sm:$0xff]  ;;  %v5735_v25 = vld [vmem:[#allocation24 + $0x70] sm:$0xff] }
  0xc7   :  { %2212 = vst.msk [vmem:[#allocation6] sm:$0x1] %vm304_vm0, %v5386_v0  ;;  %2227 = vst.msk [vmem:[#allocation6 + $0xb] sm:$0x1] %vm304_vm0, %v5386_v0  ;;  %420 = vmatprep.subr.mxu0 %v5386_v0  ;;  %4315 = vmatpush3.msra.mxu1 %v5732_v23  ;;  %v380_v26 = vld [vmem:[%s5410_s9 + $0x48] sm:$0xff]  ;;  %v379_v27 = vld [vmem:[%s5410_s9 + $0x40] sm:$0xff] }
  0xc8   :  { %2228 = vst.msk [vmem:[#allocation6 + $0x4] sm:$0x1] %vm304_vm0, %v5386_v0  ;;  %2235 = vst.msk [vmem:[#allocation6 + $0xf] sm:$0x1] %vm304_vm0, %v5386_v0  ;;  %421 = vmatpush1.msra.mxu0 %v383_v20  ;;  %4316 = vmatprep.subr.mxu1 %v5386_v0  ;;  %v378_v28 = vld [vmem:[%s5410_s9 + $0x38] sm:$0xff]  ;;  %v377_v29 = vld [vmem:[%s5410_s9 + $0x30] sm:$0xff] }
  0xc9   :  { %2963 = vst.msk [vmem:[#allocation8] sm:$0x1] %vm304_vm0, %v5386_v0  ;;  %2975 = vst.msk [vmem:[#allocation8 + $0x5] sm:$0x1] %vm304_vm0, %v5386_v0  ;;  %422 = vmatprep.subr.mxu0 %v5386_v0  ;;  %4317 = vmatpush3.msra.mxu1 %v5735_v25  ;;  %v376_v30 = vld [vmem:[%s5410_s9 + $0x28] sm:$0xff]  ;;  %v375_v31 = vld [vmem:[%s5410_s9 + $0x20] sm:$0xff] }
  0xca   :  { %2976 = vst.msk [vmem:[#allocation8 + $0x2] sm:$0x1] %vm304_vm0, %v5386_v0  ;;  %2987 = vst.msk [vmem:[#allocation8 + $0x7] sm:$0x1] %vm304_vm0, %v5386_v0  ;;  %423 = vmatpush1.msra.mxu0 %v382_v21  ;;  %4318 = vmatprep.subr.mxu1 %v5386_v0  ;;  %v374_v32 = vld [vmem:[%s5410_s9 + $0x18] sm:$0xff]  ;;  %v373_v33 = vld [vmem:[%s5410_s9 + $0x10] sm:$0xff] }
  0xcb   :  { %315 = vst.msk [vmem:[#allocation2] sm:$0xfe] %vm314_vm1, %v309_v4  ;;  %345 = vst.msk [vmem:[#allocation2 + $0x20] sm:$0xfe] %vm314_vm1, %v340_v10  ;;  %424 = vmatprep.subr.mxu0 %v5386_v0  ;;  %v372_v34 = vld [vmem:[%s5410_s9 + $0x8] sm:$0xff]  ;;  %v371_v35 = vld [vmem:[%s5410_s9] sm:$0xff] }
  0xcc   :  { %335 = vst.msk [vmem:[#allocation2 + $0x18] sm:$0x7f] %vm334_vm5, %v329_v7  ;;  %361 = vst.msk [vmem:[#allocation2 + $0x38] sm:$0x7f] %vm334_vm5, %v356_v13  ;;  %425 = vmatpush1.msra.mxu0 %v381_v22  ;;  %v394_v36 = vld [vmem:[%s5410_s9 + $0xb8] sm:$0xff]  ;;  %v393_v37 = vld [vmem:[%s5410_s9 + $0xb0] sm:$0xff] }
  0xcd   :  { %333 = vst.msk [vmem:[#allocation2 + $0x8] sm:$0xff] %vm316_vm3, %v330_v16  ;;  %317 = vst.msk [vmem:[#allocation2 + $0x10] sm:$0xff] %vm316_vm3, %v311_v15  ;;  %426 = vmatprep.subr.mxu0 %v5386_v0  ;;  %v392_v38 = vld [vmem:[%s5410_s9 + $0xa8] sm:$0xff]  ;;  %v391_v39 = vld [vmem:[%s5410_s9 + $0xa0] sm:$0xff]  ;;  %vm324_vm6 = vcmask 1048064   ;;  %vm5388_vm7 = vmmov 0  }
  0xce   :  { %360 = vst.msk [vmem:[#allocation2 + $0x28] sm:$0xff] %vm316_vm3, %v357_v18  ;;  %346 = vst.msk [vmem:[#allocation2 + $0x30] sm:$0xff] %vm316_vm3, %v342_v17  ;;  %427 = vmatpush1.msra.mxu0 %v380_v26  ;;  %v390_v40 = vld [vmem:[%s5410_s9 + $0x98] sm:$0xff]  ;;  %v389_v41 = vld [vmem:[%s5410_s9 + $0x90] sm:$0xff]  ;;  %4346 = vmatprep.mubr.msk.f32.mxu1 %vm5388_vm7, %v5386_v0  ;;  %s6905_s5 = sld [smem:[#allocation38_spill]]  ;;  %s5389_s27 = smov 120  }
  0xcf   :  { %428 = vmatprep.subr.mxu0 %v5386_v0  ;;  %v388_v42 = vld [vmem:[%s5410_s9 + $0x88] sm:$0xff]  ;;  %v387_v43 = vld [vmem:[%s5410_s9 + $0x80] sm:$0xff]  ;;  %v5785_v55 = vld [vmem:[#allocation24 + $0x68] sm:$0xff]  ;;  %s6906_s9 = sld [smem:[#allocation39_spill]]  ;;  %s5391_s0 = smov 104   ;;  %vm1235_vm8 = vcmask 64512  }
  0xd0   :  { %429 = vmatpush1.msra.mxu0 %v379_v27  ;;  %4319 = vmatpush3.msra.mxu1 %v5785_v55  ;;  %v5789_v56 = vld [vmem:[#allocation24 + $0x60] sm:$0xff]  ;;  %v5793_v57 = vld [vmem:[#allocation24 + $0x58] sm:$0xff]  ;;  %v5797_v58 = vld [vmem:[#allocation24 + $0x50] sm:$0xff]  ;;  %s6909_s20 = sld [smem:[#allocation42_spill]]  ;;  %s5392_s18 = smov 96   ;;  %vm1237_vm9 = vcmask 130048  }
  0xd1   :  { %430 = vmatprep.subr.mxu0 %v5386_v0  ;;  %4320 = vmatprep.subr.mxu1 %v5386_v0  ;;  %v5801_v59 = vld [vmem:[#allocation24 + $0x48] sm:$0xff]  ;;  %v5805_v60 = vld [vmem:[#allocation24 + $0x40] sm:$0xff]  ;;  %v5809_v61 = vld [vmem:[#allocation24 + $0x38] sm:$0xff]  ;;  %s5393_s30 = smov 88   ;;  %s5394_s7 = smov 80   ;;  %vm1239_vm10 = vcmask 195584  }
  0xd2   :  { %431 = vmatpush1.msra.mxu0 %v378_v28  ;;  %4321 = vmatpush3.msra.mxu1 %v5789_v56  ;;  %v5813_v62 = vld [vmem:[#allocation24 + $0x30] sm:$0xff]  ;;  %v5817_v63 = vld [vmem:[#allocation24 + $0x28] sm:$0xff]  ;;  %v5821_v1 = vld [vmem:[#allocation24 + $0x20] sm:$0xff]  ;;  %s5395_s10 = smov 72   ;;  %vm1241_vm11 = vcmask 261120   ;;  %vm1243_vm12 = vcmask 326656  }
  0xd3   :  { %432 = vmatprep.subr.mxu0 %v5386_v0  ;;  %v366_v48 = vld [vmem:[#allocation2 + $0x18] sm:$0xff]  ;;  %4322 = vmatprep.subr.mxu1 %v5386_v0  ;;  %v5825_v2 = vld [vmem:[#allocation24 + $0x18] sm:$0xff]  ;;  %v5832_v4 = vld [vmem:[#allocation24 + $0x8] sm:$0xff]  ;;  %vm1245_vm13 = vcmask 392192   ;;  %vm1247_vm14 = vcmask 457728   ;;  %vm1250_vm15 = vcmask 518146  }
  0xd4   :  { %v364_v24 = vld [vmem:[#allocation2 + $0x8] sm:$0xff]  ;;  %433 = vmatpush1.msra.mxu0 %v377_v29  ;;  %v370_v53 = vld [vmem:[#allocation2 + $0x38] sm:$0xff]  ;;  %4323 = vmatpush3.msra.mxu1 %v5793_v57  ;;  %v3796_v9 = vld [vmem:[%s5415_s13] ss:$0 sm:$0xff]  ;;  %s6907_s13 = sld [smem:[#allocation40_spill]] }
  0xd5   :  { %3797 = vmatprep.mubr.msk.f32.mxu0 %vm316_vm3, %v364_v24  ;;  %434 = vmatprep.subr.mxu0 %v5386_v0  ;;  %v368_v50 = vld [vmem:[#allocation2 + $0x28] sm:$0xff]  ;;  %v5829_v3 = vld [vmem:[#allocation24 + $0x10] sm:$0xff]  ;;  %s6910_s11 = sld [smem:[#allocation43_spill]] }
  0xd6   :  { %435 = vmatpush1.msra.mxu0 %v376_v30  ;;  %4324 = vmatprep.subr.mxu1 %v5386_v0  ;;  %v5835_v5 = vld [vmem:[#allocation24] sm:$0xff]  ;;  %s6911_s15 = sld [smem:[#allocation44_spill]] }
  0xd7   :  { %436 = vmatprep.subr.mxu0 %v5386_v0  ;;  %4325 = vmatpush3.msra.mxu1 %v5797_v58  ;;  %s6912_s19 = sld [smem:[#allocation45_spill]] }
  0xd8   :  { %437 = vmatpush1.msra.mxu0 %v375_v31  ;;  %4326 = vmatprep.subr.mxu1 %v5386_v0  ;;  %s6913_s12 = sld [smem:[#allocation46_spill]] }
  0xd9   :  { %438 = vmatprep.subr.mxu0 %v5386_v0  ;;  %4327 = vmatpush3.msra.mxu1 %v5801_v59  ;;  %s6914_s16 = sld [smem:[#allocation47_spill]] }
  0xda   :  { %439 = vmatpush1.msra.mxu0 %v374_v32  ;;  %4328 = vmatprep.subr.mxu1 %v5386_v0  ;;  %s6915_s22 = sld [smem:[#allocation48_spill]] }
  0xdb   :  { %440 = vmatprep.subr.mxu0 %v5386_v0  ;;  %4329 = vmatpush3.msra.mxu1 %v5805_v60  ;;  %s6917_s23 = sld [smem:[#allocation50_spill]] }
  0xdc   :  { %441 = vmatpush1.msra.mxu0 %v373_v33  ;;  %4330 = vmatprep.subr.mxu1 %v5386_v0  ;;  %s6918_s26 = sld [smem:[#allocation51_spill]] }
  0xdd   :  { %442 = vmatprep.subr.mxu0 %v5386_v0  ;;  %4331 = vmatpush3.msra.mxu1 %v5809_v61  ;;  %s6919_s14 = sld [smem:[#allocation52_spill]] }
  0xde   :  { %443 = vmatpush1.msra.mxu0 %v372_v34  ;;  %4332 = vmatprep.subr.mxu1 %v5386_v0  ;;  %s6920_s4 = sld [smem:[#allocation53_spill]] }
  0xdf   :  { %444 = vmatprep.subr.mxu0 %v5386_v0  ;;  %4333 = vmatpush3.msra.mxu1 %v5813_v62  ;;  %s6921_s28 = sld [smem:[#allocation54_spill]] }
  0xe0   :  { %445 = vmatpush1.msra.mxu0 %v371_v35  ;;  %4334 = vmatprep.subr.mxu1 %v5386_v0  ;;  %s6923_s1 = sld [smem:[#allocation56_spill]] }
  0xe1   :  { %462 = vmatprep.subr.mxu0 %v5386_v0  ;;  %4335 = vmatpush3.msra.mxu1 %v5817_v63  ;;  %s6924_s2 = sld [smem:[#allocation57_spill]] }
  0xe2   :  { %463 = vmatpush2.msra.mxu0 %v394_v36  ;;  %4336 = vmatprep.subr.mxu1 %v5386_v0  ;;  %s6925_s6 = sld [smem:[#allocation58_spill]] }
  0xe3   :  { %464 = vmatprep.subr.mxu0 %v5386_v0  ;;  %4337 = vmatpush3.msra.mxu1 %v5821_v1  ;;  %s6926_s24 = sld [smem:[#allocation59_spill]] }
  0xe4   :  { %465 = vmatpush2.msra.mxu0 %v393_v37  ;;  %4338 = vmatprep.subr.mxu1 %v5386_v0 }
  0xe5   :  { %466 = vmatprep.subr.mxu0 %v5386_v0  ;;  %4339 = vmatpush3.msra.mxu1 %v5825_v2 }
  0xe6   :  { %467 = vmatpush2.msra.mxu0 %v392_v38  ;;  %4340 = vmatprep.subr.mxu1 %v5386_v0 }
  0xe7   :  { %468 = vmatprep.subr.mxu0 %v5386_v0  ;;  %4341 = vmatpush3.msra.mxu1 %v5829_v3 }
  0xe8   :  { %469 = vmatpush2.msra.mxu0 %v391_v39  ;;  %4342 = vmatprep.subr.mxu1 %v5386_v0 }
  0xe9   :  { %470 = vmatprep.subr.mxu0 %v5386_v0  ;;  %4343 = vmatpush3.msra.mxu1 %v5832_v4 }
  0xea   :  { %471 = vmatpush2.msra.mxu0 %v390_v40  ;;  %4344 = vmatprep.subr.mxu1 %v5386_v0 }
  0xeb   :  { %472 = vmatprep.subr.mxu0 %v5386_v0  ;;  %4345 = vmatpush3.msra.mxu1 %v5835_v5 }
  0xec   :  { %473 = vmatpush2.msra.mxu0 %v389_v41  ;;  %4349 = vmatprep.subr.mxu1 %v5386_v0 }
  0xed   :  { %474 = vmatprep.subr.mxu0 %v5386_v0 }
  0xee   :  { %475 = vmatpush2.msra.mxu0 %v388_v42 }
  0xef   :  { %476 = vmatprep.subr.mxu0 %v5386_v0 }
  0xf0   :  { %477 = vmatpush2.msra.mxu0 %v387_v43  ;;  %v794_v43 = vld [vmem:[%s5430_s25 + $0xf8] sm:$0xff] }
  0xf1   :  { %3852 = vmatprep.subr.mxu0 %v794_v43  ;;  %v764_v43 = vld [vmem:[%s5430_s25 + $0x8] sm:$0xff] }
 0x131   :  { %v319_v44 = vpop.permute.xlu0 %318  ;;  %v348_v45 = vpop.permute.xlu1 %347 }
 0x132   :  { %325 = vst.msk [vmem:[#allocation2] sm:$0xff] %vm324_vm6, %v319_v44  ;;  %353 = vst.msk [vmem:[#allocation2 + $0x20] sm:$0xff] %vm324_vm6, %v348_v45  ;;  %v810_v44 = vld [vmem:[%s5430_s25 + $0x178] sm:$0xff] }
 0x133   :  { %v778_v45 = vld [vmem:[%s5430_s25 + $0x78] sm:$0xff] }
 0x135   :  { %v321_v46 = vpop.permute.xlu0 %320 }
 0x136   :  { %v350_v47 = vpop.permute.xlu1 %349  ;;  %326 = vst.msk [vmem:[#allocation2 + $0x10] sm:$0xff] %vm324_vm6, %v321_v46  ;;  %v793_v46 = vld [vmem:[%s5430_s25 + $0xf0] sm:$0xff] }
 0x137   :  { %354 = vst.msk [vmem:[#allocation2 + $0x30] sm:$0xff] %vm324_vm6, %v350_v47  ;;  %v809_v47 = vld [vmem:[%s5430_s25 + $0x170] sm:$0xff] }
 0x139   :  { %v363_v49 = vld [vmem:[#allocation2] sm:$0xff] }
 0x13a   :  { %479 = vmatmul.mubr.f32.vlgmr.msra.gmra.mxu0 %v363_v49  ;;  %v367_v52 = vld [vmem:[#allocation2 + $0x20] sm:$0xff]  ;;  %v792_v49 = vld [vmem:[%s5430_s25 + $0xe8] sm:$0xff] }
 0x13b   :  { %3798 = vmatprep.mubr.msk.f32.mxu0 %vm316_vm3, %v366_v48  ;;  %3853 = vmatpush3.msra.mxu0 %v778_v45  ;;  %v777_v48 = vld [vmem:[%s5430_s25 + $0x70] sm:$0xff]  ;;  %v779_v45 = vld [vmem:[%s5430_s25 + $0x80] sm:$0xff] }
 0x13c   :  { %3854 = vmatprep.subr.mxu0 %v793_v46  ;;  %v763_v46 = vld [vmem:[%s5430_s25] sm:$0xff] }
 0x13d   :  { %v365_v51 = vld [vmem:[#allocation2 + $0x10] sm:$0xff]  ;;  %3855 = vmatpush3.msra.mxu0 %v777_v48 }
 0x13e   :  { %484 = vmatmul.mubr.f32.gmra.mxu0 %v365_v51  ;;  %v369_v54 = vld [vmem:[#allocation2 + $0x30] sm:$0xff]  ;;  %3856 = vmatprep.subr.mxu0 %v792_v49  ;;  %v776_v51 = vld [vmem:[%s5430_s25 + $0x68] sm:$0xff] }
 0x13f   :  { %3799 = vmatprep.mubr.msk.f32.mxu0 %vm316_vm3, %v368_v50  ;;  %v808_v50 = vld [vmem:[%s5430_s25 + $0x168] sm:$0xff]  ;;  %3857 = vmatpush3.msra.mxu0 %v776_v51 }
 0x142   :  { %489 = vmatmul.mubr.f32.gmra.mxu0 %v367_v52  ;;  %v791_v52 = vld [vmem:[%s5430_s25 + $0xe0] sm:$0xff] }
 0x143   :  { %3800 = vmatprep.mubr.msk.f32.mxu0 %vm316_vm3, %v370_v53  ;;  %v807_v53 = vld [vmem:[%s5430_s25 + $0x160] sm:$0xff]  ;;  %3858 = vmatprep.subr.mxu0 %v791_v52 }
 0x146   :  { %494 = vmatmul.mubr.f32.gmra.mxu0 %v369_v54  ;;  %v775_v54 = vld [vmem:[%s5430_s25 + $0x60] sm:$0xff] }
 0x147   :  { %3859 = vmatpush3.msra.mxu0 %v775_v54 }
 0x1fa   :  { %v480_v6 = vpop.f32.mrf.mxu0 }
 0x1fb   :  { %v5846_v13 = vadd.f32 %v3796_v9, %v480_v6  ;;  %v790_v6 = vld [vmem:[%s5430_s25 + $0xd8] sm:$0xff] }
 0x1fc   :  { %v482_v7 = vpop.f32.mrf.mxu0  ;;  %3860 = vmatprep.subr.mxu0 %v790_v6 }
 0x1fd   :  { %v508_v31 = vmul.f32 %v5846_v13, %v5846_v13  ;;  %v806_v7 = vld [vmem:[%s5430_s25 + $0x158] sm:$0xff] }
 0x1fe   :  { %v485_v8 = vpop.f32.mrf.mxu0 }
 0x1ff   :  { %v5844_v11 = vadd.f32 %v3796_v9, %v485_v8  ;;  %v774_v8 = vld [vmem:[%s5430_s25 + $0x58] sm:$0xff] }
 0x200   :  { %v487_v10 = vpop.f32.mrf.mxu0  ;;  %3861 = vmatpush3.msra.mxu0 %v774_v8 }
 0x201   :  { %v499_v16 = vadd.f32 %v5844_v11, %v5846_v13  ;;  %v509_v29 = vmul.f32 %v5844_v11, %v5844_v11  ;;  %v805_v10 = vld [vmem:[%s5430_s25 + $0x150] sm:$0xff] }
 0x202   :  { %v490_v12 = vpop.f32.mrf.mxu0 }
 0x203   :  { %v5848_v14 = vadd.f32 %v3796_v9, %v490_v12  ;;  %v512_v33 = vadd.f32 %v509_v29, %v508_v31  ;;  %v773_v12 = vld [vmem:[%s5430_s25 + $0x50] sm:$0xff]  ;;  %v800_v31 = vld [vmem:[%s5430_s25 + $0x128] sm:$0xff] }
 0x204   :  { %v492_v15 = vpop.f32.mrf.mxu0  ;;  %v769_v29 = vld [vmem:[%s5430_s25 + $0x30] sm:$0xff] }
 0x205   :  { %v500_v18 = vadd.f32 %v499_v16, %v5848_v14  ;;  %v510_v32 = vmul.f32 %v5848_v14, %v5848_v14  ;;  %v788_v15 = vld [vmem:[%s5430_s25 + $0xc8] sm:$0xff] }
 0x206   :  { %v495_v17 = vpop.f32.mrf.mxu0  ;;  %v804_v16 = vld [vmem:[%s5430_s25 + $0x148] sm:$0xff] }
 0x207   :  { %v5853_v19 = vadd.f32 %v3796_v9, %v495_v17  ;;  %v513_v35 = vadd.f32 %v512_v33, %v510_v32  ;;  %v789_v9 = vld [vmem:[%s5430_s25 + $0xd0] sm:$0xff]  ;;  %v772_v17 = vld [vmem:[%s5430_s25 + $0x48] sm:$0xff]  ;;  %v783_v33 = vld [vmem:[%s5430_s25 + $0xa0] sm:$0xff] }
 0x208   :  { %v497_v20 = vpop.f32.mrf.mxu0  ;;  %3862 = vmatprep.subr.mxu0 %v789_v9  ;;  %v768_v32 = vld [vmem:[%s5430_s25 + $0x28] sm:$0xff]  ;;  %v689_v9 = vlaneseq }
 0x209   :  { %v501_v21 = vadd.f32 %v500_v18, %v5853_v19  ;;  %v511_v34 = vmul.f32 %v5853_v19, %v5853_v19  ;;  %3863 = vmatpush3.msra.mxu0 %v773_v12  ;;  %v787_v18 = vld [vmem:[%s5430_s25 + $0xc0] sm:$0xff] }
 0x20a   :  { %3864 = vmatprep.subr.mxu0 %v788_v15  ;;  %v803_v20 = vld [vmem:[%s5430_s25 + $0x140] sm:$0xff] }
 0x20b   :  { %v502_v22 = vrot.slane %v501_v21, 4  ;;  %v514_v36 = vadd.f32 %v513_v35, %v511_v34  ;;  %3865 = vmatpush3.msra.mxu0 %v772_v17  ;;  %v799_v34 = vld [vmem:[%s5430_s25 + $0x120] sm:$0xff] }
 0x20c   :  { %3866 = vmatprep.subr.mxu0 %v787_v18  ;;  %v767_v35 = vld [vmem:[%s5430_s25 + $0x20] sm:$0xff] }
 0x20d   :  { %v503_v24 = vadd.f32 %v502_v22, %v501_v21  ;;  %v515_v37 = vrot.slane %v514_v36, 4  ;;  %v771_v21 = vld [vmem:[%s5430_s25 + $0x40] sm:$0xff]  ;;  %v786_v22 = vld [vmem:[%s5430_s25 + $0xb8] sm:$0xff] }
 0x20e   :  { %3867 = vmatpush3.msra.mxu0 %v771_v21  ;;  %v684_v12 = vld [vmem:[%s6905_s5] sm:$0x1]  ;;  %s6927_s5 = sld [smem:[#allocation60_spill]] }
 0x20f   :  { %v504_v26 = vrot.slane %v503_v24, 2  ;;  %v516_v38 = vadd.f32 %v515_v37, %v514_v36  ;;  %3868 = vmatprep.subr.mxu0 %v786_v22  ;;  %v782_v36 = vld [vmem:[%s5430_s25 + $0x98] sm:$0xff]  ;;  %v686_v18 = vld [vmem:[%s6906_s9] sm:$0x1]  ;;  %s5396_s9 = smov [#allocation30]  }
 0x210   :  { %v798_v37 = vld [vmem:[%s5430_s25 + $0x118] sm:$0xff] }
 0x211   :  { %v505_v27 = vadd.f32 %v504_v26, %v503_v24  ;;  %v517_v39 = vrot.slane %v516_v38, 2  ;;  %v802_v24 = vld [vmem:[%s5430_s25 + $0x138] sm:$0xff] }
 0x212   :  { %v770_v26 = vld [vmem:[%s5430_s25 + $0x38] sm:$0xff] }
 0x213   :  { %v506_v28 = vrot.slane %v505_v27, 1  ;;  %v518_v40 = vadd.f32 %v517_v39, %v516_v38  ;;  %3869 = vmatpush3.msra.mxu0 %v770_v26  ;;  %v766_v38 = vld [vmem:[%s5430_s25 + $0x18] sm:$0xff]  ;;  %v781_v39 = vld [vmem:[%s5430_s25 + $0x90] sm:$0xff] }
 0x215   :  { %v507_v30 = vadd.f32 %v506_v28, %v505_v27  ;;  %v519_v41 = vrot.slane %v518_v40, 1  ;;  %v785_v27 = vld [vmem:[%s5430_s25 + $0xb0] sm:$0xff] }
 0x216   :  { %v801_v28 = vld [vmem:[%s5430_s25 + $0x130] sm:$0xff]  ;;  %3870 = vmatprep.subr.mxu0 %v785_v27 }
 0x217   :  { %4347 = vmatmul.mubr.f32.vlgmr.msra.gmra.mxu1 %v507_v30  ;;  %v520_v42 = vadd.f32 %v519_v41, %v518_v40  ;;  %3871 = vmatpush3.msra.mxu0 %v769_v29  ;;  %v784_v30 = vld [vmem:[%s5430_s25 + $0xa8] sm:$0xff]  ;;  %v765_v40 = vld [vmem:[%s5430_s25 + $0x10] sm:$0xff] }
 0x218   :  { %4350 = vmatpush3.msra.mxu1 %v5732_v23  ;;  %4381 = vmatprep.mubr.msk.f32.mxu1 %vm5388_vm7, %v5386_v0  ;;  %v780_v41 = vld [vmem:[%s5430_s25 + $0x88] sm:$0xff] }
 0x219   :  { %4351 = vmatprep.subr.mxu1 %v5386_v0  ;;  %3872 = vmatprep.subr.mxu0 %v784_v30 }
 0x21a   :  { %4352 = vmatpush3.msra.mxu1 %v5735_v25  ;;  %3873 = vmatpush3.msra.mxu0 %v768_v32 }
 0x21b   :  { %4353 = vmatprep.subr.mxu1 %v5386_v0  ;;  %3874 = vmatprep.subr.mxu0 %v783_v33 }
 0x21c   :  { %4354 = vmatpush3.msra.mxu1 %v5785_v55  ;;  %3875 = vmatpush3.msra.mxu0 %v767_v35 }
 0x21d   :  { %4355 = vmatprep.subr.mxu1 %v5386_v0  ;;  %3876 = vmatprep.subr.mxu0 %v782_v36 }
 0x21e   :  { %4356 = vmatpush3.msra.mxu1 %v5789_v56  ;;  %3877 = vmatpush3.msra.mxu0 %v766_v38 }
 0x21f   :  { %4357 = vmatprep.subr.mxu1 %v5386_v0  ;;  %3878 = vmatprep.subr.mxu0 %v781_v39 }
 0x220   :  { %4358 = vmatpush3.msra.mxu1 %v5793_v57  ;;  %3879 = vmatpush3.msra.mxu0 %v765_v40 }
 0x221   :  { %4359 = vmatprep.subr.mxu1 %v5386_v0  ;;  %3880 = vmatprep.subr.mxu0 %v780_v41 }
 0x222   :  { %4360 = vmatpush3.msra.mxu1 %v5797_v58  ;;  %3881 = vmatpush3.msra.mxu0 %v764_v43 }
 0x223   :  { %4361 = vmatprep.subr.mxu1 %v5386_v0  ;;  %3882 = vmatprep.subr.mxu0 %v779_v45 }
 0x224   :  { %4362 = vmatpush3.msra.mxu1 %v5801_v59  ;;  %3883 = vmatpush3.msra.mxu0 %v763_v46 }
 0x225   :  { %4363 = vmatprep.subr.mxu1 %v5386_v0  ;;  %4422 = vmatprep.subr.mxu0 %v5386_v0 }
 0x226   :  { %4364 = vmatpush3.msra.mxu1 %v5805_v60 }
 0x227   :  { %4365 = vmatprep.subr.mxu1 %v5386_v0 }
 0x228   :  { %4366 = vmatpush3.msra.mxu1 %v5809_v61 }
 0x229   :  { %4367 = vmatprep.subr.mxu1 %v5386_v0 }
 0x22a   :  { %4368 = vmatpush3.msra.mxu1 %v5813_v62 }
 0x22b   :  { %4369 = vmatprep.subr.mxu1 %v5386_v0 }
 0x22c   :  { %4370 = vmatpush3.msra.mxu1 %v5817_v63 }
 0x22d   :  { %4371 = vmatprep.subr.mxu1 %v5386_v0 }
 0x22e   :  { %4372 = vmatpush3.msra.mxu1 %v5821_v1 }
 0x22f   :  { %4373 = vmatprep.subr.mxu1 %v5386_v0 }
 0x230   :  { %4374 = vmatpush3.msra.mxu1 %v5825_v2 }
 0x231   :  { %4375 = vmatprep.subr.mxu1 %v5386_v0 }
 0x232   :  { %4376 = vmatpush3.msra.mxu1 %v5829_v3 }
 0x233   :  { %4377 = vmatprep.subr.mxu1 %v5386_v0 }
 0x234   :  { %4378 = vmatpush3.msra.mxu1 %v5832_v4 }
 0x235   :  { %4379 = vmatprep.subr.mxu1 %v5386_v0 }
 0x236   :  { %4380 = vmatpush3.msra.mxu1 %v5835_v5 }
 0x237   :  { %4382 = vmatmul.mubr.f32.vlgmr.msra.gmra.mxu1 %v520_v42  ;;  %4384 = vmatprep.subr.mxu1 %v810_v44  ;;  %v797_v42 = vld [vmem:[%s5430_s25 + $0x110] sm:$0xff] }
 0x238   :  { %4385 = vmatpush3.msra.mxu1 %v810_v44  ;;  %v796_v44 = vld [vmem:[%s5430_s25 + $0x108] sm:$0xff] }
 0x239   :  { %4386 = vmatprep.subr.mxu1 %v809_v47 }
 0x23a   :  { %4387 = vmatpush3.msra.mxu1 %v809_v47  ;;  %v795_v47 = vld [vmem:[%s5430_s25 + $0x100] sm:$0xff]  ;;  %s6908_s25 = sld [smem:[#allocation41_spill]] }
 0x23b   :  { %4388 = vmatprep.subr.mxu1 %v808_v50 }
 0x23c   :  { %4389 = vmatpush3.msra.mxu1 %v808_v50 }
 0x23d   :  { %4390 = vmatprep.subr.mxu1 %v807_v53 }
 0x23e   :  { %4391 = vmatpush3.msra.mxu1 %v807_v53 }
 0x23f   :  { %4392 = vmatprep.subr.mxu1 %v806_v7 }
 0x240   :  { %4393 = vmatpush3.msra.mxu1 %v806_v7 }
 0x241   :  { %4394 = vmatprep.subr.mxu1 %v805_v10 }
 0x242   :  { %4395 = vmatpush3.msra.mxu1 %v805_v10  ;;  %v690_v10 = vshrl.u32 %v689_v9, 7 }
 0x243   :  { %4396 = vmatprep.subr.mxu1 %v804_v16 }
 0x244   :  { %4397 = vmatpush3.msra.mxu1 %v804_v16  ;;  %v5948_v15 = vsub.s32 0, %v690_v10 }
 0x245   :  { %4398 = vmatprep.subr.mxu1 %v803_v20 }
 0x246   :  { %4399 = vmatpush3.msra.mxu1 %v803_v20 }
 0x247   :  { %4400 = vmatprep.subr.mxu1 %v802_v24 }
 0x248   :  { %4401 = vmatpush3.msra.mxu1 %v802_v24 }
 0x249   :  { %4402 = vmatprep.subr.mxu1 %v801_v28 }
 0x24a   :  { %4403 = vmatpush3.msra.mxu1 %v801_v28 }
 0x24b   :  { %4404 = vmatprep.subr.mxu1 %v800_v31 }
 0x24c   :  { %4405 = vmatpush3.msra.mxu1 %v800_v31 }
 0x24d   :  { %4406 = vmatprep.subr.mxu1 %v799_v34 }
 0x24e   :  { %4407 = vmatpush3.msra.mxu1 %v799_v34 }
 0x24f   :  { %4408 = vmatprep.subr.mxu1 %v798_v37 }
 0x250   :  { %4409 = vmatpush3.msra.mxu1 %v798_v37 }
 0x251   :  { %4410 = vmatprep.subr.mxu1 %v797_v42 }
 0x252   :  { %4411 = vmatpush3.msra.mxu1 %v797_v42 }
 0x253   :  { %4412 = vmatprep.subr.mxu1 %v796_v44 }
 0x254   :  { %4413 = vmatpush3.msra.mxu1 %v796_v44 }
 0x255   :  { %4414 = vmatprep.subr.mxu1 %v795_v47 }
 0x256   :  { %4415 = vmatpush3.msra.mxu1 %v795_v47 }
 0x257   :  { %4457 = vmatprep.subr.mxu1 %v5386_v0 }
 0x2d7   :  { %v603_v48 = vpop.f32.mrf.mxu1 }
 0x2d8   :  { %v607_v50 = vmul.f32 0.001953125, %v603_v48 }
 0x2d9   :  { %v4348_v49 = vpop.f32.mrf.mxu1 }
 0x2da   :  { %v679_v52 = vmul.f32 %v607_v50, %v607_v50 }
 0x2f7   :  { %v674_v51 = vpop.f32.mrf.mxu1 }
 0x2f8   :  { %v678_v53 = vmul.f32 0.001953125, %v674_v51 }
 0x2f9   :  { %v4383_v54 = vpop.f32.mrf.mxu1 }
 0x2fa   :  { %v680_v6 = vsub.f32 %v678_v53, %v679_v52 }
 0x2fc   :  { %v681_v7 = vmax.f32 %v680_v6, 0.0 }
 0x2fe   :  { %v682_v8 = vadd.f32 1e-05, %v681_v7 }
 0x300   :  { %5083 = vrsqrt.f32 %v682_v8 }
 0x30d   :  { %v5084_v16 = vpop.eup %5083 }
 0x30e   :  { %v685_v17 = vmul.f32 %v5084_v16, %v684_v12 }
 0x310   :  { %v687_v20 = vmul.f32 %v685_v17, %v607_v50  ;;  %v692_v21 = vrot.slane %v685_v17, %v5948_v15 }
 0x312   :  { %v688_v22 = vsub.f32 %v686_v18, %v687_v20  ;;  %v693_v24 = vmul.f32 %v692_v21, %v5846_v13  ;;  %v694_v26 = vmul.f32 %v692_v21, %v5844_v11  ;;  %v695_v27 = vmul.f32 %v692_v21, %v5848_v14 }
 0x313   :  { %v696_v28 = vmul.f32 %v692_v21, %v5853_v19 }
 0x314   :  { %v701_v29 = vrot.slane %v688_v22, %v5948_v15 }
 0x316   :  { %v703_v30 = vadd.f32 %v701_v29, %v693_v24  ;;  %v704_v31 = vadd.f32 %v701_v29, %v694_v26  ;;  %v705_v32 = vadd.f32 %v701_v29, %v695_v27  ;;  %v706_v33 = vadd.f32 %v701_v29, %v696_v28 }
 0x318   :  { %v707_v34 = vmax.f32 %v703_v30, 0.0  ;;  %v708_v35 = vmax.f32 %v704_v31, 0.0  ;;  %v709_v36 = vmax.f32 %v705_v32, 0.0  ;;  %v710_v37 = vmax.f32 %v706_v33, 0.0 }
 0x31a   :  { %v714_v38 = vrot.slane %v707_v34, 7  ;;  %v715_v39 = vrot.slane %v708_v35, 7  ;;  %v723_v40 = vrot.slane %v707_v34, 1  ;;  %v724_v13 = vrot.slane %v708_v35, 1  ;;  %882 = vmatprep.mubr.f32.mxu0 %v707_v34 }
 0x31b   :  { %v734_v11 = vrot.slane %v709_v36, 7  ;;  %v735_v41 = vrot.slane %v710_v37, 7  ;;  %v743_v14 = vrot.slane %v709_v36, 1  ;;  %v744_v42 = vrot.slane %v710_v37, 1 }
 0x31c   :  { %719 = vst [vmem:[#allocation3] sm:$0xfe] %v714_v38  ;;  %729 = vst [vmem:[#allocation3 + $0x28] sm:$0x7f] %v724_v13  ;;  %v725_v19 = vsel %vm327_vm4, %v723_v40, %v724_v13  ;;  %v716_v43 = vsel %vm308_vm2, %v714_v38, %v715_v39 }
 0x31d   :  { %739 = vst [vmem:[#allocation3 + $0x30] sm:$0xfe] %v734_v11  ;;  %749 = vst [vmem:[#allocation3 + $0x58] sm:$0x7f] %v744_v42  ;;  %4416 = vmatprep.mubr.f32.mxu1 %v725_v19  ;;  %v745_v44 = vsel %vm327_vm4, %v743_v14, %v744_v42  ;;  %v736_v45 = vsel %vm308_vm2, %v734_v11, %v735_v41  ;;  %vm1252_vm2 = vcmask 520196   ;;  %vm1254_vm4 = vcmask 522246  }
 0x323   :  { %v751_v46 = vld [vmem:[#allocation3] sm:$0xff]  ;;  %v756_v47 = vld [vmem:[#allocation3 + $0x28] sm:$0xff] }
 0x324   :  { %883 = vmatmul.mubr.f32.vlgmr.msra.gmra.mxu0 %v751_v46  ;;  %4417 = vmatmul.mubr.f32.vlgmr.msra.gmra.mxu1 %v756_v47  ;;  %v762_v48 = vld [vmem:[#allocation3 + $0x58] sm:$0xff]  ;;  %v757_v49 = vld [vmem:[#allocation3 + $0x30] sm:$0xff] }
 0x325   :  { %887 = vmatprep.mubr.f32.mxu0 %v708_v35  ;;  %4419 = vmatprep.mubr.f32.mxu1 %v745_v44 }
 0x326   :  { %4423 = vmatpush3.msra.mxu0 %v5732_v23  ;;  %4458 = vmatpush3.msra.mxu1 %v5732_v23 }
 0x327   :  { %4424 = vmatprep.subr.mxu0 %v5386_v0  ;;  %4459 = vmatprep.subr.mxu1 %v5386_v0 }
 0x328   :  { %888 = vmatmul.mubr.f32.gmra.mxu0 %v716_v43  ;;  %4420 = vmatmul.mubr.f32.gmra.mxu1 %v762_v48  ;;  %v1175_v48 = vld [vmem:[%s6909_s20] sm:$0x1] }
 0x329   :  { %892 = vmatprep.mubr.f32.mxu0 %v709_v36  ;;  %4425 = vmatpush3.msra.mxu0 %v5735_v25 }
 0x32a   :  { %4426 = vmatprep.subr.mxu0 %v5386_v0  ;;  %4460 = vmatpush3.msra.mxu1 %v5735_v25 }
 0x32b   :  { %4427 = vmatpush3.msra.mxu0 %v5785_v55  ;;  %4461 = vmatprep.subr.mxu1 %v5386_v0 }
 0x32c   :  { %893 = vmatmul.mubr.f32.gmra.mxu0 %v757_v49  ;;  %4428 = vmatprep.subr.mxu0 %v5386_v0 }
 0x32d   :  { %897 = vmatprep.mubr.f32.mxu0 %v710_v37  ;;  %4429 = vmatpush3.msra.mxu0 %v5789_v56 }
 0x32e   :  { %4462 = vmatpush3.msra.mxu1 %v5785_v55  ;;  %4430 = vmatprep.subr.mxu0 %v5386_v0 }
 0x32f   :  { %4463 = vmatprep.subr.mxu1 %v5386_v0  ;;  %4431 = vmatpush3.msra.mxu0 %v5793_v57 }
 0x330   :  { %898 = vmatmul.mubr.f32.gmra.mxu0 %v736_v45  ;;  %4464 = vmatpush3.msra.mxu1 %v5789_v56  ;;  %v1173_v45 = vld [vmem:[%s6908_s25] sm:$0x1] }
 0x331   :  { %4432 = vmatprep.subr.mxu0 %v5386_v0  ;;  %4465 = vmatprep.subr.mxu1 %v5386_v0 }
 0x332   :  { %4433 = vmatpush3.msra.mxu0 %v5797_v58  ;;  %4466 = vmatpush3.msra.mxu1 %v5793_v57 }
 0x333   :  { %4434 = vmatprep.subr.mxu0 %v5386_v0  ;;  %4467 = vmatprep.subr.mxu1 %v5386_v0 }
 0x334   :  { %4435 = vmatpush3.msra.mxu0 %v5801_v59  ;;  %4468 = vmatpush3.msra.mxu1 %v5797_v58  ;;  %v3801_v58 = vld [vmem:[%s6907_s13] ss:$0 sm:$0xff]  ;;  %s3725_s13 = sshll.u32 %s5396_s9, 4  ;;  %s3726_s13 = int_to_ptr.vmem [resolvable:$true] %s3725_s13 }
 0x335   :  { %4436 = vmatprep.subr.mxu0 %v5386_v0  ;;  %4469 = vmatprep.subr.mxu1 %v5386_v0  ;;  %s5299_s25 = scalar_lea.vmem %s3726_s13, 32  ;;  %p5304_p9 = scmp.lt.s32.totalorder %s3726_s13, %s3726_s13 }
 0x336   :  { %4437 = vmatpush3.msra.mxu0 %v5805_v60  ;;  %4470 = vmatpush3.msra.mxu1 %v5801_v59  ;;  %p5300_p8 = scmp.ne.s32.totalorder %s3726_s13, %s5299_s25  ;;  %p5305_p10 = scmp.lt.s32.totalorder %s5299_s25, %s5299_s25 }
 0x337   :  { %4438 = vmatprep.subr.mxu0 %v5386_v0  ;;  %4471 = vmatprep.subr.mxu1 %v5386_v0 }
 0x338   :  { %4439 = vmatpush3.msra.mxu0 %v5809_v61  ;;  %4472 = vmatpush3.msra.mxu1 %v5805_v60  ;;  %p5306_p11 = por %p5305_p10, %p5304_p9 }
 0x339   :  { %4440 = vmatprep.subr.mxu0 %v5386_v0  ;;  %4473 = vmatprep.subr.mxu1 %v5386_v0 }
 0x33a   :  { %4441 = vmatpush3.msra.mxu0 %v5813_v62  ;;  %4474 = vmatpush3.msra.mxu1 %v5809_v61  ;;  %p5307_p12 = pnand %p5306_p11, %p5300_p8 }
 0x33b   :  { %4442 = vmatprep.subr.mxu0 %v5386_v0  ;;  %4475 = vmatprep.subr.mxu1 %v5386_v0 }
 0x33c   :  { %4443 = vmatpush3.msra.mxu0 %v5817_v63  ;;  %4476 = vmatpush3.msra.mxu1 %v5813_v62 }
 0x33d   :  { %4444 = vmatprep.subr.mxu0 %v5386_v0  ;;  %4477 = vmatprep.subr.mxu1 %v5386_v0 }
 0x33e   :  { %4445 = vmatpush3.msra.mxu0 %v5821_v1  ;;  %4478 = vmatpush3.msra.mxu1 %v5817_v63 }
 0x33f   :  { %4446 = vmatprep.subr.mxu0 %v5386_v0  ;;  %4479 = vmatprep.subr.mxu1 %v5386_v0 }
 0x340   :  { %4447 = vmatpush3.msra.mxu0 %v5825_v2  ;;  %4480 = vmatpush3.msra.mxu1 %v5821_v1 }
 0x341   :  { %4448 = vmatprep.subr.mxu0 %v5386_v0  ;;  %4481 = vmatprep.subr.mxu1 %v5386_v0 }
 0x342   :  { %4449 = vmatpush3.msra.mxu0 %v5829_v3  ;;  %4482 = vmatpush3.msra.mxu1 %v5825_v2 }
 0x343   :  { %4450 = vmatprep.subr.mxu0 %v5386_v0  ;;  %4483 = vmatprep.subr.mxu1 %v5386_v0 }
 0x344   :  { %4451 = vmatpush3.msra.mxu0 %v5832_v4  ;;  %4484 = vmatpush3.msra.mxu1 %v5829_v3 }
 0x345   :  { %4452 = vmatprep.subr.mxu0 %v5386_v0  ;;  %4485 = vmatprep.subr.mxu1 %v5386_v0 }
 0x346   :  { %4453 = vmatpush3.msra.mxu0 %v5835_v5  ;;  %4454 = vmatprep.mubr.msk.f32.mxu0 %vm5388_vm7, %v5386_v0 }
 0x347   :  { %4486 = vmatpush3.msra.mxu1 %v5832_v4  ;;  %4489 = vmatprep.mubr.msk.f32.mxu1 %vm5388_vm7, %v5386_v0 }
 0x348   :  { %4487 = vmatprep.subr.mxu1 %v5386_v0  ;;  %1451 = vmatprep.subr.mxu0 %v5386_v0 }
 0x349   :  { %4488 = vmatpush3.msra.mxu1 %v5835_v5 }
 0x34a   :  { %4492 = vmatprep.subr.mxu1 %v5386_v0 }
 0x3e4   :  { %v3884_v23 = vpop.f32.mrf.mxu0  ;;  %v4418_v55 = vpop.f32.mrf.mxu1 }
 0x3e6   :  { %v3885_v25 = vpop.f32.mrf.mxu0  ;;  %v969_v59 = vpop.f32.mrf.mxu1 }
 0x3e7   :  { %v3886_v57 = vadd.f32 %v3885_v25, %v3884_v23 }
 0x3e8   :  { %v3887_v56 = vpop.f32.mrf.mxu0  ;;  %v4421_v2 = vpop.f32.mrf.mxu1 }
 0x3e9   :  { %v885_v63 = vadd.f32 %v3886_v57, %v3801_v58 }
 0x3ea   :  { %v3888_v60 = vpop.f32.mrf.mxu0  ;;  %v979_v53 = vpop.f32.mrf.mxu1 }
 0x3eb   :  { %v3889_v61 = vadd.f32 %v3888_v60, %v3887_v56  ;;  %v970_v5 = vadd.f32 %v969_v59, %v885_v63 }
 0x3ec   :  { %v3890_v62 = vpop.f32.mrf.mxu0 }
 0x3ed   :  { %v890_v1 = vadd.f32 %v3889_v61, %v3801_v58  ;;  %v997_v9 = vmul.f32 %v970_v5, %v970_v5 }
 0x3ee   :  { %v3891_v3 = vpop.f32.mrf.mxu0 }
 0x3ef   :  { %v975_v4 = vadd.f32 %v4418_v55, %v890_v1  ;;  %v3892_v50 = vadd.f32 %v3891_v3, %v3890_v62 }
 0x3f0   :  { %v3893_v51 = vpop.f32.mrf.mxu0 }
 0x3f1   :  { %v895_v52 = vadd.f32 %v3892_v50, %v3801_v58  ;;  %v998_v6 = vmul.f32 %v975_v4, %v975_v4  ;;  %v988_v10 = vadd.f32 %v975_v4, %v970_v5 }
 0x3f2   :  { %v3894_v54 = vpop.f32.mrf.mxu0 }
 0x3f3   :  { %v980_v7 = vadd.f32 %v979_v53, %v895_v52  ;;  %v3895_v8 = vadd.f32 %v3894_v54, %v3893_v51  ;;  %v1001_v17 = vadd.f32 %v998_v6, %v997_v9 }
 0x3f5   :  { %v999_v12 = vmul.f32 %v980_v7, %v980_v7  ;;  %v900_v16 = vadd.f32 %v3895_v8, %v3801_v58  ;;  %v989_v18 = vadd.f32 %v988_v10, %v980_v7 }
 0x3f7   :  { %v985_v20 = vadd.f32 %v4421_v2, %v900_v16  ;;  %v1002_v21 = vadd.f32 %v1001_v17, %v999_v12 }
 0x3f9   :  { %v990_v22 = vadd.f32 %v989_v18, %v985_v20  ;;  %v1000_v24 = vmul.f32 %v985_v20, %v985_v20 }
 0x3fb   :  { %v991_v26 = vrot.slane %v990_v22, 4  ;;  %v1003_v27 = vadd.f32 %v1002_v21, %v1000_v24  ;;  %v1429_v21 = vld [vmem:[#allocation13 + $0x78] sm:$0xff]  ;;  %v1427_v24 = vld [vmem:[#allocation13 + $0x68] sm:$0xff] }
 0x3fd   :  { %v992_v28 = vadd.f32 %v991_v26, %v990_v22  ;;  %v1004_v29 = vrot.slane %v1003_v27, 4  ;;  %v1428_v22 = vld [vmem:[#allocation13 + $0x70] sm:$0xff]  ;;  %v1426_v26 = vld [vmem:[#allocation13 + $0x60] sm:$0xff] }
 0x3ff   :  { %v993_v30 = vrot.slane %v992_v28, 2  ;;  %v1005_v31 = vadd.f32 %v1004_v29, %v1003_v27  ;;  %v1425_v27 = vld [vmem:[#allocation13 + $0x58] sm:$0xff]  ;;  %v1423_v29 = vld [vmem:[#allocation13 + $0x48] sm:$0xff] }
 0x401   :  { %v994_v32 = vadd.f32 %v993_v30, %v992_v28  ;;  %v1006_v33 = vrot.slane %v1005_v31, 2  ;;  %v1424_v28 = vld [vmem:[#allocation13 + $0x50] sm:$0xff]  ;;  %v1422_v30 = vld [vmem:[#allocation13 + $0x40] sm:$0xff] }
 0x403   :  { %v995_v34 = vrot.slane %v994_v32, 1  ;;  %v1007_v35 = vadd.f32 %v1006_v33, %v1005_v31  ;;  %v1421_v31 = vld [vmem:[#allocation13 + $0x38] sm:$0xff]  ;;  %v1419_v33 = vld [vmem:[#allocation13 + $0x28] sm:$0xff] }
 0x405   :  { %v996_v36 = vadd.f32 %v995_v34, %v994_v32  ;;  %v1008_v37 = vrot.slane %v1007_v35, 1  ;;  %v1420_v32 = vld [vmem:[#allocation13 + $0x30] sm:$0xff]  ;;  %v1418_v34 = vld [vmem:[#allocation13 + $0x20] sm:$0xff] }
 0x407   :  { %4455 = vmatmul.mubr.f32.vlgmr.msra.gmra.mxu0 %v996_v36  ;;  %v1009_v38 = vadd.f32 %v1008_v37, %v1007_v35  ;;  %v1417_v35 = vld [vmem:[#allocation13 + $0x18] sm:$0xff]  ;;  %v1416_v36 = vld [vmem:[#allocation13 + $0x10] sm:$0xff]  ;;  %v1415_v37 = vld [vmem:[#allocation13 + $0x8] sm:$0xff] }
 0x408   :  { %1452 = vmatpush1.msra.mxu0 %v1429_v21 }
 0x409   :  { %4490 = vmatmul.mubr.f32.vlgmr.msra.gmra.mxu1 %v1009_v38  ;;  %1453 = vmatprep.subr.mxu0 %v5386_v0  ;;  %v1414_v38 = vld [vmem:[#allocation13] sm:$0xff] }
 0x40a   :  { %4524 = vmatprep.mubr.msk.f32.mxu1 %vm5388_vm7, %v5386_v0  ;;  %1454 = vmatpush1.msra.mxu0 %v1428_v22 }
 0x40b   :  { %1455 = vmatprep.subr.mxu0 %v5386_v0 }
 0x40c   :  { %1456 = vmatpush1.msra.mxu0 %v1427_v24 }
 0x40d   :  { %1457 = vmatprep.subr.mxu0 %v5386_v0 }
 0x40e   :  { %1458 = vmatpush1.msra.mxu0 %v1426_v26 }
 0x40f   :  { %1459 = vmatprep.subr.mxu0 %v5386_v0 }
 0x410   :  { %1460 = vmatpush1.msra.mxu0 %v1425_v27 }
 0x411   :  { %1461 = vmatprep.subr.mxu0 %v5386_v0 }
 0x412   :  { %1462 = vmatpush1.msra.mxu0 %v1424_v28 }
 0x413   :  { %1463 = vmatprep.subr.mxu0 %v5386_v0 }
 0x414   :  { %1464 = vmatpush1.msra.mxu0 %v1423_v29 }
 0x415   :  { %1465 = vmatprep.subr.mxu0 %v5386_v0 }
 0x416   :  { %1466 = vmatpush1.msra.mxu0 %v1422_v30 }
 0x417   :  { %1467 = vmatprep.subr.mxu0 %v5386_v0 }
 0x418   :  { %1468 = vmatpush1.msra.mxu0 %v1421_v31 }
 0x419   :  { %1469 = vmatprep.subr.mxu0 %v5386_v0 }
 0x41a   :  { %1470 = vmatpush1.msra.mxu0 %v1420_v32 }
 0x41b   :  { %1471 = vmatprep.subr.mxu0 %v5386_v0 }
 0x41c   :  { %1472 = vmatpush1.msra.mxu0 %v1419_v33 }
 0x41d   :  { %1473 = vmatprep.subr.mxu0 %v5386_v0 }
 0x41e   :  { %1474 = vmatpush1.msra.mxu0 %v1418_v34 }
 0x41f   :  { %1475 = vmatprep.subr.mxu0 %v5386_v0 }
 0x420   :  { %1476 = vmatpush1.msra.mxu0 %v1417_v35 }
 0x421   :  { %1477 = vmatprep.subr.mxu0 %v5386_v0 }
 0x422   :  { %1478 = vmatpush1.msra.mxu0 %v1416_v36 }
 0x423   :  { %1479 = vmatprep.subr.mxu0 %v5386_v0 }
 0x424   :  { %1480 = vmatpush1.msra.mxu0 %v1415_v37 }
 0x425   :  { %1481 = vmatprep.subr.mxu0 %v5386_v0 }
 0x426   :  { %1482 = vmatpush1.msra.mxu0 %v1414_v38 }
 0x427   :  { %1499 = vmatprep.subr.mxu0 %v5386_v0 }
 0x4c7   :  { %v1092_v39 = vpop.f32.mrf.mxu0 }
 0x4c8   :  { %v1096_v40 = vmul.f32 0.001953125, %v1092_v39  ;;  %v1437_v39 = vld [vmem:[#allocation13 + $0xb8] sm:$0xff] }
 0x4c9   :  { %v4456_v13 = vpop.f32.mrf.mxu0  ;;  %v1163_v11 = vpop.f32.mrf.mxu1  ;;  %1500 = vmatpush2.msra.mxu0 %v1437_v39 }
 0x4ca   :  { %v1168_v41 = vmul.f32 %v1096_v40, %v1096_v40  ;;  %v1167_v14 = vmul.f32 0.001953125, %v1163_v11  ;;  %1501 = vmatprep.subr.mxu0 %v5386_v0  ;;  %v1435_v13 = vld [vmem:[#allocation13 + $0xa8] sm:$0xff]  ;;  %v1434_v11 = vld [vmem:[#allocation13 + $0xa0] sm:$0xff] }
 0x4cb   :  { %v4491_v42 = vpop.f32.mrf.mxu1 }
 0x4cc   :  { %v1169_v19 = vsub.f32 %v1167_v14, %v1168_v41 }
 0x4ce   :  { %v1170_v43 = vmax.f32 %v1169_v19, 0.0 }
 0x4d0   :  { %v1171_v44 = vadd.f32 1e-05, %v1170_v43 }
 0x4d2   :  { %5085 = vrsqrt.f32 %v1171_v44 }
 0x4df   :  { %v5086_v46 = vpop.eup %5085 }
 0x4e0   :  { %v1174_v47 = vmul.f32 %v5086_v46, %v1173_v45 }
 0x4e2   :  { %v1176_v49 = vmul.f32 %v1174_v47, %v1096_v40  ;;  %v1181_v23 = vrot.slane %v1174_v47, %v5948_v15  ;;  %v1436_v40 = vld [vmem:[#allocation13 + $0xb0] sm:$0xff] }
 0x4e3   :  { %1502 = vmatpush2.msra.mxu0 %v1436_v40 }
 0x4e4   :  { %v1177_v25 = vsub.f32 %v1175_v48, %v1176_v49  ;;  %v1183_v55 = vmul.f32 %v1181_v23, %v975_v4  ;;  %v1182_v57 = vmul.f32 %v1181_v23, %v970_v5  ;;  %v1185_v58 = vmul.f32 %v1181_v23, %v985_v20  ;;  %1503 = vmatprep.subr.mxu0 %v5386_v0 }
 0x4e5   :  { %v1184_v59 = vmul.f32 %v1181_v23, %v980_v7  ;;  %1504 = vmatpush2.msra.mxu0 %v1435_v13 }
 0x4e6   :  { %v1190_v56 = vrot.slane %v1177_v25, %v5948_v15  ;;  %1505 = vmatprep.subr.mxu0 %v5386_v0 }
 0x4e7   :  { %1506 = vmatpush2.msra.mxu0 %v1434_v11 }
 0x4e8   :  { %v1193_v60 = vadd.f32 %v1190_v56, %v1183_v55  ;;  %v1192_v61 = vadd.f32 %v1190_v56, %v1182_v57  ;;  %v1195_v62 = vadd.f32 %v1190_v56, %v1185_v58  ;;  %v1194_v63 = vadd.f32 %v1190_v56, %v1184_v59  ;;  %1507 = vmatprep.subr.mxu0 %v5386_v0 }
 0x4ea   :  { %v1197_v1 = vmax.f32 %v1193_v60, 0.0  ;;  %v1196_v2 = vmax.f32 %v1192_v61, 0.0  ;;  %v1199_v3 = vmax.f32 %v1195_v62, 0.0  ;;  %v1198_v50 = vmax.f32 %v1194_v63, 0.0 }
 0x4ec   :  { %v1257_v51 = vrot.slane %v1197_v1, 1  ;;  %1201 = vst [vmem:[%s5595_s29 + $0x8] sm:$0xff] %v1197_v1  ;;  %v1205_v52 = vrot.slane %v1196_v2, 1  ;;  %1200 = vst [vmem:[%s5595_s29] sm:$0xff] %v1196_v2  ;;  %v1341_v5 = vrot.slane %v1199_v3, 1  ;;  %v1299_v54 = vrot.slane %v1198_v50, 1 }
 0x4ed   :  { %1203 = vst [vmem:[%s5595_s29 + $0x18] sm:$0xff] %v1199_v3  ;;  %1202 = vst [vmem:[%s5595_s29 + $0x10] sm:$0xff] %v1198_v50  ;;  %s5390_s29 = smov 112  }
 0x4ee   :  { %v1259_v4 = vmax.f32 %v1197_v1, %v1257_v51  ;;  %v1207_v53 = vmax.f32 %v1196_v2, %v1205_v52  ;;  %v1343_v6 = vmax.f32 %v1199_v3, %v1341_v5  ;;  %v1301_v7 = vmax.f32 %v1198_v50, %v1299_v54  ;;  %v1433_v1 = vld [vmem:[#allocation13 + $0x98] sm:$0xff]  ;;  %v1432_v2 = vld [vmem:[#allocation13 + $0x90] sm:$0xff] }
 0x4ef   :  { %1508 = vmatpush2.msra.mxu0 %v1433_v1  ;;  %v6249_v1 = vld [vmem:[#allocation25 + $0x18] sm:$0xff] }
 0x4f0   :  { %1261 = vrot.lane.b32.xlu1 %v1259_v4, %s5389_s27  ;;  %1209 = vrot.lane.b32.xlu0 %v1207_v53, %s5389_s27 }
 0x4f1   :  { %1509 = vmatprep.subr.mxu0 %v5386_v0 }
 0x4f2   :  { %1510 = vmatpush2.msra.mxu0 %v1432_v2  ;;  %v6255_v2 = vld [vmem:[#allocation25 + $0x10] sm:$0xff] }
 0x4f3   :  { %1511 = vmatprep.subr.mxu0 %v5386_v0 }
 0x4f4   :  { %1345 = vrot.lane.b32.xlu1 %v1343_v6, %s5389_s27  ;;  %1303 = vrot.lane.b32.xlu0 %v1301_v7, %s5389_s27 }
 0x562   :  { %v1262_v8 = vpop.permute.xlu1 %1261  ;;  %v1210_v9 = vpop.permute.xlu0 %1209 }
 0x563   :  { %v6040_v10 = vmax.f32 %v1259_v4, %v1262_v8  ;;  %v6042_v12 = vmax.f32 %v1207_v53, %v1210_v9  ;;  %v1431_v4 = vld [vmem:[#allocation13 + $0x88] sm:$0xff]  ;;  %v1430_v9 = vld [vmem:[#allocation13 + $0x80] sm:$0xff] }
 0x564   :  { %1512 = vmatpush2.msra.mxu0 %v1431_v4  ;;  %v3802_v4 = vld [vmem:[%s6910_s11] ss:$0 sm:$0xff] }
 0x565   :  { %1266 = vrot.lane.b32.xlu1 %v6040_v10, %s5389_s27  ;;  %1214 = vrot.lane.b32.xlu0 %v6042_v12, %s5389_s27 }
 0x566   :  { %v1346_v16 = vpop.permute.xlu1 %1345  ;;  %v1304_v17 = vpop.permute.xlu0 %1303  ;;  %1513 = vmatprep.subr.mxu0 %v5386_v0 }
 0x567   :  { %v6058_v18 = vmax.f32 %v1343_v6, %v1346_v16  ;;  %v6060_v20 = vmax.f32 %v1301_v7, %v1304_v17  ;;  %1514 = vmatpush2.msra.mxu0 %v1430_v9 }
 0x568   :  { %4527 = vmatprep.subr.mxu0 %v5386_v0 }
 0x569   :  { %1269 = vrot.lane.b32.xlu1 %v6040_v10, %s5390_s29  ;;  %1217 = vrot.lane.b32.xlu0 %v6042_v12, %s5390_s29 }
 0x56d   :  { %1272 = vrot.lane.b32.xlu1 %v6040_v10, %s5391_s0  ;;  %1220 = vrot.lane.b32.xlu0 %v6042_v12, %s5391_s0 }
 0x571   :  { %1275 = vrot.lane.b32.xlu1 %v6040_v10, %s5392_s18  ;;  %1223 = vrot.lane.b32.xlu0 %v6042_v12, %s5392_s18 }
 0x575   :  { %1278 = vrot.lane.b32.xlu1 %v6040_v10, %s5393_s30  ;;  %1226 = vrot.lane.b32.xlu0 %v6042_v12, %s5393_s30 }
 0x579   :  { %1350 = vrot.lane.b32.xlu1 %v6058_v18, %s5389_s27  ;;  %1308 = vrot.lane.b32.xlu0 %v6060_v20, %s5389_s27 }
 0x57d   :  { %1281 = vrot.lane.b32.xlu1 %v6040_v10, %s5394_s7  ;;  %1229 = vrot.lane.b32.xlu0 %v6042_v12, %s5394_s7 }
 0x581   :  { %1353 = vrot.lane.b32.xlu1 %v6058_v18, %s5390_s29  ;;  %1311 = vrot.lane.b32.xlu0 %v6060_v20, %s5390_s29 }
 0x585   :  { %1284 = vrot.lane.b32.xlu1 %v6040_v10, %s5395_s10  ;;  %1232 = vrot.lane.b32.xlu0 %v6042_v12, %s5395_s10 }
 0x589   :  { %1356 = vrot.lane.b32.xlu1 %v6058_v18, %s5391_s0  ;;  %1314 = vrot.lane.b32.xlu0 %v6060_v20, %s5391_s0 }
 0x58d   :  { %1359 = vrot.lane.b32.xlu1 %v6058_v18, %s5392_s18  ;;  %1317 = vrot.lane.b32.xlu0 %v6060_v20, %s5392_s18 }
 0x591   :  { %1362 = vrot.lane.b32.xlu1 %v6058_v18, %s5393_s30  ;;  %1320 = vrot.lane.b32.xlu0 %v6060_v20, %s5393_s30 }
 0x595   :  { %1365 = vrot.lane.b32.xlu1 %v6058_v18, %s5394_s7  ;;  %1323 = vrot.lane.b32.xlu0 %v6060_v20, %s5394_s7 }
 0x599   :  { %1368 = vrot.lane.b32.xlu1 %v6058_v18, %s5395_s10  ;;  %1326 = vrot.lane.b32.xlu0 %v6060_v20, %s5395_s10 }
 0x5d7   :  { %v1267_v41 = vpop.permute.xlu1 %1266  ;;  %v1215_v14 = vpop.permute.xlu0 %1214 }
 0x5d8   :  { %v1287_v56 = vsel %vm1235_vm8, %v6040_v10, %v1267_v41  ;;  %v1236_v57 = vsel %vm1235_vm8, %v6042_v12, %v1215_v14 }
 0x5db   :  { %v1270_v42 = vpop.permute.xlu1 %1269  ;;  %v1218_v19 = vpop.permute.xlu0 %1217 }
 0x5dc   :  { %v1288_v58 = vsel %vm1237_vm9, %v1287_v56, %v1270_v42  ;;  %v1238_v59 = vsel %vm1237_vm9, %v1236_v57, %v1218_v19  ;;  %v6198_v56 = vld [vmem:[#allocation25 + $0x58] sm:$0xff]  ;;  %v6204_v57 = vld [vmem:[#allocation25 + $0x50] sm:$0xff] }
 0x5df   :  { %v1273_v43 = vpop.permute.xlu1 %1272  ;;  %v1221_v44 = vpop.permute.xlu0 %1220 }
 0x5e0   :  { %v1289_v62 = vsel %vm1239_vm10, %v1288_v58, %v1273_v43  ;;  %v1240_v63 = vsel %vm1239_vm10, %v1238_v59, %v1221_v44  ;;  %v6210_v58 = vld [vmem:[#allocation25 + $0x48] sm:$0xff]  ;;  %v6220_v59 = vld [vmem:[#allocation25 + $0x40] sm:$0xff] }
 0x5e3   :  { %v1276_v45 = vpop.permute.xlu1 %1275  ;;  %v1224_v46 = vpop.permute.xlu0 %1223 }
 0x5e4   :  { %v1290_v3 = vsel %vm1241_vm11, %v1289_v62, %v1276_v45  ;;  %v1242_v50 = vsel %vm1241_vm11, %v1240_v63, %v1224_v46  ;;  %v6237_v62 = vld [vmem:[#allocation25 + $0x28] sm:$0xff]  ;;  %v6243_v63 = vld [vmem:[#allocation25 + $0x20] sm:$0xff] }
 0x5e7   :  { %v1279_v47 = vpop.permute.xlu1 %1278  ;;  %v1227_v48 = vpop.permute.xlu0 %1226 }
 0x5e8   :  { %v1291_v51 = vsel %vm1243_vm12, %v1290_v3, %v1279_v47  ;;  %v1244_v52 = vsel %vm1243_vm12, %v1242_v50, %v1227_v48  ;;  %v6261_v3 = vld [vmem:[#allocation25 + $0x8] sm:$0xff]  ;;  %v6265_v50 = vld [vmem:[#allocation25] sm:$0xff] }
 0x5eb   :  { %v6108_v49 = vpop.permute.xlu1 %1350  ;;  %v6110_v23 = vpop.permute.xlu0 %1308 }
 0x5ec   :  { %v1371_v28 = vsel %vm1235_vm8, %v6058_v18, %v6108_v49  ;;  %v1329_v29 = vsel %vm1235_vm8, %v6060_v20, %v6110_v23  ;;  %v6178_v49 = vld [vmem:[#allocation25 + $0x78] sm:$0xff]  ;;  %v6180_v23 = vld [vmem:[#allocation25 + $0x70] sm:$0xff]  ;;  %vm2233_vm8 = vcmask 522244  }
 0x5ed   :  { %4493 = vmatpush3.msra.mxu1 %v6178_v49 }
 0x5ee   :  { %4494 = vmatprep.subr.mxu1 %v5386_v0 }
 0x5ef   :  { %v1282_v25 = vpop.permute.xlu1 %1281  ;;  %v1230_v55 = vpop.permute.xlu0 %1229  ;;  %4495 = vmatpush3.msra.mxu1 %v6180_v23 }
 0x5f0   :  { %v1292_v53 = vsel %vm1245_vm13, %v1291_v51, %v1282_v25  ;;  %v1246_v5 = vsel %vm1245_vm13, %v1244_v52, %v1230_v55  ;;  %v6186_v25 = vld [vmem:[#allocation25 + $0x68] sm:$0xff]  ;;  %4496 = vmatprep.subr.mxu1 %v5386_v0  ;;  %v6192_v55 = vld [vmem:[#allocation25 + $0x60] sm:$0xff] }
 0x5f1   :  { %4497 = vmatpush3.msra.mxu1 %v6186_v25 }
 0x5f2   :  { %4498 = vmatprep.subr.mxu1 %v5386_v0 }
 0x5f3   :  { %v1354_v60 = vpop.permute.xlu1 %1353  ;;  %v1312_v61 = vpop.permute.xlu0 %1311  ;;  %4499 = vmatpush3.msra.mxu1 %v6192_v55 }
 0x5f4   :  { %v1372_v30 = vsel %vm1237_vm9, %v1371_v28, %v1354_v60  ;;  %v1330_v31 = vsel %vm1237_vm9, %v1329_v29, %v1312_v61  ;;  %4500 = vmatprep.subr.mxu1 %v5386_v0  ;;  %v6225_v60 = vld [vmem:[#allocation25 + $0x38] sm:$0xff]  ;;  %v6231_v61 = vld [vmem:[#allocation25 + $0x30] sm:$0xff] }
 0x5f5   :  { %4501 = vmatpush3.msra.mxu1 %v6198_v56 }
 0x5f6   :  { %4502 = vmatprep.subr.mxu1 %v5386_v0 }
 0x5f7   :  { %v1285_v54 = vpop.permute.xlu1 %1284  ;;  %v1233_v6 = vpop.permute.xlu0 %1232  ;;  %4503 = vmatpush3.msra.mxu1 %v6204_v57 }
 0x5f8   :  { %v1293_v7 = vsel %vm1247_vm14, %v1292_v53, %v1285_v54  ;;  %v1248_v8 = vsel %vm1247_vm14, %v1246_v5, %v1233_v6  ;;  %4504 = vmatprep.subr.mxu1 %v5386_v0 }
 0x5f9   :  { %1294 = vst.msk [vmem:[#allocation10 + $0x4] sm:$0x1] %vm304_vm0, %v1293_v7  ;;  %1249 = vst.msk [vmem:[#allocation10] sm:$0x1] %vm304_vm0, %v1248_v8  ;;  %4505 = vmatpush3.msra.mxu1 %v6210_v58 }
 0x5fa   :  { %1295 = vst.msk [vmem:[#allocation10 + $0x3] sm:$0x4] %vm1250_vm15, %v1293_v7  ;;  %1251 = vst.msk [vmem:[#allocation10 - $0x1] sm:$0x4] %vm1250_vm15, %v1248_v8  ;;  %4506 = vmatprep.subr.mxu1 %v5386_v0 }
 0x5fb   :  { %1296 = vst.msk [vmem:[#allocation10 + $0x2] sm:$0x10] %vm1252_vm2, %v1293_v7  ;;  %1253 = vst.msk [vmem:[#allocation10 - $0x2] sm:$0x10] %vm1252_vm2, %v1248_v8  ;;  %v1357_v10 = vpop.permute.xlu1 %1356  ;;  %v1315_v12 = vpop.permute.xlu0 %1314  ;;  %4507 = vmatpush3.msra.mxu1 %v6220_v59 }
 0x5fc   :  { %1297 = vst.msk [vmem:[#allocation10 + $0x1] sm:$0x40] %vm1254_vm4, %v1293_v7  ;;  %1255 = vst.msk [vmem:[#allocation10 - $0x3] sm:$0x40] %vm1254_vm4, %v1248_v8  ;;  %v1373_v34 = vsel %vm1239_vm10, %v1372_v30, %v1357_v10  ;;  %v1331_v35 = vsel %vm1239_vm10, %v1330_v31, %v1315_v12  ;;  %4508 = vmatprep.subr.mxu1 %v5386_v0  ;;  %vm2231_vm10 = vcmask 1048068  }
 0x5fd   :  { %4509 = vmatpush3.msra.mxu1 %v6225_v60 }
 0x5fe   :  { %4510 = vmatprep.subr.mxu1 %v5386_v0 }
 0x5ff   :  { %v1360_v16 = vpop.permute.xlu1 %1359  ;;  %v1318_v17 = vpop.permute.xlu0 %1317  ;;  %4511 = vmatpush3.msra.mxu1 %v6231_v61 }
 0x600   :  { %v1374_v36 = vsel %vm1241_vm11, %v1373_v34, %v1360_v16  ;;  %v1332_v37 = vsel %vm1241_vm11, %v1331_v35, %v1318_v17  ;;  %4512 = vmatprep.subr.mxu1 %v5386_v0  ;;  %v1799_v34 = vld [vmem:[#allocation16 + $0x178] sm:$0xff]  ;;  %v1782_v35 = vld [vmem:[#allocation16 + $0xf0] sm:$0xff] }
 0x601   :  { %4513 = vmatpush3.msra.mxu1 %v6237_v62 }
 0x602   :  { %4514 = vmatprep.subr.mxu1 %v5386_v0 }
 0x603   :  { %v1382_v21 = vld [vmem:[#allocation10] sm:$0xff]  ;;  %v1363_v26 = vpop.permute.xlu1 %1362  ;;  %v1321_v27 = vpop.permute.xlu0 %1320  ;;  %4515 = vmatpush3.msra.mxu1 %v6243_v63 }
 0x604   :  { %1389 = vrot.lane.b32.xlu0 %v1382_v21, %s5387_s8  ;;  %v1386_v22 = vrot.slane %v1382_v21, 7  ;;  %v1393_v24 = vrot.slane %v1382_v21, 1  ;;  %v1375_v18 = vsel %vm1243_vm12, %v1374_v36, %v1363_v26  ;;  %v1333_v38 = vsel %vm1243_vm12, %v1332_v37, %v1321_v27  ;;  %4516 = vmatprep.subr.mxu1 %v5386_v0  ;;  %v1766_v36 = vld [vmem:[#allocation16 + $0x70] sm:$0xff] }
 0x605   :  { %4517 = vmatpush3.msra.mxu1 %v6249_v1  ;;  %v1798_v37 = vld [vmem:[#allocation16 + $0x170] sm:$0xff]  ;;  %vm2981_vm12 = vcmask 1043970  }
 0x606   :  { %1388 = vst.msk [vmem:[#allocation4] sm:$0xfe] %vm314_vm1, %v1386_v22  ;;  %4518 = vmatprep.subr.mxu1 %v5386_v0 }
 0x607   :  { %1395 = vst.msk [vmem:[#allocation4 + $0x8] sm:$0x7f] %vm334_vm5, %v1393_v24  ;;  %v1366_v32 = vpop.permute.xlu1 %1365  ;;  %v1324_v33 = vpop.permute.xlu0 %1323  ;;  %4519 = vmatpush3.msra.mxu1 %v6255_v2 }
 0x608   :  { %v1376_v20 = vsel %vm1245_vm13, %v1375_v18, %v1366_v32  ;;  %v1334_v40 = vsel %vm1245_vm13, %v1333_v38, %v1324_v33  ;;  %4520 = vmatprep.subr.mxu1 %v5386_v0  ;;  %v1783_v32 = vld [vmem:[#allocation16 + $0xf8] sm:$0xff]  ;;  %v1781_v18 = vld [vmem:[#allocation16 + $0xe8] sm:$0xff] }
 0x609   :  { %4521 = vmatpush3.msra.mxu1 %v6261_v3  ;;  %v1767_v33 = vld [vmem:[#allocation16 + $0x78] sm:$0xff]  ;;  %v1765_v38 = vld [vmem:[#allocation16 + $0x68] sm:$0xff] }
 0x60a   :  { %4522 = vmatprep.subr.mxu1 %v5386_v0 }
 0x60b   :  { %v1369_v13 = vpop.permute.xlu1 %1368  ;;  %v1327_v11 = vpop.permute.xlu0 %1326  ;;  %4523 = vmatpush3.msra.mxu1 %v6265_v50 }
 0x60c   :  { %v1377_v41 = vsel %vm1247_vm14, %v1376_v20, %v1369_v13  ;;  %v1335_v14 = vsel %vm1247_vm14, %v1334_v40, %v1327_v11  ;;  %3984 = vmatprep.subr.mxu1 %v1783_v32  ;;  %v1780_v20 = vld [vmem:[#allocation16 + $0xe0] sm:$0xff]  ;;  %v1779_v11 = vld [vmem:[#allocation16 + $0xd8] sm:$0xff]  ;;  %v1785_v32 = vld [vmem:[#allocation16 + $0x108] sm:$0xff] }
 0x60d   :  { %1378 = vst.msk [vmem:[#allocation10 + $0xc] sm:$0x1] %vm304_vm0, %v1377_v41  ;;  %1336 = vst.msk [vmem:[#allocation10 + $0x8] sm:$0x1] %vm304_vm0, %v1335_v14  ;;  %v1764_v40 = vld [vmem:[#allocation16 + $0x60] sm:$0xff] }
 0x60e   :  { %v1411_v39 = vld [vmem:[#allocation4 + $0x8] sm:$0xff]  ;;  %1379 = vst.msk [vmem:[#allocation10 + $0xb] sm:$0x4] %vm1250_vm15, %v1377_v41  ;;  %1337 = vst.msk [vmem:[#allocation10 + $0x7] sm:$0x4] %vm1250_vm15, %v1335_v14 }
 0x60f   :  { %3803 = vmatprep.mubr.msk.f32.mxu0 %vm316_vm3, %v1411_v39  ;;  %1380 = vst.msk [vmem:[#allocation10 + $0xa] sm:$0x10] %vm1252_vm2, %v1377_v41  ;;  %1338 = vst.msk [vmem:[#allocation10 + $0x6] sm:$0x10] %vm1252_vm2, %v1335_v14  ;;  %v1797_v39 = vld [vmem:[#allocation16 + $0x168] sm:$0xff]  ;;  %v1796_v13 = vld [vmem:[#allocation16 + $0x160] sm:$0xff] }
 0x610   :  { %1381 = vst.msk [vmem:[#allocation10 + $0x9] sm:$0x40] %vm1254_vm4, %v1377_v41  ;;  %1339 = vst.msk [vmem:[#allocation10 + $0x5] sm:$0x40] %vm1254_vm4, %v1335_v14  ;;  %v1763_v41 = vld [vmem:[#allocation16 + $0x58] sm:$0xff] }
 0x611   :  { %v1795_v14 = vld [vmem:[#allocation16 + $0x158] sm:$0xff] }
 0x617   :  { %v1383_v42 = vld [vmem:[#allocation10 + $0x8] sm:$0xff] }
 0x618   :  { %1402 = vrot.lane.b32.xlu1 %v1383_v42, %s5387_s8  ;;  %v1399_v19 = vrot.slane %v1383_v42, 7  ;;  %v1406_v43 = vrot.slane %v1383_v42, 1  ;;  %v1778_v42 = vld [vmem:[#allocation16 + $0xd0] sm:$0xff] }
 0x61a   :  { %1401 = vst.msk [vmem:[#allocation4 + $0x10] sm:$0xfe] %vm314_vm1, %v1399_v19  ;;  %v1762_v19 = vld [vmem:[#allocation16 + $0x50] sm:$0xff]  ;;  %vm2216_vm1 = vcmask 519169  }
 0x61b   :  { %1408 = vst.msk [vmem:[#allocation4 + $0x18] sm:$0x7f] %vm334_vm5, %v1406_v43  ;;  %v1794_v43 = vld [vmem:[#allocation16 + $0x150] sm:$0xff]  ;;  %vm2225_vm5 = vcmask 518144  }
 0x622   :  { %v1413_v46 = vld [vmem:[#allocation4 + $0x18] sm:$0xff] }
 0x676   :  { %v1390_v44 = vpop.permute.xlu0 %1389 }
 0x677   :  { %1392 = vst.msk [vmem:[#allocation4] sm:$0xff] %vm324_vm6, %v1390_v44  ;;  %v1777_v44 = vld [vmem:[#allocation16 + $0xc8] sm:$0xff] }
 0x67e   :  { %v1410_v45 = vld [vmem:[#allocation4] sm:$0xff] }
 0x67f   :  { %1516 = vmatmul.mubr.f32.vlgmr.msra.gmra.mxu0 %v1410_v45  ;;  %v1761_v45 = vld [vmem:[#allocation16 + $0x48] sm:$0xff] }
 0x680   :  { %3804 = vmatprep.mubr.msk.f32.mxu0 %vm316_vm3, %v1413_v46  ;;  %4528 = vmatpush3.msra.mxu0 %v6178_v49  ;;  %v1793_v46 = vld [vmem:[#allocation16 + $0x148] sm:$0xff] }
 0x681   :  { %4529 = vmatprep.subr.mxu0 %v5386_v0 }
 0x682   :  { %4530 = vmatpush3.msra.mxu0 %v6180_v23 }
 0x683   :  { %4531 = vmatprep.subr.mxu0 %v5386_v0 }
 0x684   :  { %4532 = vmatpush3.msra.mxu0 %v6186_v25 }
 0x685   :  { %4533 = vmatprep.subr.mxu0 %v5386_v0 }
 0x686   :  { %4534 = vmatpush3.msra.mxu0 %v6192_v55 }
 0x687   :  { %4535 = vmatprep.subr.mxu0 %v5386_v0 }
 0x688   :  { %4536 = vmatpush3.msra.mxu0 %v6198_v56 }
 0x689   :  { %4537 = vmatprep.subr.mxu0 %v5386_v0 }
 0x68a   :  { %v1403_v47 = vpop.permute.xlu1 %1402  ;;  %4538 = vmatpush3.msra.mxu0 %v6204_v57 }
 0x68b   :  { %1405 = vst.msk [vmem:[#allocation4 + $0x10] sm:$0xff] %vm324_vm6, %v1403_v47  ;;  %4539 = vmatprep.subr.mxu0 %v5386_v0  ;;  %v1776_v47 = vld [vmem:[#allocation16 + $0xc0] sm:$0xff]  ;;  %vm2229_vm6 = vcmask 523269  }
 0x68c   :  { %4540 = vmatpush3.msra.mxu0 %v6210_v58 }
 0x68d   :  { %4541 = vmatprep.subr.mxu0 %v5386_v0 }
 0x68e   :  { %4542 = vmatpush3.msra.mxu0 %v6220_v59 }
 0x68f   :  { %4543 = vmatprep.subr.mxu0 %v5386_v0 }
 0x690   :  { %4544 = vmatpush3.msra.mxu0 %v6225_v60 }
 0x691   :  { %4545 = vmatprep.subr.mxu0 %v5386_v0 }
 0x692   :  { %v1412_v48 = vld [vmem:[#allocation4 + $0x10] sm:$0xff]  ;;  %4546 = vmatpush3.msra.mxu0 %v6231_v61 }
 0x693   :  { %1521 = vmatmul.mubr.f32.gmra.mxu0 %v1412_v48  ;;  %4547 = vmatprep.subr.mxu0 %v5386_v0  ;;  %v1760_v48 = vld [vmem:[#allocation16 + $0x40] sm:$0xff] }
 0x694   :  { %4559 = vmatprep.mubr.msk.f32.mxu0 %vm5388_vm7, %v5386_v0  ;;  %4548 = vmatpush3.msra.mxu0 %v6237_v62 }
 0x695   :  { %4549 = vmatprep.subr.mxu0 %v5386_v0 }
 0x696   :  { %4550 = vmatpush3.msra.mxu0 %v6243_v63 }
 0x697   :  { %4551 = vmatprep.subr.mxu0 %v5386_v0 }
 0x698   :  { %4552 = vmatpush3.msra.mxu0 %v6249_v1 }
 0x699   :  { %4553 = vmatprep.subr.mxu0 %v5386_v0 }
 0x69a   :  { %4554 = vmatpush3.msra.mxu0 %v6255_v2 }
 0x69b   :  { %4555 = vmatprep.subr.mxu0 %v5386_v0 }
 0x69c   :  { %4556 = vmatpush3.msra.mxu0 %v6261_v3 }
 0x69d   :  { %4557 = vmatprep.subr.mxu0 %v5386_v0 }
 0x69e   :  { %4558 = vmatpush3.msra.mxu0 %v6265_v50 }
 0x69f   :  { %4562 = vmatprep.subr.mxu0 %v1799_v34 }
 0x73f   :  { %v1517_v51 = vpop.f32.mrf.mxu0 }
 0x740   :  { %v6273_v53 = vadd.f32 %v3802_v4, %v1517_v51  ;;  %v1792_v51 = vld [vmem:[#allocation16 + $0x140] sm:$0xff] }
 0x741   :  { %v1519_v52 = vpop.f32.mrf.mxu0 }
 0x742   :  { %v1533_v7 = vmul.f32 %v6273_v53, %v6273_v53  ;;  %v1775_v52 = vld [vmem:[#allocation16 + $0xb8] sm:$0xff] }
 0x753   :  { %v1522_v5 = vpop.f32.mrf.mxu0 }
 0x754   :  { %v6275_v54 = vadd.f32 %v3802_v4, %v1522_v5  ;;  %v1759_v4 = vld [vmem:[#allocation16 + $0x38] sm:$0xff] }
 0x755   :  { %v1524_v6 = vpop.f32.mrf.mxu0  ;;  %v1791_v5 = vld [vmem:[#allocation16 + $0x138] sm:$0xff] }
 0x756   :  { %v1526_v8 = vadd.f32 %v6275_v54, %v6273_v53  ;;  %v1534_v9 = vmul.f32 %v6275_v54, %v6275_v54  ;;  %v1774_v6 = vld [vmem:[#allocation16 + $0xb0] sm:$0xff] }
 0x758   :  { %v1527_v10 = vrot.slane %v1526_v8, 4  ;;  %v1535_v12 = vadd.f32 %v1534_v9, %v1533_v7  ;;  %v1758_v7 = vld [vmem:[#allocation16 + $0x30] sm:$0xff]  ;;  %v1773_v9 = vld [vmem:[#allocation16 + $0xa8] sm:$0xff] }
 0x75a   :  { %v1528_v16 = vadd.f32 %v1527_v10, %v1526_v8  ;;  %v1536_v17 = vrot.slane %v1535_v12, 4  ;;  %v1790_v8 = vld [vmem:[#allocation16 + $0x130] sm:$0xff]  ;;  %v1757_v10 = vld [vmem:[#allocation16 + $0x28] sm:$0xff] }
 0x75c   :  { %v1529_v21 = vrot.slane %v1528_v16, 2  ;;  %v1537_v22 = vadd.f32 %v1536_v17, %v1535_v12  ;;  %v1789_v12 = vld [vmem:[#allocation16 + $0x128] sm:$0xff]  ;;  %v1756_v17 = vld [vmem:[#allocation16 + $0x20] sm:$0xff] }
 0x75e   :  { %v1530_v24 = vadd.f32 %v1529_v21, %v1528_v16  ;;  %v1538_v26 = vrot.slane %v1537_v22, 2  ;;  %v1772_v16 = vld [vmem:[#allocation16 + $0xa0] sm:$0xff] }
 0x75f   :  { %v1788_v21 = vld [vmem:[#allocation16 + $0x120] sm:$0xff] }
 0x760   :  { %v1539_v27 = vadd.f32 %v1538_v26, %v1537_v22  ;;  %v1531_v28 = vrot.slane %v1530_v24, 1  ;;  %v1771_v22 = vld [vmem:[#allocation16 + $0x98] sm:$0xff] }
 0x761   :  { %v1787_v26 = vld [vmem:[#allocation16 + $0x118] sm:$0xff] }
 0x762   :  { %v1540_v29 = vrot.slane %v1539_v27, 1  ;;  %v1532_v30 = vadd.f32 %v1531_v28, %v1530_v24  ;;  %v1755_v24 = vld [vmem:[#allocation16 + $0x18] sm:$0xff]  ;;  %v1754_v28 = vld [vmem:[#allocation16 + $0x10] sm:$0xff] }
 0x764   :  { %4525 = vmatmul.mubr.f32.vlgmr.msra.gmra.mxu1 %v1532_v30  ;;  %v1541_v31 = vadd.f32 %v1540_v29, %v1539_v27  ;;  %v1770_v27 = vld [vmem:[#allocation16 + $0x90] sm:$0xff]  ;;  %v1769_v30 = vld [vmem:[#allocation16 + $0x88] sm:$0xff] }
 0x765   :  { %3985 = vmatpush3.msra.mxu1 %v1767_v33  ;;  %v1786_v29 = vld [vmem:[#allocation16 + $0x110] sm:$0xff]  ;;  %v1768_v33 = vld [vmem:[#allocation16 + $0x80] sm:$0xff] }
 0x766   :  { %4560 = vmatmul.mubr.f32.vlgmr.msra.gmra.mxu0 %v1541_v31  ;;  %3986 = vmatprep.subr.mxu1 %v1782_v35  ;;  %v1753_v31 = vld [vmem:[#allocation16 + $0x8] sm:$0xff]  ;;  %v1784_v35 = vld [vmem:[#allocation16 + $0x100] sm:$0xff] }
 0x767   :  { %4563 = vmatpush3.msra.mxu0 %v1799_v34  ;;  %3987 = vmatpush3.msra.mxu1 %v1766_v36  ;;  %v1752_v34 = vld [vmem:[#allocation16] sm:$0xff] }
 0x768   :  { %4564 = vmatprep.subr.mxu0 %v1798_v37  ;;  %3988 = vmatprep.subr.mxu1 %v1781_v18 }
 0x769   :  { %4565 = vmatpush3.msra.mxu0 %v1798_v37  ;;  %3989 = vmatpush3.msra.mxu1 %v1765_v38 }
 0x76a   :  { %4566 = vmatprep.subr.mxu0 %v1797_v39  ;;  %3990 = vmatprep.subr.mxu1 %v1780_v20 }
 0x76b   :  { %4567 = vmatpush3.msra.mxu0 %v1797_v39  ;;  %3991 = vmatpush3.msra.mxu1 %v1764_v40 }
 0x76c   :  { %4568 = vmatprep.subr.mxu0 %v1796_v13  ;;  %3992 = vmatprep.subr.mxu1 %v1779_v11 }
 0x76d   :  { %4569 = vmatpush3.msra.mxu0 %v1796_v13  ;;  %3993 = vmatpush3.msra.mxu1 %v1763_v41 }
 0x76e   :  { %4570 = vmatprep.subr.mxu0 %v1795_v14  ;;  %3994 = vmatprep.subr.mxu1 %v1778_v42 }
 0x76f   :  { %4571 = vmatpush3.msra.mxu0 %v1795_v14  ;;  %3995 = vmatpush3.msra.mxu1 %v1762_v19  ;;  %v1705_v14 = vld [vmem:[%s6911_s15] sm:$0x1] }
 0x770   :  { %4572 = vmatprep.subr.mxu0 %v1794_v43  ;;  %3996 = vmatprep.subr.mxu1 %v1777_v44 }
 0x771   :  { %4573 = vmatpush3.msra.mxu0 %v1794_v43  ;;  %3997 = vmatpush3.msra.mxu1 %v1761_v45  ;;  %v1707_v43 = vld [vmem:[%s6912_s19] sm:$0x1] }
 0x772   :  { %4574 = vmatprep.subr.mxu0 %v1793_v46  ;;  %3998 = vmatprep.subr.mxu1 %v1776_v47 }
 0x773   :  { %4575 = vmatpush3.msra.mxu0 %v1793_v46  ;;  %3999 = vmatpush3.msra.mxu1 %v1760_v48 }
 0x774   :  { %4576 = vmatprep.subr.mxu0 %v1792_v51  ;;  %4000 = vmatprep.subr.mxu1 %v1775_v52 }
 0x775   :  { %4577 = vmatpush3.msra.mxu0 %v1792_v51  ;;  %4001 = vmatpush3.msra.mxu1 %v1759_v4 }
 0x776   :  { %4578 = vmatprep.subr.mxu0 %v1791_v5  ;;  %4002 = vmatprep.subr.mxu1 %v1774_v6 }
 0x777   :  { %4579 = vmatpush3.msra.mxu0 %v1791_v5  ;;  %4003 = vmatpush3.msra.mxu1 %v1758_v7 }
 0x778   :  { %4580 = vmatprep.subr.mxu0 %v1790_v8  ;;  %4004 = vmatprep.subr.mxu1 %v1773_v9 }
 0x779   :  { %4581 = vmatpush3.msra.mxu0 %v1790_v8  ;;  %4005 = vmatpush3.msra.mxu1 %v1757_v10 }
 0x77a   :  { %4582 = vmatprep.subr.mxu0 %v1789_v12  ;;  %4006 = vmatprep.subr.mxu1 %v1772_v16 }
 0x77b   :  { %4583 = vmatpush3.msra.mxu0 %v1789_v12  ;;  %4007 = vmatpush3.msra.mxu1 %v1756_v17 }
 0x77c   :  { %4584 = vmatprep.subr.mxu0 %v1788_v21  ;;  %4008 = vmatprep.subr.mxu1 %v1771_v22 }
 0x77d   :  { %4585 = vmatpush3.msra.mxu0 %v1788_v21  ;;  %4009 = vmatpush3.msra.mxu1 %v1755_v24 }
 0x77e   :  { %4586 = vmatprep.subr.mxu0 %v1787_v26  ;;  %4010 = vmatprep.subr.mxu1 %v1770_v27 }
 0x77f   :  { %4587 = vmatpush3.msra.mxu0 %v1787_v26  ;;  %4011 = vmatpush3.msra.mxu1 %v1754_v28 }
 0x780   :  { %4588 = vmatprep.subr.mxu0 %v1786_v29  ;;  %4012 = vmatprep.subr.mxu1 %v1769_v30 }
 0x781   :  { %4589 = vmatpush3.msra.mxu0 %v1786_v29  ;;  %4013 = vmatpush3.msra.mxu1 %v1753_v31 }
 0x782   :  { %4590 = vmatprep.subr.mxu0 %v1785_v32  ;;  %4014 = vmatprep.subr.mxu1 %v1768_v33 }
 0x783   :  { %4591 = vmatpush3.msra.mxu0 %v1785_v32  ;;  %4015 = vmatpush3.msra.mxu1 %v1752_v34 }
 0x784   :  { %4592 = vmatprep.subr.mxu0 %v1784_v35  ;;  %4597 = vmatprep.subr.mxu1 %v5386_v0 }
 0x785   :  { %4593 = vmatpush3.msra.mxu0 %v1784_v35 }
 0x786   :  { %4632 = vmatprep.subr.mxu0 %v5386_v0 }
 0x824   :  { %v1624_v36 = vpop.f32.mrf.mxu1 }
 0x825   :  { %v1628_v37 = vmul.f32 0.0078125, %v1624_v36 }
 0x826   :  { %v4526_v18 = vpop.f32.mrf.mxu1  ;;  %v1695_v38 = vpop.f32.mrf.mxu0 }
 0x827   :  { %v1700_v39 = vmul.f32 %v1628_v37, %v1628_v37  ;;  %v1699_v20 = vmul.f32 0.0078125, %v1695_v38 }
 0x828   :  { %v4561_v40 = vpop.f32.mrf.mxu0 }
 0x829   :  { %v1701_v13 = vsub.f32 %v1699_v20, %v1700_v39 }
 0x82b   :  { %v1702_v11 = vmax.f32 %v1701_v13, 0.0 }
 0x82d   :  { %v1703_v41 = vadd.f32 1e-05, %v1702_v11 }
 0x82f   :  { %5087 = vrsqrt.f32 %v1703_v41  ;;  %v2136_v41 = vld [vmem:[%s6914_s16] sm:$0x1] }
 0x83c   :  { %v5088_v42 = vpop.eup %5087 }
 0x83d   :  { %v1706_v19 = vmul.f32 %v5088_v42, %v1705_v14 }
 0x83f   :  { %v1708_v44 = vmul.f32 %v1706_v19, %v1628_v37  ;;  %v1713_v45 = vrot.slane %v1706_v19, %v5948_v15  ;;  %v2138_v19 = vld [vmem:[%s6915_s22] sm:$0x1] }
 0x841   :  { %v1709_v46 = vsub.f32 %v1707_v43, %v1708_v44  ;;  %v1714_v47 = vmul.f32 %v1713_v45, %v6273_v53  ;;  %v1715_v48 = vmul.f32 %v1713_v45, %v6275_v54 }
 0x843   :  { %v1720_v51 = vrot.slane %v1709_v46, %v5948_v15 }
 0x845   :  { %v1722_v52 = vadd.f32 %v1720_v51, %v1714_v47  ;;  %v1723_v4 = vadd.f32 %v1720_v51, %v1715_v48 }
 0x847   :  { %v1724_v5 = vmax.f32 %v1722_v52, 0.0  ;;  %v1725_v6 = vmax.f32 %v1723_v4, 0.0 }
 0x849   :  { %v1728_v7 = vrot.slane %v1724_v5, 7  ;;  %v1732_v8 = vrot.slane %v1724_v5, 1  ;;  %v1738_v9 = vrot.slane %v1725_v6, 7  ;;  %v1742_v10 = vrot.slane %v1725_v6, 1  ;;  %1871 = vmatprep.mubr.f32.mxu1 %v1724_v5 }
 0x84b   :  { %1730 = vst [vmem:[#allocation5] sm:$0xfe] %v1728_v7  ;;  %1734 = vst [vmem:[#allocation5 + $0x10] sm:$0x7f] %v1732_v8 }
 0x84c   :  { %1740 = vst [vmem:[#allocation5 + $0x18] sm:$0xfe] %v1738_v9  ;;  %1744 = vst [vmem:[#allocation5 + $0x28] sm:$0x7f] %v1742_v10 }
 0x852   :  { %v1746_v12 = vld [vmem:[#allocation5] sm:$0xff]  ;;  %v1748_v16 = vld [vmem:[#allocation5 + $0x10] sm:$0xff] }
 0x853   :  { %v1751_v53 = vld [vmem:[#allocation5 + $0x28] sm:$0xff]  ;;  %1872 = vmatmul.mubr.f32.vlgmr.msra.gmra.mxu1 %v1746_v12  ;;  %4594 = vmatprep.mubr.f32.mxu0 %v1748_v16  ;;  %v1749_v54 = vld [vmem:[#allocation5 + $0x18] sm:$0xff] }
 0x854   :  { %1876 = vmatprep.mubr.f32.mxu1 %v1725_v6  ;;  %4595 = vmatmul.mubr.f32.vlgmr.msra.gmra.mxu0 %v1751_v53 }
 0x855   :  { %4598 = vmatpush3.msra.mxu1 %v6178_v49  ;;  %4633 = vmatpush3.msra.mxu0 %v6178_v49 }
 0x856   :  { %4599 = vmatprep.subr.mxu1 %v5386_v0  ;;  %4634 = vmatprep.subr.mxu0 %v5386_v0 }
 0x857   :  { %1877 = vmatmul.mubr.f32.gmra.mxu1 %v1749_v54  ;;  %4635 = vmatpush3.msra.mxu0 %v6180_v23  ;;  %v2253_v54 = vld [vmem:[#allocation18 + $0x78] sm:$0xff] }
 0x858   :  { %4600 = vmatpush3.msra.mxu1 %v6180_v23  ;;  %4636 = vmatprep.subr.mxu0 %v5386_v0 }
 0x859   :  { %4601 = vmatprep.subr.mxu1 %v5386_v0  ;;  %4637 = vmatpush3.msra.mxu0 %v6186_v25 }
 0x85a   :  { %4602 = vmatpush3.msra.mxu1 %v6186_v25  ;;  %4638 = vmatprep.subr.mxu0 %v5386_v0  ;;  %v3805_v25 = vld [vmem:[%s6913_s12] ss:$0 sm:$0xff] }
 0x85b   :  { %4603 = vmatprep.subr.mxu1 %v5386_v0  ;;  %4639 = vmatpush3.msra.mxu0 %v6192_v55 }
 0x85c   :  { %4604 = vmatpush3.msra.mxu1 %v6192_v55  ;;  %4640 = vmatprep.subr.mxu0 %v5386_v0 }
 0x85d   :  { %4605 = vmatprep.subr.mxu1 %v5386_v0  ;;  %4641 = vmatpush3.msra.mxu0 %v6198_v56 }
 0x85e   :  { %4606 = vmatpush3.msra.mxu1 %v6198_v56  ;;  %4642 = vmatprep.subr.mxu0 %v5386_v0 }
 0x85f   :  { %4607 = vmatprep.subr.mxu1 %v5386_v0  ;;  %4643 = vmatpush3.msra.mxu0 %v6204_v57 }
 0x860   :  { %4608 = vmatpush3.msra.mxu1 %v6204_v57  ;;  %4644 = vmatprep.subr.mxu0 %v5386_v0 }
 0x861   :  { %4609 = vmatprep.subr.mxu1 %v5386_v0  ;;  %4645 = vmatpush3.msra.mxu0 %v6210_v58 }
 0x862   :  { %4610 = vmatpush3.msra.mxu1 %v6210_v58  ;;  %4646 = vmatprep.subr.mxu0 %v5386_v0 }
 0x863   :  { %4611 = vmatprep.subr.mxu1 %v5386_v0  ;;  %4647 = vmatpush3.msra.mxu0 %v6220_v59 }
 0x864   :  { %4612 = vmatpush3.msra.mxu1 %v6220_v59  ;;  %4648 = vmatprep.subr.mxu0 %v5386_v0 }
 0x865   :  { %4613 = vmatprep.subr.mxu1 %v5386_v0  ;;  %4649 = vmatpush3.msra.mxu0 %v6225_v60 }
 0x866   :  { %4614 = vmatpush3.msra.mxu1 %v6225_v60  ;;  %4650 = vmatprep.subr.mxu0 %v5386_v0 }
 0x867   :  { %4615 = vmatprep.subr.mxu1 %v5386_v0  ;;  %4651 = vmatpush3.msra.mxu0 %v6231_v61 }
 0x868   :  { %4616 = vmatpush3.msra.mxu1 %v6231_v61  ;;  %4652 = vmatprep.subr.mxu0 %v5386_v0 }
 0x869   :  { %4617 = vmatprep.subr.mxu1 %v5386_v0  ;;  %4653 = vmatpush3.msra.mxu0 %v6237_v62 }
 0x86a   :  { %4618 = vmatpush3.msra.mxu1 %v6237_v62  ;;  %4654 = vmatprep.subr.mxu0 %v5386_v0 }
 0x86b   :  { %4619 = vmatprep.subr.mxu1 %v5386_v0  ;;  %4655 = vmatpush3.msra.mxu0 %v6243_v63 }
 0x86c   :  { %4620 = vmatpush3.msra.mxu1 %v6243_v63  ;;  %4656 = vmatprep.subr.mxu0 %v5386_v0 }
 0x86d   :  { %4621 = vmatprep.subr.mxu1 %v5386_v0  ;;  %4657 = vmatpush3.msra.mxu0 %v6249_v1 }
 0x86e   :  { %4622 = vmatpush3.msra.mxu1 %v6249_v1  ;;  %4658 = vmatprep.subr.mxu0 %v5386_v0 }
 0x86f   :  { %4623 = vmatprep.subr.mxu1 %v5386_v0  ;;  %4659 = vmatpush3.msra.mxu0 %v6255_v2 }
 0x870   :  { %4624 = vmatpush3.msra.mxu1 %v6255_v2  ;;  %4660 = vmatprep.subr.mxu0 %v5386_v0 }
 0x871   :  { %4625 = vmatprep.subr.mxu1 %v5386_v0  ;;  %4629 = vmatprep.mubr.msk.f32.mxu1 %vm5388_vm7, %v5386_v0 }
 0x872   :  { %4626 = vmatpush3.msra.mxu1 %v6261_v3  ;;  %4661 = vmatpush3.msra.mxu0 %v6261_v3 }
 0x873   :  { %4627 = vmatprep.subr.mxu1 %v5386_v0  ;;  %4662 = vmatprep.subr.mxu0 %v5386_v0 }
 0x874   :  { %4628 = vmatpush3.msra.mxu1 %v6265_v50  ;;  %4663 = vmatpush3.msra.mxu0 %v6265_v50 }
 0x875   :  { %4664 = vmatprep.mubr.msk.f32.mxu0 %vm5388_vm7, %v5386_v0  ;;  %2272 = vmatprep.subr.mxu1 %v5386_v0 }
 0x876   :  { %4667 = vmatprep.subr.mxu0 %v5386_v0 }
 0x913   :  { %v4016_v49 = vpop.f32.mrf.mxu1 }
 0x914   :  { %v4596_v56 = vpop.f32.mrf.mxu0 }
 0x915   :  { %v4017_v23 = vpop.f32.mrf.mxu1 }
 0x916   :  { %v4018_v55 = vadd.f32 %v4017_v23, %v4016_v49  ;;  %v1948_v61 = vpop.f32.mrf.mxu0  ;;  %v2252_v49 = vld [vmem:[#allocation18 + $0x70] sm:$0xff]  ;;  %v2251_v23 = vld [vmem:[#allocation18 + $0x68] sm:$0xff] }
 0x917   :  { %v4019_v57 = vpop.f32.mrf.mxu1 }
 0x918   :  { %v1874_v58 = vadd.f32 %v4018_v55, %v3805_v25  ;;  %v2249_v55 = vld [vmem:[#allocation18 + $0x58] sm:$0xff] }
 0x919   :  { %v4020_v59 = vpop.f32.mrf.mxu1 }
 0x91a   :  { %v4021_v60 = vadd.f32 %v4020_v59, %v4019_v57  ;;  %v1949_v62 = vadd.f32 %v1948_v61, %v1874_v58  ;;  %v2247_v57 = vld [vmem:[#allocation18 + $0x48] sm:$0xff]  ;;  %v2246_v58 = vld [vmem:[#allocation18 + $0x40] sm:$0xff]  ;;  %v2245_v59 = vld [vmem:[#allocation18 + $0x38] sm:$0xff] }
 0x91b   :  { %v2243_v61 = vld [vmem:[#allocation18 + $0x28] sm:$0xff] }
 0x91c   :  { %v1879_v63 = vadd.f32 %v4021_v60, %v3805_v25  ;;  %v1964_v2 = vmul.f32 %v1949_v62, %v1949_v62  ;;  %v2250_v25 = vld [vmem:[#allocation18 + $0x60] sm:$0xff]  ;;  %v2244_v60 = vld [vmem:[#allocation18 + $0x30] sm:$0xff] }
 0x91e   :  { %v1954_v1 = vadd.f32 %v4596_v56, %v1879_v63  ;;  %v2248_v56 = vld [vmem:[#allocation18 + $0x50] sm:$0xff]  ;;  %v2241_v63 = vld [vmem:[#allocation18 + $0x18] sm:$0xff] }
 0x920   :  { %v1957_v3 = vadd.f32 %v1954_v1, %v1949_v62  ;;  %v1965_v50 = vmul.f32 %v1954_v1, %v1954_v1 }
 0x922   :  { %v1958_v17 = vrot.slane %v1957_v3, 4  ;;  %v1966_v21 = vadd.f32 %v1965_v50, %v1964_v2  ;;  %v2239_v2 = vld [vmem:[#allocation18 + $0x8] sm:$0xff]  ;;  %v2261_v50 = vld [vmem:[#allocation18 + $0xb8] sm:$0xff] }
 0x924   :  { %v1959_v22 = vadd.f32 %v1958_v17, %v1957_v3  ;;  %v1967_v24 = vrot.slane %v1966_v21, 4  ;;  %v2238_v3 = vld [vmem:[#allocation18] sm:$0xff]  ;;  %v2260_v17 = vld [vmem:[#allocation18 + $0xb0] sm:$0xff] }
 0x926   :  { %v1960_v26 = vrot.slane %v1959_v22, 2  ;;  %v1968_v27 = vadd.f32 %v1967_v24, %v1966_v21  ;;  %v2259_v21 = vld [vmem:[#allocation18 + $0xa8] sm:$0xff] }
 0x928   :  { %v1961_v28 = vadd.f32 %v1960_v26, %v1959_v22  ;;  %v1969_v29 = vrot.slane %v1968_v27, 2  ;;  %v2258_v22 = vld [vmem:[#allocation18 + $0xa0] sm:$0xff] }
 0x92a   :  { %v1962_v30 = vrot.slane %v1961_v28, 1  ;;  %v1970_v31 = vadd.f32 %v1969_v29, %v1968_v27  ;;  %v2257_v29 = vld [vmem:[#allocation18 + $0x98] sm:$0xff] }
 0x92c   :  { %v1963_v32 = vadd.f32 %v1962_v30, %v1961_v28  ;;  %v1971_v33 = vrot.slane %v1970_v31, 1  ;;  %v2256_v30 = vld [vmem:[#allocation18 + $0x90] sm:$0xff] }
 0x92e   :  { %4630 = vmatmul.mubr.f32.vlgmr.msra.gmra.mxu1 %v1963_v32  ;;  %v1972_v34 = vadd.f32 %v1971_v33, %v1970_v31  ;;  %v2255_v33 = vld [vmem:[#allocation18 + $0x88] sm:$0xff] }
 0x92f   :  { %2273 = vmatpush1.msra.mxu1 %v2253_v54 }
 0x930   :  { %4665 = vmatmul.mubr.f32.vlgmr.msra.gmra.mxu0 %v1972_v34  ;;  %2274 = vmatprep.subr.mxu1 %v5386_v0 }
 0x931   :  { %4699 = vmatprep.mubr.msk.f32.mxu0 %vm5388_vm7, %v5386_v0  ;;  %2275 = vmatpush1.msra.mxu1 %v2252_v49 }
 0x932   :  { %2276 = vmatprep.subr.mxu1 %v5386_v0 }
 0x933   :  { %2277 = vmatpush1.msra.mxu1 %v2251_v23 }
 0x934   :  { %2278 = vmatprep.subr.mxu1 %v5386_v0 }
 0x935   :  { %2279 = vmatpush1.msra.mxu1 %v2250_v25 }
 0x936   :  { %2280 = vmatprep.subr.mxu1 %v5386_v0 }
 0x937   :  { %2281 = vmatpush1.msra.mxu1 %v2249_v55 }
 0x938   :  { %2282 = vmatprep.subr.mxu1 %v5386_v0 }
 0x939   :  { %2283 = vmatpush1.msra.mxu1 %v2248_v56 }
 0x93a   :  { %2284 = vmatprep.subr.mxu1 %v5386_v0 }
 0x93b   :  { %2285 = vmatpush1.msra.mxu1 %v2247_v57 }
 0x93c   :  { %2286 = vmatprep.subr.mxu1 %v5386_v0 }
 0x93d   :  { %2287 = vmatpush1.msra.mxu1 %v2246_v58 }
 0x93e   :  { %2288 = vmatprep.subr.mxu1 %v5386_v0 }
 0x93f   :  { %2289 = vmatpush1.msra.mxu1 %v2245_v59 }
 0x940   :  { %2290 = vmatprep.subr.mxu1 %v5386_v0 }
 0x941   :  { %2291 = vmatpush1.msra.mxu1 %v2244_v60 }
 0x942   :  { %2292 = vmatprep.subr.mxu1 %v5386_v0 }
 0x943   :  { %2293 = vmatpush1.msra.mxu1 %v2243_v61 }
 0x944   :  { %2294 = vmatprep.subr.mxu1 %v5386_v0 }
 0x9ee   :  { %v2055_v35 = vpop.f32.mrf.mxu1 }
 0x9ef   :  { %v2059_v36 = vmul.f32 0.0078125, %v2055_v35 }
 0x9f0   :  { %v4631_v37 = vpop.f32.mrf.mxu1  ;;  %v2126_v18 = vpop.f32.mrf.mxu0 }
 0x9f1   :  { %v2131_v38 = vmul.f32 %v2059_v36, %v2059_v36  ;;  %v2130_v39 = vmul.f32 0.0078125, %v2126_v18 }
 0x9f2   :  { %v4666_v20 = vpop.f32.mrf.mxu0 }
 0x9f3   :  { %v2132_v40 = vsub.f32 %v2130_v39, %v2131_v38  ;;  %v2254_v39 = vld [vmem:[#allocation18 + $0x80] sm:$0xff]  ;;  %v6425_v20 = vld [vmem:[#allocation27 + $0x78] sm:$0xff] }
 0x9f4   :  { %4668 = vmatpush3.msra.mxu0 %v6425_v20 }
 0x9f5   :  { %v2133_v13 = vmax.f32 %v2132_v40, 0.0  ;;  %v6428_v40 = vld [vmem:[#allocation27 + $0x70] sm:$0xff]  ;;  %4669 = vmatprep.subr.mxu0 %v5386_v0 }
 0x9f6   :  { %4670 = vmatpush3.msra.mxu0 %v6428_v40 }
 0x9f7   :  { %v2134_v11 = vadd.f32 1e-05, %v2133_v13  ;;  %v6432_v13 = vld [vmem:[#allocation27 + $0x68] sm:$0xff]  ;;  %4671 = vmatprep.subr.mxu0 %v5386_v0 }
 0x9f8   :  { %4672 = vmatpush3.msra.mxu0 %v6432_v13 }
 0x9f9   :  { %5089 = vrsqrt.f32 %v2134_v11  ;;  %4673 = vmatprep.subr.mxu0 %v5386_v0 }
 0xa06   :  { %v5090_v14 = vpop.eup %5089 }
 0xa07   :  { %v2137_v42 = vmul.f32 %v5090_v14, %v2136_v41  ;;  %v6436_v41 = vld [vmem:[#allocation27 + $0x60] sm:$0xff] }
 0xa08   :  { %4674 = vmatpush3.msra.mxu0 %v6436_v41 }
 0xa09   :  { %v2139_v43 = vmul.f32 %v2137_v42, %v2059_v36  ;;  %v2144_v44 = vrot.slane %v2137_v42, %v5948_v15  ;;  %4675 = vmatprep.subr.mxu0 %v5386_v0 }
 0xa0b   :  { %v2140_v45 = vsub.f32 %v2138_v19, %v2139_v43  ;;  %v2146_v46 = vmul.f32 %v2144_v44, %v1954_v1  ;;  %v2145_v48 = vmul.f32 %v2144_v44, %v1949_v62  ;;  %v2242_v62 = vld [vmem:[#allocation18 + $0x20] sm:$0xff]  ;;  %v2240_v1 = vld [vmem:[#allocation18 + $0x10] sm:$0xff]  ;;  %v6441_v19 = vld [vmem:[#allocation27 + $0x58] sm:$0xff] }
 0xa0c   :  { %2295 = vmatpush1.msra.mxu1 %v2242_v62  ;;  %v6445_v43 = vld [vmem:[#allocation27 + $0x50] sm:$0xff]  ;;  %4676 = vmatpush3.msra.mxu0 %v6441_v19  ;;  %v6449_v44 = vld [vmem:[#allocation27 + $0x48] sm:$0xff] }
 0xa0d   :  { %v2151_v47 = vrot.slane %v2140_v45, %v5948_v15  ;;  %2296 = vmatprep.subr.mxu1 %v5386_v0  ;;  %4677 = vmatprep.subr.mxu0 %v5386_v0  ;;  %v6453_v45 = vld [vmem:[#allocation27 + $0x40] sm:$0xff] }
 0xa0e   :  { %2297 = vmatpush1.msra.mxu1 %v2241_v63  ;;  %4678 = vmatpush3.msra.mxu0 %v6445_v43 }
 0xa0f   :  { %v2154_v51 = vadd.f32 %v2151_v47, %v2146_v46  ;;  %v2153_v52 = vadd.f32 %v2151_v47, %v2145_v48  ;;  %2298 = vmatprep.subr.mxu1 %v5386_v0  ;;  %4679 = vmatprep.subr.mxu0 %v5386_v0 }
 0xa10   :  { %2299 = vmatpush1.msra.mxu1 %v2240_v1  ;;  %4680 = vmatpush3.msra.mxu0 %v6449_v44  ;;  %v2585_v1 = vld [vmem:[#allocation19 + $0xf8] sm:$0xff] }
 0xa11   :  { %v2156_v4 = vmax.f32 %v2154_v51, 0.0  ;;  %v2155_v5 = vmax.f32 %v2153_v52, 0.0  ;;  %2300 = vmatprep.subr.mxu1 %v5386_v0  ;;  %4681 = vmatprep.subr.mxu0 %v5386_v0  ;;  %v6478_v51 = vld [vmem:[#allocation27 + $0x38] sm:$0xff]  ;;  %v6483_v52 = vld [vmem:[#allocation27 + $0x30] sm:$0xff] }
 0xa12   :  { %2301 = vmatpush1.msra.mxu1 %v2239_v2  ;;  %4682 = vmatpush3.msra.mxu0 %v6453_v45  ;;  %v2569_v2 = vld [vmem:[#allocation19 + $0x78] sm:$0xff] }
 0xa13   :  { %v2186_v6 = vrot.slane %v2156_v4, 1  ;;  %2158 = vst [vmem:[%s5600_s21 + $0x8] sm:$0xff] %v2156_v4  ;;  %v2160_v7 = vrot.slane %v2155_v5, 1  ;;  %2157 = vst [vmem:[%s5600_s21] sm:$0xff] %v2155_v5  ;;  %2302 = vmatprep.subr.mxu1 %v5386_v0  ;;  %4683 = vmatprep.subr.mxu0 %v5386_v0  ;;  %s6916_s21 = sld [smem:[#allocation49_spill]] }
 0xa14   :  { %2303 = vmatpush1.msra.mxu1 %v2238_v3  ;;  %4684 = vmatpush3.msra.mxu0 %v6478_v51  ;;  %v2601_v3 = vld [vmem:[#allocation19 + $0x178] sm:$0xff] }
 0xa15   :  { %v2188_v8 = vmax.f32 %v2156_v4, %v2186_v6  ;;  %v2162_v9 = vmax.f32 %v2155_v5, %v2160_v7  ;;  %2320 = vmatprep.subr.mxu1 %v5386_v0  ;;  %4685 = vmatprep.subr.mxu0 %v5386_v0  ;;  %v6489_v4 = vld [vmem:[#allocation27 + $0x28] sm:$0xff]  ;;  %v6495_v5 = vld [vmem:[#allocation27 + $0x20] sm:$0xff]  ;;  %v6499_v6 = vld [vmem:[#allocation27 + $0x18] sm:$0xff] }
 0xa16   :  { %2321 = vmatpush2.msra.mxu1 %v2261_v50  ;;  %4686 = vmatpush3.msra.mxu0 %v6483_v52  ;;  %v6504_v7 = vld [vmem:[#allocation27 + $0x10] sm:$0xff] }
 0xa17   :  { %2190 = vrot.lane.b32.xlu1 %v2188_v8, %s5390_s29  ;;  %2164 = vrot.lane.b32.xlu0 %v2162_v9, %s5390_s29  ;;  %v2584_v50 = vld [vmem:[#allocation19 + $0xf0] sm:$0xff] }
 0xa18   :  { %2322 = vmatprep.subr.mxu1 %v5386_v0  ;;  %4687 = vmatprep.subr.mxu0 %v5386_v0 }
 0xa19   :  { %2323 = vmatpush2.msra.mxu1 %v2260_v17  ;;  %4688 = vmatpush3.msra.mxu0 %v6489_v4  ;;  %v2568_v17 = vld [vmem:[#allocation19 + $0x70] sm:$0xff] }
 0xa1a   :  { %2324 = vmatprep.subr.mxu1 %v5386_v0  ;;  %4689 = vmatprep.subr.mxu0 %v5386_v0 }
 0xa1b   :  { %2325 = vmatpush2.msra.mxu1 %v2259_v21  ;;  %4690 = vmatpush3.msra.mxu0 %v6495_v5  ;;  %v2600_v21 = vld [vmem:[#allocation19 + $0x170] sm:$0xff] }
 0xa1c   :  { %2326 = vmatprep.subr.mxu1 %v5386_v0  ;;  %4691 = vmatprep.subr.mxu0 %v5386_v0 }
 0xa1d   :  { %2327 = vmatpush2.msra.mxu1 %v2258_v22  ;;  %4692 = vmatpush3.msra.mxu0 %v6499_v6  ;;  %v2583_v22 = vld [vmem:[#allocation19 + $0xe8] sm:$0xff] }
 0xa1e   :  { %2328 = vmatprep.subr.mxu1 %v5386_v0  ;;  %4693 = vmatprep.subr.mxu0 %v5386_v0 }
 0xa1f   :  { %2329 = vmatpush2.msra.mxu1 %v2257_v29  ;;  %4694 = vmatpush3.msra.mxu0 %v6504_v7  ;;  %v2598_v29 = vld [vmem:[#allocation19 + $0x160] sm:$0xff] }
 0xa20   :  { %2330 = vmatprep.subr.mxu1 %v5386_v0  ;;  %4695 = vmatprep.subr.mxu0 %v5386_v0 }
 0xa21   :  { %2331 = vmatpush2.msra.mxu1 %v2256_v30  ;;  %v2581_v30 = vld [vmem:[#allocation19 + $0xd8] sm:$0xff] }
 0xa22   :  { %2332 = vmatprep.subr.mxu1 %v5386_v0 }
 0xa23   :  { %2333 = vmatpush2.msra.mxu1 %v2255_v33  ;;  %v2580_v33 = vld [vmem:[#allocation19 + $0xd0] sm:$0xff] }
 0xa24   :  { %2334 = vmatprep.subr.mxu1 %v5386_v0 }
 0xa25   :  { %2335 = vmatpush2.msra.mxu1 %v2254_v39  ;;  %v2562_v39 = vld [vmem:[#allocation19 + $0x40] sm:$0xff] }
 0xa26   :  { %4702 = vmatprep.subr.mxu1 %v5386_v0 }
 0xa89   :  { %v2191_v10 = vpop.permute.xlu1 %2190  ;;  %v2165_v12 = vpop.permute.xlu0 %2164 }
 0xa8a   :  { %v6370_v16 = vmax.f32 %v2188_v8, %v2191_v10  ;;  %v6372_v53 = vmax.f32 %v2162_v9, %v2165_v12  ;;  %v6510_v8 = vld [vmem:[#allocation27 + $0x8] sm:$0xff]  ;;  %v6516_v9 = vld [vmem:[#allocation27] sm:$0xff]  ;;  %v3806_v10 = vld [vmem:[%s6916_s21] ss:$0 sm:$0xff] }
 0xa8b   :  { %4696 = vmatpush3.msra.mxu0 %v6510_v8 }
 0xa8c   :  { %2195 = vrot.lane.b32.xlu1 %v6370_v16, %s5390_s29  ;;  %2169 = vrot.lane.b32.xlu0 %v6372_v53, %s5390_s29 }
 0xa8d   :  { %4697 = vmatprep.subr.mxu0 %v5386_v0 }
 0xa8e   :  { %4698 = vmatpush3.msra.mxu0 %v6516_v9 }
 0xa8f   :  { %4108 = vmatprep.subr.mxu0 %v2585_v1  ;;  %v2570_v1 = vld [vmem:[#allocation19 + $0x80] sm:$0xff] }
 0xa90   :  { %2198 = vrot.lane.b32.xlu1 %v6370_v16, %s5392_s18  ;;  %2172 = vrot.lane.b32.xlu0 %v6372_v53, %s5392_s18 }
 0xa94   :  { %2201 = vrot.lane.b32.xlu1 %v6370_v16, %s5394_s7  ;;  %2175 = vrot.lane.b32.xlu0 %v6372_v53, %s5394_s7 }
 0xafe   :  { %v2196_v24 = vpop.permute.xlu1 %2195  ;;  %v2170_v26 = vpop.permute.xlu0 %2169 }
 0xaff   :  { %v2204_v31 = vsel %vm1237_vm9, %v6370_v16, %v2196_v24  ;;  %v2178_v32 = vsel %vm1237_vm9, %v6372_v53, %v2170_v26  ;;  %vm2221_vm9 = vcmask 1043968   ;;  %v2567_v24 = vld [vmem:[#allocation19 + $0x68] sm:$0xff] }
 0xb00   :  { %v2599_v26 = vld [vmem:[#allocation19 + $0x168] sm:$0xff] }
 0xb02   :  { %v2199_v27 = vpop.permute.xlu1 %2198  ;;  %v2173_v28 = vpop.permute.xlu0 %2172 }
 0xb03   :  { %v2205_v34 = vsel %vm1241_vm11, %v2204_v31, %v2199_v27  ;;  %v2179_v35 = vsel %vm1241_vm11, %v2178_v32, %v2173_v28  ;;  %v2582_v27 = vld [vmem:[#allocation19 + $0xe0] sm:$0xff]  ;;  %v2565_v31 = vld [vmem:[#allocation19 + $0x58] sm:$0xff] }
 0xb04   :  { %v2566_v28 = vld [vmem:[#allocation19 + $0x60] sm:$0xff]  ;;  %v2597_v32 = vld [vmem:[#allocation19 + $0x158] sm:$0xff] }
 0xb06   :  { %v2202_v36 = vpop.permute.xlu1 %2201  ;;  %v2176_v37 = vpop.permute.xlu0 %2175 }
 0xb07   :  { %v2206_v18 = vsel %vm1245_vm13, %v2205_v34, %v2202_v36  ;;  %v2180_v38 = vsel %vm1245_vm13, %v2179_v35, %v2176_v37  ;;  %v2564_v34 = vld [vmem:[#allocation19 + $0x50] sm:$0xff]  ;;  %v2579_v36 = vld [vmem:[#allocation19 + $0xc8] sm:$0xff] }
 0xb08   :  { %2207 = vst.msk [vmem:[#allocation11 + $0x4] sm:$0x1] %vm304_vm0, %v2206_v18  ;;  %2181 = vst.msk [vmem:[#allocation11] sm:$0x1] %vm304_vm0, %v2180_v38  ;;  %v2596_v35 = vld [vmem:[#allocation19 + $0x150] sm:$0xff]  ;;  %v2563_v37 = vld [vmem:[#allocation19 + $0x48] sm:$0xff] }
 0xb09   :  { %2208 = vst.msk [vmem:[#allocation11 + $0x3] sm:$0x4] %vm1250_vm15, %v2206_v18  ;;  %2182 = vst.msk [vmem:[#allocation11 - $0x1] sm:$0x4] %vm1250_vm15, %v2180_v38 }
 0xb0a   :  { %2209 = vst.msk [vmem:[#allocation11 + $0x2] sm:$0x10] %vm1252_vm2, %v2206_v18  ;;  %2183 = vst.msk [vmem:[#allocation11 - $0x2] sm:$0x10] %vm1252_vm2, %v2180_v38 }
 0xb0b   :  { %2210 = vst.msk [vmem:[#allocation11 + $0x1] sm:$0x40] %vm1254_vm4, %v2206_v18  ;;  %2184 = vst.msk [vmem:[#allocation11 - $0x3] sm:$0x40] %vm1254_vm4, %v2180_v38  ;;  %v2595_v18 = vld [vmem:[#allocation19 + $0x148] sm:$0xff]  ;;  %v2578_v38 = vld [vmem:[#allocation19 + $0xc0] sm:$0xff] }
 0xb12   :  { %v2211_v11 = vld [vmem:[#allocation11] sm:$0xff] }
 0xb13   :  { %2218 = vrot.lane.b32.xlu0 %v2211_v11, %s5387_s8  ;;  %v2214_v14 = vrot.slane %v2211_v11, 7  ;;  %v2223_v42 = vrot.slane %v2211_v11, 1  ;;  %v2594_v11 = vld [vmem:[#allocation19 + $0x140] sm:$0xff] }
 0xb15   :  { %2217 = vst.msk [vmem:[#allocation6] sm:$0xe] %vm2216_vm1, %v2214_v14 }
 0xb16   :  { %2226 = vst.msk [vmem:[#allocation6 + $0x8] sm:$0x7] %vm2225_vm5, %v2223_v42 }
 0xb17   :  { %2230 = vst.msk [vmem:[#allocation6] sm:$0xe0] %vm2229_vm6, %v2214_v14  ;;  %v2577_v14 = vld [vmem:[#allocation19 + $0xb8] sm:$0xff] }
 0xb18   :  { %2234 = vst.msk [vmem:[#allocation6 + $0x8] sm:$0x70] %vm2233_vm8, %v2223_v42  ;;  %v2561_v42 = vld [vmem:[#allocation19 + $0x38] sm:$0xff] }
 0xb1f   :  { %v2237_v46 = vld [vmem:[#allocation6 + $0x8] sm:$0xff] }
 0xb20   :  { %3807 = vmatprep.mubr.msk.f32.mxu1 %vm316_vm3, %v2237_v46  ;;  %v2593_v46 = vld [vmem:[#allocation19 + $0x138] sm:$0xff] }
 0xb85   :  { %v2219_v47 = vpop.permute.xlu0 %2218 }
 0xb86   :  { %2222 = vst.msk [vmem:[#allocation6] sm:$0xf] %vm2221_vm9, %v2219_v47 }
 0xb87   :  { %2232 = vst.msk [vmem:[#allocation6] sm:$0xf0] %vm2231_vm10, %v2219_v47  ;;  %v2576_v47 = vld [vmem:[#allocation19 + $0xb0] sm:$0xff] }
 0xb8e   :  { %v2236_v48 = vld [vmem:[#allocation6] sm:$0xff] }
 0xb8f   :  { %2337 = vmatmul.mubr.f32.vlgmr.msra.gmra.mxu1 %v2236_v48  ;;  %v2560_v48 = vld [vmem:[#allocation19 + $0x30] sm:$0xff] }
 0xb90   :  { %4703 = vmatpush3.msra.mxu1 %v6425_v20  ;;  %4734 = vmatprep.mubr.msk.f32.mxu1 %vm5388_vm7, %v5386_v0 }
 0xb91   :  { %4704 = vmatprep.subr.mxu1 %v5386_v0 }
 0xb92   :  { %4705 = vmatpush3.msra.mxu1 %v6428_v40 }
 0xb93   :  { %4706 = vmatprep.subr.mxu1 %v5386_v0 }
 0xb94   :  { %4707 = vmatpush3.msra.mxu1 %v6432_v13 }
 0xb95   :  { %4708 = vmatprep.subr.mxu1 %v5386_v0 }
 0xb96   :  { %4709 = vmatpush3.msra.mxu1 %v6436_v41 }
 0xb97   :  { %4710 = vmatprep.subr.mxu1 %v5386_v0 }
 0xb98   :  { %4711 = vmatpush3.msra.mxu1 %v6441_v19 }
 0xb99   :  { %4712 = vmatprep.subr.mxu1 %v5386_v0 }
 0xb9a   :  { %4713 = vmatpush3.msra.mxu1 %v6445_v43 }
 0xb9b   :  { %4714 = vmatprep.subr.mxu1 %v5386_v0 }
 0xb9c   :  { %4715 = vmatpush3.msra.mxu1 %v6449_v44 }
 0xb9d   :  { %4716 = vmatprep.subr.mxu1 %v5386_v0 }
 0xb9e   :  { %4717 = vmatpush3.msra.mxu1 %v6453_v45 }
 0xb9f   :  { %4718 = vmatprep.subr.mxu1 %v5386_v0 }
 0xba0   :  { %4719 = vmatpush3.msra.mxu1 %v6478_v51 }
 0xba1   :  { %4720 = vmatprep.subr.mxu1 %v5386_v0 }
 0xba2   :  { %4721 = vmatpush3.msra.mxu1 %v6483_v52 }
 0xba3   :  { %4722 = vmatprep.subr.mxu1 %v5386_v0 }
 0xba4   :  { %4723 = vmatpush3.msra.mxu1 %v6489_v4 }
 0xba5   :  { %4724 = vmatprep.subr.mxu1 %v5386_v0 }
 0xba6   :  { %4725 = vmatpush3.msra.mxu1 %v6495_v5 }
 0xba7   :  { %4726 = vmatprep.subr.mxu1 %v5386_v0 }
 0xba8   :  { %4727 = vmatpush3.msra.mxu1 %v6499_v6 }
 0xba9   :  { %4728 = vmatprep.subr.mxu1 %v5386_v0 }
 0xbaa   :  { %4729 = vmatpush3.msra.mxu1 %v6504_v7 }
 0xbab   :  { %4730 = vmatprep.subr.mxu1 %v5386_v0 }
 0xbac   :  { %4731 = vmatpush3.msra.mxu1 %v6510_v8 }
 0xbad   :  { %4732 = vmatprep.subr.mxu1 %v5386_v0 }
 0xbae   :  { %4733 = vmatpush3.msra.mxu1 %v6516_v9 }
 0xbaf   :  { %4737 = vmatprep.subr.mxu1 %v5386_v0 }
 0xc4f   :  { %v2338_v12 = vpop.f32.mrf.mxu1 }
 0xc50   :  { %v6526_v16 = vadd.f32 %v3806_v10, %v2338_v12  ;;  %v2592_v10 = vld [vmem:[#allocation19 + $0x130] sm:$0xff]  ;;  %v2575_v12 = vld [vmem:[#allocation19 + $0xa8] sm:$0xff] }
 0xc51   :  { %v2340_v53 = vpop.f32.mrf.mxu1 }
 0xc52   :  { %v2342_v54 = vrot.slane %v6526_v16, 4  ;;  %v2348_v49 = vmul.f32 %v6526_v16, %v6526_v16  ;;  %v2559_v53 = vld [vmem:[#allocation19 + $0x28] sm:$0xff] }
 0xc54   :  { %v2343_v23 = vadd.f32 %v2342_v54, %v6526_v16  ;;  %v2349_v25 = vrot.slane %v2348_v49, 4  ;;  %v2591_v54 = vld [vmem:[#allocation19 + $0x128] sm:$0xff] }
 0xc56   :  { %v2344_v55 = vrot.slane %v2343_v23, 2  ;;  %v2350_v56 = vadd.f32 %v2349_v25, %v2348_v49  ;;  %v2574_v49 = vld [vmem:[#allocation19 + $0xa0] sm:$0xff] }
 0xc57   :  { %v2590_v25 = vld [vmem:[#allocation19 + $0x120] sm:$0xff] }
 0xc58   :  { %v2345_v57 = vadd.f32 %v2344_v55, %v2343_v23  ;;  %v2351_v58 = vrot.slane %v2350_v56, 2  ;;  %v2558_v23 = vld [vmem:[#allocation19 + $0x20] sm:$0xff]  ;;  %v2573_v55 = vld [vmem:[#allocation19 + $0x98] sm:$0xff] }
 0xc5a   :  { %v2346_v59 = vrot.slane %v2345_v57, 1  ;;  %v2352_v60 = vadd.f32 %v2351_v58, %v2350_v56  ;;  %v2557_v56 = vld [vmem:[#allocation19 + $0x18] sm:$0xff]  ;;  %v2572_v58 = vld [vmem:[#allocation19 + $0x90] sm:$0xff] }
 0xc5c   :  { %v2347_v61 = vadd.f32 %v2346_v59, %v2345_v57  ;;  %v2353_v62 = vrot.slane %v2352_v60, 1  ;;  %v2589_v57 = vld [vmem:[#allocation19 + $0x118] sm:$0xff]  ;;  %v2556_v59 = vld [vmem:[#allocation19 + $0x10] sm:$0xff] }
 0xc5e   :  { %4700 = vmatmul.mubr.f32.vlgmr.msra.gmra.mxu0 %v2347_v61  ;;  %v2354_v63 = vadd.f32 %v2353_v62, %v2352_v60  ;;  %v2588_v60 = vld [vmem:[#allocation19 + $0x110] sm:$0xff]  ;;  %v2571_v61 = vld [vmem:[#allocation19 + $0x88] sm:$0xff] }
 0xc5f   :  { %4109 = vmatpush3.msra.mxu0 %v2569_v2  ;;  %v2555_v62 = vld [vmem:[#allocation19 + $0x8] sm:$0xff]  ;;  %v2554_v2 = vld [vmem:[#allocation19] sm:$0xff] }
 0xc60   :  { %4735 = vmatmul.mubr.f32.vlgmr.msra.gmra.mxu1 %v2354_v63  ;;  %4110 = vmatprep.subr.mxu0 %v2584_v50  ;;  %v2587_v63 = vld [vmem:[#allocation19 + $0x108] sm:$0xff] }
 0xc61   :  { %4769 = vmatprep.mubr.msk.f32.mxu1 %vm5388_vm7, %v5386_v0  ;;  %4738 = vmatpush3.msra.mxu1 %v2601_v3  ;;  %v2586_v3 = vld [vmem:[#allocation19 + $0x100] sm:$0xff] }
 0xc62   :  { %4739 = vmatprep.subr.mxu1 %v5386_v0  ;;  %4111 = vmatpush3.msra.mxu0 %v2568_v17 }
 0xc63   :  { %4740 = vmatpush3.msra.mxu1 %v2600_v21  ;;  %4112 = vmatprep.subr.mxu0 %v2583_v22 }
 0xc64   :  { %4741 = vmatprep.subr.mxu1 %v5386_v0  ;;  %4113 = vmatpush3.msra.mxu0 %v2567_v24 }
 0xc65   :  { %4742 = vmatpush3.msra.mxu1 %v2599_v26  ;;  %4114 = vmatprep.subr.mxu0 %v2582_v27 }
 0xc66   :  { %4743 = vmatprep.subr.mxu1 %v5386_v0  ;;  %4115 = vmatpush3.msra.mxu0 %v2566_v28 }
 0xc67   :  { %4744 = vmatpush3.msra.mxu1 %v2598_v29  ;;  %4116 = vmatprep.subr.mxu0 %v2581_v30 }
 0xc68   :  { %4745 = vmatprep.subr.mxu1 %v5386_v0  ;;  %4117 = vmatpush3.msra.mxu0 %v2565_v31  ;;  %v2518_v31 = vld [vmem:[%s6917_s23] sm:$0x1] }
 0xc69   :  { %4746 = vmatpush3.msra.mxu1 %v2597_v32  ;;  %4118 = vmatprep.subr.mxu0 %v2580_v33 }
 0xc6a   :  { %4747 = vmatprep.subr.mxu1 %v5386_v0  ;;  %4119 = vmatpush3.msra.mxu0 %v2564_v34  ;;  %v2520_v34 = vld [vmem:[%s6918_s26] sm:$0x1] }
 0xc6b   :  { %4748 = vmatpush3.msra.mxu1 %v2596_v35  ;;  %4120 = vmatprep.subr.mxu0 %v2579_v36 }
 0xc6c   :  { %4749 = vmatprep.subr.mxu1 %v5386_v0  ;;  %4121 = vmatpush3.msra.mxu0 %v2563_v37 }
 0xc6d   :  { %4750 = vmatpush3.msra.mxu1 %v2595_v18  ;;  %4122 = vmatprep.subr.mxu0 %v2578_v38 }
 0xc6e   :  { %4751 = vmatprep.subr.mxu1 %v5386_v0  ;;  %4123 = vmatpush3.msra.mxu0 %v2562_v39 }
 0xc6f   :  { %4752 = vmatpush3.msra.mxu1 %v2594_v11  ;;  %4124 = vmatprep.subr.mxu0 %v2577_v14 }
 0xc70   :  { %4753 = vmatprep.subr.mxu1 %v5386_v0  ;;  %4125 = vmatpush3.msra.mxu0 %v2561_v42 }
 0xc71   :  { %4754 = vmatpush3.msra.mxu1 %v2593_v46  ;;  %4126 = vmatprep.subr.mxu0 %v2576_v47 }
 0xc72   :  { %4755 = vmatprep.subr.mxu1 %v5386_v0  ;;  %4127 = vmatpush3.msra.mxu0 %v2560_v48 }
 0xc73   :  { %4756 = vmatpush3.msra.mxu1 %v2592_v10  ;;  %4128 = vmatprep.subr.mxu0 %v2575_v12 }
 0xc74   :  { %4757 = vmatprep.subr.mxu1 %v5386_v0  ;;  %4129 = vmatpush3.msra.mxu0 %v2559_v53 }
 0xc75   :  { %4758 = vmatpush3.msra.mxu1 %v2591_v54  ;;  %4130 = vmatprep.subr.mxu0 %v2574_v49 }
 0xc76   :  { %4759 = vmatprep.subr.mxu1 %v5386_v0  ;;  %4131 = vmatpush3.msra.mxu0 %v2558_v23 }
 0xc77   :  { %4760 = vmatpush3.msra.mxu1 %v2590_v25  ;;  %4132 = vmatprep.subr.mxu0 %v2573_v55 }
 0xc78   :  { %4761 = vmatprep.subr.mxu1 %v5386_v0  ;;  %4133 = vmatpush3.msra.mxu0 %v2557_v56 }
 0xc79   :  { %4762 = vmatpush3.msra.mxu1 %v2589_v57  ;;  %4134 = vmatprep.subr.mxu0 %v2572_v58 }
 0xc7a   :  { %4763 = vmatprep.subr.mxu1 %v5386_v0  ;;  %4135 = vmatpush3.msra.mxu0 %v2556_v59 }
 0xc7b   :  { %4764 = vmatpush3.msra.mxu1 %v2588_v60  ;;  %4136 = vmatprep.subr.mxu0 %v2571_v61 }
 0xc7c   :  { %4765 = vmatprep.subr.mxu1 %v5386_v0  ;;  %4137 = vmatpush3.msra.mxu0 %v2555_v62  ;;  %v2925_v62 = vld [vmem:[%s6920_s4] sm:$0x1] }
 0xc7d   :  { %4766 = vmatpush3.msra.mxu1 %v2587_v63  ;;  %4138 = vmatprep.subr.mxu0 %v2570_v1 }
 0xc7e   :  { %4767 = vmatprep.subr.mxu1 %v5386_v0  ;;  %4139 = vmatpush3.msra.mxu0 %v2554_v2  ;;  %v2927_v2 = vld [vmem:[%s6921_s28] sm:$0x1] }
 0xc7f   :  { %4768 = vmatpush3.msra.mxu1 %v2586_v3  ;;  %4772 = vmatprep.subr.mxu0 %v5386_v0 }
 0xc80   :  { %4807 = vmatprep.subr.mxu1 %v5386_v0 }
 0xd1e   :  { %v2437_v50 = vpop.f32.mrf.mxu0 }
 0xd1f   :  { %v2441_v17 = vmul.f32 0.03125, %v2437_v50 }
 0xd20   :  { %v4701_v21 = vpop.f32.mrf.mxu0  ;;  %v2508_v22 = vpop.f32.mrf.mxu1 }
 0xd21   :  { %v2513_v24 = vmul.f32 %v2441_v17, %v2441_v17  ;;  %v2512_v26 = vmul.f32 0.03125, %v2508_v22 }
 0xd22   :  { %v4736_v27 = vpop.f32.mrf.mxu1 }
 0xd23   :  { %v2514_v28 = vsub.f32 %v2512_v26, %v2513_v24 }
 0xd25   :  { %v2515_v29 = vmax.f32 %v2514_v28, 0.0 }
 0xd27   :  { %v2516_v30 = vadd.f32 1e-05, %v2515_v29 }
 0xd29   :  { %5091 = vrsqrt.f32 %v2516_v30 }
 0xd36   :  { %v5092_v32 = vpop.eup %5091 }
 0xd37   :  { %v2519_v33 = vmul.f32 %v5092_v32, %v2518_v31  ;;  %v3004_v31 = vld [vmem:[#allocation21 + $0x78] sm:$0xff]  ;;  %v3003_v32 = vld [vmem:[#allocation21 + $0x70] sm:$0xff] }
 0xd39   :  { %v2521_v35 = vmul.f32 %v2519_v33, %v2441_v17  ;;  %v2526_v36 = vrot.slane %v2519_v33, %v5948_v15  ;;  %v3002_v33 = vld [vmem:[#allocation21 + $0x68] sm:$0xff] }
 0xd3b   :  { %v2522_v37 = vsub.f32 %v2520_v34, %v2521_v35  ;;  %v2527_v18 = vmul.f32 %v2526_v36, %v6526_v16  ;;  %v3001_v34 = vld [vmem:[#allocation21 + $0x60] sm:$0xff]  ;;  %v3000_v35 = vld [vmem:[#allocation21 + $0x58] sm:$0xff]  ;;  %v2999_v36 = vld [vmem:[#allocation21 + $0x50] sm:$0xff] }
 0xd3d   :  { %v2532_v38 = vrot.slane %v2522_v37, %v5948_v15  ;;  %v2998_v37 = vld [vmem:[#allocation21 + $0x48] sm:$0xff] }
 0xd3f   :  { %v2534_v39 = vadd.f32 %v2532_v38, %v2527_v18  ;;  %v2997_v18 = vld [vmem:[#allocation21 + $0x40] sm:$0xff]  ;;  %v2996_v38 = vld [vmem:[#allocation21 + $0x38] sm:$0xff] }
 0xd41   :  { %v2535_v11 = vmax.f32 %v2534_v39, 0.0  ;;  %v2995_v39 = vld [vmem:[#allocation21 + $0x30] sm:$0xff] }
 0xd43   :  { %v2538_v14 = vrot.slane %v2535_v11, 7  ;;  %2541 = vst [vmem:[#allocation7 + $0x8] sm:$0xff] %v2535_v11   ;;  %v2542_v42 = vrot.slane %v2535_v11, 1  ;;  %v2994_v11 = vld [vmem:[#allocation21 + $0x28] sm:$0xff] }
 0xd45   :  { %2540 = vst [vmem:[#allocation7] sm:$0xee] %v2538_v14   ;;  %2544 = vst [vmem:[#allocation7 + $0x10] sm:$0x77] %v2542_v42   ;;  %v2993_v14 = vld [vmem:[#allocation21 + $0x20] sm:$0xff]  ;;  %v2992_v42 = vld [vmem:[#allocation21 + $0x18] sm:$0xff] }
 0xd4a   :  { %v2552_v46 = vld [vmem:[#allocation7 + $0x8] sm:$0xff] }
 0xd4b   :  { %2673 = vmatprep.mubr.f32.mxu0 %v2552_v46  ;;  %v2991_v46 = vld [vmem:[#allocation21 + $0x10] sm:$0xff] }
 0xd4c   :  { %v2551_v47 = vld [vmem:[#allocation7] sm:$0xff]  ;;  %v2553_v48 = vld [vmem:[#allocation7 + $0x10] sm:$0xff] }
 0xd4d   :  { %2674 = vmatmul.mubr.f32.vlgmr.msra.gmra.mxu0 %v2551_v47  ;;  %4770 = vmatmul.mubr.f32.vlgmr.msra.gmra.mxu1 %v2553_v48  ;;  %v2990_v47 = vld [vmem:[#allocation21 + $0x8] sm:$0xff]  ;;  %v2989_v48 = vld [vmem:[#allocation21] sm:$0xff] }
 0xd4e   :  { %4773 = vmatpush3.msra.mxu0 %v6425_v20  ;;  %4808 = vmatpush3.msra.mxu1 %v6425_v20 }
 0xd4f   :  { %4774 = vmatprep.subr.mxu0 %v5386_v0  ;;  %4809 = vmatprep.subr.mxu1 %v5386_v0 }
 0xd50   :  { %4775 = vmatpush3.msra.mxu0 %v6428_v40  ;;  %4810 = vmatpush3.msra.mxu1 %v6428_v40 }
 0xd51   :  { %4776 = vmatprep.subr.mxu0 %v5386_v0  ;;  %4811 = vmatprep.subr.mxu1 %v5386_v0 }
 0xd52   :  { %4777 = vmatpush3.msra.mxu0 %v6432_v13  ;;  %4812 = vmatpush3.msra.mxu1 %v6432_v13  ;;  %v3808_v13 = vld [vmem:[%s6919_s14] ss:$0 sm:$0xff] }
 0xd53   :  { %4778 = vmatprep.subr.mxu0 %v5386_v0  ;;  %4813 = vmatprep.subr.mxu1 %v5386_v0 }
 0xd54   :  { %4779 = vmatpush3.msra.mxu0 %v6436_v41  ;;  %4814 = vmatpush3.msra.mxu1 %v6436_v41 }
 0xd55   :  { %4780 = vmatprep.subr.mxu0 %v5386_v0  ;;  %4815 = vmatprep.subr.mxu1 %v5386_v0 }
 0xd56   :  { %4781 = vmatpush3.msra.mxu0 %v6441_v19  ;;  %4816 = vmatpush3.msra.mxu1 %v6441_v19 }
 0xd57   :  { %4782 = vmatprep.subr.mxu0 %v5386_v0  ;;  %4817 = vmatprep.subr.mxu1 %v5386_v0 }
 0xd58   :  { %4783 = vmatpush3.msra.mxu0 %v6445_v43  ;;  %4818 = vmatpush3.msra.mxu1 %v6445_v43 }
 0xd59   :  { %4784 = vmatprep.subr.mxu0 %v5386_v0  ;;  %4819 = vmatprep.subr.mxu1 %v5386_v0 }
 0xd5a   :  { %4785 = vmatpush3.msra.mxu0 %v6449_v44  ;;  %4820 = vmatpush3.msra.mxu1 %v6449_v44 }
 0xd5b   :  { %4786 = vmatprep.subr.mxu0 %v5386_v0  ;;  %4821 = vmatprep.subr.mxu1 %v5386_v0 }
 0xd5c   :  { %4787 = vmatpush3.msra.mxu0 %v6453_v45  ;;  %4822 = vmatpush3.msra.mxu1 %v6453_v45 }
 0xd5d   :  { %4788 = vmatprep.subr.mxu0 %v5386_v0  ;;  %4823 = vmatprep.subr.mxu1 %v5386_v0 }
 0xd5e   :  { %4789 = vmatpush3.msra.mxu0 %v6478_v51  ;;  %4824 = vmatpush3.msra.mxu1 %v6478_v51 }
 0xd5f   :  { %4790 = vmatprep.subr.mxu0 %v5386_v0  ;;  %4825 = vmatprep.subr.mxu1 %v5386_v0 }
 0xd60   :  { %4791 = vmatpush3.msra.mxu0 %v6483_v52  ;;  %4826 = vmatpush3.msra.mxu1 %v6483_v52 }
 0xd61   :  { %4792 = vmatprep.subr.mxu0 %v5386_v0  ;;  %4827 = vmatprep.subr.mxu1 %v5386_v0 }
 0xd62   :  { %4793 = vmatpush3.msra.mxu0 %v6489_v4  ;;  %4828 = vmatpush3.msra.mxu1 %v6489_v4 }
 0xd63   :  { %4794 = vmatprep.subr.mxu0 %v5386_v0  ;;  %4829 = vmatprep.subr.mxu1 %v5386_v0 }
 0xd64   :  { %4795 = vmatpush3.msra.mxu0 %v6495_v5  ;;  %4830 = vmatpush3.msra.mxu1 %v6495_v5 }
 0xd65   :  { %4796 = vmatprep.subr.mxu0 %v5386_v0  ;;  %4831 = vmatprep.subr.mxu1 %v5386_v0 }
 0xd66   :  { %4797 = vmatpush3.msra.mxu0 %v6499_v6  ;;  %4832 = vmatpush3.msra.mxu1 %v6499_v6 }
 0xd67   :  { %4798 = vmatprep.subr.mxu0 %v5386_v0  ;;  %4833 = vmatprep.subr.mxu1 %v5386_v0 }
 0xd68   :  { %4799 = vmatpush3.msra.mxu0 %v6504_v7  ;;  %4834 = vmatpush3.msra.mxu1 %v6504_v7 }
 0xd69   :  { %4800 = vmatprep.subr.mxu0 %v5386_v0  ;;  %4835 = vmatprep.subr.mxu1 %v5386_v0 }
 0xd6a   :  { %4801 = vmatpush3.msra.mxu0 %v6510_v8  ;;  %4804 = vmatprep.mubr.msk.f32.mxu0 %vm5388_vm7, %v5386_v0 }
 0xd6b   :  { %4802 = vmatprep.subr.mxu0 %v5386_v0  ;;  %4836 = vmatpush3.msra.mxu1 %v6510_v8 }
 0xd6c   :  { %4803 = vmatpush3.msra.mxu0 %v6516_v9  ;;  %4837 = vmatprep.subr.mxu1 %v5386_v0 }
 0xd6d   :  { %4838 = vmatpush3.msra.mxu1 %v6516_v9  ;;  %4839 = vmatprep.mubr.msk.f32.mxu1 %vm5388_vm7, %v5386_v0 }
 0xd6e   :  { %3024 = vmatprep.subr.mxu0 %v5386_v0  ;;  %4842 = vmatprep.subr.mxu1 %v5386_v0 }
 0xe0d   :  { %v4140_v20 = vpop.f32.mrf.mxu0  ;;  %v2745_v40 = vpop.f32.mrf.mxu1 }
 0xe0f   :  { %v4141_v41 = vpop.f32.mrf.mxu0  ;;  %v4771_v19 = vpop.f32.mrf.mxu1 }
 0xe10   :  { %v4142_v43 = vadd.f32 %v4141_v41, %v4140_v20  ;;  %v3012_v20 = vld [vmem:[#allocation21 + $0xb8] sm:$0xff]  ;;  %v3009_v41 = vld [vmem:[#allocation21 + $0xa0] sm:$0xff] }
 0xe11   :  { %v3008_v19 = vld [vmem:[#allocation21 + $0x98] sm:$0xff] }
 0xe12   :  { %v2676_v44 = vadd.f32 %v4142_v43, %v3808_v13  ;;  %v3010_v13 = vld [vmem:[#allocation21 + $0xa8] sm:$0xff] }
 0xe14   :  { %v2746_v45 = vadd.f32 %v2745_v40, %v2676_v44  ;;  %v3011_v40 = vld [vmem:[#allocation21 + $0xb0] sm:$0xff] }
 0xe16   :  { %v2749_v51 = vrot.slane %v2746_v45, 4  ;;  %v2755_v52 = vmul.f32 %v2746_v45, %v2746_v45 }
 0xe18   :  { %v2750_v4 = vadd.f32 %v2749_v51, %v2746_v45  ;;  %v2756_v5 = vrot.slane %v2755_v52, 4  ;;  %v3006_v51 = vld [vmem:[#allocation21 + $0x88] sm:$0xff] }
 0xe1a   :  { %v2751_v6 = vrot.slane %v2750_v4, 2  ;;  %v2757_v7 = vadd.f32 %v2756_v5, %v2755_v52  ;;  %v3005_v52 = vld [vmem:[#allocation21 + $0x80] sm:$0xff]  ;;  %v6668_v5 = vld [vmem:[#allocation28 + $0x70] sm:$0xff] }
 0xe1c   :  { %v2752_v8 = vadd.f32 %v2751_v6, %v2750_v4  ;;  %v2758_v9 = vrot.slane %v2757_v7, 2  ;;  %v6666_v4 = vld [vmem:[#allocation28 + $0x78] sm:$0xff] }
 0xe1e   :  { %v2753_v16 = vrot.slane %v2752_v8, 1  ;;  %v2759_v10 = vadd.f32 %v2758_v9, %v2757_v7 }
 0xe20   :  { %v2754_v12 = vadd.f32 %v2753_v16, %v2752_v8  ;;  %v2760_v53 = vrot.slane %v2759_v10, 1  ;;  %v6675_v16 = vld [vmem:[#allocation28 + $0x68] sm:$0xff] }
 0xe22   :  { %4805 = vmatmul.mubr.f32.vlgmr.msra.gmra.mxu0 %v2754_v12  ;;  %v2761_v54 = vadd.f32 %v2760_v53, %v2759_v10  ;;  %v6682_v10 = vld [vmem:[#allocation28 + $0x60] sm:$0xff]  ;;  %v6686_v12 = vld [vmem:[#allocation28 + $0x58] sm:$0xff]  ;;  %v6690_v53 = vld [vmem:[#allocation28 + $0x50] sm:$0xff] }
 0xe23   :  { %3025 = vmatpush1.msra.mxu0 %v3004_v31 }
 0xe24   :  { %4840 = vmatmul.mubr.f32.vlgmr.msra.gmra.mxu1 %v2761_v54  ;;  %3026 = vmatprep.subr.mxu0 %v5386_v0  ;;  %v6694_v54 = vld [vmem:[#allocation28 + $0x48] sm:$0xff] }
 0xe25   :  { %4874 = vmatprep.mubr.msk.f32.mxu1 %vm5388_vm7, %v5386_v0  ;;  %3027 = vmatpush1.msra.mxu0 %v3003_v32 }
 0xe26   :  { %3028 = vmatprep.subr.mxu0 %v5386_v0  ;;  %4843 = vmatpush3.msra.mxu1 %v6666_v4 }
 0xe27   :  { %3029 = vmatpush1.msra.mxu0 %v3002_v33  ;;  %4844 = vmatprep.subr.mxu1 %v5386_v0 }
 0xe28   :  { %3030 = vmatprep.subr.mxu0 %v5386_v0  ;;  %4845 = vmatpush3.msra.mxu1 %v6668_v5 }
 0xe29   :  { %3031 = vmatpush1.msra.mxu0 %v3001_v34  ;;  %4846 = vmatprep.subr.mxu1 %v5386_v0 }
 0xe2a   :  { %3032 = vmatprep.subr.mxu0 %v5386_v0  ;;  %4847 = vmatpush3.msra.mxu1 %v6675_v16 }
 0xe2b   :  { %3033 = vmatpush1.msra.mxu0 %v3000_v35  ;;  %4848 = vmatprep.subr.mxu1 %v5386_v0 }
 0xe2c   :  { %3034 = vmatprep.subr.mxu0 %v5386_v0  ;;  %4849 = vmatpush3.msra.mxu1 %v6682_v10 }
 0xe2d   :  { %3035 = vmatpush1.msra.mxu0 %v2999_v36  ;;  %4850 = vmatprep.subr.mxu1 %v5386_v0 }
 0xe2e   :  { %3036 = vmatprep.subr.mxu0 %v5386_v0  ;;  %4851 = vmatpush3.msra.mxu1 %v6686_v12 }
 0xe2f   :  { %3037 = vmatpush1.msra.mxu0 %v2998_v37  ;;  %4852 = vmatprep.subr.mxu1 %v5386_v0  ;;  %v3360_v37 = vld [vmem:[#allocation22 + $0x178] sm:$0xff] }
 0xe30   :  { %3038 = vmatprep.subr.mxu0 %v5386_v0  ;;  %4853 = vmatpush3.msra.mxu1 %v6690_v53 }
 0xe31   :  { %3039 = vmatpush1.msra.mxu0 %v2997_v18  ;;  %4854 = vmatprep.subr.mxu1 %v5386_v0  ;;  %v3344_v18 = vld [vmem:[#allocation22 + $0xf8] sm:$0xff] }
 0xe32   :  { %3040 = vmatprep.subr.mxu0 %v5386_v0  ;;  %4855 = vmatpush3.msra.mxu1 %v6694_v54 }
 0xe33   :  { %3041 = vmatpush1.msra.mxu0 %v2996_v38  ;;  %4856 = vmatprep.subr.mxu1 %v5386_v0  ;;  %v3359_v38 = vld [vmem:[#allocation22 + $0x170] sm:$0xff] }
 0xe34   :  { %3042 = vmatprep.subr.mxu0 %v5386_v0 }
 0xe35   :  { %3043 = vmatpush1.msra.mxu0 %v2995_v39  ;;  %v3328_v39 = vld [vmem:[#allocation22 + $0x78] sm:$0xff] }
 0xe36   :  { %3044 = vmatprep.subr.mxu0 %v5386_v0 }
 0xe37   :  { %3045 = vmatpush1.msra.mxu0 %v2994_v11  ;;  %v3343_v11 = vld [vmem:[#allocation22 + $0xf0] sm:$0xff] }
 0xe38   :  { %3046 = vmatprep.subr.mxu0 %v5386_v0 }
 0xe39   :  { %3047 = vmatpush1.msra.mxu0 %v2993_v14  ;;  %v3358_v14 = vld [vmem:[#allocation22 + $0x168] sm:$0xff] }
 0xe3a   :  { %3048 = vmatprep.subr.mxu0 %v5386_v0 }
 0xe3b   :  { %3049 = vmatpush1.msra.mxu0 %v2992_v42  ;;  %v3327_v42 = vld [vmem:[#allocation22 + $0x70] sm:$0xff] }
 0xe3c   :  { %3050 = vmatprep.subr.mxu0 %v5386_v0 }
 0xe3d   :  { %3051 = vmatpush1.msra.mxu0 %v2991_v46  ;;  %v3342_v46 = vld [vmem:[#allocation22 + $0xe8] sm:$0xff] }
 0xe3e   :  { %3052 = vmatprep.subr.mxu0 %v5386_v0 }
 0xe3f   :  { %3053 = vmatpush1.msra.mxu0 %v2990_v47  ;;  %v3357_v47 = vld [vmem:[#allocation22 + $0x160] sm:$0xff] }
 0xe40   :  { %3054 = vmatprep.subr.mxu0 %v5386_v0 }
 0xe41   :  { %3055 = vmatpush1.msra.mxu0 %v2989_v48  ;;  %v3326_v48 = vld [vmem:[#allocation22 + $0x68] sm:$0xff] }
 0xe42   :  { %3072 = vmatprep.subr.mxu0 %v5386_v0 }
 0xe43   :  { %3073 = vmatpush2.msra.mxu0 %v3012_v20  ;;  %v3341_v20 = vld [vmem:[#allocation22 + $0xe0] sm:$0xff] }
 0xe44   :  { %3074 = vmatprep.subr.mxu0 %v5386_v0 }
 0xe45   :  { %3075 = vmatpush2.msra.mxu0 %v3011_v40  ;;  %v3356_v40 = vld [vmem:[#allocation22 + $0x158] sm:$0xff] }
 0xe46   :  { %3076 = vmatprep.subr.mxu0 %v5386_v0 }
 0xe47   :  { %3077 = vmatpush2.msra.mxu0 %v3010_v13  ;;  %v3325_v13 = vld [vmem:[#allocation22 + $0x60] sm:$0xff] }
 0xe48   :  { %3078 = vmatprep.subr.mxu0 %v5386_v0 }
 0xe49   :  { %3079 = vmatpush2.msra.mxu0 %v3009_v41  ;;  %v3340_v41 = vld [vmem:[#allocation22 + $0xd8] sm:$0xff] }
 0xe4a   :  { %3080 = vmatprep.subr.mxu0 %v5386_v0 }
 0xe4b   :  { %3081 = vmatpush2.msra.mxu0 %v3008_v19  ;;  %v3355_v19 = vld [vmem:[#allocation22 + $0x150] sm:$0xff] }
 0xe4c   :  { %3082 = vmatprep.subr.mxu0 %v5386_v0 }
 0xee2   :  { %v2844_v49 = vpop.f32.mrf.mxu0 }
 0xee3   :  { %v2848_v23 = vmul.f32 0.03125, %v2844_v49  ;;  %v6698_v49 = vld [vmem:[#allocation28 + $0x40] sm:$0xff] }
 0xee4   :  { %v4806_v25 = vpop.f32.mrf.mxu0  ;;  %v2915_v55 = vpop.f32.mrf.mxu1  ;;  %4857 = vmatpush3.msra.mxu1 %v6698_v49 }
 0xee5   :  { %v2920_v56 = vmul.f32 %v2848_v23, %v2848_v23  ;;  %v2919_v57 = vmul.f32 0.03125, %v2915_v55  ;;  %4858 = vmatprep.subr.mxu1 %v5386_v0 }
 0xee6   :  { %v4841_v58 = vpop.f32.mrf.mxu1 }
 0xee7   :  { %v2921_v59 = vsub.f32 %v2919_v57, %v2920_v56  ;;  %v6723_v56 = vld [vmem:[#allocation28 + $0x38] sm:$0xff]  ;;  %v6728_v57 = vld [vmem:[#allocation28 + $0x30] sm:$0xff]  ;;  %v6734_v58 = vld [vmem:[#allocation28 + $0x28] sm:$0xff] }
 0xee8   :  { %4859 = vmatpush3.msra.mxu1 %v6723_v56 }
 0xee9   :  { %v2922_v60 = vmax.f32 %v2921_v59, 0.0  ;;  %4860 = vmatprep.subr.mxu1 %v5386_v0  ;;  %v6740_v59 = vld [vmem:[#allocation28 + $0x20] sm:$0xff] }
 0xeea   :  { %4861 = vmatpush3.msra.mxu1 %v6728_v57 }
 0xeeb   :  { %v2923_v61 = vadd.f32 1e-05, %v2922_v60  ;;  %4862 = vmatprep.subr.mxu1 %v5386_v0  ;;  %v6746_v60 = vld [vmem:[#allocation28 + $0x18] sm:$0xff] }
 0xeec   :  { %4863 = vmatpush3.msra.mxu1 %v6734_v58 }
 0xeed   :  { %5093 = vrsqrt.f32 %v2923_v61  ;;  %4864 = vmatprep.subr.mxu1 %v5386_v0  ;;  %v6750_v61 = vld [vmem:[#allocation28 + $0x10] sm:$0xff] }
 0xeee   :  { %4865 = vmatpush3.msra.mxu1 %v6740_v59 }
 0xeef   :  { %4866 = vmatprep.subr.mxu1 %v5386_v0 }
 0xef0   :  { %4867 = vmatpush3.msra.mxu1 %v6746_v60 }
 0xef1   :  { %4868 = vmatprep.subr.mxu1 %v5386_v0 }
 0xef2   :  { %4869 = vmatpush3.msra.mxu1 %v6750_v61 }
 0xef3   :  { %4870 = vmatprep.subr.mxu1 %v5386_v0 }
 0xefa   :  { %v5094_v63 = vpop.eup %5093 }
 0xefb   :  { %v2926_v1 = vmul.f32 %v5094_v63, %v2925_v62  ;;  %v6755_v62 = vld [vmem:[#allocation28 + $0x8] sm:$0xff]  ;;  %v6761_v63 = vld [vmem:[#allocation28] sm:$0xff] }
 0xefc   :  { %4871 = vmatpush3.msra.mxu1 %v6755_v62 }
 0xefd   :  { %v2928_v3 = vmul.f32 %v2926_v1, %v2848_v23  ;;  %v2933_v50 = vrot.slane %v2926_v1, %v5948_v15  ;;  %4872 = vmatprep.subr.mxu1 %v5386_v0 }
 0xefe   :  { %4873 = vmatpush3.msra.mxu1 %v6761_v63 }
 0xeff   :  { %v2929_v17 = vsub.f32 %v2927_v2, %v2928_v3  ;;  %v2934_v21 = vmul.f32 %v2933_v50, %v2746_v45  ;;  %v3007_v45 = vld [vmem:[#allocation21 + $0x90] sm:$0xff]  ;;  %4228 = vmatprep.subr.mxu1 %v3344_v18  ;;  %v3329_v18 = vld [vmem:[#allocation22 + $0x80] sm:$0xff] }
 0xf00   :  { %3083 = vmatpush2.msra.mxu0 %v3007_v45  ;;  %v3354_v45 = vld [vmem:[#allocation22 + $0x148] sm:$0xff] }
 0xf01   :  { %v2939_v22 = vrot.slane %v2929_v17, %v5948_v15  ;;  %3084 = vmatprep.subr.mxu0 %v5386_v0 }
 0xf02   :  { %3085 = vmatpush2.msra.mxu0 %v3006_v51  ;;  %v3323_v51 = vld [vmem:[#allocation22 + $0x50] sm:$0xff] }
 0xf03   :  { %v2941_v24 = vadd.f32 %v2939_v22, %v2934_v21  ;;  %3086 = vmatprep.subr.mxu0 %v5386_v0 }
 0xf04   :  { %3087 = vmatpush2.msra.mxu0 %v3005_v52  ;;  %v3338_v52 = vld [vmem:[#allocation22 + $0xc8] sm:$0xff] }
 0xf05   :  { %v2942_v26 = vmax.f32 %v2941_v24, 0.0  ;;  %4877 = vmatprep.subr.mxu0 %v5386_v0 }
 0xf07   :  { %v2945_v27 = vrot.slane %v2942_v26, 1  ;;  %2943 = vst [vmem:[%s5605_s17] sm:$0xff] %v2942_v26  ;;  %s6922_s17 = sld [smem:[#allocation55_spill]] }
 0xf09   :  { %v2947_v28 = vmax.f32 %v2942_v26, %v2945_v27 }
 0xf0b   :  { %2949 = vrot.lane.b32.xlu1 %v2947_v28, %s5392_s18 }
 0xf0d   :  { %v3812_v1 = vld [vmem:[%s6922_s17] ss:$0 sm:$0xff] }
 0xf7d   :  { %v2950_v29 = vpop.permute.xlu1 %2949 }
 0xf7e   :  { %v6633_v30 = vmax.f32 %v2947_v28, %v2950_v29 }
 0xf80   :  { %2954 = vrot.lane.b32.xlu0 %v6633_v30, %s5392_s18 }
 0xff2   :  { %v2955_v43 = vpop.permute.xlu0 %2954 }
 0xff3   :  { %v2957_v44 = vsel %vm1241_vm11, %v6633_v30, %v2955_v43  ;;  %vm2969_vm11 = vcmask 1041920   ;;  %v3324_v43 = vld [vmem:[#allocation22 + $0x58] sm:$0xff] }
 0xff4   :  { %2958 = vst.msk [vmem:[#allocation12] sm:$0x1] %vm304_vm0, %v2957_v44 }
 0xff5   :  { %2959 = vst.msk [vmem:[#allocation12 - $0x1] sm:$0x4] %vm1250_vm15, %v2957_v44 }
 0xff6   :  { %2960 = vst.msk [vmem:[#allocation12 - $0x2] sm:$0x10] %vm1252_vm2, %v2957_v44 }
 0xff7   :  { %2961 = vst.msk [vmem:[#allocation12 - $0x3] sm:$0x40] %vm1254_vm4, %v2957_v44  ;;  %v3339_v44 = vld [vmem:[#allocation22 + $0xd0] sm:$0xff] }
 0xffe   :  { %v2962_v6 = vld [vmem:[#allocation12] sm:$0xf] }
 0xfff   :  { %2966 = vrot.lane.b32.xlu1 %v2962_v6, %s5387_s8  ;;  %v3809_v7 = vrot.slane %v2962_v6, 9  ;;  %v3810_v8 = vrot.slane %v2962_v6, 10  ;;  %v3811_v9 = vrot.slane %v2962_v6, 11  ;;  %2964 = vst.msk [vmem:[#allocation8 + $0x1] sm:$0x1] %vm304_vm0, %v2962_v6  ;;  %v3353_v6 = vld [vmem:[#allocation22 + $0x140] sm:$0xff] }
0x1001   :  { %2974 = vst.msk [vmem:[#allocation8 + $0x4] sm:$0x1] %vm304_vm0, %v3809_v7  ;;  %2986 = vst.msk [vmem:[#allocation8 + $0x6] sm:$0x1] %vm304_vm0, %v3811_v9  ;;  %v3322_v7 = vld [vmem:[#allocation22 + $0x48] sm:$0xff]  ;;  %v3352_v9 = vld [vmem:[#allocation22 + $0x138] sm:$0xff] }
0x1002   :  { %2980 = vst.msk [vmem:[#allocation8 + $0x3] sm:$0x1] %vm304_vm0, %v3810_v8  ;;  %v3337_v8 = vld [vmem:[#allocation22 + $0xc0] sm:$0xff] }
0x1071   :  { %v2967_v23 = vpop.permute.xlu1 %2966 }
0x1072   :  { %2970 = vst.msk [vmem:[#allocation8] sm:$0x3] %vm2969_vm11, %v2967_v23 }
0x1073   :  { %2982 = vst.msk [vmem:[#allocation8] sm:$0xc] %vm2981_vm12, %v2967_v23  ;;  %v3321_v23 = vld [vmem:[#allocation22 + $0x40] sm:$0xff] }
0x107a   :  { %v2988_v25 = vld [vmem:[#allocation8] sm:$0xff] }
0x107b   :  { %v3021_v55 = vcombine.high %v2988_v25, %v2988_v25 }
0x107d   :  { %3813 = vmatprep.mubr.msk.f32.mxu0 %vm316_vm3, %v3021_v55  ;;  %vm3094_vm3 = vcmask 1043456   ;;  %v3351_v55 = vld [vmem:[#allocation22 + $0x130] sm:$0xff] }
0x107e   :  { %3089 = vmatmul.mubr.f32.vlgmr.msra.gmra.mxu0 %v2988_v25  ;;  %v3336_v25 = vld [vmem:[#allocation22 + $0xb8] sm:$0xff] }
0x107f   :  { %4878 = vmatpush3.msra.mxu0 %v6666_v4  ;;  %4909 = vmatprep.mubr.msk.f32.mxu0 %vm5388_vm7, %v5386_v0 }
0x1080   :  { %4879 = vmatprep.subr.mxu0 %v5386_v0 }
0x1081   :  { %4880 = vmatpush3.msra.mxu0 %v6668_v5 }
0x1082   :  { %4881 = vmatprep.subr.mxu0 %v5386_v0 }
0x1083   :  { %4882 = vmatpush3.msra.mxu0 %v6675_v16 }
0x1084   :  { %4883 = vmatprep.subr.mxu0 %v5386_v0 }
0x1085   :  { %4884 = vmatpush3.msra.mxu0 %v6682_v10 }
0x1086   :  { %4885 = vmatprep.subr.mxu0 %v5386_v0 }
0x1087   :  { %4886 = vmatpush3.msra.mxu0 %v6686_v12 }
0x1088   :  { %4887 = vmatprep.subr.mxu0 %v5386_v0 }
0x1089   :  { %4888 = vmatpush3.msra.mxu0 %v6690_v53 }
0x108a   :  { %4889 = vmatprep.subr.mxu0 %v5386_v0 }
0x108b   :  { %4890 = vmatpush3.msra.mxu0 %v6694_v54 }
0x108c   :  { %4891 = vmatprep.subr.mxu0 %v5386_v0 }
0x108d   :  { %4892 = vmatpush3.msra.mxu0 %v6698_v49 }
0x108e   :  { %4893 = vmatprep.subr.mxu0 %v5386_v0 }
0x108f   :  { %4894 = vmatpush3.msra.mxu0 %v6723_v56 }
0x1090   :  { %4895 = vmatprep.subr.mxu0 %v5386_v0 }
0x1091   :  { %4896 = vmatpush3.msra.mxu0 %v6728_v57 }
0x1092   :  { %4897 = vmatprep.subr.mxu0 %v5386_v0 }
0x1093   :  { %4898 = vmatpush3.msra.mxu0 %v6734_v58 }
0x1094   :  { %4899 = vmatprep.subr.mxu0 %v5386_v0 }
0x1095   :  { %4900 = vmatpush3.msra.mxu0 %v6740_v59 }
0x1096   :  { %4901 = vmatprep.subr.mxu0 %v5386_v0 }
0x1097   :  { %4902 = vmatpush3.msra.mxu0 %v6746_v60 }
0x1098   :  { %4903 = vmatprep.subr.mxu0 %v5386_v0 }
0x1099   :  { %4904 = vmatpush3.msra.mxu0 %v6750_v61 }
0x109a   :  { %4905 = vmatprep.subr.mxu0 %v5386_v0 }
0x109b   :  { %4906 = vmatpush3.msra.mxu0 %v6755_v62 }
0x109c   :  { %4907 = vmatprep.subr.mxu0 %v5386_v0 }
0x109d   :  { %4908 = vmatpush3.msra.mxu0 %v6761_v63 }
0x109e   :  { %4912 = vmatprep.subr.mxu0 %v5386_v0 }
0x113e   :  { %v3090_v2 = vpop.f32.mrf.mxu0 }
0x113f   :  { %v6771_v3 = vadd.f32 %v3812_v1, %v3090_v2  ;;  %v3320_v1 = vld [vmem:[#allocation22 + $0x38] sm:$0xff]  ;;  %v3335_v2 = vld [vmem:[#allocation22 + $0xb0] sm:$0xff] }
0x1140   :  { %v3092_v50 = vpop.f32.mrf.mxu0 }
0x1141   :  { %v3095_v17 = vsel %vm3094_vm3, %v6771_v3, 0.0  ;;  %v3102_v21 = vmul.f32 %v6771_v3, %v6771_v3  ;;  %v3350_v50 = vld [vmem:[#allocation22 + $0x128] sm:$0xff] }
0x1142   :  { %v3096_v22 = vrot.slane %v3095_v17, 4 }
0x1143   :  { %v3103_v24 = vsel %vm3094_vm3, %v3102_v21, 0.0  ;;  %v3334_v21 = vld [vmem:[#allocation22 + $0xa8] sm:$0xff] }
0x1144   :  { %v3097_v26 = vadd.f32 %v3096_v22, %v3095_v17  ;;  %v3104_v27 = vrot.slane %v3103_v24, 4  ;;  %v3319_v17 = vld [vmem:[#allocation22 + $0x30] sm:$0xff]  ;;  %v3349_v22 = vld [vmem:[#allocation22 + $0x120] sm:$0xff] }
0x1146   :  { %v3098_v28 = vrot.slane %v3097_v26, 2  ;;  %v3105_v29 = vadd.f32 %v3104_v27, %v3103_v24  ;;  %v3318_v24 = vld [vmem:[#allocation22 + $0x28] sm:$0xff]  ;;  %v3348_v27 = vld [vmem:[#allocation22 + $0x118] sm:$0xff] }
0x1148   :  { %v3099_v30 = vadd.f32 %v3098_v28, %v3097_v26  ;;  %v3106_v31 = vrot.slane %v3105_v29, 2  ;;  %v3333_v26 = vld [vmem:[#allocation22 + $0xa0] sm:$0xff] }
0x1149   :  { %v3317_v28 = vld [vmem:[#allocation22 + $0x20] sm:$0xff] }
0x114a   :  { %v3100_v32 = vrot.slane %v3099_v30, 1  ;;  %v3107_v33 = vadd.f32 %v3106_v31, %v3105_v29  ;;  %v3332_v29 = vld [vmem:[#allocation22 + $0x98] sm:$0xff] }
0x114b   :  { %v3316_v31 = vld [vmem:[#allocation22 + $0x18] sm:$0xff] }
0x114c   :  { %v3101_v34 = vadd.f32 %v3100_v32, %v3099_v30  ;;  %v3108_v35 = vrot.slane %v3107_v33, 1  ;;  %v3347_v30 = vld [vmem:[#allocation22 + $0x110] sm:$0xff] }
0x114d   :  { %v3331_v32 = vld [vmem:[#allocation22 + $0x90] sm:$0xff] }
0x114e   :  { %4875 = vmatmul.mubr.f32.vlgmr.msra.gmra.mxu1 %v3101_v34  ;;  %v3109_v36 = vadd.f32 %v3108_v35, %v3107_v33  ;;  %v3346_v33 = vld [vmem:[#allocation22 + $0x108] sm:$0xff]  ;;  %v3315_v34 = vld [vmem:[#allocation22 + $0x10] sm:$0xff] }
0x114f   :  { %4229 = vmatpush3.msra.mxu1 %v3328_v39  ;;  %v3330_v35 = vld [vmem:[#allocation22 + $0x88] sm:$0xff] }
0x1150   :  { %4910 = vmatmul.mubr.f32.vlgmr.msra.gmra.mxu0 %v3109_v36  ;;  %4230 = vmatprep.subr.mxu1 %v3343_v11  ;;  %v3345_v36 = vld [vmem:[#allocation22 + $0x100] sm:$0xff] }
0x1151   :  { %4944 = vmatprep.mubr.msk.f32.mxu0 %vm5388_vm7, %v5386_v0  ;;  %4913 = vmatpush3.msra.mxu0 %v3360_v37  ;;  %v3314_v37 = vld [vmem:[#allocation22 + $0x8] sm:$0xff] }
0x1152   :  { %4914 = vmatprep.subr.mxu0 %v5386_v0  ;;  %4231 = vmatpush3.msra.mxu1 %v3327_v42 }
0x1153   :  { %4915 = vmatpush3.msra.mxu0 %v3359_v38  ;;  %4232 = vmatprep.subr.mxu1 %v3342_v46  ;;  %v3313_v38 = vld [vmem:[#allocation22] sm:$0xff] }
0x1154   :  { %4916 = vmatprep.subr.mxu0 %v5386_v0  ;;  %4233 = vmatpush3.msra.mxu1 %v3326_v48 }
0x1155   :  { %4917 = vmatpush3.msra.mxu0 %v3358_v14  ;;  %4234 = vmatprep.subr.mxu1 %v3341_v20 }
0x1156   :  { %4918 = vmatprep.subr.mxu0 %v5386_v0  ;;  %4235 = vmatpush3.msra.mxu1 %v3325_v13 }
0x1157   :  { %4919 = vmatpush3.msra.mxu0 %v3357_v47  ;;  %4236 = vmatprep.subr.mxu1 %v3340_v41  ;;  %v3273_v41 = vld [vmem:[%s6923_s1] sm:$0x1] }
0x1158   :  { %4920 = vmatprep.subr.mxu0 %v5386_v0  ;;  %4237 = vmatpush3.msra.mxu1 %v3324_v43 }
0x1159   :  { %4921 = vmatpush3.msra.mxu0 %v3356_v40  ;;  %4238 = vmatprep.subr.mxu1 %v3339_v44  ;;  %v3275_v44 = vld [vmem:[%s6924_s2] sm:$0x1] }
0x115a   :  { %4922 = vmatprep.subr.mxu0 %v5386_v0  ;;  %4239 = vmatpush3.msra.mxu1 %v3323_v51 }
0x115b   :  { %4923 = vmatpush3.msra.mxu0 %v3355_v19  ;;  %4240 = vmatprep.subr.mxu1 %v3338_v52 }
0x115c   :  { %4924 = vmatprep.subr.mxu0 %v5386_v0  ;;  %4241 = vmatpush3.msra.mxu1 %v3322_v7 }
0x115d   :  { %4925 = vmatpush3.msra.mxu0 %v3354_v45  ;;  %4242 = vmatprep.subr.mxu1 %v3337_v8 }
0x115e   :  { %4926 = vmatprep.subr.mxu0 %v5386_v0  ;;  %4243 = vmatpush3.msra.mxu1 %v3321_v23 }
0x115f   :  { %4927 = vmatpush3.msra.mxu0 %v3353_v6  ;;  %4244 = vmatprep.subr.mxu1 %v3336_v25 }
0x1160   :  { %4928 = vmatprep.subr.mxu0 %v5386_v0  ;;  %4245 = vmatpush3.msra.mxu1 %v3320_v1 }
0x1161   :  { %4929 = vmatpush3.msra.mxu0 %v3352_v9  ;;  %4246 = vmatprep.subr.mxu1 %v3335_v2 }
0x1162   :  { %4930 = vmatprep.subr.mxu0 %v5386_v0  ;;  %4247 = vmatpush3.msra.mxu1 %v3319_v17 }
0x1163   :  { %4931 = vmatpush3.msra.mxu0 %v3351_v55  ;;  %4248 = vmatprep.subr.mxu1 %v3334_v21 }
0x1164   :  { %4932 = vmatprep.subr.mxu0 %v5386_v0  ;;  %4249 = vmatpush3.msra.mxu1 %v3318_v24 }
0x1165   :  { %4933 = vmatpush3.msra.mxu0 %v3350_v50  ;;  %4250 = vmatprep.subr.mxu1 %v3333_v26 }
0x1166   :  { %4934 = vmatprep.subr.mxu0 %v5386_v0  ;;  %4251 = vmatpush3.msra.mxu1 %v3317_v28 }
0x1167   :  { %4935 = vmatpush3.msra.mxu0 %v3349_v22  ;;  %4252 = vmatprep.subr.mxu1 %v3332_v29 }
0x1168   :  { %4936 = vmatprep.subr.mxu0 %v5386_v0  ;;  %4253 = vmatpush3.msra.mxu1 %v3316_v31 }
0x1169   :  { %4937 = vmatpush3.msra.mxu0 %v3348_v27  ;;  %4254 = vmatprep.subr.mxu1 %v3331_v32 }
0x116a   :  { %4938 = vmatprep.subr.mxu0 %v5386_v0  ;;  %4255 = vmatpush3.msra.mxu1 %v3315_v34 }
0x116b   :  { %4939 = vmatpush3.msra.mxu0 %v3347_v30  ;;  %4256 = vmatprep.subr.mxu1 %v3330_v35 }
0x116c   :  { %4940 = vmatprep.subr.mxu0 %v5386_v0  ;;  %4257 = vmatpush3.msra.mxu1 %v3314_v37  ;;  %v3689_v37 = vld [vmem:[%s6926_s24] sm:$0x1] }
0x116d   :  { %4941 = vmatpush3.msra.mxu0 %v3346_v33  ;;  %4258 = vmatprep.subr.mxu1 %v3329_v18 }
0x116e   :  { %4942 = vmatprep.subr.mxu0 %v5386_v0  ;;  %4259 = vmatpush3.msra.mxu1 %v3313_v38 }
0x116f   :  { %4943 = vmatpush3.msra.mxu0 %v3345_v36  ;;  %4947 = vmatprep.subr.mxu1 %v5386_v0 }
0x1170   :  { %4982 = vmatprep.subr.mxu0 %v5386_v0 }
0x120e   :  { %v3192_v39 = vpop.f32.mrf.mxu1 }
0x120f   :  { %v3196_v11 = vmul.f32 0.125, %v3192_v39  ;;  %v3691_v39 = vld [vmem:[%s6927_s5] sm:$0x1] }
0x1210   :  { %v4876_v14 = vpop.f32.mrf.mxu1  ;;  %v3263_v42 = vpop.f32.mrf.mxu0 }
0x1211   :  { %v3268_v46 = vmul.f32 %v3196_v11, %v3196_v11  ;;  %v3267_v47 = vmul.f32 0.125, %v3263_v42 }
0x1212   :  { %v4911_v48 = vpop.f32.mrf.mxu0 }
0x1213   :  { %v3269_v20 = vsub.f32 %v3267_v47, %v3268_v46 }
0x1215   :  { %v3270_v40 = vmax.f32 %v3269_v20, 0.0 }
0x1217   :  { %v3271_v13 = vadd.f32 1e-05, %v3270_v40 }
0x1219   :  { %5095 = vrsqrt.f32 %v3271_v13 }
0x1226   :  { %v5096_v19 = vpop.eup %5095 }
0x1227   :  { %v3274_v43 = vmul.f32 %v5096_v19, %v3273_v41 }
0x1229   :  { %v3276_v45 = vmul.f32 %v3274_v43, %v3196_v11  ;;  %v3281_v51 = vrot.slane %v3274_v43, %v5948_v15 }
0x122b   :  { %v3277_v52 = vsub.f32 %v3275_v44, %v3276_v45  ;;  %v3282_v6 = vmul.f32 %v3281_v51, %v6771_v3 }
0x122d   :  { %v3287_v7 = vrot.slane %v3277_v52, %v5948_v15 }
0x122f   :  { %v3289_v8 = vadd.f32 %v3287_v7, %v3282_v6 }
0x1231   :  { %v3290_v9 = vmax.f32 %v3289_v8, 0.0 }
0x1233   :  { %3292 = vst [vmem:[#allocation9 + $0x1] sm:$0x1] %v3290_v9  ;;  %3293 = vst [vmem:[#allocation9 + $0x4] sm:$0xf] %v3290_v9   ;;  %v3814_v23 = vrot.slane %v3290_v9, 9  ;;  %v3816_v25 = vrot.slane %v3290_v9, 11 }
0x1234   :  { %v3815_v55 = vrot.slane %v3290_v9, 10 }
0x1235   :  { %3298 = vst [vmem:[#allocation9 + $0x8] sm:$0x1] %v3814_v23  ;;  %3309 = vst [vmem:[#allocation9 + $0xa] sm:$0x1] %v3816_v25 }
0x1236   :  { %3304 = vst [vmem:[#allocation9 + $0x3] sm:$0x1] %v3815_v55 }
0x123c   :  { %v3312_v1 = vld [vmem:[#allocation9 + $0x8] sm:$0xf] }
0x123d   :  { %v3311_v2 = vld [vmem:[#allocation9] sm:$0xff]  ;;  %4945 = vmatmul.mubr.f32.vlgmr.msra.gmra.mxu0 %v3312_v1 }
0x123e   :  { %v3369_v50 = vcombine.high %v3311_v2, %v3311_v2  ;;  %4983 = vmatpush3.msra.mxu0 %v6666_v4  ;;  %5014 = vmatprep.mubr.msk.f32.mxu0 %vm5388_vm7, %v5386_v0 }
0x123f   :  { %4984 = vmatprep.subr.mxu0 %v5386_v0 }
0x1240   :  { %3435 = vmatprep.mubr.f32.mxu1 %v3369_v50  ;;  %4985 = vmatpush3.msra.mxu0 %v6668_v5 }
0x1241   :  { %3436 = vmatmul.mubr.f32.vlgmr.msra.gmra.mxu1 %v3311_v2  ;;  %4986 = vmatprep.subr.mxu0 %v5386_v0 }
0x1242   :  { %4948 = vmatpush3.msra.mxu1 %v6666_v4  ;;  %4987 = vmatpush3.msra.mxu0 %v6675_v16 }
0x1243   :  { %4949 = vmatprep.subr.mxu1 %v5386_v0  ;;  %4988 = vmatprep.subr.mxu0 %v5386_v0 }
0x1244   :  { %4950 = vmatpush3.msra.mxu1 %v6668_v5  ;;  %4989 = vmatpush3.msra.mxu0 %v6682_v10 }
0x1245   :  { %4951 = vmatprep.subr.mxu1 %v5386_v0  ;;  %4990 = vmatprep.subr.mxu0 %v5386_v0 }
0x1246   :  { %4952 = vmatpush3.msra.mxu1 %v6675_v16  ;;  %4991 = vmatpush3.msra.mxu0 %v6686_v12 }
0x1247   :  { %4953 = vmatprep.subr.mxu1 %v5386_v0  ;;  %4992 = vmatprep.subr.mxu0 %v5386_v0 }
0x1248   :  { %4954 = vmatpush3.msra.mxu1 %v6682_v10  ;;  %4993 = vmatpush3.msra.mxu0 %v6690_v53  ;;  %v3817_v10 = vld [vmem:[%s6925_s6] ss:$0 sm:$0xff] }
0x1249   :  { %4955 = vmatprep.subr.mxu1 %v5386_v0  ;;  %4994 = vmatprep.subr.mxu0 %v5386_v0 }
0x124a   :  { %4956 = vmatpush3.msra.mxu1 %v6686_v12  ;;  %4995 = vmatpush3.msra.mxu0 %v6694_v54 }
0x124b   :  { %4957 = vmatprep.subr.mxu1 %v5386_v0  ;;  %4996 = vmatprep.subr.mxu0 %v5386_v0 }
0x124c   :  { %4958 = vmatpush3.msra.mxu1 %v6690_v53  ;;  %4997 = vmatpush3.msra.mxu0 %v6698_v49 }
0x124d   :  { %4959 = vmatprep.subr.mxu1 %v5386_v0  ;;  %4998 = vmatprep.subr.mxu0 %v5386_v0 }
0x124e   :  { %4960 = vmatpush3.msra.mxu1 %v6694_v54  ;;  %4999 = vmatpush3.msra.mxu0 %v6723_v56 }
0x124f   :  { %4961 = vmatprep.subr.mxu1 %v5386_v0  ;;  %5000 = vmatprep.subr.mxu0 %v5386_v0 }
0x1250   :  { %4962 = vmatpush3.msra.mxu1 %v6698_v49  ;;  %5001 = vmatpush3.msra.mxu0 %v6728_v57 }
0x1251   :  { %4963 = vmatprep.subr.mxu1 %v5386_v0  ;;  %5002 = vmatprep.subr.mxu0 %v5386_v0 }
0x1252   :  { %4964 = vmatpush3.msra.mxu1 %v6723_v56  ;;  %5003 = vmatpush3.msra.mxu0 %v6734_v58 }
0x1253   :  { %4965 = vmatprep.subr.mxu1 %v5386_v0  ;;  %5004 = vmatprep.subr.mxu0 %v5386_v0 }
0x1254   :  { %4966 = vmatpush3.msra.mxu1 %v6728_v57  ;;  %5005 = vmatpush3.msra.mxu0 %v6740_v59 }
0x1255   :  { %4967 = vmatprep.subr.mxu1 %v5386_v0  ;;  %5006 = vmatprep.subr.mxu0 %v5386_v0 }
0x1256   :  { %4968 = vmatpush3.msra.mxu1 %v6734_v58  ;;  %5007 = vmatpush3.msra.mxu0 %v6746_v60 }
0x1257   :  { %4969 = vmatprep.subr.mxu1 %v5386_v0  ;;  %5008 = vmatprep.subr.mxu0 %v5386_v0 }
0x1258   :  { %4970 = vmatpush3.msra.mxu1 %v6740_v59  ;;  %5009 = vmatpush3.msra.mxu0 %v6750_v61 }
0x1259   :  { %4971 = vmatprep.subr.mxu1 %v5386_v0  ;;  %5010 = vmatprep.subr.mxu0 %v5386_v0 }
0x125a   :  { %4972 = vmatpush3.msra.mxu1 %v6746_v60  ;;  %4979 = vmatprep.mubr.msk.f32.mxu1 %vm5388_vm7, %v5386_v0 }
0x125b   :  { %4973 = vmatprep.subr.mxu1 %v5386_v0  ;;  %5011 = vmatpush3.msra.mxu0 %v6755_v62 }
0x125c   :  { %4974 = vmatpush3.msra.mxu1 %v6750_v61  ;;  %5012 = vmatprep.subr.mxu0 %v5386_v0 }
0x125d   :  { %4975 = vmatprep.subr.mxu1 %v5386_v0  ;;  %5013 = vmatpush3.msra.mxu0 %v6761_v63 }
0x125e   :  { %4976 = vmatpush3.msra.mxu1 %v6755_v62 }
0x125f   :  { %4977 = vmatprep.subr.mxu1 %v5386_v0 }
0x1260   :  { %4978 = vmatpush3.msra.mxu1 %v6761_v63 }
0x12fd   :  { %v3507_v4 = vpop.f32.mrf.mxu0 }
0x12ff   :  { %v4946_v5 = vpop.f32.mrf.mxu0 }
0x1301   :  { %v4260_v16 = vpop.f32.mrf.mxu1 }
0x1303   :  { %v4261_v12 = vpop.f32.mrf.mxu1 }
0x1304   :  { %v4262_v53 = vadd.f32 %v4261_v12, %v4260_v16 }
0x1306   :  { %v3438_v54 = vadd.f32 %v4262_v53, %v3817_v10 }
0x1308   :  { %v3508_v49 = vadd.f32 %v3507_v4, %v3438_v54 }
0x130a   :  { %v3511_v56 = vsel %vm3094_vm3, %v3508_v49, 0.0  ;;  %v3518_v57 = vmul.f32 %v3508_v49, %v3508_v49 }
0x130b   :  { %v3512_v58 = vrot.slane %v3511_v56, 4 }
0x130c   :  { %v3519_v59 = vsel %vm3094_vm3, %v3518_v57, 0.0 }
0x130d   :  { %v3513_v60 = vadd.f32 %v3512_v58, %v3511_v56  ;;  %v3520_v61 = vrot.slane %v3519_v59, 4 }
0x130f   :  { %v3514_v62 = vrot.slane %v3513_v60, 2  ;;  %v3521_v0 = vadd.f32 %v3520_v61, %v3519_v59 }
0x1311   :  { %v3515_v3 = vadd.f32 %v3514_v62, %v3513_v60  ;;  %v3522_v63 = vrot.slane %v3521_v0, 2 }
0x1313   :  { %v3516_v17 = vrot.slane %v3515_v3, 1  ;;  %v3523_v21 = vadd.f32 %v3522_v63, %v3521_v0 }
0x1315   :  { %v3517_v22 = vadd.f32 %v3516_v17, %v3515_v3  ;;  %v3524_v24 = vrot.slane %v3523_v21, 1 }
0x1317   :  { %4980 = vmatmul.mubr.f32.vlgmr.msra.gmra.mxu1 %v3517_v22  ;;  %v3525_v26 = vadd.f32 %v3524_v24, %v3523_v21 }
0x1319   :  { %5015 = vmatmul.mubr.f32.vlgmr.msra.gmra.mxu0 %v3525_v26 }
0x13d7   :  { %v3608_v27 = vpop.f32.mrf.mxu1 }
0x13d8   :  { %v3612_v28 = vmul.f32 0.125, %v3608_v27 }
0x13d9   :  { %v4981_v29 = vpop.f32.mrf.mxu1  ;;  %v3679_v30 = vpop.f32.mrf.mxu0 }
0x13da   :  { %v3684_v31 = vmul.f32 %v3612_v28, %v3612_v28  ;;  %v3683_v32 = vmul.f32 0.125, %v3679_v30 }
0x13db   :  { %v5016_v33 = vpop.f32.mrf.mxu0 }
0x13dc   :  { %v3685_v34 = vsub.f32 %v3683_v32, %v3684_v31 }
0x13de   :  { %v3686_v35 = vmax.f32 %v3685_v34, 0.0 }
0x13e0   :  { %v3687_v36 = vadd.f32 1e-05, %v3686_v35 }
0x13e2   :  { %5097 = vrsqrt.f32 %v3687_v36 }
0x13ef   :  { %v5098_v18 = vpop.eup %5097 }
0x13f0   :  { %v3690_v38 = vmul.f32 %v5098_v18, %v3689_v37 }
0x13f2   :  { %v3692_v11 = vmul.f32 %v3690_v38, %v3612_v28  ;;  %v3697_v14 = vrot.slane %v3690_v38, %v5948_v15 }
0x13f4   :  { %v3693_v42 = vsub.f32 %v3691_v39, %v3692_v11  ;;  %v3698_v46 = vmul.f32 %v3697_v14, %v3508_v49 }
0x13f6   :  { %v3703_v47 = vrot.slane %v3693_v42, %v5948_v15 }
0x13f8   :  { %v3705_v48 = vadd.f32 %v3703_v47, %v3698_v46 }
0x13fa   :  { %v3706_v20 = vmax.f32 %v3705_v48, 0.0 }
0x13fc   :  { %v3709_v40 = vrot.slane %v3706_v20, 1  ;;  %3707 = vst [vmem:[%s5610_s3] sm:$0xf] %v3706_v20 }
0x13fe   :  { %v3711_v13 = vmax.f32 %v3706_v20, %v3709_v40 }
0x1400   :  { %3713 = vrot.lane.b32.xlu0 %v3711_v13, %s5387_s8 }
0x1472   :  { %v3714_v41 = vpop.permute.xlu0 %3713 }
0x1473   :  { %v3716_v19 = vmax.f32 %v3711_v13, %v3714_v41 }
0x1475   :  { %3717 = vst.msk [vmem:[#allocation30] sm:$0x1] %vm304_vm0, %v3716_v19 }
0x1476   :  { %3718 = vst.msk [vmem:[#allocation30 - $0x1] sm:$0x4] %vm1250_vm15, %v3716_v19 }
0x1477   :  { %5310 = shalt.err (!%p5307_p12)
}
0x1478   :  { %s6928_s3 = sld [smem:[#allocation61_spill]] }
0x147e   :  { %3728 = dma.vmem_to_hbm [thread:$0]  %s3726_s13, 32, %s6928_s3, [#allocation15]  }
0x147f   :  { %5331 = dma.done.wait [#allocation15], 32  }
0x1480   :  { %5332 = vsyncadd [#allocation15], 4294967264 }
0x1481   :  { %3748 = vsyncpa [#allocation14], 1 }
0x1482   :  { %3749 = vsyncpa [#allocation17], 1 }
0x1483   :  { %3750 = vsyncpa [#allocation20], 1 }
0x1484   :  { %3751 = vsyncpa [#allocation23], 1 }
0x1485   :  { %3752 = vsyncpa [#allocation26], 1 }
0x1486   :  { %3753 = vsyncpa [#allocation29], 1 }
0x1487   :  { %3754 = vsyncpa [#allocation15], 1 }

</bundles_post_ra>
